<compile_context>
chip_gen: v7x
topology: tpu7x:2x2x1
jax: 0.10.0
libtpu: 0.0.40
codegen_flags: <defaults>
</compile_context>

<pallas_src>
import functools

import jax
import jax.numpy as jnp
from jax.experimental import pallas as pl
from jax.experimental.pallas import tpu as pltpu

# ----------------------------- architecture constants ------------------------
CHANNELS = 48                                   # CleanUNetRicNetwork channels
ENC_CH = ((48, 64), (64, 128), (128, 256))      # encoder (cin, cout) per layer
DEC_CH = ((256, 128), (128, 64), (64, 96))      # decoder (cin, cout) per layer
DEC_RELU = (True, True, False)                  # last decoder layer: no ReLU
D_MODEL = 256                                   # bottleneck width
FF_DIM = 512                                    # bottleneck FFN hidden width
CLEANUNET_OUT = CHANNELS * 2                    # 96 = postprocess input channels
CONV_K, CONV_S, CONV_P = 4, 2, 1                # encoder/decoder resampling convs
PRE_K, PRE_P = 5, 2                             # RicbePreprocess Conv1d(2, 48, 5, p=2)
POST_K, POST_P = 5, 2                           # RicbePostprocess Conv1d(96, 1, 5, p=2)
POST_CPAD = 128                                 # postprocess channels padded to a lane tile


def _param_order():
    order = ["pre_w", "pre_b"]
    for i in range(len(ENC_CH)):
        order += [f"e{i}_w1", f"e{i}_b1", f"e{i}_w2a", f"e{i}_b2a",
                  f"e{i}_w2g", f"e{i}_b2g"]
    order += ["ln1_g", "ln1_b", "wqkv", "bqkv", "wo", "bo",
              "ln2_g", "ln2_b", "wff1", "bff1", "wff2", "bff2"]
    for i in range(len(DEC_CH)):
        order += [f"d{i}_w1a", f"d{i}_b1a", f"d{i}_w1g", f"d{i}_b1g",
                  f"d{i}_wt", f"d{i}_bt"]
    order += ["post_w", "post_b"]
    return tuple(order)


_PARAM_ORDER = _param_order()


# ----------------------------- the single fused kernel -----------------------
def _fused_kernel(*refs, seq_len):
    T = seq_len
    f32 = jnp.float32
    bf16 = jnp.bfloat16
    n_p = len(_PARAM_ORDER)

    x_ref = refs[0]                                       # (1, T+4, 2) padded input
    p = {name: refs[1 + i] for i, name in enumerate(_PARAM_ORDER)}
    o_ref = refs[1 + n_p]                                 # (1, 1, T) output
    s1, s2, s3, d1, d2, d3 = refs[2 + n_p:]               # VMEM scratch

    # ------------- helpers (everything stays in VMEM values / refs) ----------
    def store_padded(dst, val):
        """Write `val` into `dst` with one zero row of temporal padding each side."""
        z = jnp.zeros((1, val.shape[1]), f32)
        dst[...] = jnp.concatenate([z, val, z], axis=0)

    def conv_down(src, w_ref, b_ref, tout):
        """Conv1d(k=4, s=2, p=1) + bias + ReLU; src holds the padded input."""
        acc = None
        for tap in range(CONV_K):
            xt = src[pl.ds(tap, tout, CONV_S), :].astype(bf16)     # strided tap load
            term = jnp.dot(xt, w_ref[tap], preferred_element_type=f32)
            acc = term if acc is None else acc + term
        return jnp.maximum(acc + b_ref[...], 0.0)

    def glu(a_bf16, wa, ba, wg, bg):
        """Conv1d(c, 2c, 1) + GLU, with pre-split value/gate weight halves."""
        val = jnp.dot(a_bf16, wa[...], preferred_element_type=f32) + ba[...]
        gate = jnp.dot(a_bf16, wg[...], preferred_element_type=f32) + bg[...]
        return val * jax.nn.sigmoid(gate)

    def layernorm(v, g_ref, b_ref):
        mu = jnp.mean(v, axis=-1, keepdims=True)
        vc = v - mu
        var = jnp.mean(vc * vc, axis=-1, keepdims=True)
        return vc * jax.lax.rsqrt(var + 1e-5) * g_ref[...] + b_ref[...]

    def upsample(dst, g_bf16, wt_ref, bt_ref, relu):
        """ConvTranspose1d(k=4, s=2, p=1) with in-VMEM overlap-add.

        out[2m]   = g[m]·W1 + g[m-1]·W3   (even phase)
        out[2m+1] = g[m]·W2 + g[m+1]·W0   (odd phase)
        Phases are interleaved with two strided stores into `dst`."""
        tin = g_bf16.shape[0]
        cout = wt_ref.shape[2]
        taps = [jnp.dot(g_bf16, wt_ref[tap], preferred_element_type=f32)
                for tap in range(CONV_K)]
        z = jnp.zeros((1, cout), f32)
        even = taps[1] + jnp.concatenate([z, taps[3][:tin - 1, :]], axis=0) + bt_ref[...]
        odd = taps[2] + jnp.concatenate([taps[0][1:, :], z], axis=0) + bt_ref[...]
        if relu:
            even = jnp.maximum(even, 0.0)
            odd = jnp.maximum(odd, 0.0)
        dst[pl.ds(0, tin, 2), :] = even
        dst[pl.ds(1, tin, 2), :] = odd

    # ------------- RicbePreprocess: Conv1d(2, 48, k=5, p=2) + ReLU -----------
    # K = Cin*k = 10 << 128, so use the VPU broadcast-multiply path (per review)
    acc = jnp.zeros((T, CHANNELS), f32)
    for tap in range(PRE_K):
        w_tap = p["pre_w"][tap]                           # (2, 48) f32
        for ci in range(2):
            col = x_ref[0, tap:tap + T, ci:ci + 1]        # (T, 1)
            acc = acc + col * w_tap[ci:ci + 1, :]
    cur = jnp.maximum(acc + p["pre_b"][...], 0.0)         # (T, 48) f32

    # ------------- CleanUNet encoder ------------------------------------------
    skips = []
    enc_scr = (s1, s2, s3)
    t_cur = T
    for i in range(len(ENC_CH)):
        store_padded(enc_scr[i], cur)
        t_cur //= 2
        h1 = conv_down(enc_scr[i], p[f"e{i}_w1"], p[f"e{i}_b1"], t_cur)
        cur = glu(h1.astype(bf16), p[f"e{i}_w2a"], p[f"e{i}_b2a"],
                  p[f"e{i}_w2g"], p[f"e{i}_b2g"])
        skips.append(cur)                                 # f32, channels-last

    # ------------- bottleneck: self-attention + FFN (LN/residual in-kernel) ---
    # TODO(synk): real CleanUNet bottleneck is multi-head; single head here.
    D = D_MODEL
    x = cur                                               # (T/8, 256) f32
    h = layernorm(x, p["ln1_g"], p["ln1_b"]).astype(bf16)
    qkv = jnp.dot(h, p["wqkv"][...], preferred_element_type=f32) + p["bqkv"][...]
    q = qkv[:, :D].astype(bf16)
    k = qkv[:, D:2 * D].astype(bf16)
    v = qkv[:, 2 * D:].astype(bf16)
    s = jax.lax.dot_general(q, k, (((1,), (1,)), ((), ())),
                            preferred_element_type=f32) * (float(D) ** -0.5)
    s = s - jnp.max(s, axis=-1, keepdims=True)
    e = jnp.exp(s)
    p_attn = (e / jnp.sum(e, axis=-1, keepdims=True)).astype(bf16)   # exact softmax
    ctx = jnp.dot(p_attn, v, preferred_element_type=f32).astype(bf16)
    x = x + jnp.dot(ctx, p["wo"][...], preferred_element_type=f32) + p["bo"][...]

    h2 = layernorm(x, p["ln2_g"], p["ln2_b"]).astype(bf16)
    f1 = jnp.maximum(
        jnp.dot(h2, p["wff1"][...], preferred_element_type=f32) + p["bff1"][...],
        0.0).astype(bf16)
    x = x + jnp.dot(f1, p["wff2"][...], preferred_element_type=f32) + p["bff2"][...]

    # ------------- CleanUNet decoder (skip add + 1x1 GLU + ConvT overlap-add) -
    dec_scr = (d1, d2, d3)
    cur = x
    for i in range(len(DEC_CH)):
        a = (cur + skips[len(ENC_CH) - 1 - i]).astype(bf16)
        g = glu(a, p[f"d{i}_w1a"], p[f"d{i}_b1a"],
                p[f"d{i}_w1g"], p[f"d{i}_b1g"]).astype(bf16)
        upsample(dec_scr[i], g, p[f"d{i}_wt"], p[f"d{i}_bt"], DEC_RELU[i])
        cur = dec_scr[i][...]                             # (2*tin, cout) f32

    # ------------- RicbePostprocess: Conv1d(96, 1, k=5, p=2) ------------------
    # Cout = 1: VPU multiply + sublane reduce, result stored lane-dense (1, T).
    ypad = jnp.concatenate(
        [cur, jnp.zeros((T, POST_CPAD - CLEANUNET_OUT), f32)], axis=1)   # (T, 128)
    yt = ypad.T                                                          # (128, T)
    zc = jnp.zeros((POST_CPAD, POST_P), f32)
    ytp = jnp.concatenate([zc, yt, zc], axis=1)                          # (128, T+4)
    out = jnp.zeros((1, T), f32)
    for tap in range(POST_K):
        out = out + jnp.sum(ytp[:, tap:tap + T] * p["post_w"][tap],
                            axis=0, keepdims=True)
    o_ref[0] = out + p["post_b"][...]


# ----------------------------- pallas_call wrapper ----------------------------
def _const_index_map(ndim):
    zeros = (0,) * ndim
    return lambda b: zeros


def forward(params, reverb, speech):
    B, _, T = reverb.shape
    assert T % 8 == 0, "sequence length must be divisible by 8 (3 stride-2 stages)"

    # torch.cat([reverb, speech], dim=1) -> channels-last -> pre-pad for k=5 conv
    rs = jnp.concatenate([reverb, speech], axis=1).astype(jnp.float32)   # (B, 2, T)
    rs = jnp.transpose(rs, (0, 2, 1))                                    # (B, T, 2)
    rs_pad = jnp.pad(rs, ((0, 0), (PRE_P, PRE_P), (0, 0)))               # (B, T+4, 2)

    weights = [params[name] for name in _PARAM_ORDER]

    in_specs = [pl.BlockSpec((1, T + 2 * PRE_P, 2), lambda b: (b, 0, 0))]
    in_specs += [pl.BlockSpec(w.shape, _const_index_map(w.ndim)) for w in weights]

    return pl.pallas_call(
        functools.partial(_fused_kernel, seq_len=T),
        out_shape=jax.ShapeDtypeStruct((B, 1, T), jnp.float32),
        grid=(B,),
        in_specs=in_specs,
        out_specs=pl.BlockSpec((1, 1, T), lambda b: (b, 0, 0)),
        scratch_shapes=[
            pltpu.VMEM((T + 2, CHANNELS), jnp.float32),            # enc0 padded conv input
            pltpu.VMEM((T // 2 + 2, ENC_CH[0][1]), jnp.float32),   # enc1 padded conv input
            pltpu.VMEM((T // 4 + 2, ENC_CH[1][1]), jnp.float32),   # enc2 padded conv input
            pltpu.VMEM((T // 4, DEC_CH[0][1]), jnp.float32),       # dec0 overlap-add buffer
            pltpu.VMEM((T // 2, DEC_CH[1][1]), jnp.float32),       # dec1 overlap-add buffer
            pltpu.VMEM((T, DEC_CH[2][1]), jnp.float32),            # dec2 overlap-add buffer
        ],
        compiler_params=pltpu.CompilerParams(
            dimension_semantics=("parallel",),
        ),
    )(rs_pad, *weights)


# ----------------------------- parameters ------------------------------------
def init_params(key):
    """Synthetic weights, pre-packed for the kernel:
      - resampling conv weights as (K, Cin, Cout) bf16 (PyTorch Conv1d weight
        (Cout, Cin, K) -> transpose(2, 1, 0); ConvTranspose1d (Cin, Cout, K) ->
        transpose(2, 0, 1)),
      - GLU 1x1 convs pre-split into value / gate halves (F.glu convention:
        first half = value, second half = gate),
      - biases as (1, N) f32, postprocess weight lane-padded to 128 channels."""
    keys = iter(jax.random.split(key, 128))

    def nrm(shape, scale=0.05, dtype=jnp.bfloat16):
        return (jax.random.normal(next(keys), shape, jnp.float32) * scale).astype(dtype)

    def bias(n):
        return nrm((1, n), dtype=jnp.float32)

    p = {}
    # RicbePreprocess(2, 48): Conv1d(2, 48, k=5, p=2) + ReLU
    p["pre_w"] = nrm((PRE_K, 2, CHANNELS), dtype=jnp.float32)
    p["pre_b"] = bias(CHANNELS)

    # CleanUNet encoder
    for i, (cin, h) in enumerate(ENC_CH):
        p[f"e{i}_w1"] = nrm((CONV_K, cin, h))            # Conv1d(cin, h, 4, 2, 1)
        p[f"e{i}_b1"] = bias(h)
        p[f"e{i}_w2a"] = nrm((h, h))                     # Conv1d(h, 2h, 1) value half
        p[f"e{i}_b2a"] = bias(h)
        p[f"e{i}_w2g"] = nrm((h, h))                     # Conv1d(h, 2h, 1) gate half
        p[f"e{i}_b2g"] = bias(h)

    # bottleneck transformer (1 layer)
    D = D_MODEL
    p["ln1_g"] = jnp.ones((1, D), jnp.float32)
    p["ln1_b"] = jnp.zeros((1, D), jnp.float32)
    p["wqkv"] = nrm((D, 3 * D))
    p["bqkv"] = bias(3 * D)
    p["wo"] = nrm((D, D))
    p["bo"] = bias(D)
    p["ln2_g"] = jnp.ones((1, D), jnp.float32)
    p["ln2_b"] = jnp.zeros((1, D), jnp.float32)
    p["wff1"] = nrm((D, FF_DIM))
    p["bff1"] = bias(FF_DIM)
    p["wff2"] = nrm((FF_DIM, D))
    p["bff2"] = bias(D)

    # CleanUNet decoder (deepest first); last layer outputs 96 channels
    for i, (cin, cout) in enumerate(DEC_CH):
        p[f"d{i}_w1a"] = nrm((cin, cin))                 # Conv1d(cin, 2cin, 1) value half
        p[f"d{i}_b1a"] = bias(cin)
        p[f"d{i}_w1g"] = nrm((cin, cin))                 # gate half (GLU)
        p[f"d{i}_b1g"] = bias(cin)
        p[f"d{i}_wt"] = nrm((CONV_K, cin, cout))         # ConvTranspose1d(cin, cout, 4, 2, 1)
        p[f"d{i}_bt"] = bias(cout)

    # RicbePostprocess(96, 1, 1, 1, 5): Conv1d(96, 1, k=5, s=1, p=2)
    pw = nrm((POST_K, CLEANUNET_OUT, 1), dtype=jnp.float32)
    p["post_w"] = jnp.concatenate(
        [pw, jnp.zeros((POST_K, POST_CPAD - CLEANUNET_OUT, 1), jnp.float32)], axis=1)
    p["post_b"] = bias(1)
    return p


# ----------------------------- main -------------------------------------------
if __name__ == "__main__":
    key = jax.random.PRNGKey(0)
    kp, kr, ks = jax.random.split(key, 3)
    params = init_params(kp)

    B, T = 2, 64
    reverb = jax.random.normal(kr, (B, 1, T), jnp.float32)
    speech = jax.random.normal(ks, (B, 1, T), jnp.float32)

    out = jax.block_until_ready(jax.jit(forward)(params, reverb, speech))
    assert out.shape == (B, 1, T), out.shape
    assert bool(jnp.all(jnp.isfinite(out)))
    print("KERNEL_OK")
</pallas_src>

<mosaic_0001>
module attributes {stable_mosaic.version = 11 : i64} {
  func.func @_fused_kernel(%arg0: i32, %arg1: memref<1x68x2xf32, #tpu.memory_space<vmem>>, %arg2: memref<5x2x48xf32, #tpu.memory_space<vmem>>, %arg3: memref<1x48xf32, #tpu.memory_space<vmem>>, %arg4: memref<4x48x64xbf16, #tpu.memory_space<vmem>>, %arg5: memref<1x64xf32, #tpu.memory_space<vmem>>, %arg6: memref<64x64xbf16, #tpu.memory_space<vmem>>, %arg7: memref<1x64xf32, #tpu.memory_space<vmem>>, %arg8: memref<64x64xbf16, #tpu.memory_space<vmem>>, %arg9: memref<1x64xf32, #tpu.memory_space<vmem>>, %arg10: memref<4x64x128xbf16, #tpu.memory_space<vmem>>, %arg11: memref<1x128xf32, #tpu.memory_space<vmem>>, %arg12: memref<128x128xbf16, #tpu.memory_space<vmem>>, %arg13: memref<1x128xf32, #tpu.memory_space<vmem>>, %arg14: memref<128x128xbf16, #tpu.memory_space<vmem>>, %arg15: memref<1x128xf32, #tpu.memory_space<vmem>>, %arg16: memref<4x128x256xbf16, #tpu.memory_space<vmem>>, %arg17: memref<1x256xf32, #tpu.memory_space<vmem>>, %arg18: memref<256x256xbf16, #tpu.memory_space<vmem>>, %arg19: memref<1x256xf32, #tpu.memory_space<vmem>>, %arg20: memref<256x256xbf16, #tpu.memory_space<vmem>>, %arg21: memref<1x256xf32, #tpu.memory_space<vmem>>, %arg22: memref<1x256xf32, #tpu.memory_space<vmem>>, %arg23: memref<1x256xf32, #tpu.memory_space<vmem>>, %arg24: memref<256x768xbf16, #tpu.memory_space<vmem>>, %arg25: memref<1x768xf32, #tpu.memory_space<vmem>>, %arg26: memref<256x256xbf16, #tpu.memory_space<vmem>>, %arg27: memref<1x256xf32, #tpu.memory_space<vmem>>, %arg28: memref<1x256xf32, #tpu.memory_space<vmem>>, %arg29: memref<1x256xf32, #tpu.memory_space<vmem>>, %arg30: memref<256x512xbf16, #tpu.memory_space<vmem>>, %arg31: memref<1x512xf32, #tpu.memory_space<vmem>>, %arg32: memref<512x256xbf16, #tpu.memory_space<vmem>>, %arg33: memref<1x256xf32, #tpu.memory_space<vmem>>, %arg34: memref<256x256xbf16, #tpu.memory_space<vmem>>, %arg35: memref<1x256xf32, #tpu.memory_space<vmem>>, %arg36: memref<256x256xbf16, #tpu.memory_space<vmem>>, %arg37: memref<1x256xf32, #tpu.memory_space<vmem>>, %arg38: memref<4x256x128xbf16, #tpu.memory_space<vmem>>, %arg39: memref<1x128xf32, #tpu.memory_space<vmem>>, %arg40: memref<128x128xbf16, #tpu.memory_space<vmem>>, %arg41: memref<1x128xf32, #tpu.memory_space<vmem>>, %arg42: memref<128x128xbf16, #tpu.memory_space<vmem>>, %arg43: memref<1x128xf32, #tpu.memory_space<vmem>>, %arg44: memref<4x128x64xbf16, #tpu.memory_space<vmem>>, %arg45: memref<1x64xf32, #tpu.memory_space<vmem>>, %arg46: memref<64x64xbf16, #tpu.memory_space<vmem>>, %arg47: memref<1x64xf32, #tpu.memory_space<vmem>>, %arg48: memref<64x64xbf16, #tpu.memory_space<vmem>>, %arg49: memref<1x64xf32, #tpu.memory_space<vmem>>, %arg50: memref<4x64x96xbf16, #tpu.memory_space<vmem>>, %arg51: memref<1x96xf32, #tpu.memory_space<vmem>>, %arg52: memref<5x128x1xf32, #tpu.memory_space<vmem>>, %arg53: memref<1x1xf32, #tpu.memory_space<vmem>>, %arg54: memref<1x1x64xf32, #tpu.memory_space<vmem>>, %arg55: memref<66x48xf32, #tpu.memory_space<vmem>>, %arg56: memref<34x64xf32, #tpu.memory_space<vmem>>, %arg57: memref<18x128xf32, #tpu.memory_space<vmem>>, %arg58: memref<16x128xf32, #tpu.memory_space<vmem>>, %arg59: memref<32x64xf32, #tpu.memory_space<vmem>>, %arg60: memref<64x96xf32, #tpu.memory_space<vmem>>) attributes {dimension_semantics = [#tpu.dimension_semantics<parallel>], iteration_bounds = array<i64: 2>, scalar_prefetch = 0 : i64, scratch_operands = 6 : i64, tpu.core_type = #tpu.core_type<tc>, window_params = [{transform_indices = @transform_0, window_bounds = array<i64: 1, 68, 2>}, {pipeline_mode = #tpu.pipeline_mode<synchronous>, transform_indices = @transform_1, window_bounds = array<i64: 5, 2, 48>}, {pipeline_mode = #tpu.pipeline_mode<synchronous>, transform_indices = @transform_2, window_bounds = array<i64: 1, 48>}, {pipeline_mode = #tpu.pipeline_mode<synchronous>, transform_indices = @transform_3, window_bounds = array<i64: 4, 48, 64>}, {pipeline_mode = #tpu.pipeline_mode<synchronous>, transform_indices = @transform_4, window_bounds = array<i64: 1, 64>}, {pipeline_mode = #tpu.pipeline_mode<synchronous>, transform_indices = @transform_5, window_bounds = array<i64: 64, 64>}, {pipeline_mode = #tpu.pipeline_mode<synchronous>, transform_indices = @transform_6, window_bounds = array<i64: 1, 64>}, {pipeline_mode = #tpu.pipeline_mode<synchronous>, transform_indices = @transform_7, window_bounds = array<i64: 64, 64>}, {pipeline_mode = #tpu.pipeline_mode<synchronous>, transform_indices = @transform_8, window_bounds = array<i64: 1, 64>}, {pipeline_mode = #tpu.pipeline_mode<synchronous>, transform_indices = @transform_9, window_bounds = array<i64: 4, 64, 128>}, {pipeline_mode = #tpu.pipeline_mode<synchronous>, transform_indices = @transform_10, window_bounds = array<i64: 1, 128>}, {pipeline_mode = #tpu.pipeline_mode<synchronous>, transform_indices = @transform_11, window_bounds = array<i64: 128, 128>}, {pipeline_mode = #tpu.pipeline_mode<synchronous>, transform_indices = @transform_12, window_bounds = array<i64: 1, 128>}, {pipeline_mode = #tpu.pipeline_mode<synchronous>, transform_indices = @transform_13, window_bounds = array<i64: 128, 128>}, {pipeline_mode = #tpu.pipeline_mode<synchronous>, transform_indices = @transform_14, window_bounds = array<i64: 1, 128>}, {pipeline_mode = #tpu.pipeline_mode<synchronous>, transform_indices = @transform_15, window_bounds = array<i64: 4, 128, 256>}, {pipeline_mode = #tpu.pipeline_mode<synchronous>, transform_indices = @transform_16, window_bounds = array<i64: 1, 256>}, {pipeline_mode = #tpu.pipeline_mode<synchronous>, transform_indices = @transform_17, window_bounds = array<i64: 256, 256>}, {pipeline_mode = #tpu.pipeline_mode<synchronous>, transform_indices = @transform_18, window_bounds = array<i64: 1, 256>}, {pipeline_mode = #tpu.pipeline_mode<synchronous>, transform_indices = @transform_19, window_bounds = array<i64: 256, 256>}, {pipeline_mode = #tpu.pipeline_mode<synchronous>, transform_indices = @transform_20, window_bounds = array<i64: 1, 256>}, {pipeline_mode = #tpu.pipeline_mode<synchronous>, transform_indices = @transform_21, window_bounds = array<i64: 1, 256>}, {pipeline_mode = #tpu.pipeline_mode<synchronous>, transform_indices = @transform_22, window_bounds = array<i64: 1, 256>}, {pipeline_mode = #tpu.pipeline_mode<synchronous>, transform_indices = @transform_23, window_bounds = array<i64: 256, 768>}, {pipeline_mode = #tpu.pipeline_mode<synchronous>, transform_indices = @transform_24, window_bounds = array<i64: 1, 768>}, {pipeline_mode = #tpu.pipeline_mode<synchronous>, transform_indices = @transform_25, window_bounds = array<i64: 256, 256>}, {pipeline_mode = #tpu.pipeline_mode<synchronous>, transform_indices = @transform_26, window_bounds = array<i64: 1, 256>}, {pipeline_mode = #tpu.pipeline_mode<synchronous>, transform_indices = @transform_27, window_bounds = array<i64: 1, 256>}, {pipeline_mode = #tpu.pipeline_mode<synchronous>, transform_indices = @transform_28, window_bounds = array<i64: 1, 256>}, {pipeline_mode = #tpu.pipeline_mode<synchronous>, transform_indices = @transform_29, window_bounds = array<i64: 256, 512>}, {pipeline_mode = #tpu.pipeline_mode<synchronous>, transform_indices = @transform_30, window_bounds = array<i64: 1, 512>}, {pipeline_mode = #tpu.pipeline_mode<synchronous>, transform_indices = @transform_31, window_bounds = array<i64: 512, 256>}, {pipeline_mode = #tpu.pipeline_mode<synchronous>, transform_indices = @transform_32, window_bounds = array<i64: 1, 256>}, {pipeline_mode = #tpu.pipeline_mode<synchronous>, transform_indices = @transform_33, window_bounds = array<i64: 256, 256>}, {pipeline_mode = #tpu.pipeline_mode<synchronous>, transform_indices = @transform_34, window_bounds = array<i64: 1, 256>}, {pipeline_mode = #tpu.pipeline_mode<synchronous>, transform_indices = @transform_35, window_bounds = array<i64: 256, 256>}, {pipeline_mode = #tpu.pipeline_mode<synchronous>, transform_indices = @transform_36, window_bounds = array<i64: 1, 256>}, {pipeline_mode = #tpu.pipeline_mode<synchronous>, transform_indices = @transform_37, window_bounds = array<i64: 4, 256, 128>}, {pipeline_mode = #tpu.pipeline_mode<synchronous>, transform_indices = @transform_38, window_bounds = array<i64: 1, 128>}, {pipeline_mode = #tpu.pipeline_mode<synchronous>, transform_indices = @transform_39, window_bounds = array<i64: 128, 128>}, {pipeline_mode = #tpu.pipeline_mode<synchronous>, transform_indices = @transform_40, window_bounds = array<i64: 1, 128>}, {pipeline_mode = #tpu.pipeline_mode<synchronous>, transform_indices = @transform_41, window_bounds = array<i64: 128, 128>}, {pipeline_mode = #tpu.pipeline_mode<synchronous>, transform_indices = @transform_42, window_bounds = array<i64: 1, 128>}, {pipeline_mode = #tpu.pipeline_mode<synchronous>, transform_indices = @transform_43, window_bounds = array<i64: 4, 128, 64>}, {pipeline_mode = #tpu.pipeline_mode<synchronous>, transform_indices = @transform_44, window_bounds = array<i64: 1, 64>}, {pipeline_mode = #tpu.pipeline_mode<synchronous>, transform_indices = @transform_45, window_bounds = array<i64: 64, 64>}, {pipeline_mode = #tpu.pipeline_mode<synchronous>, transform_indices = @transform_46, window_bounds = array<i64: 1, 64>}, {pipeline_mode = #tpu.pipeline_mode<synchronous>, transform_indices = @transform_47, window_bounds = array<i64: 64, 64>}, {pipeline_mode = #tpu.pipeline_mode<synchronous>, transform_indices = @transform_48, window_bounds = array<i64: 1, 64>}, {pipeline_mode = #tpu.pipeline_mode<synchronous>, transform_indices = @transform_49, window_bounds = array<i64: 4, 64, 96>}, {pipeline_mode = #tpu.pipeline_mode<synchronous>, transform_indices = @transform_50, window_bounds = array<i64: 1, 96>}, {pipeline_mode = #tpu.pipeline_mode<synchronous>, transform_indices = @transform_51, window_bounds = array<i64: 5, 128, 1>}, {pipeline_mode = #tpu.pipeline_mode<synchronous>, transform_indices = @transform_52, window_bounds = array<i64: 1, 1>}, {transform_indices = @transform_53, window_bounds = array<i64: 1, 1, 64>}]} {
    %cst = arith.constant 0.000000e+00 : f32
    %0 = vector.broadcast %cst : f32 to vector<64x48xf32>
    %c0 = arith.constant 0 : index
    %c0_0 = arith.constant 0 : index
    %c0_1 = arith.constant 0 : index
    %1 = vector.load %arg2[%c0, %c0_0, %c0_1] : memref<5x2x48xf32, #tpu.memory_space<vmem>>, vector<1x2x48xf32>
    %2 = vector.shape_cast %1 : vector<1x2x48xf32> to vector<2x48xf32>
    %c0_2 = arith.constant 0 : index
    %c0_3 = arith.constant 0 : index
    %c0_4 = arith.constant 0 : index
    %3 = vector.load %arg1[%c0_2, %c0_3, %c0_4] : memref<1x68x2xf32, #tpu.memory_space<vmem>>, vector<1x64x1xf32>
    %4 = vector.shape_cast %3 : vector<1x64x1xf32> to vector<64x1xf32>
    %5 = vector.extract_strided_slice %2 {offsets = [0, 0], sizes = [1, 48], strides = [1, 1]} : vector<2x48xf32> to vector<1x48xf32>
    %6 = vector.broadcast %4 : vector<64x1xf32> to vector<64x48xf32>
    %7 = vector.broadcast %5 : vector<1x48xf32> to vector<64x48xf32>
    %8 = arith.mulf %6, %7 : vector<64x48xf32>
    %9 = arith.addf %0, %8 : vector<64x48xf32>
    %c0_5 = arith.constant 0 : index
    %c0_6 = arith.constant 0 : index
    %c1 = arith.constant 1 : index
    %10 = vector.load %arg1[%c0_5, %c0_6, %c1] : memref<1x68x2xf32, #tpu.memory_space<vmem>>, vector<1x64x1xf32>
    %11 = vector.shape_cast %10 : vector<1x64x1xf32> to vector<64x1xf32>
    %12 = vector.extract_strided_slice %2 {offsets = [1, 0], sizes = [1, 48], strides = [1, 1]} : vector<2x48xf32> to vector<1x48xf32>
    %13 = vector.broadcast %11 : vector<64x1xf32> to vector<64x48xf32>
    %14 = vector.broadcast %12 : vector<1x48xf32> to vector<64x48xf32>
    %15 = arith.mulf %13, %14 : vector<64x48xf32>
    %16 = arith.addf %9, %15 : vector<64x48xf32>
    %c1_7 = arith.constant 1 : index
    %c0_8 = arith.constant 0 : index
    %c0_9 = arith.constant 0 : index
    %17 = vector.load %arg2[%c1_7, %c0_8, %c0_9] : memref<5x2x48xf32, #tpu.memory_space<vmem>>, vector<1x2x48xf32>
    %18 = vector.shape_cast %17 : vector<1x2x48xf32> to vector<2x48xf32>
    %c0_10 = arith.constant 0 : index
    %c1_11 = arith.constant 1 : index
    %c0_12 = arith.constant 0 : index
    %19 = vector.load %arg1[%c0_10, %c1_11, %c0_12] : memref<1x68x2xf32, #tpu.memory_space<vmem>>, vector<1x64x1xf32>
    %20 = vector.shape_cast %19 : vector<1x64x1xf32> to vector<64x1xf32>
    %21 = vector.extract_strided_slice %18 {offsets = [0, 0], sizes = [1, 48], strides = [1, 1]} : vector<2x48xf32> to vector<1x48xf32>
    %22 = vector.broadcast %20 : vector<64x1xf32> to vector<64x48xf32>
    %23 = vector.broadcast %21 : vector<1x48xf32> to vector<64x48xf32>
    %24 = arith.mulf %22, %23 : vector<64x48xf32>
    %25 = arith.addf %16, %24 : vector<64x48xf32>
    %c0_13 = arith.constant 0 : index
    %c1_14 = arith.constant 1 : index
    %c1_15 = arith.constant 1 : index
    %26 = vector.load %arg1[%c0_13, %c1_14, %c1_15] : memref<1x68x2xf32, #tpu.memory_space<vmem>>, vector<1x64x1xf32>
    %27 = vector.shape_cast %26 : vector<1x64x1xf32> to vector<64x1xf32>
    %28 = vector.extract_strided_slice %18 {offsets = [1, 0], sizes = [1, 48], strides = [1, 1]} : vector<2x48xf32> to vector<1x48xf32>
    %29 = vector.broadcast %27 : vector<64x1xf32> to vector<64x48xf32>
    %30 = vector.broadcast %28 : vector<1x48xf32> to vector<64x48xf32>
    %31 = arith.mulf %29, %30 : vector<64x48xf32>
    %32 = arith.addf %25, %31 : vector<64x48xf32>
    %c2 = arith.constant 2 : index
    %c0_16 = arith.constant 0 : index
    %c0_17 = arith.constant 0 : index
    %33 = vector.load %arg2[%c2, %c0_16, %c0_17] : memref<5x2x48xf32, #tpu.memory_space<vmem>>, vector<1x2x48xf32>
    %34 = vector.shape_cast %33 : vector<1x2x48xf32> to vector<2x48xf32>
    %c0_18 = arith.constant 0 : index
    %c2_19 = arith.constant 2 : index
    %c0_20 = arith.constant 0 : index
    %35 = vector.load %arg1[%c0_18, %c2_19, %c0_20] : memref<1x68x2xf32, #tpu.memory_space<vmem>>, vector<1x64x1xf32>
    %36 = vector.shape_cast %35 : vector<1x64x1xf32> to vector<64x1xf32>
    %37 = vector.extract_strided_slice %34 {offsets = [0, 0], sizes = [1, 48], strides = [1, 1]} : vector<2x48xf32> to vector<1x48xf32>
    %38 = vector.broadcast %36 : vector<64x1xf32> to vector<64x48xf32>
    %39 = vector.broadcast %37 : vector<1x48xf32> to vector<64x48xf32>
    %40 = arith.mulf %38, %39 : vector<64x48xf32>
    %41 = arith.addf %32, %40 : vector<64x48xf32>
    %c0_21 = arith.constant 0 : index
    %c2_22 = arith.constant 2 : index
    %c1_23 = arith.constant 1 : index
    %42 = vector.load %arg1[%c0_21, %c2_22, %c1_23] : memref<1x68x2xf32, #tpu.memory_space<vmem>>, vector<1x64x1xf32>
    %43 = vector.shape_cast %42 : vector<1x64x1xf32> to vector<64x1xf32>
    %44 = vector.extract_strided_slice %34 {offsets = [1, 0], sizes = [1, 48], strides = [1, 1]} : vector<2x48xf32> to vector<1x48xf32>
    %45 = vector.broadcast %43 : vector<64x1xf32> to vector<64x48xf32>
    %46 = vector.broadcast %44 : vector<1x48xf32> to vector<64x48xf32>
    %47 = arith.mulf %45, %46 : vector<64x48xf32>
    %48 = arith.addf %41, %47 : vector<64x48xf32>
    %c3 = arith.constant 3 : index
    %c0_24 = arith.constant 0 : index
    %c0_25 = arith.constant 0 : index
    %49 = vector.load %arg2[%c3, %c0_24, %c0_25] : memref<5x2x48xf32, #tpu.memory_space<vmem>>, vector<1x2x48xf32>
    %50 = vector.shape_cast %49 : vector<1x2x48xf32> to vector<2x48xf32>
    %c0_26 = arith.constant 0 : index
    %c3_27 = arith.constant 3 : index
    %c0_28 = arith.constant 0 : index
    %51 = vector.load %arg1[%c0_26, %c3_27, %c0_28] : memref<1x68x2xf32, #tpu.memory_space<vmem>>, vector<1x64x1xf32>
    %52 = vector.shape_cast %51 : vector<1x64x1xf32> to vector<64x1xf32>
    %53 = vector.extract_strided_slice %50 {offsets = [0, 0], sizes = [1, 48], strides = [1, 1]} : vector<2x48xf32> to vector<1x48xf32>
    %54 = vector.broadcast %52 : vector<64x1xf32> to vector<64x48xf32>
    %55 = vector.broadcast %53 : vector<1x48xf32> to vector<64x48xf32>
    %56 = arith.mulf %54, %55 : vector<64x48xf32>
    %57 = arith.addf %48, %56 : vector<64x48xf32>
    %c0_29 = arith.constant 0 : index
    %c3_30 = arith.constant 3 : index
    %c1_31 = arith.constant 1 : index
    %58 = vector.load %arg1[%c0_29, %c3_30, %c1_31] : memref<1x68x2xf32, #tpu.memory_space<vmem>>, vector<1x64x1xf32>
    %59 = vector.shape_cast %58 : vector<1x64x1xf32> to vector<64x1xf32>
    %60 = vector.extract_strided_slice %50 {offsets = [1, 0], sizes = [1, 48], strides = [1, 1]} : vector<2x48xf32> to vector<1x48xf32>
    %61 = vector.broadcast %59 : vector<64x1xf32> to vector<64x48xf32>
    %62 = vector.broadcast %60 : vector<1x48xf32> to vector<64x48xf32>
    %63 = arith.mulf %61, %62 : vector<64x48xf32>
    %64 = arith.addf %57, %63 : vector<64x48xf32>
    %c4 = arith.constant 4 : index
    %c0_32 = arith.constant 0 : index
    %c0_33 = arith.constant 0 : index
    %65 = vector.load %arg2[%c4, %c0_32, %c0_33] : memref<5x2x48xf32, #tpu.memory_space<vmem>>, vector<1x2x48xf32>
    %66 = vector.shape_cast %65 : vector<1x2x48xf32> to vector<2x48xf32>
    %c0_34 = arith.constant 0 : index
    %c4_35 = arith.constant 4 : index
    %c0_36 = arith.constant 0 : index
    %67 = vector.load %arg1[%c0_34, %c4_35, %c0_36] : memref<1x68x2xf32, #tpu.memory_space<vmem>>, vector<1x64x1xf32>
    %68 = vector.shape_cast %67 : vector<1x64x1xf32> to vector<64x1xf32>
    %69 = vector.extract_strided_slice %66 {offsets = [0, 0], sizes = [1, 48], strides = [1, 1]} : vector<2x48xf32> to vector<1x48xf32>
    %70 = vector.broadcast %68 : vector<64x1xf32> to vector<64x48xf32>
    %71 = vector.broadcast %69 : vector<1x48xf32> to vector<64x48xf32>
    %72 = arith.mulf %70, %71 : vector<64x48xf32>
    %73 = arith.addf %64, %72 : vector<64x48xf32>
    %c0_37 = arith.constant 0 : index
    %c4_38 = arith.constant 4 : index
    %c1_39 = arith.constant 1 : index
    %74 = vector.load %arg1[%c0_37, %c4_38, %c1_39] : memref<1x68x2xf32, #tpu.memory_space<vmem>>, vector<1x64x1xf32>
    %75 = vector.shape_cast %74 : vector<1x64x1xf32> to vector<64x1xf32>
    %76 = vector.extract_strided_slice %66 {offsets = [1, 0], sizes = [1, 48], strides = [1, 1]} : vector<2x48xf32> to vector<1x48xf32>
    %77 = vector.broadcast %75 : vector<64x1xf32> to vector<64x48xf32>
    %78 = vector.broadcast %76 : vector<1x48xf32> to vector<64x48xf32>
    %79 = arith.mulf %77, %78 : vector<64x48xf32>
    %80 = arith.addf %73, %79 : vector<64x48xf32>
    %c0_40 = arith.constant 0 : index
    %c0_41 = arith.constant 0 : index
    %81 = vector.load %arg3[%c0_40, %c0_41] : memref<1x48xf32, #tpu.memory_space<vmem>>, vector<1x48xf32>
    %82 = vector.broadcast %81 : vector<1x48xf32> to vector<64x48xf32>
    %83 = arith.addf %80, %82 : vector<64x48xf32>
    %cst_42 = arith.constant 0.000000e+00 : f32
    %84 = vector.broadcast %cst_42 : f32 to vector<64x48xf32>
    %85 = arith.maximumf %83, %84 : vector<64x48xf32>
    %cst_43 = arith.constant 0.000000e+00 : f32
    %86 = vector.broadcast %cst_43 : f32 to vector<1x48xf32>
    %87 = tpu.concatenate %86, %85, %86 in 0 : vector<1x48xf32>, vector<64x48xf32>, vector<1x48xf32> -> vector<66x48xf32>
    %c0_44 = arith.constant 0 : index
    %c0_45 = arith.constant 0 : index
    %88 = vector.load %arg55[%c0_44, %c0_45] : memref<66x48xf32, #tpu.memory_space<vmem>>, vector<66x48xf32>
    tpu.vector_store %arg55[%c0_44, %c0_45], %87 {strides = array<i32>} : memref<66x48xf32, #tpu.memory_space<vmem>>, vector<66x48xf32>,
    %c0_46 = arith.constant 0 : index
    %c0_47 = arith.constant 0 : index
    %89 = tpu.strided_load %arg55[%c0_46, %c0_47] {strides = array<i32: 2, 1>} : memref<66x48xf32, #tpu.memory_space<vmem>>, vector<32x48xf32>
    %90 = arith.truncf %89 : vector<32x48xf32> to vector<32x48xbf16>
    %c0_48 = arith.constant 0 : index
    %c0_49 = arith.constant 0 : index
    %c0_50 = arith.constant 0 : index
    %91 = vector.load %arg4[%c0_48, %c0_49, %c0_50] : memref<4x48x64xbf16, #tpu.memory_space<vmem>>, vector<1x48x64xbf16>
    %92 = vector.shape_cast %91 : vector<1x48x64xbf16> to vector<48x64xbf16>
    %cst_51 = arith.constant dense<0.000000e+00> : vector<32x64xf32>
    %93 = tpu.matmul %90, %92, %cst_51 {dimension_numbers = #tpu.dot_dimension_numbers<[1], [0], [0], [1], [0, 0, 1, 1], [], []>} : vector<32x48xbf16>, vector<48x64xbf16>, vector<32x64xf32> -> vector<32x64xf32>
    %c1_52 = arith.constant 1 : index
    %c0_53 = arith.constant 0 : index
    %94 = tpu.strided_load %arg55[%c1_52, %c0_53] {strides = array<i32: 2, 1>} : memref<66x48xf32, #tpu.memory_space<vmem>>, vector<32x48xf32>
    %95 = arith.truncf %94 : vector<32x48xf32> to vector<32x48xbf16>
    %c1_54 = arith.constant 1 : index
    %c0_55 = arith.constant 0 : index
    %c0_56 = arith.constant 0 : index
    %96 = vector.load %arg4[%c1_54, %c0_55, %c0_56] : memref<4x48x64xbf16, #tpu.memory_space<vmem>>, vector<1x48x64xbf16>
    %97 = vector.shape_cast %96 : vector<1x48x64xbf16> to vector<48x64xbf16>
    %cst_57 = arith.constant dense<0.000000e+00> : vector<32x64xf32>
    %98 = tpu.matmul %95, %97, %cst_57 {dimension_numbers = #tpu.dot_dimension_numbers<[1], [0], [0], [1], [0, 0, 1, 1], [], []>} : vector<32x48xbf16>, vector<48x64xbf16>, vector<32x64xf32> -> vector<32x64xf32>
    %99 = arith.addf %93, %98 : vector<32x64xf32>
    %c2_58 = arith.constant 2 : index
    %c0_59 = arith.constant 0 : index
    %100 = tpu.strided_load %arg55[%c2_58, %c0_59] {strides = array<i32: 2, 1>} : memref<66x48xf32, #tpu.memory_space<vmem>>, vector<32x48xf32>
    %101 = arith.truncf %100 : vector<32x48xf32> to vector<32x48xbf16>
    %c2_60 = arith.constant 2 : index
    %c0_61 = arith.constant 0 : index
    %c0_62 = arith.constant 0 : index
    %102 = vector.load %arg4[%c2_60, %c0_61, %c0_62] : memref<4x48x64xbf16, #tpu.memory_space<vmem>>, vector<1x48x64xbf16>
    %103 = vector.shape_cast %102 : vector<1x48x64xbf16> to vector<48x64xbf16>
    %cst_63 = arith.constant dense<0.000000e+00> : vector<32x64xf32>
    %104 = tpu.matmul %101, %103, %cst_63 {dimension_numbers = #tpu.dot_dimension_numbers<[1], [0], [0], [1], [0, 0, 1, 1], [], []>} : vector<32x48xbf16>, vector<48x64xbf16>, vector<32x64xf32> -> vector<32x64xf32>
    %105 = arith.addf %99, %104 : vector<32x64xf32>
    %c3_64 = arith.constant 3 : index
    %c0_65 = arith.constant 0 : index
    %106 = tpu.strided_load %arg55[%c3_64, %c0_65] {strides = array<i32: 2, 1>} : memref<66x48xf32, #tpu.memory_space<vmem>>, vector<32x48xf32>
    %107 = arith.truncf %106 : vector<32x48xf32> to vector<32x48xbf16>
    %c3_66 = arith.constant 3 : index
    %c0_67 = arith.constant 0 : index
    %c0_68 = arith.constant 0 : index
    %108 = vector.load %arg4[%c3_66, %c0_67, %c0_68] : memref<4x48x64xbf16, #tpu.memory_space<vmem>>, vector<1x48x64xbf16>
    %109 = vector.shape_cast %108 : vector<1x48x64xbf16> to vector<48x64xbf16>
    %cst_69 = arith.constant dense<0.000000e+00> : vector<32x64xf32>
    %110 = tpu.matmul %107, %109, %cst_69 {dimension_numbers = #tpu.dot_dimension_numbers<[1], [0], [0], [1], [0, 0, 1, 1], [], []>} : vector<32x48xbf16>, vector<48x64xbf16>, vector<32x64xf32> -> vector<32x64xf32>
    %111 = arith.addf %105, %110 : vector<32x64xf32>
    %c0_70 = arith.constant 0 : index
    %c0_71 = arith.constant 0 : index
    %112 = vector.load %arg5[%c0_70, %c0_71] : memref<1x64xf32, #tpu.memory_space<vmem>>, vector<1x64xf32>
    %113 = vector.broadcast %112 : vector<1x64xf32> to vector<32x64xf32>
    %114 = arith.addf %111, %113 : vector<32x64xf32>
    %cst_72 = arith.constant 0.000000e+00 : f32
    %115 = vector.broadcast %cst_72 : f32 to vector<32x64xf32>
    %116 = arith.maximumf %114, %115 : vector<32x64xf32>
    %117 = arith.truncf %116 : vector<32x64xf32> to vector<32x64xbf16>
    %c0_73 = arith.constant 0 : index
    %c0_74 = arith.constant 0 : index
    %118 = vector.load %arg6[%c0_73, %c0_74] : memref<64x64xbf16, #tpu.memory_space<vmem>>, vector<64x64xbf16>
    %cst_75 = arith.constant dense<0.000000e+00> : vector<32x64xf32>
    %119 = tpu.matmul %117, %118, %cst_75 {dimension_numbers = #tpu.dot_dimension_numbers<[1], [0], [0], [1], [0, 0, 1, 1], [], []>} : vector<32x64xbf16>, vector<64x64xbf16>, vector<32x64xf32> -> vector<32x64xf32>
    %c0_76 = arith.constant 0 : index
    %c0_77 = arith.constant 0 : index
    %120 = vector.load %arg7[%c0_76, %c0_77] : memref<1x64xf32, #tpu.memory_space<vmem>>, vector<1x64xf32>
    %121 = vector.broadcast %120 : vector<1x64xf32> to vector<32x64xf32>
    %122 = arith.addf %119, %121 : vector<32x64xf32>
    %c0_78 = arith.constant 0 : index
    %c0_79 = arith.constant 0 : index
    %123 = vector.load %arg8[%c0_78, %c0_79] : memref<64x64xbf16, #tpu.memory_space<vmem>>, vector<64x64xbf16>
    %cst_80 = arith.constant dense<0.000000e+00> : vector<32x64xf32>
    %124 = tpu.matmul %117, %123, %cst_80 {dimension_numbers = #tpu.dot_dimension_numbers<[1], [0], [0], [1], [0, 0, 1, 1], [], []>} : vector<32x64xbf16>, vector<64x64xbf16>, vector<32x64xf32> -> vector<32x64xf32>
    %c0_81 = arith.constant 0 : index
    %c0_82 = arith.constant 0 : index
    %125 = vector.load %arg9[%c0_81, %c0_82] : memref<1x64xf32, #tpu.memory_space<vmem>>, vector<1x64xf32>
    %126 = vector.broadcast %125 : vector<1x64xf32> to vector<32x64xf32>
    %127 = arith.addf %124, %126 : vector<32x64xf32>
    %128 = arith.negf %127 : vector<32x64xf32>
    %129 = math.exp %128 : vector<32x64xf32>
    %cst_83 = arith.constant 1.000000e+00 : f32
    %130 = vector.broadcast %cst_83 : f32 to vector<32x64xf32>
    %131 = arith.addf %130, %129 : vector<32x64xf32>
    %132 = arith.divf %130, %131 : vector<32x64xf32>
    %133 = arith.mulf %122, %132 : vector<32x64xf32>
    %cst_84 = arith.constant 0.000000e+00 : f32
    %134 = vector.broadcast %cst_84 : f32 to vector<1x64xf32>
    %135 = tpu.concatenate %134, %133, %134 in 0 : vector<1x64xf32>, vector<32x64xf32>, vector<1x64xf32> -> vector<34x64xf32>
    %c0_85 = arith.constant 0 : index
    %c0_86 = arith.constant 0 : index
    %136 = vector.load %arg56[%c0_85, %c0_86] : memref<34x64xf32, #tpu.memory_space<vmem>>, vector<34x64xf32>
    tpu.vector_store %arg56[%c0_85, %c0_86], %135 {strides = array<i32>} : memref<34x64xf32, #tpu.memory_space<vmem>>, vector<34x64xf32>,
    %c0_87 = arith.constant 0 : index
    %c0_88 = arith.constant 0 : index
    %137 = tpu.strided_load %arg56[%c0_87, %c0_88] {strides = array<i32: 2, 1>} : memref<34x64xf32, #tpu.memory_space<vmem>>, vector<16x64xf32>
    %138 = arith.truncf %137 : vector<16x64xf32> to vector<16x64xbf16>
    %c0_89 = arith.constant 0 : index
    %c0_90 = arith.constant 0 : index
    %c0_91 = arith.constant 0 : index
    %139 = vector.load %arg10[%c0_89, %c0_90, %c0_91] : memref<4x64x128xbf16, #tpu.memory_space<vmem>>, vector<1x64x128xbf16>
    %140 = vector.shape_cast %139 : vector<1x64x128xbf16> to vector<64x128xbf16>
    %cst_92 = arith.constant dense<0.000000e+00> : vector<16x128xf32>
    %141 = tpu.matmul %138, %140, %cst_92 {dimension_numbers = #tpu.dot_dimension_numbers<[1], [0], [0], [1], [0, 0, 1, 1], [], []>} : vector<16x64xbf16>, vector<64x128xbf16>, vector<16x128xf32> -> vector<16x128xf32>
    %c1_93 = arith.constant 1 : index
    %c0_94 = arith.constant 0 : index
    %142 = tpu.strided_load %arg56[%c1_93, %c0_94] {strides = array<i32: 2, 1>} : memref<34x64xf32, #tpu.memory_space<vmem>>, vector<16x64xf32>
    %143 = arith.truncf %142 : vector<16x64xf32> to vector<16x64xbf16>
    %c1_95 = arith.constant 1 : index
    %c0_96 = arith.constant 0 : index
    %c0_97 = arith.constant 0 : index
    %144 = vector.load %arg10[%c1_95, %c0_96, %c0_97] : memref<4x64x128xbf16, #tpu.memory_space<vmem>>, vector<1x64x128xbf16>
    %145 = vector.shape_cast %144 : vector<1x64x128xbf16> to vector<64x128xbf16>
    %cst_98 = arith.constant dense<0.000000e+00> : vector<16x128xf32>
    %146 = tpu.matmul %143, %145, %cst_98 {dimension_numbers = #tpu.dot_dimension_numbers<[1], [0], [0], [1], [0, 0, 1, 1], [], []>} : vector<16x64xbf16>, vector<64x128xbf16>, vector<16x128xf32> -> vector<16x128xf32>
    %147 = arith.addf %141, %146 : vector<16x128xf32>
    %c2_99 = arith.constant 2 : index
    %c0_100 = arith.constant 0 : index
    %148 = tpu.strided_load %arg56[%c2_99, %c0_100] {strides = array<i32: 2, 1>} : memref<34x64xf32, #tpu.memory_space<vmem>>, vector<16x64xf32>
    %149 = arith.truncf %148 : vector<16x64xf32> to vector<16x64xbf16>
    %c2_101 = arith.constant 2 : index
    %c0_102 = arith.constant 0 : index
    %c0_103 = arith.constant 0 : index
    %150 = vector.load %arg10[%c2_101, %c0_102, %c0_103] : memref<4x64x128xbf16, #tpu.memory_space<vmem>>, vector<1x64x128xbf16>
    %151 = vector.shape_cast %150 : vector<1x64x128xbf16> to vector<64x128xbf16>
    %cst_104 = arith.constant dense<0.000000e+00> : vector<16x128xf32>
    %152 = tpu.matmul %149, %151, %cst_104 {dimension_numbers = #tpu.dot_dimension_numbers<[1], [0], [0], [1], [0, 0, 1, 1], [], []>} : vector<16x64xbf16>, vector<64x128xbf16>, vector<16x128xf32> -> vector<16x128xf32>
    %153 = arith.addf %147, %152 : vector<16x128xf32>
    %c3_105 = arith.constant 3 : index
    %c0_106 = arith.constant 0 : index
    %154 = tpu.strided_load %arg56[%c3_105, %c0_106] {strides = array<i32: 2, 1>} : memref<34x64xf32, #tpu.memory_space<vmem>>, vector<16x64xf32>
    %155 = arith.truncf %154 : vector<16x64xf32> to vector<16x64xbf16>
    %c3_107 = arith.constant 3 : index
    %c0_108 = arith.constant 0 : index
    %c0_109 = arith.constant 0 : index
    %156 = vector.load %arg10[%c3_107, %c0_108, %c0_109] : memref<4x64x128xbf16, #tpu.memory_space<vmem>>, vector<1x64x128xbf16>
    %157 = vector.shape_cast %156 : vector<1x64x128xbf16> to vector<64x128xbf16>
    %cst_110 = arith.constant dense<0.000000e+00> : vector<16x128xf32>
    %158 = tpu.matmul %155, %157, %cst_110 {dimension_numbers = #tpu.dot_dimension_numbers<[1], [0], [0], [1], [0, 0, 1, 1], [], []>} : vector<16x64xbf16>, vector<64x128xbf16>, vector<16x128xf32> -> vector<16x128xf32>
    %159 = arith.addf %153, %158 : vector<16x128xf32>
    %c0_111 = arith.constant 0 : index
    %c0_112 = arith.constant 0 : index
    %160 = vector.load %arg11[%c0_111, %c0_112] : memref<1x128xf32, #tpu.memory_space<vmem>>, vector<1x128xf32>
    %161 = vector.broadcast %160 : vector<1x128xf32> to vector<16x128xf32>
    %162 = arith.addf %159, %161 : vector<16x128xf32>
    %cst_113 = arith.constant 0.000000e+00 : f32
    %163 = vector.broadcast %cst_113 : f32 to vector<16x128xf32>
    %164 = arith.maximumf %162, %163 : vector<16x128xf32>
    %165 = arith.truncf %164 : vector<16x128xf32> to vector<16x128xbf16>
    %c0_114 = arith.constant 0 : index
    %c0_115 = arith.constant 0 : index
    %166 = vector.load %arg12[%c0_114, %c0_115] : memref<128x128xbf16, #tpu.memory_space<vmem>>, vector<128x128xbf16>
    %cst_116 = arith.constant dense<0.000000e+00> : vector<16x128xf32>
    %167 = tpu.matmul %165, %166, %cst_116 {dimension_numbers = #tpu.dot_dimension_numbers<[1], [0], [0], [1], [0, 0, 1, 1], [], []>} : vector<16x128xbf16>, vector<128x128xbf16>, vector<16x128xf32> -> vector<16x128xf32>
    %c0_117 = arith.constant 0 : index
    %c0_118 = arith.constant 0 : index
    %168 = vector.load %arg13[%c0_117, %c0_118] : memref<1x128xf32, #tpu.memory_space<vmem>>, vector<1x128xf32>
    %169 = vector.broadcast %168 : vector<1x128xf32> to vector<16x128xf32>
    %170 = arith.addf %167, %169 : vector<16x128xf32>
    %c0_119 = arith.constant 0 : index
    %c0_120 = arith.constant 0 : index
    %171 = vector.load %arg14[%c0_119, %c0_120] : memref<128x128xbf16, #tpu.memory_space<vmem>>, vector<128x128xbf16>
    %cst_121 = arith.constant dense<0.000000e+00> : vector<16x128xf32>
    %172 = tpu.matmul %165, %171, %cst_121 {dimension_numbers = #tpu.dot_dimension_numbers<[1], [0], [0], [1], [0, 0, 1, 1], [], []>} : vector<16x128xbf16>, vector<128x128xbf16>, vector<16x128xf32> -> vector<16x128xf32>
    %c0_122 = arith.constant 0 : index
    %c0_123 = arith.constant 0 : index
    %173 = vector.load %arg15[%c0_122, %c0_123] : memref<1x128xf32, #tpu.memory_space<vmem>>, vector<1x128xf32>
    %174 = vector.broadcast %173 : vector<1x128xf32> to vector<16x128xf32>
    %175 = arith.addf %172, %174 : vector<16x128xf32>
    %176 = arith.negf %175 : vector<16x128xf32>
    %177 = math.exp %176 : vector<16x128xf32>
    %cst_124 = arith.constant 1.000000e+00 : f32
    %178 = vector.broadcast %cst_124 : f32 to vector<16x128xf32>
    %179 = arith.addf %178, %177 : vector<16x128xf32>
    %180 = arith.divf %178, %179 : vector<16x128xf32>
    %181 = arith.mulf %170, %180 : vector<16x128xf32>
    %cst_125 = arith.constant 0.000000e+00 : f32
    %182 = vector.broadcast %cst_125 : f32 to vector<1x128xf32>
    %183 = tpu.concatenate %182, %181, %182 in 0 : vector<1x128xf32>, vector<16x128xf32>, vector<1x128xf32> -> vector<18x128xf32>
    %c0_126 = arith.constant 0 : index
    %c0_127 = arith.constant 0 : index
    %184 = vector.load %arg57[%c0_126, %c0_127] : memref<18x128xf32, #tpu.memory_space<vmem>>, vector<18x128xf32>
    tpu.vector_store %arg57[%c0_126, %c0_127], %183 {strides = array<i32>} : memref<18x128xf32, #tpu.memory_space<vmem>>, vector<18x128xf32>,
    %c0_128 = arith.constant 0 : index
    %c0_129 = arith.constant 0 : index
    %185 = tpu.strided_load %arg57[%c0_128, %c0_129] {strides = array<i32: 2, 1>} : memref<18x128xf32, #tpu.memory_space<vmem>>, vector<8x128xf32>
    %186 = arith.truncf %185 : vector<8x128xf32> to vector<8x128xbf16>
    %c0_130 = arith.constant 0 : index
    %c0_131 = arith.constant 0 : index
    %c0_132 = arith.constant 0 : index
    %187 = vector.load %arg16[%c0_130, %c0_131, %c0_132] : memref<4x128x256xbf16, #tpu.memory_space<vmem>>, vector<1x128x256xbf16>
    %188 = vector.shape_cast %187 : vector<1x128x256xbf16> to vector<128x256xbf16>
    %cst_133 = arith.constant dense<0.000000e+00> : vector<8x256xf32>
    %189 = tpu.matmul %186, %188, %cst_133 {dimension_numbers = #tpu.dot_dimension_numbers<[1], [0], [0], [1], [0, 0, 1, 1], [], []>} : vector<8x128xbf16>, vector<128x256xbf16>, vector<8x256xf32> -> vector<8x256xf32>
    %c1_134 = arith.constant 1 : index
    %c0_135 = arith.constant 0 : index
    %190 = tpu.strided_load %arg57[%c1_134, %c0_135] {strides = array<i32: 2, 1>} : memref<18x128xf32, #tpu.memory_space<vmem>>, vector<8x128xf32>
    %191 = arith.truncf %190 : vector<8x128xf32> to vector<8x128xbf16>
    %c1_136 = arith.constant 1 : index
    %c0_137 = arith.constant 0 : index
    %c0_138 = arith.constant 0 : index
    %192 = vector.load %arg16[%c1_136, %c0_137, %c0_138] : memref<4x128x256xbf16, #tpu.memory_space<vmem>>, vector<1x128x256xbf16>
    %193 = vector.shape_cast %192 : vector<1x128x256xbf16> to vector<128x256xbf16>
    %cst_139 = arith.constant dense<0.000000e+00> : vector<8x256xf32>
    %194 = tpu.matmul %191, %193, %cst_139 {dimension_numbers = #tpu.dot_dimension_numbers<[1], [0], [0], [1], [0, 0, 1, 1], [], []>} : vector<8x128xbf16>, vector<128x256xbf16>, vector<8x256xf32> -> vector<8x256xf32>
    %195 = arith.addf %189, %194 : vector<8x256xf32>
    %c2_140 = arith.constant 2 : index
    %c0_141 = arith.constant 0 : index
    %196 = tpu.strided_load %arg57[%c2_140, %c0_141] {strides = array<i32: 2, 1>} : memref<18x128xf32, #tpu.memory_space<vmem>>, vector<8x128xf32>
    %197 = arith.truncf %196 : vector<8x128xf32> to vector<8x128xbf16>
    %c2_142 = arith.constant 2 : index
    %c0_143 = arith.constant 0 : index
    %c0_144 = arith.constant 0 : index
    %198 = vector.load %arg16[%c2_142, %c0_143, %c0_144] : memref<4x128x256xbf16, #tpu.memory_space<vmem>>, vector<1x128x256xbf16>
    %199 = vector.shape_cast %198 : vector<1x128x256xbf16> to vector<128x256xbf16>
    %cst_145 = arith.constant dense<0.000000e+00> : vector<8x256xf32>
    %200 = tpu.matmul %197, %199, %cst_145 {dimension_numbers = #tpu.dot_dimension_numbers<[1], [0], [0], [1], [0, 0, 1, 1], [], []>} : vector<8x128xbf16>, vector<128x256xbf16>, vector<8x256xf32> -> vector<8x256xf32>
    %201 = arith.addf %195, %200 : vector<8x256xf32>
    %c3_146 = arith.constant 3 : index
    %c0_147 = arith.constant 0 : index
    %202 = tpu.strided_load %arg57[%c3_146, %c0_147] {strides = array<i32: 2, 1>} : memref<18x128xf32, #tpu.memory_space<vmem>>, vector<8x128xf32>
    %203 = arith.truncf %202 : vector<8x128xf32> to vector<8x128xbf16>
    %c3_148 = arith.constant 3 : index
    %c0_149 = arith.constant 0 : index
    %c0_150 = arith.constant 0 : index
    %204 = vector.load %arg16[%c3_148, %c0_149, %c0_150] : memref<4x128x256xbf16, #tpu.memory_space<vmem>>, vector<1x128x256xbf16>
    %205 = vector.shape_cast %204 : vector<1x128x256xbf16> to vector<128x256xbf16>
    %cst_151 = arith.constant dense<0.000000e+00> : vector<8x256xf32>
    %206 = tpu.matmul %203, %205, %cst_151 {dimension_numbers = #tpu.dot_dimension_numbers<[1], [0], [0], [1], [0, 0, 1, 1], [], []>} : vector<8x128xbf16>, vector<128x256xbf16>, vector<8x256xf32> -> vector<8x256xf32>
    %207 = arith.addf %201, %206 : vector<8x256xf32>
    %c0_152 = arith.constant 0 : index
    %c0_153 = arith.constant 0 : index
    %208 = vector.load %arg17[%c0_152, %c0_153] : memref<1x256xf32, #tpu.memory_space<vmem>>, vector<1x256xf32>
    %209 = vector.broadcast %208 : vector<1x256xf32> to vector<8x256xf32>
    %210 = arith.addf %207, %209 : vector<8x256xf32>
    %cst_154 = arith.constant 0.000000e+00 : f32
    %211 = vector.broadcast %cst_154 : f32 to vector<8x256xf32>
    %212 = arith.maximumf %210, %211 : vector<8x256xf32>
    %213 = arith.truncf %212 : vector<8x256xf32> to vector<8x256xbf16>
    %c0_155 = arith.constant 0 : index
    %c0_156 = arith.constant 0 : index
    %214 = vector.load %arg18[%c0_155, %c0_156] : memref<256x256xbf16, #tpu.memory_space<vmem>>, vector<256x256xbf16>
    %cst_157 = arith.constant dense<0.000000e+00> : vector<8x256xf32>
    %215 = tpu.matmul %213, %214, %cst_157 {dimension_numbers = #tpu.dot_dimension_numbers<[1], [0], [0], [1], [0, 0, 1, 1], [], []>} : vector<8x256xbf16>, vector<256x256xbf16>, vector<8x256xf32> -> vector<8x256xf32>
    %c0_158 = arith.constant 0 : index
    %c0_159 = arith.constant 0 : index
    %216 = vector.load %arg19[%c0_158, %c0_159] : memref<1x256xf32, #tpu.memory_space<vmem>>, vector<1x256xf32>
    %217 = vector.broadcast %216 : vector<1x256xf32> to vector<8x256xf32>
    %218 = arith.addf %215, %217 : vector<8x256xf32>
    %c0_160 = arith.constant 0 : index
    %c0_161 = arith.constant 0 : index
    %219 = vector.load %arg20[%c0_160, %c0_161] : memref<256x256xbf16, #tpu.memory_space<vmem>>, vector<256x256xbf16>
    %cst_162 = arith.constant dense<0.000000e+00> : vector<8x256xf32>
    %220 = tpu.matmul %213, %219, %cst_162 {dimension_numbers = #tpu.dot_dimension_numbers<[1], [0], [0], [1], [0, 0, 1, 1], [], []>} : vector<8x256xbf16>, vector<256x256xbf16>, vector<8x256xf32> -> vector<8x256xf32>
    %c0_163 = arith.constant 0 : index
    %c0_164 = arith.constant 0 : index
    %221 = vector.load %arg21[%c0_163, %c0_164] : memref<1x256xf32, #tpu.memory_space<vmem>>, vector<1x256xf32>
    %222 = vector.broadcast %221 : vector<1x256xf32> to vector<8x256xf32>
    %223 = arith.addf %220, %222 : vector<8x256xf32>
    %224 = arith.negf %223 : vector<8x256xf32>
    %225 = math.exp %224 : vector<8x256xf32>
    %cst_165 = arith.constant 1.000000e+00 : f32
    %226 = vector.broadcast %cst_165 : f32 to vector<8x256xf32>
    %227 = arith.addf %226, %225 : vector<8x256xf32>
    %228 = arith.divf %226, %227 : vector<8x256xf32>
    %229 = arith.mulf %218, %228 : vector<8x256xf32>
    %cst_166 = arith.constant dense<0.000000e+00> : vector<8xf32>
    %230 = vector.multi_reduction <add>, %229, %cst_166 [1] : vector<8x256xf32> to vector<8xf32>
    %231 = vector.shape_cast %230 : vector<8xf32> to vector<8x1xf32>
    %cst_167 = arith.constant 2.560000e+02 : f32
    %232 = vector.broadcast %cst_167 : f32 to vector<8x1xf32>
    %233 = arith.divf %231, %232 : vector<8x1xf32>
    %234 = vector.broadcast %233 : vector<8x1xf32> to vector<8x256xf32>
    %235 = arith.subf %229, %234 : vector<8x256xf32>
    %236 = arith.mulf %235, %235 : vector<8x256xf32>
    %cst_168 = arith.constant dense<0.000000e+00> : vector<8xf32>
    %237 = vector.multi_reduction <add>, %236, %cst_168 [1] : vector<8x256xf32> to vector<8xf32>
    %238 = vector.shape_cast %237 : vector<8xf32> to vector<8x1xf32>
    %cst_169 = arith.constant 2.560000e+02 : f32
    %239 = vector.broadcast %cst_169 : f32 to vector<8x1xf32>
    %240 = arith.divf %238, %239 : vector<8x1xf32>
    %cst_170 = arith.constant 9.99999974E-6 : f32
    %241 = vector.broadcast %cst_170 : f32 to vector<8x1xf32>
    %242 = arith.addf %240, %241 : vector<8x1xf32>
    %243 = math.rsqrt %242 : vector<8x1xf32>
    %244 = vector.broadcast %243 : vector<8x1xf32> to vector<8x256xf32>
    %245 = arith.mulf %235, %244 : vector<8x256xf32>
    %c0_171 = arith.constant 0 : index
    %c0_172 = arith.constant 0 : index
    %246 = vector.load %arg22[%c0_171, %c0_172] : memref<1x256xf32, #tpu.memory_space<vmem>>, vector<1x256xf32>
    %247 = vector.broadcast %246 : vector<1x256xf32> to vector<8x256xf32>
    %248 = arith.mulf %245, %247 : vector<8x256xf32>
    %c0_173 = arith.constant 0 : index
    %c0_174 = arith.constant 0 : index
    %249 = vector.load %arg23[%c0_173, %c0_174] : memref<1x256xf32, #tpu.memory_space<vmem>>, vector<1x256xf32>
    %250 = vector.broadcast %249 : vector<1x256xf32> to vector<8x256xf32>
    %251 = arith.addf %248, %250 : vector<8x256xf32>
    %252 = arith.truncf %251 : vector<8x256xf32> to vector<8x256xbf16>
    %c0_175 = arith.constant 0 : index
    %c0_176 = arith.constant 0 : index
    %253 = vector.load %arg24[%c0_175, %c0_176] : memref<256x768xbf16, #tpu.memory_space<vmem>>, vector<256x768xbf16>
    %cst_177 = arith.constant dense<0.000000e+00> : vector<8x768xf32>
    %254 = tpu.matmul %252, %253, %cst_177 {dimension_numbers = #tpu.dot_dimension_numbers<[1], [0], [0], [1], [0, 0, 1, 1], [], []>} : vector<8x256xbf16>, vector<256x768xbf16>, vector<8x768xf32> -> vector<8x768xf32>
    %c0_178 = arith.constant 0 : index
    %c0_179 = arith.constant 0 : index
    %255 = vector.load %arg25[%c0_178, %c0_179] : memref<1x768xf32, #tpu.memory_space<vmem>>, vector<1x768xf32>
    %256 = vector.broadcast %255 : vector<1x768xf32> to vector<8x768xf32>
    %257 = arith.addf %254, %256 : vector<8x768xf32>
    %258 = vector.extract_strided_slice %257 {offsets = [0, 0], sizes = [8, 256], strides = [1, 1]} : vector<8x768xf32> to vector<8x256xf32>
    %259 = arith.truncf %258 : vector<8x256xf32> to vector<8x256xbf16>
    %260 = vector.extract_strided_slice %257 {offsets = [0, 256], sizes = [8, 256], strides = [1, 1]} : vector<8x768xf32> to vector<8x256xf32>
    %261 = arith.truncf %260 : vector<8x256xf32> to vector<8x256xbf16>
    %262 = vector.extract_strided_slice %257 {offsets = [0, 512], sizes = [8, 256], strides = [1, 1]} : vector<8x768xf32> to vector<8x256xf32>
    %263 = arith.truncf %262 : vector<8x256xf32> to vector<8x256xbf16>
    %cst_180 = arith.constant dense<0.000000e+00> : vector<8x8xf32>
    %264 = tpu.matmul %259, %261, %cst_180 {dimension_numbers = #tpu.dot_dimension_numbers<[1], [1], [0], [0], [0, 0, 1, 0], [], []>} : vector<8x256xbf16>, vector<8x256xbf16>, vector<8x8xf32> -> vector<8x8xf32>
    %cst_181 = arith.constant 6.250000e-02 : f32
    %265 = vector.broadcast %cst_181 : f32 to vector<8x8xf32>
    %266 = arith.mulf %264, %265 : vector<8x8xf32>
    %cst_182 = arith.constant dense<0xFF800000> : vector<8xf32>
    %267 = vector.multi_reduction <maximumf>, %266, %cst_182 [1] : vector<8x8xf32> to vector<8xf32>
    %268 = vector.shape_cast %267 : vector<8xf32> to vector<8x1xf32>
    %269 = vector.broadcast %268 : vector<8x1xf32> to vector<8x8xf32>
    %270 = arith.subf %266, %269 : vector<8x8xf32>
    %271 = math.exp %270 : vector<8x8xf32>
    %cst_183 = arith.constant dense<0.000000e+00> : vector<8xf32>
    %272 = vector.multi_reduction <add>, %271, %cst_183 [1] : vector<8x8xf32> to vector<8xf32>
    %273 = vector.shape_cast %272 : vector<8xf32> to vector<8x1xf32>
    %274 = vector.broadcast %273 : vector<8x1xf32> to vector<8x8xf32>
    %275 = arith.divf %271, %274 : vector<8x8xf32>
    %276 = arith.truncf %275 : vector<8x8xf32> to vector<8x8xbf16>
    %cst_184 = arith.constant dense<0.000000e+00> : vector<8x256xf32>
    %277 = tpu.matmul %276, %263, %cst_184 {dimension_numbers = #tpu.dot_dimension_numbers<[1], [0], [0], [1], [0, 0, 1, 1], [], []>} : vector<8x8xbf16>, vector<8x256xbf16>, vector<8x256xf32> -> vector<8x256xf32>
    %278 = arith.truncf %277 : vector<8x256xf32> to vector<8x256xbf16>
    %c0_185 = arith.constant 0 : index
    %c0_186 = arith.constant 0 : index
    %279 = vector.load %arg26[%c0_185, %c0_186] : memref<256x256xbf16, #tpu.memory_space<vmem>>, vector<256x256xbf16>
    %cst_187 = arith.constant dense<0.000000e+00> : vector<8x256xf32>
    %280 = tpu.matmul %278, %279, %cst_187 {dimension_numbers = #tpu.dot_dimension_numbers<[1], [0], [0], [1], [0, 0, 1, 1], [], []>} : vector<8x256xbf16>, vector<256x256xbf16>, vector<8x256xf32> -> vector<8x256xf32>
    %281 = arith.addf %229, %280 : vector<8x256xf32>
    %c0_188 = arith.constant 0 : index
    %c0_189 = arith.constant 0 : index
    %282 = vector.load %arg27[%c0_188, %c0_189] : memref<1x256xf32, #tpu.memory_space<vmem>>, vector<1x256xf32>
    %283 = vector.broadcast %282 : vector<1x256xf32> to vector<8x256xf32>
    %284 = arith.addf %281, %283 : vector<8x256xf32>
    %cst_190 = arith.constant dense<0.000000e+00> : vector<8xf32>
    %285 = vector.multi_reduction <add>, %284, %cst_190 [1] : vector<8x256xf32> to vector<8xf32>
    %286 = vector.shape_cast %285 : vector<8xf32> to vector<8x1xf32>
    %cst_191 = arith.constant 2.560000e+02 : f32
    %287 = vector.broadcast %cst_191 : f32 to vector<8x1xf32>
    %288 = arith.divf %286, %287 : vector<8x1xf32>
    %289 = vector.broadcast %288 : vector<8x1xf32> to vector<8x256xf32>
    %290 = arith.subf %284, %289 : vector<8x256xf32>
    %291 = arith.mulf %290, %290 : vector<8x256xf32>
    %cst_192 = arith.constant dense<0.000000e+00> : vector<8xf32>
    %292 = vector.multi_reduction <add>, %291, %cst_192 [1] : vector<8x256xf32> to vector<8xf32>
    %293 = vector.shape_cast %292 : vector<8xf32> to vector<8x1xf32>
    %cst_193 = arith.constant 2.560000e+02 : f32
    %294 = vector.broadcast %cst_193 : f32 to vector<8x1xf32>
    %295 = arith.divf %293, %294 : vector<8x1xf32>
    %cst_194 = arith.constant 9.99999974E-6 : f32
    %296 = vector.broadcast %cst_194 : f32 to vector<8x1xf32>
    %297 = arith.addf %295, %296 : vector<8x1xf32>
    %298 = math.rsqrt %297 : vector<8x1xf32>
    %299 = vector.broadcast %298 : vector<8x1xf32> to vector<8x256xf32>
    %300 = arith.mulf %290, %299 : vector<8x256xf32>
    %c0_195 = arith.constant 0 : index
    %c0_196 = arith.constant 0 : index
    %301 = vector.load %arg28[%c0_195, %c0_196] : memref<1x256xf32, #tpu.memory_space<vmem>>, vector<1x256xf32>
    %302 = vector.broadcast %301 : vector<1x256xf32> to vector<8x256xf32>
    %303 = arith.mulf %300, %302 : vector<8x256xf32>
    %c0_197 = arith.constant 0 : index
    %c0_198 = arith.constant 0 : index
    %304 = vector.load %arg29[%c0_197, %c0_198] : memref<1x256xf32, #tpu.memory_space<vmem>>, vector<1x256xf32>
    %305 = vector.broadcast %304 : vector<1x256xf32> to vector<8x256xf32>
    %306 = arith.addf %303, %305 : vector<8x256xf32>
    %307 = arith.truncf %306 : vector<8x256xf32> to vector<8x256xbf16>
    %c0_199 = arith.constant 0 : index
    %c0_200 = arith.constant 0 : index
    %308 = vector.load %arg30[%c0_199, %c0_200] : memref<256x512xbf16, #tpu.memory_space<vmem>>, vector<256x512xbf16>
    %cst_201 = arith.constant dense<0.000000e+00> : vector<8x512xf32>
    %309 = tpu.matmul %307, %308, %cst_201 {dimension_numbers = #tpu.dot_dimension_numbers<[1], [0], [0], [1], [0, 0, 1, 1], [], []>} : vector<8x256xbf16>, vector<256x512xbf16>, vector<8x512xf32> -> vector<8x512xf32>
    %c0_202 = arith.constant 0 : index
    %c0_203 = arith.constant 0 : index
    %310 = vector.load %arg31[%c0_202, %c0_203] : memref<1x512xf32, #tpu.memory_space<vmem>>, vector<1x512xf32>
    %311 = vector.broadcast %310 : vector<1x512xf32> to vector<8x512xf32>
    %312 = arith.addf %309, %311 : vector<8x512xf32>
    %cst_204 = arith.constant 0.000000e+00 : f32
    %313 = vector.broadcast %cst_204 : f32 to vector<8x512xf32>
    %314 = arith.maximumf %312, %313 : vector<8x512xf32>
    %315 = arith.truncf %314 : vector<8x512xf32> to vector<8x512xbf16>
    %c0_205 = arith.constant 0 : index
    %c0_206 = arith.constant 0 : index
    %316 = vector.load %arg32[%c0_205, %c0_206] : memref<512x256xbf16, #tpu.memory_space<vmem>>, vector<512x256xbf16>
    %cst_207 = arith.constant dense<0.000000e+00> : vector<8x256xf32>
    %317 = tpu.matmul %315, %316, %cst_207 {dimension_numbers = #tpu.dot_dimension_numbers<[1], [0], [0], [1], [0, 0, 1, 1], [], []>} : vector<8x512xbf16>, vector<512x256xbf16>, vector<8x256xf32> -> vector<8x256xf32>
    %318 = arith.addf %284, %317 : vector<8x256xf32>
    %c0_208 = arith.constant 0 : index
    %c0_209 = arith.constant 0 : index
    %319 = vector.load %arg33[%c0_208, %c0_209] : memref<1x256xf32, #tpu.memory_space<vmem>>, vector<1x256xf32>
    %320 = vector.broadcast %319 : vector<1x256xf32> to vector<8x256xf32>
    %321 = arith.addf %318, %320 : vector<8x256xf32>
    %322 = arith.addf %321, %229 : vector<8x256xf32>
    %323 = arith.truncf %322 : vector<8x256xf32> to vector<8x256xbf16>
    %c0_210 = arith.constant 0 : index
    %c0_211 = arith.constant 0 : index
    %324 = vector.load %arg34[%c0_210, %c0_211] : memref<256x256xbf16, #tpu.memory_space<vmem>>, vector<256x256xbf16>
    %cst_212 = arith.constant dense<0.000000e+00> : vector<8x256xf32>
    %325 = tpu.matmul %323, %324, %cst_212 {dimension_numbers = #tpu.dot_dimension_numbers<[1], [0], [0], [1], [0, 0, 1, 1], [], []>} : vector<8x256xbf16>, vector<256x256xbf16>, vector<8x256xf32> -> vector<8x256xf32>
    %c0_213 = arith.constant 0 : index
    %c0_214 = arith.constant 0 : index
    %326 = vector.load %arg35[%c0_213, %c0_214] : memref<1x256xf32, #tpu.memory_space<vmem>>, vector<1x256xf32>
    %327 = vector.broadcast %326 : vector<1x256xf32> to vector<8x256xf32>
    %328 = arith.addf %325, %327 : vector<8x256xf32>
    %c0_215 = arith.constant 0 : index
    %c0_216 = arith.constant 0 : index
    %329 = vector.load %arg36[%c0_215, %c0_216] : memref<256x256xbf16, #tpu.memory_space<vmem>>, vector<256x256xbf16>
    %cst_217 = arith.constant dense<0.000000e+00> : vector<8x256xf32>
    %330 = tpu.matmul %323, %329, %cst_217 {dimension_numbers = #tpu.dot_dimension_numbers<[1], [0], [0], [1], [0, 0, 1, 1], [], []>} : vector<8x256xbf16>, vector<256x256xbf16>, vector<8x256xf32> -> vector<8x256xf32>
    %c0_218 = arith.constant 0 : index
    %c0_219 = arith.constant 0 : index
    %331 = vector.load %arg37[%c0_218, %c0_219] : memref<1x256xf32, #tpu.memory_space<vmem>>, vector<1x256xf32>
    %332 = vector.broadcast %331 : vector<1x256xf32> to vector<8x256xf32>
    %333 = arith.addf %330, %332 : vector<8x256xf32>
    %334 = arith.negf %333 : vector<8x256xf32>
    %335 = math.exp %334 : vector<8x256xf32>
    %cst_220 = arith.constant 1.000000e+00 : f32
    %336 = vector.broadcast %cst_220 : f32 to vector<8x256xf32>
    %337 = arith.addf %336, %335 : vector<8x256xf32>
    %338 = arith.divf %336, %337 : vector<8x256xf32>
    %339 = arith.mulf %328, %338 : vector<8x256xf32>
    %340 = arith.truncf %339 : vector<8x256xf32> to vector<8x256xbf16>
    %c0_221 = arith.constant 0 : index
    %c0_222 = arith.constant 0 : index
    %c0_223 = arith.constant 0 : index
    %341 = vector.load %arg38[%c0_221, %c0_222, %c0_223] : memref<4x256x128xbf16, #tpu.memory_space<vmem>>, vector<1x256x128xbf16>
    %342 = vector.shape_cast %341 : vector<1x256x128xbf16> to vector<256x128xbf16>
    %cst_224 = arith.constant dense<0.000000e+00> : vector<8x128xf32>
    %343 = tpu.matmul %340, %342, %cst_224 {dimension_numbers = #tpu.dot_dimension_numbers<[1], [0], [0], [1], [0, 0, 1, 1], [], []>} : vector<8x256xbf16>, vector<256x128xbf16>, vector<8x128xf32> -> vector<8x128xf32>
    %c1_225 = arith.constant 1 : index
    %c0_226 = arith.constant 0 : index
    %c0_227 = arith.constant 0 : index
    %344 = vector.load %arg38[%c1_225, %c0_226, %c0_227] : memref<4x256x128xbf16, #tpu.memory_space<vmem>>, vector<1x256x128xbf16>
    %345 = vector.shape_cast %344 : vector<1x256x128xbf16> to vector<256x128xbf16>
    %cst_228 = arith.constant dense<0.000000e+00> : vector<8x128xf32>
    %346 = tpu.matmul %340, %345, %cst_228 {dimension_numbers = #tpu.dot_dimension_numbers<[1], [0], [0], [1], [0, 0, 1, 1], [], []>} : vector<8x256xbf16>, vector<256x128xbf16>, vector<8x128xf32> -> vector<8x128xf32>
    %c2_229 = arith.constant 2 : index
    %c0_230 = arith.constant 0 : index
    %c0_231 = arith.constant 0 : index
    %347 = vector.load %arg38[%c2_229, %c0_230, %c0_231] : memref<4x256x128xbf16, #tpu.memory_space<vmem>>, vector<1x256x128xbf16>
    %348 = vector.shape_cast %347 : vector<1x256x128xbf16> to vector<256x128xbf16>
    %cst_232 = arith.constant dense<0.000000e+00> : vector<8x128xf32>
    %349 = tpu.matmul %340, %348, %cst_232 {dimension_numbers = #tpu.dot_dimension_numbers<[1], [0], [0], [1], [0, 0, 1, 1], [], []>} : vector<8x256xbf16>, vector<256x128xbf16>, vector<8x128xf32> -> vector<8x128xf32>
    %c3_233 = arith.constant 3 : index
    %c0_234 = arith.constant 0 : index
    %c0_235 = arith.constant 0 : index
    %350 = vector.load %arg38[%c3_233, %c0_234, %c0_235] : memref<4x256x128xbf16, #tpu.memory_space<vmem>>, vector<1x256x128xbf16>
    %351 = vector.shape_cast %350 : vector<1x256x128xbf16> to vector<256x128xbf16>
    %cst_236 = arith.constant dense<0.000000e+00> : vector<8x128xf32>
    %352 = tpu.matmul %340, %351, %cst_236 {dimension_numbers = #tpu.dot_dimension_numbers<[1], [0], [0], [1], [0, 0, 1, 1], [], []>} : vector<8x256xbf16>, vector<256x128xbf16>, vector<8x128xf32> -> vector<8x128xf32>
    %cst_237 = arith.constant 0.000000e+00 : f32
    %353 = vector.broadcast %cst_237 : f32 to vector<1x128xf32>
    %354 = vector.extract_strided_slice %352 {offsets = [0, 0], sizes = [7, 128], strides = [1, 1]} : vector<8x128xf32> to vector<7x128xf32>
    %355 = tpu.concatenate %353, %354 in 0 : vector<1x128xf32>, vector<7x128xf32> -> vector<8x128xf32>
    %356 = arith.addf %346, %355 : vector<8x128xf32>
    %c0_238 = arith.constant 0 : index
    %c0_239 = arith.constant 0 : index
    %357 = vector.load %arg39[%c0_238, %c0_239] : memref<1x128xf32, #tpu.memory_space<vmem>>, vector<1x128xf32>
    %358 = vector.broadcast %357 : vector<1x128xf32> to vector<8x128xf32>
    %359 = arith.addf %356, %358 : vector<8x128xf32>
    %360 = vector.extract_strided_slice %343 {offsets = [1, 0], sizes = [7, 128], strides = [1, 1]} : vector<8x128xf32> to vector<7x128xf32>
    %361 = tpu.concatenate %360, %353 in 0 : vector<7x128xf32>, vector<1x128xf32> -> vector<8x128xf32>
    %362 = arith.addf %349, %361 : vector<8x128xf32>
    %c0_240 = arith.constant 0 : index
    %c0_241 = arith.constant 0 : index
    %363 = vector.load %arg39[%c0_240, %c0_241] : memref<1x128xf32, #tpu.memory_space<vmem>>, vector<1x128xf32>
    %364 = vector.broadcast %363 : vector<1x128xf32> to vector<8x128xf32>
    %365 = arith.addf %362, %364 : vector<8x128xf32>
    %cst_242 = arith.constant 0.000000e+00 : f32
    %366 = vector.broadcast %cst_242 : f32 to vector<8x128xf32>
    %367 = arith.maximumf %359, %366 : vector<8x128xf32>
    %cst_243 = arith.constant 0.000000e+00 : f32
    %368 = vector.broadcast %cst_243 : f32 to vector<8x128xf32>
    %369 = arith.maximumf %365, %368 : vector<8x128xf32>
    %c0_244 = arith.constant 0 : index
    %c0_245 = arith.constant 0 : index
    %370 = tpu.strided_load %arg58[%c0_244, %c0_245] {strides = array<i32: 2, 1>} : memref<16x128xf32, #tpu.memory_space<vmem>>, vector<8x128xf32>
    tpu.strided_store %arg58[%c0_244, %c0_245], %367 {strides = array<i32: 2, 1>} : memref<16x128xf32, #tpu.memory_space<vmem>>, vector<8x128xf32>
    %c1_246 = arith.constant 1 : index
    %c0_247 = arith.constant 0 : index
    %371 = tpu.strided_load %arg58[%c1_246, %c0_247] {strides = array<i32: 2, 1>} : memref<16x128xf32, #tpu.memory_space<vmem>>, vector<8x128xf32>
    tpu.strided_store %arg58[%c1_246, %c0_247], %369 {strides = array<i32: 2, 1>} : memref<16x128xf32, #tpu.memory_space<vmem>>, vector<8x128xf32>
    %c0_248 = arith.constant 0 : index
    %c0_249 = arith.constant 0 : index
    %372 = vector.load %arg58[%c0_248, %c0_249] : memref<16x128xf32, #tpu.memory_space<vmem>>, vector<16x128xf32>
    %373 = arith.addf %372, %181 : vector<16x128xf32>
    %374 = arith.truncf %373 : vector<16x128xf32> to vector<16x128xbf16>
    %c0_250 = arith.constant 0 : index
    %c0_251 = arith.constant 0 : index
    %375 = vector.load %arg40[%c0_250, %c0_251] : memref<128x128xbf16, #tpu.memory_space<vmem>>, vector<128x128xbf16>
    %cst_252 = arith.constant dense<0.000000e+00> : vector<16x128xf32>
    %376 = tpu.matmul %374, %375, %cst_252 {dimension_numbers = #tpu.dot_dimension_numbers<[1], [0], [0], [1], [0, 0, 1, 1], [], []>} : vector<16x128xbf16>, vector<128x128xbf16>, vector<16x128xf32> -> vector<16x128xf32>
    %c0_253 = arith.constant 0 : index
    %c0_254 = arith.constant 0 : index
    %377 = vector.load %arg41[%c0_253, %c0_254] : memref<1x128xf32, #tpu.memory_space<vmem>>, vector<1x128xf32>
    %378 = vector.broadcast %377 : vector<1x128xf32> to vector<16x128xf32>
    %379 = arith.addf %376, %378 : vector<16x128xf32>
    %c0_255 = arith.constant 0 : index
    %c0_256 = arith.constant 0 : index
    %380 = vector.load %arg42[%c0_255, %c0_256] : memref<128x128xbf16, #tpu.memory_space<vmem>>, vector<128x128xbf16>
    %cst_257 = arith.constant dense<0.000000e+00> : vector<16x128xf32>
    %381 = tpu.matmul %374, %380, %cst_257 {dimension_numbers = #tpu.dot_dimension_numbers<[1], [0], [0], [1], [0, 0, 1, 1], [], []>} : vector<16x128xbf16>, vector<128x128xbf16>, vector<16x128xf32> -> vector<16x128xf32>
    %c0_258 = arith.constant 0 : index
    %c0_259 = arith.constant 0 : index
    %382 = vector.load %arg43[%c0_258, %c0_259] : memref<1x128xf32, #tpu.memory_space<vmem>>, vector<1x128xf32>
    %383 = vector.broadcast %382 : vector<1x128xf32> to vector<16x128xf32>
    %384 = arith.addf %381, %383 : vector<16x128xf32>
    %385 = arith.negf %384 : vector<16x128xf32>
    %386 = math.exp %385 : vector<16x128xf32>
    %cst_260 = arith.constant 1.000000e+00 : f32
    %387 = vector.broadcast %cst_260 : f32 to vector<16x128xf32>
    %388 = arith.addf %387, %386 : vector<16x128xf32>
    %389 = arith.divf %387, %388 : vector<16x128xf32>
    %390 = arith.mulf %379, %389 : vector<16x128xf32>
    %391 = arith.truncf %390 : vector<16x128xf32> to vector<16x128xbf16>
    %c0_261 = arith.constant 0 : index
    %c0_262 = arith.constant 0 : index
    %c0_263 = arith.constant 0 : index
    %392 = vector.load %arg44[%c0_261, %c0_262, %c0_263] : memref<4x128x64xbf16, #tpu.memory_space<vmem>>, vector<1x128x64xbf16>
    %393 = vector.shape_cast %392 : vector<1x128x64xbf16> to vector<128x64xbf16>
    %cst_264 = arith.constant dense<0.000000e+00> : vector<16x64xf32>
    %394 = tpu.matmul %391, %393, %cst_264 {dimension_numbers = #tpu.dot_dimension_numbers<[1], [0], [0], [1], [0, 0, 1, 1], [], []>} : vector<16x128xbf16>, vector<128x64xbf16>, vector<16x64xf32> -> vector<16x64xf32>
    %c1_265 = arith.constant 1 : index
    %c0_266 = arith.constant 0 : index
    %c0_267 = arith.constant 0 : index
    %395 = vector.load %arg44[%c1_265, %c0_266, %c0_267] : memref<4x128x64xbf16, #tpu.memory_space<vmem>>, vector<1x128x64xbf16>
    %396 = vector.shape_cast %395 : vector<1x128x64xbf16> to vector<128x64xbf16>
    %cst_268 = arith.constant dense<0.000000e+00> : vector<16x64xf32>
    %397 = tpu.matmul %391, %396, %cst_268 {dimension_numbers = #tpu.dot_dimension_numbers<[1], [0], [0], [1], [0, 0, 1, 1], [], []>} : vector<16x128xbf16>, vector<128x64xbf16>, vector<16x64xf32> -> vector<16x64xf32>
    %c2_269 = arith.constant 2 : index
    %c0_270 = arith.constant 0 : index
    %c0_271 = arith.constant 0 : index
    %398 = vector.load %arg44[%c2_269, %c0_270, %c0_271] : memref<4x128x64xbf16, #tpu.memory_space<vmem>>, vector<1x128x64xbf16>
    %399 = vector.shape_cast %398 : vector<1x128x64xbf16> to vector<128x64xbf16>
    %cst_272 = arith.constant dense<0.000000e+00> : vector<16x64xf32>
    %400 = tpu.matmul %391, %399, %cst_272 {dimension_numbers = #tpu.dot_dimension_numbers<[1], [0], [0], [1], [0, 0, 1, 1], [], []>} : vector<16x128xbf16>, vector<128x64xbf16>, vector<16x64xf32> -> vector<16x64xf32>
    %c3_273 = arith.constant 3 : index
    %c0_274 = arith.constant 0 : index
    %c0_275 = arith.constant 0 : index
    %401 = vector.load %arg44[%c3_273, %c0_274, %c0_275] : memref<4x128x64xbf16, #tpu.memory_space<vmem>>, vector<1x128x64xbf16>
    %402 = vector.shape_cast %401 : vector<1x128x64xbf16> to vector<128x64xbf16>
    %cst_276 = arith.constant dense<0.000000e+00> : vector<16x64xf32>
    %403 = tpu.matmul %391, %402, %cst_276 {dimension_numbers = #tpu.dot_dimension_numbers<[1], [0], [0], [1], [0, 0, 1, 1], [], []>} : vector<16x128xbf16>, vector<128x64xbf16>, vector<16x64xf32> -> vector<16x64xf32>
    %cst_277 = arith.constant 0.000000e+00 : f32
    %404 = vector.broadcast %cst_277 : f32 to vector<1x64xf32>
    %405 = vector.extract_strided_slice %403 {offsets = [0, 0], sizes = [15, 64], strides = [1, 1]} : vector<16x64xf32> to vector<15x64xf32>
    %406 = tpu.concatenate %404, %405 in 0 : vector<1x64xf32>, vector<15x64xf32> -> vector<16x64xf32>
    %407 = arith.addf %397, %406 : vector<16x64xf32>
    %c0_278 = arith.constant 0 : index
    %c0_279 = arith.constant 0 : index
    %408 = vector.load %arg45[%c0_278, %c0_279] : memref<1x64xf32, #tpu.memory_space<vmem>>, vector<1x64xf32>
    %409 = vector.broadcast %408 : vector<1x64xf32> to vector<16x64xf32>
    %410 = arith.addf %407, %409 : vector<16x64xf32>
    %411 = vector.extract_strided_slice %394 {offsets = [1, 0], sizes = [15, 64], strides = [1, 1]} : vector<16x64xf32> to vector<15x64xf32>
    %412 = tpu.concatenate %411, %404 in 0 : vector<15x64xf32>, vector<1x64xf32> -> vector<16x64xf32>
    %413 = arith.addf %400, %412 : vector<16x64xf32>
    %c0_280 = arith.constant 0 : index
    %c0_281 = arith.constant 0 : index
    %414 = vector.load %arg45[%c0_280, %c0_281] : memref<1x64xf32, #tpu.memory_space<vmem>>, vector<1x64xf32>
    %415 = vector.broadcast %414 : vector<1x64xf32> to vector<16x64xf32>
    %416 = arith.addf %413, %415 : vector<16x64xf32>
    %cst_282 = arith.constant 0.000000e+00 : f32
    %417 = vector.broadcast %cst_282 : f32 to vector<16x64xf32>
    %418 = arith.maximumf %410, %417 : vector<16x64xf32>
    %cst_283 = arith.constant 0.000000e+00 : f32
    %419 = vector.broadcast %cst_283 : f32 to vector<16x64xf32>
    %420 = arith.maximumf %416, %419 : vector<16x64xf32>
    %c0_284 = arith.constant 0 : index
    %c0_285 = arith.constant 0 : index
    %421 = tpu.strided_load %arg59[%c0_284, %c0_285] {strides = array<i32: 2, 1>} : memref<32x64xf32, #tpu.memory_space<vmem>>, vector<16x64xf32>
    tpu.strided_store %arg59[%c0_284, %c0_285], %418 {strides = array<i32: 2, 1>} : memref<32x64xf32, #tpu.memory_space<vmem>>, vector<16x64xf32>
    %c1_286 = arith.constant 1 : index
    %c0_287 = arith.constant 0 : index
    %422 = tpu.strided_load %arg59[%c1_286, %c0_287] {strides = array<i32: 2, 1>} : memref<32x64xf32, #tpu.memory_space<vmem>>, vector<16x64xf32>
    tpu.strided_store %arg59[%c1_286, %c0_287], %420 {strides = array<i32: 2, 1>} : memref<32x64xf32, #tpu.memory_space<vmem>>, vector<16x64xf32>
    %c0_288 = arith.constant 0 : index
    %c0_289 = arith.constant 0 : index
    %423 = vector.load %arg59[%c0_288, %c0_289] : memref<32x64xf32, #tpu.memory_space<vmem>>, vector<32x64xf32>
    %424 = arith.addf %423, %133 : vector<32x64xf32>
    %425 = arith.truncf %424 : vector<32x64xf32> to vector<32x64xbf16>
    %c0_290 = arith.constant 0 : index
    %c0_291 = arith.constant 0 : index
    %426 = vector.load %arg46[%c0_290, %c0_291] : memref<64x64xbf16, #tpu.memory_space<vmem>>, vector<64x64xbf16>
    %cst_292 = arith.constant dense<0.000000e+00> : vector<32x64xf32>
    %427 = tpu.matmul %425, %426, %cst_292 {dimension_numbers = #tpu.dot_dimension_numbers<[1], [0], [0], [1], [0, 0, 1, 1], [], []>} : vector<32x64xbf16>, vector<64x64xbf16>, vector<32x64xf32> -> vector<32x64xf32>
    %c0_293 = arith.constant 0 : index
    %c0_294 = arith.constant 0 : index
    %428 = vector.load %arg47[%c0_293, %c0_294] : memref<1x64xf32, #tpu.memory_space<vmem>>, vector<1x64xf32>
    %429 = vector.broadcast %428 : vector<1x64xf32> to vector<32x64xf32>
    %430 = arith.addf %427, %429 : vector<32x64xf32>
    %c0_295 = arith.constant 0 : index
    %c0_296 = arith.constant 0 : index
    %431 = vector.load %arg48[%c0_295, %c0_296] : memref<64x64xbf16, #tpu.memory_space<vmem>>, vector<64x64xbf16>
    %cst_297 = arith.constant dense<0.000000e+00> : vector<32x64xf32>
    %432 = tpu.matmul %425, %431, %cst_297 {dimension_numbers = #tpu.dot_dimension_numbers<[1], [0], [0], [1], [0, 0, 1, 1], [], []>} : vector<32x64xbf16>, vector<64x64xbf16>, vector<32x64xf32> -> vector<32x64xf32>
    %c0_298 = arith.constant 0 : index
    %c0_299 = arith.constant 0 : index
    %433 = vector.load %arg49[%c0_298, %c0_299] : memref<1x64xf32, #tpu.memory_space<vmem>>, vector<1x64xf32>
    %434 = vector.broadcast %433 : vector<1x64xf32> to vector<32x64xf32>
    %435 = arith.addf %432, %434 : vector<32x64xf32>
    %436 = arith.negf %435 : vector<32x64xf32>
    %437 = math.exp %436 : vector<32x64xf32>
    %cst_300 = arith.constant 1.000000e+00 : f32
    %438 = vector.broadcast %cst_300 : f32 to vector<32x64xf32>
    %439 = arith.addf %438, %437 : vector<32x64xf32>
    %440 = arith.divf %438, %439 : vector<32x64xf32>
    %441 = arith.mulf %430, %440 : vector<32x64xf32>
    %442 = arith.truncf %441 : vector<32x64xf32> to vector<32x64xbf16>
    %c0_301 = arith.constant 0 : index
    %c0_302 = arith.constant 0 : index
    %c0_303 = arith.constant 0 : index
    %443 = vector.load %arg50[%c0_301, %c0_302, %c0_303] : memref<4x64x96xbf16, #tpu.memory_space<vmem>>, vector<1x64x96xbf16>
    %444 = vector.shape_cast %443 : vector<1x64x96xbf16> to vector<64x96xbf16>
    %cst_304 = arith.constant dense<0.000000e+00> : vector<32x96xf32>
    %445 = tpu.matmul %442, %444, %cst_304 {dimension_numbers = #tpu.dot_dimension_numbers<[1], [0], [0], [1], [0, 0, 1, 1], [], []>} : vector<32x64xbf16>, vector<64x96xbf16>, vector<32x96xf32> -> vector<32x96xf32>
    %c1_305 = arith.constant 1 : index
    %c0_306 = arith.constant 0 : index
    %c0_307 = arith.constant 0 : index
    %446 = vector.load %arg50[%c1_305, %c0_306, %c0_307] : memref<4x64x96xbf16, #tpu.memory_space<vmem>>, vector<1x64x96xbf16>
    %447 = vector.shape_cast %446 : vector<1x64x96xbf16> to vector<64x96xbf16>
    %cst_308 = arith.constant dense<0.000000e+00> : vector<32x96xf32>
    %448 = tpu.matmul %442, %447, %cst_308 {dimension_numbers = #tpu.dot_dimension_numbers<[1], [0], [0], [1], [0, 0, 1, 1], [], []>} : vector<32x64xbf16>, vector<64x96xbf16>, vector<32x96xf32> -> vector<32x96xf32>
    %c2_309 = arith.constant 2 : index
    %c0_310 = arith.constant 0 : index
    %c0_311 = arith.constant 0 : index
    %449 = vector.load %arg50[%c2_309, %c0_310, %c0_311] : memref<4x64x96xbf16, #tpu.memory_space<vmem>>, vector<1x64x96xbf16>
    %450 = vector.shape_cast %449 : vector<1x64x96xbf16> to vector<64x96xbf16>
    %cst_312 = arith.constant dense<0.000000e+00> : vector<32x96xf32>
    %451 = tpu.matmul %442, %450, %cst_312 {dimension_numbers = #tpu.dot_dimension_numbers<[1], [0], [0], [1], [0, 0, 1, 1], [], []>} : vector<32x64xbf16>, vector<64x96xbf16>, vector<32x96xf32> -> vector<32x96xf32>
    %c3_313 = arith.constant 3 : index
    %c0_314 = arith.constant 0 : index
    %c0_315 = arith.constant 0 : index
    %452 = vector.load %arg50[%c3_313, %c0_314, %c0_315] : memref<4x64x96xbf16, #tpu.memory_space<vmem>>, vector<1x64x96xbf16>
    %453 = vector.shape_cast %452 : vector<1x64x96xbf16> to vector<64x96xbf16>
    %cst_316 = arith.constant dense<0.000000e+00> : vector<32x96xf32>
    %454 = tpu.matmul %442, %453, %cst_316 {dimension_numbers = #tpu.dot_dimension_numbers<[1], [0], [0], [1], [0, 0, 1, 1], [], []>} : vector<32x64xbf16>, vector<64x96xbf16>, vector<32x96xf32> -> vector<32x96xf32>
    %cst_317 = arith.constant 0.000000e+00 : f32
    %455 = vector.broadcast %cst_317 : f32 to vector<1x96xf32>
    %456 = vector.extract_strided_slice %454 {offsets = [0, 0], sizes = [31, 96], strides = [1, 1]} : vector<32x96xf32> to vector<31x96xf32>
    %457 = tpu.concatenate %455, %456 in 0 : vector<1x96xf32>, vector<31x96xf32> -> vector<32x96xf32>
    %458 = arith.addf %448, %457 : vector<32x96xf32>
    %c0_318 = arith.constant 0 : index
    %c0_319 = arith.constant 0 : index
    %459 = vector.load %arg51[%c0_318, %c0_319] : memref<1x96xf32, #tpu.memory_space<vmem>>, vector<1x96xf32>
    %460 = vector.broadcast %459 : vector<1x96xf32> to vector<32x96xf32>
    %461 = arith.addf %458, %460 : vector<32x96xf32>
    %462 = vector.extract_strided_slice %445 {offsets = [1, 0], sizes = [31, 96], strides = [1, 1]} : vector<32x96xf32> to vector<31x96xf32>
    %463 = tpu.concatenate %462, %455 in 0 : vector<31x96xf32>, vector<1x96xf32> -> vector<32x96xf32>
    %464 = arith.addf %451, %463 : vector<32x96xf32>
    %c0_320 = arith.constant 0 : index
    %c0_321 = arith.constant 0 : index
    %465 = vector.load %arg51[%c0_320, %c0_321] : memref<1x96xf32, #tpu.memory_space<vmem>>, vector<1x96xf32>
    %466 = vector.broadcast %465 : vector<1x96xf32> to vector<32x96xf32>
    %467 = arith.addf %464, %466 : vector<32x96xf32>
    %c0_322 = arith.constant 0 : index
    %c0_323 = arith.constant 0 : index
    %468 = tpu.strided_load %arg60[%c0_322, %c0_323] {strides = array<i32: 2, 1>} : memref<64x96xf32, #tpu.memory_space<vmem>>, vector<32x96xf32>
    tpu.strided_store %arg60[%c0_322, %c0_323], %461 {strides = array<i32: 2, 1>} : memref<64x96xf32, #tpu.memory_space<vmem>>, vector<32x96xf32>
    %c1_324 = arith.constant 1 : index
    %c0_325 = arith.constant 0 : index
    %469 = tpu.strided_load %arg60[%c1_324, %c0_325] {strides = array<i32: 2, 1>} : memref<64x96xf32, #tpu.memory_space<vmem>>, vector<32x96xf32>
    tpu.strided_store %arg60[%c1_324, %c0_325], %467 {strides = array<i32: 2, 1>} : memref<64x96xf32, #tpu.memory_space<vmem>>, vector<32x96xf32>
    %c0_326 = arith.constant 0 : index
    %c0_327 = arith.constant 0 : index
    %470 = vector.load %arg60[%c0_326, %c0_327] : memref<64x96xf32, #tpu.memory_space<vmem>>, vector<64x96xf32>
    %cst_328 = arith.constant 0.000000e+00 : f32
    %471 = vector.broadcast %cst_328 : f32 to vector<64x32xf32>
    %472 = tpu.concatenate %470, %471 in 1 : vector<64x96xf32>, vector<64x32xf32> -> vector<64x128xf32>
    %473 = tpu.transpose %472, [1, 0] : vector<64x128xf32> -> vector<128x64xf32>
    %cst_329 = arith.constant 0.000000e+00 : f32
    %474 = vector.broadcast %cst_329 : f32 to vector<128x2xf32>
    %475 = tpu.concatenate %474, %473, %474 in 1 : vector<128x2xf32>, vector<128x64xf32>, vector<128x2xf32> -> vector<128x68xf32>
    %cst_330 = arith.constant 0.000000e+00 : f32
    %476 = vector.broadcast %cst_330 : f32 to vector<1x64xf32>
    %477 = vector.extract_strided_slice %475 {offsets = [0, 0], sizes = [128, 64], strides = [1, 1]} : vector<128x68xf32> to vector<128x64xf32>
    %c0_331 = arith.constant 0 : index
    %c0_332 = arith.constant 0 : index
    %c0_333 = arith.constant 0 : index
    %478 = vector.load %arg52[%c0_331, %c0_332, %c0_333] : memref<5x128x1xf32, #tpu.memory_space<vmem>>, vector<1x128x1xf32>
    %479 = vector.shape_cast %478 : vector<1x128x1xf32> to vector<128x1xf32>
    %480 = vector.broadcast %479 : vector<128x1xf32> to vector<128x64xf32>
    %481 = arith.mulf %477, %480 : vector<128x64xf32>
    %cst_334 = arith.constant dense<0.000000e+00> : vector<64xf32>
    %482 = vector.multi_reduction <add>, %481, %cst_334 [0] : vector<128x64xf32> to vector<64xf32>
    %483 = vector.shape_cast %482 : vector<64xf32> to vector<1x64xf32>
    %484 = arith.addf %476, %483 : vector<1x64xf32>
    %485 = vector.extract_strided_slice %475 {offsets = [0, 1], sizes = [128, 64], strides = [1, 1]} : vector<128x68xf32> to vector<128x64xf32>
    %c1_335 = arith.constant 1 : index
    %c0_336 = arith.constant 0 : index
    %c0_337 = arith.constant 0 : index
    %486 = vector.load %arg52[%c1_335, %c0_336, %c0_337] : memref<5x128x1xf32, #tpu.memory_space<vmem>>, vector<1x128x1xf32>
    %487 = vector.shape_cast %486 : vector<1x128x1xf32> to vector<128x1xf32>
    %488 = vector.broadcast %487 : vector<128x1xf32> to vector<128x64xf32>
    %489 = arith.mulf %485, %488 : vector<128x64xf32>
    %cst_338 = arith.constant dense<0.000000e+00> : vector<64xf32>
    %490 = vector.multi_reduction <add>, %489, %cst_338 [0] : vector<128x64xf32> to vector<64xf32>
    %491 = vector.shape_cast %490 : vector<64xf32> to vector<1x64xf32>
    %492 = arith.addf %484, %491 : vector<1x64xf32>
    %493 = vector.extract_strided_slice %475 {offsets = [0, 2], sizes = [128, 64], strides = [1, 1]} : vector<128x68xf32> to vector<128x64xf32>
    %c2_339 = arith.constant 2 : index
    %c0_340 = arith.constant 0 : index
    %c0_341 = arith.constant 0 : index
    %494 = vector.load %arg52[%c2_339, %c0_340, %c0_341] : memref<5x128x1xf32, #tpu.memory_space<vmem>>, vector<1x128x1xf32>
    %495 = vector.shape_cast %494 : vector<1x128x1xf32> to vector<128x1xf32>
    %496 = vector.broadcast %495 : vector<128x1xf32> to vector<128x64xf32>
    %497 = arith.mulf %493, %496 : vector<128x64xf32>
    %cst_342 = arith.constant dense<0.000000e+00> : vector<64xf32>
    %498 = vector.multi_reduction <add>, %497, %cst_342 [0] : vector<128x64xf32> to vector<64xf32>
    %499 = vector.shape_cast %498 : vector<64xf32> to vector<1x64xf32>
    %500 = arith.addf %492, %499 : vector<1x64xf32>
    %501 = vector.extract_strided_slice %475 {offsets = [0, 3], sizes = [128, 64], strides = [1, 1]} : vector<128x68xf32> to vector<128x64xf32>
    %c3_343 = arith.constant 3 : index
    %c0_344 = arith.constant 0 : index
    %c0_345 = arith.constant 0 : index
    %502 = vector.load %arg52[%c3_343, %c0_344, %c0_345] : memref<5x128x1xf32, #tpu.memory_space<vmem>>, vector<1x128x1xf32>
    %503 = vector.shape_cast %502 : vector<1x128x1xf32> to vector<128x1xf32>
    %504 = vector.broadcast %503 : vector<128x1xf32> to vector<128x64xf32>
    %505 = arith.mulf %501, %504 : vector<128x64xf32>
    %cst_346 = arith.constant dense<0.000000e+00> : vector<64xf32>
    %506 = vector.multi_reduction <add>, %505, %cst_346 [0] : vector<128x64xf32> to vector<64xf32>
    %507 = vector.shape_cast %506 : vector<64xf32> to vector<1x64xf32>
    %508 = arith.addf %500, %507 : vector<1x64xf32>
    %509 = vector.extract_strided_slice %475 {offsets = [0, 4], sizes = [128, 64], strides = [1, 1]} : vector<128x68xf32> to vector<128x64xf32>
    %c4_347 = arith.constant 4 : index
    %c0_348 = arith.constant 0 : index
    %c0_349 = arith.constant 0 : index
    %510 = vector.load %arg52[%c4_347, %c0_348, %c0_349] : memref<5x128x1xf32, #tpu.memory_space<vmem>>, vector<1x128x1xf32>
    %511 = vector.shape_cast %510 : vector<1x128x1xf32> to vector<128x1xf32>
    %512 = vector.broadcast %511 : vector<128x1xf32> to vector<128x64xf32>
    %513 = arith.mulf %509, %512 : vector<128x64xf32>
    %cst_350 = arith.constant dense<0.000000e+00> : vector<64xf32>
    %514 = vector.multi_reduction <add>, %513, %cst_350 [0] : vector<128x64xf32> to vector<64xf32>
    %515 = vector.shape_cast %514 : vector<64xf32> to vector<1x64xf32>
    %516 = arith.addf %508, %515 : vector<1x64xf32>
    %c0_351 = arith.constant 0 : index
    %c0_352 = arith.constant 0 : index
    %517 = vector.load %arg53[%c0_351, %c0_352] : memref<1x1xf32, #tpu.memory_space<vmem>>, vector<1x1xf32>
    %518 = vector.broadcast %517 : vector<1x1xf32> to vector<1x64xf32>
    %519 = arith.addf %516, %518 : vector<1x64xf32>
    %c0_353 = arith.constant 0 : index
    %c0_354 = arith.constant 0 : index
    %c0_355 = arith.constant 0 : index
    %520 = vector.load %arg54[%c0_353, %c0_354, %c0_355] : memref<1x1x64xf32, #tpu.memory_space<vmem>>, vector<1x1x64xf32>
    %521 = vector.shape_cast %520 : vector<1x1x64xf32> to vector<1x64xf32>
    %522 = vector.shape_cast %519 : vector<1x64xf32> to vector<1x1x64xf32>
    tpu.vector_store %arg54[%c0_353, %c0_354, %c0_355], %522 {strides = array<i32>} : memref<1x1x64xf32, #tpu.memory_space<vmem>>, vector<1x1x64xf32>,
    return
  }
  func.func @transform_0(%arg0: i32) -> (i32, i32, i32) {
    %c0_i32 = arith.constant 0 : i32
    %c0_i32_0 = arith.constant 0 : i32
    %c0_i32_1 = arith.constant 0 : i32
    return %arg0, %c0_i32, %c0_i32_0 : i32, i32, i32
  }
  func.func @transform_1(%arg0: i32) -> (i32, i32, i32) {
    %c0_i32 = arith.constant 0 : i32
    %c0_i32_0 = arith.constant 0 : i32
    %c0_i32_1 = arith.constant 0 : i32
    %c0_i32_2 = arith.constant 0 : i32
    return %c0_i32, %c0_i32_0, %c0_i32_1 : i32, i32, i32
  }
  func.func @transform_2(%arg0: i32) -> (i32, i32) {
    %c0_i32 = arith.constant 0 : i32
    %c0_i32_0 = arith.constant 0 : i32
    %c0_i32_1 = arith.constant 0 : i32
    return %c0_i32, %c0_i32_0 : i32, i32
  }
  func.func @transform_3(%arg0: i32) -> (i32, i32, i32) {
    %c0_i32 = arith.constant 0 : i32
    %c0_i32_0 = arith.constant 0 : i32
    %c0_i32_1 = arith.constant 0 : i32
    %c0_i32_2 = arith.constant 0 : i32
    return %c0_i32, %c0_i32_0, %c0_i32_1 : i32, i32, i32
  }
  func.func @transform_4(%arg0: i32) -> (i32, i32) {
    %c0_i32 = arith.constant 0 : i32
    %c0_i32_0 = arith.constant 0 : i32
    %c0_i32_1 = arith.constant 0 : i32
    return %c0_i32, %c0_i32_0 : i32, i32
  }
  func.func @transform_5(%arg0: i32) -> (i32, i32) {
    %c0_i32 = arith.constant 0 : i32
    %c0_i32_0 = arith.constant 0 : i32
    %c0_i32_1 = arith.constant 0 : i32
    return %c0_i32, %c0_i32_0 : i32, i32
  }
  func.func @transform_6(%arg0: i32) -> (i32, i32) {
    %c0_i32 = arith.constant 0 : i32
    %c0_i32_0 = arith.constant 0 : i32
    %c0_i32_1 = arith.constant 0 : i32
    return %c0_i32, %c0_i32_0 : i32, i32
  }
  func.func @transform_7(%arg0: i32) -> (i32, i32) {
    %c0_i32 = arith.constant 0 : i32
    %c0_i32_0 = arith.constant 0 : i32
    %c0_i32_1 = arith.constant 0 : i32
    return %c0_i32, %c0_i32_0 : i32, i32
  }
  func.func @transform_8(%arg0: i32) -> (i32, i32) {
    %c0_i32 = arith.constant 0 : i32
    %c0_i32_0 = arith.constant 0 : i32
    %c0_i32_1 = arith.constant 0 : i32
    return %c0_i32, %c0_i32_0 : i32, i32
  }
  func.func @transform_9(%arg0: i32) -> (i32, i32, i32) {
    %c0_i32 = arith.constant 0 : i32
    %c0_i32_0 = arith.constant 0 : i32
    %c0_i32_1 = arith.constant 0 : i32
    %c0_i32_2 = arith.constant 0 : i32
    return %c0_i32, %c0_i32_0, %c0_i32_1 : i32, i32, i32
  }
  func.func @transform_10(%arg0: i32) -> (i32, i32) {
    %c0_i32 = arith.constant 0 : i32
    %c0_i32_0 = arith.constant 0 : i32
    %c0_i32_1 = arith.constant 0 : i32
    return %c0_i32, %c0_i32_0 : i32, i32
  }
  func.func @transform_11(%arg0: i32) -> (i32, i32) {
    %c0_i32 = arith.constant 0 : i32
    %c0_i32_0 = arith.constant 0 : i32
    %c0_i32_1 = arith.constant 0 : i32
    return %c0_i32, %c0_i32_0 : i32, i32
  }
  func.func @transform_12(%arg0: i32) -> (i32, i32) {
    %c0_i32 = arith.constant 0 : i32
    %c0_i32_0 = arith.constant 0 : i32
    %c0_i32_1 = arith.constant 0 : i32
    return %c0_i32, %c0_i32_0 : i32, i32
  }
  func.func @transform_13(%arg0: i32) -> (i32, i32) {
    %c0_i32 = arith.constant 0 : i32
    %c0_i32_0 = arith.constant 0 : i32
    %c0_i32_1 = arith.constant 0 : i32
    return %c0_i32, %c0_i32_0 : i32, i32
  }
  func.func @transform_14(%arg0: i32) -> (i32, i32) {
    %c0_i32 = arith.constant 0 : i32
    %c0_i32_0 = arith.constant 0 : i32
    %c0_i32_1 = arith.constant 0 : i32
    return %c0_i32, %c0_i32_0 : i32, i32
  }
  func.func @transform_15(%arg0: i32) -> (i32, i32, i32) {
    %c0_i32 = arith.constant 0 : i32
    %c0_i32_0 = arith.constant 0 : i32
    %c0_i32_1 = arith.constant 0 : i32
    %c0_i32_2 = arith.constant 0 : i32
    return %c0_i32, %c0_i32_0, %c0_i32_1 : i32, i32, i32
  }
  func.func @transform_16(%arg0: i32) -> (i32, i32) {
    %c0_i32 = arith.constant 0 : i32
    %c0_i32_0 = arith.constant 0 : i32
    %c0_i32_1 = arith.constant 0 : i32
    return %c0_i32, %c0_i32_0 : i32, i32
  }
  func.func @transform_17(%arg0: i32) -> (i32, i32) {
    %c0_i32 = arith.constant 0 : i32
    %c0_i32_0 = arith.constant 0 : i32
    %c0_i32_1 = arith.constant 0 : i32
    return %c0_i32, %c0_i32_0 : i32, i32
  }
  func.func @transform_18(%arg0: i32) -> (i32, i32) {
    %c0_i32 = arith.constant 0 : i32
    %c0_i32_0 = arith.constant 0 : i32
    %c0_i32_1 = arith.constant 0 : i32
    return %c0_i32, %c0_i32_0 : i32, i32
  }
  func.func @transform_19(%arg0: i32) -> (i32, i32) {
    %c0_i32 = arith.constant 0 : i32
    %c0_i32_0 = arith.constant 0 : i32
    %c0_i32_1 = arith.constant 0 : i32
    return %c0_i32, %c0_i32_0 : i32, i32
  }
  func.func @transform_20(%arg0: i32) -> (i32, i32) {
    %c0_i32 = arith.constant 0 : i32
    %c0_i32_0 = arith.constant 0 : i32
    %c0_i32_1 = arith.constant 0 : i32
    return %c0_i32, %c0_i32_0 : i32, i32
  }
  func.func @transform_21(%arg0: i32) -> (i32, i32) {
    %c0_i32 = arith.constant 0 : i32
    %c0_i32_0 = arith.constant 0 : i32
    %c0_i32_1 = arith.constant 0 : i32
    return %c0_i32, %c0_i32_0 : i32, i32
  }
  func.func @transform_22(%arg0: i32) -> (i32, i32) {
    %c0_i32 = arith.constant 0 : i32
    %c0_i32_0 = arith.constant 0 : i32
    %c0_i32_1 = arith.constant 0 : i32
    return %c0_i32, %c0_i32_0 : i32, i32
  }
  func.func @transform_23(%arg0: i32) -> (i32, i32) {
    %c0_i32 = arith.constant 0 : i32
    %c0_i32_0 = arith.constant 0 : i32
    %c0_i32_1 = arith.constant 0 : i32
    return %c0_i32, %c0_i32_0 : i32, i32
  }
  func.func @transform_24(%arg0: i32) -> (i32, i32) {
    %c0_i32 = arith.constant 0 : i32
    %c0_i32_0 = arith.constant 0 : i32
    %c0_i32_1 = arith.constant 0 : i32
    return %c0_i32, %c0_i32_0 : i32, i32
  }
  func.func @transform_25(%arg0: i32) -> (i32, i32) {
    %c0_i32 = arith.constant 0 : i32
    %c0_i32_0 = arith.constant 0 : i32
    %c0_i32_1 = arith.constant 0 : i32
    return %c0_i32, %c0_i32_0 : i32, i32
  }
  func.func @transform_26(%arg0: i32) -> (i32, i32) {
    %c0_i32 = arith.constant 0 : i32
    %c0_i32_0 = arith.constant 0 : i32
    %c0_i32_1 = arith.constant 0 : i32
    return %c0_i32, %c0_i32_0 : i32, i32
  }
  func.func @transform_27(%arg0: i32) -> (i32, i32) {
    %c0_i32 = arith.constant 0 : i32
    %c0_i32_0 = arith.constant 0 : i32
    %c0_i32_1 = arith.constant 0 : i32
    return %c0_i32, %c0_i32_0 : i32, i32
  }
  func.func @transform_28(%arg0: i32) -> (i32, i32) {
    %c0_i32 = arith.constant 0 : i32
    %c0_i32_0 = arith.constant 0 : i32
    %c0_i32_1 = arith.constant 0 : i32
    return %c0_i32, %c0_i32_0 : i32, i32
  }
  func.func @transform_29(%arg0: i32) -> (i32, i32) {
    %c0_i32 = arith.constant 0 : i32
    %c0_i32_0 = arith.constant 0 : i32
    %c0_i32_1 = arith.constant 0 : i32
    return %c0_i32, %c0_i32_0 : i32, i32
  }
  func.func @transform_30(%arg0: i32) -> (i32, i32) {
    %c0_i32 = arith.constant 0 : i32
    %c0_i32_0 = arith.constant 0 : i32
    %c0_i32_1 = arith.constant 0 : i32
    return %c0_i32, %c0_i32_0 : i32, i32
  }
  func.func @transform_31(%arg0: i32) -> (i32, i32) {
    %c0_i32 = arith.constant 0 : i32
    %c0_i32_0 = arith.constant 0 : i32
    %c0_i32_1 = arith.constant 0 : i32
    return %c0_i32, %c0_i32_0 : i32, i32
  }
  func.func @transform_32(%arg0: i32) -> (i32, i32) {
    %c0_i32 = arith.constant 0 : i32
    %c0_i32_0 = arith.constant 0 : i32
    %c0_i32_1 = arith.constant 0 : i32
    return %c0_i32, %c0_i32_0 : i32, i32
  }
  func.func @transform_33(%arg0: i32) -> (i32, i32) {
    %c0_i32 = arith.constant 0 : i32
    %c0_i32_0 = arith.constant 0 : i32
    %c0_i32_1 = arith.constant 0 : i32
    return %c0_i32, %c0_i32_0 : i32, i32
  }
  func.func @transform_34(%arg0: i32) -> (i32, i32) {
    %c0_i32 = arith.constant 0 : i32
    %c0_i32_0 = arith.constant 0 : i32
    %c0_i32_1 = arith.constant 0 : i32
    return %c0_i32, %c0_i32_0 : i32, i32
  }
  func.func @transform_35(%arg0: i32) -> (i32, i32) {
    %c0_i32 = arith.constant 0 : i32
    %c0_i32_0 = arith.constant 0 : i32
    %c0_i32_1 = arith.constant 0 : i32
    return %c0_i32, %c0_i32_0 : i32, i32
  }
  func.func @transform_36(%arg0: i32) -> (i32, i32) {
    %c0_i32 = arith.constant 0 : i32
    %c0_i32_0 = arith.constant 0 : i32
    %c0_i32_1 = arith.constant 0 : i32
    return %c0_i32, %c0_i32_0 : i32, i32
  }
  func.func @transform_37(%arg0: i32) -> (i32, i32, i32) {
    %c0_i32 = arith.constant 0 : i32
    %c0_i32_0 = arith.constant 0 : i32
    %c0_i32_1 = arith.constant 0 : i32
    %c0_i32_2 = arith.constant 0 : i32
    return %c0_i32, %c0_i32_0, %c0_i32_1 : i32, i32, i32
  }
  func.func @transform_38(%arg0: i32) -> (i32, i32) {
    %c0_i32 = arith.constant 0 : i32
    %c0_i32_0 = arith.constant 0 : i32
    %c0_i32_1 = arith.constant 0 : i32
    return %c0_i32, %c0_i32_0 : i32, i32
  }
  func.func @transform_39(%arg0: i32) -> (i32, i32) {
    %c0_i32 = arith.constant 0 : i32
    %c0_i32_0 = arith.constant 0 : i32
    %c0_i32_1 = arith.constant 0 : i32
    return %c0_i32, %c0_i32_0 : i32, i32
  }
  func.func @transform_40(%arg0: i32) -> (i32, i32) {
    %c0_i32 = arith.constant 0 : i32
    %c0_i32_0 = arith.constant 0 : i32
    %c0_i32_1 = arith.constant 0 : i32
    return %c0_i32, %c0_i32_0 : i32, i32
  }
  func.func @transform_41(%arg0: i32) -> (i32, i32) {
    %c0_i32 = arith.constant 0 : i32
    %c0_i32_0 = arith.constant 0 : i32
    %c0_i32_1 = arith.constant 0 : i32
    return %c0_i32, %c0_i32_0 : i32, i32
  }
  func.func @transform_42(%arg0: i32) -> (i32, i32) {
    %c0_i32 = arith.constant 0 : i32
    %c0_i32_0 = arith.constant 0 : i32
    %c0_i32_1 = arith.constant 0 : i32
    return %c0_i32, %c0_i32_0 : i32, i32
  }
  func.func @transform_43(%arg0: i32) -> (i32, i32, i32) {
    %c0_i32 = arith.constant 0 : i32
    %c0_i32_0 = arith.constant 0 : i32
    %c0_i32_1 = arith.constant 0 : i32
    %c0_i32_2 = arith.constant 0 : i32
    return %c0_i32, %c0_i32_0, %c0_i32_1 : i32, i32, i32
  }
  func.func @transform_44(%arg0: i32) -> (i32, i32) {
    %c0_i32 = arith.constant 0 : i32
    %c0_i32_0 = arith.constant 0 : i32
    %c0_i32_1 = arith.constant 0 : i32
    return %c0_i32, %c0_i32_0 : i32, i32
  }
  func.func @transform_45(%arg0: i32) -> (i32, i32) {
    %c0_i32 = arith.constant 0 : i32
    %c0_i32_0 = arith.constant 0 : i32
    %c0_i32_1 = arith.constant 0 : i32
    return %c0_i32, %c0_i32_0 : i32, i32
  }
  func.func @transform_46(%arg0: i32) -> (i32, i32) {
    %c0_i32 = arith.constant 0 : i32
    %c0_i32_0 = arith.constant 0 : i32
    %c0_i32_1 = arith.constant 0 : i32
    return %c0_i32, %c0_i32_0 : i32, i32
  }
  func.func @transform_47(%arg0: i32) -> (i32, i32) {
    %c0_i32 = arith.constant 0 : i32
    %c0_i32_0 = arith.constant 0 : i32
    %c0_i32_1 = arith.constant 0 : i32
    return %c0_i32, %c0_i32_0 : i32, i32
  }
  func.func @transform_48(%arg0: i32) -> (i32, i32) {
    %c0_i32 = arith.constant 0 : i32
    %c0_i32_0 = arith.constant 0 : i32
    %c0_i32_1 = arith.constant 0 : i32
    return %c0_i32, %c0_i32_0 : i32, i32
  }
  func.func @transform_49(%arg0: i32) -> (i32, i32, i32) {
    %c0_i32 = arith.constant 0 : i32
    %c0_i32_0 = arith.constant 0 : i32
    %c0_i32_1 = arith.constant 0 : i32
    %c0_i32_2 = arith.constant 0 : i32
    return %c0_i32, %c0_i32_0, %c0_i32_1 : i32, i32, i32
  }
  func.func @transform_50(%arg0: i32) -> (i32, i32) {
    %c0_i32 = arith.constant 0 : i32
    %c0_i32_0 = arith.constant 0 : i32
    %c0_i32_1 = arith.constant 0 : i32
    return %c0_i32, %c0_i32_0 : i32, i32
  }
  func.func @transform_51(%arg0: i32) -> (i32, i32, i32) {
    %c0_i32 = arith.constant 0 : i32
    %c0_i32_0 = arith.constant 0 : i32
    %c0_i32_1 = arith.constant 0 : i32
    %c0_i32_2 = arith.constant 0 : i32
    return %c0_i32, %c0_i32_0, %c0_i32_1 : i32, i32, i32
  }
  func.func @transform_52(%arg0: i32) -> (i32, i32) {
    %c0_i32 = arith.constant 0 : i32
    %c0_i32_0 = arith.constant 0 : i32
    %c0_i32_1 = arith.constant 0 : i32
    return %c0_i32, %c0_i32_0 : i32, i32
  }
  func.func @transform_53(%arg0: i32) -> (i32, i32, i32) {
    %c0_i32 = arith.constant 0 : i32
    %c0_i32_0 = arith.constant 0 : i32
    %c0_i32_1 = arith.constant 0 : i32
    return %arg0, %c0_i32, %c0_i32_0 : i32, i32, i32
  }
}

</mosaic_0001>

<bundles_post_ra>
// kernel: forward.1
= control target key start
LH: loop header
LB: loop body
LE: loop exit
PB: predicated region body
PF: predicated region fallthrough
CT: control target
= control target key end

     0   :  { %s15120_s6 = smov 1   ;;  %s15121_s10 = smov 2   ;;  %s17516_s0 = inlined_call_operand.smem [shape: u32[54], index: -1, kind: input, shape index: {}] }
   0x1   :  { %s15234_s5 = sld [smem:[%s17516_s0]]   ;;  %s15122_s14 = smov 3  }
   0x2   :  { %s15239_s9 = sld [smem:[%s17516_s0 + %s15120_s6]]   ;;  %s15123_s18 = smov 4  }
   0x3   :  { %s15244_s13 = sld [smem:[%s17516_s0 + %s15121_s10]]   ;;  %s15124_s22 = smov 5  }
   0x4   :  { %s15249_s17 = sld [smem:[%s17516_s0 + %s15122_s14]]   ;;  %s15125_s26 = smov 6  }
   0x5   :  { %s15254_s21 = sld [smem:[%s17516_s0 + %s15123_s18]]   ;;  %s15126_s30 = smov 7  }
   0x6   :  { %s15259_s25 = sld [smem:[%s17516_s0 + %s15124_s22]]   ;;  %s15127_s4 = smov 8  }
   0x7   :  { %17593 = sst [smem:[#allocation87_spill]] %s15234_s5  ;;  %s15128_s10 = smov 9  }
   0x8   :  { %17594 = sst [smem:[#allocation88_spill]] %s15239_s9  ;;  %s15129_s15 = smov 10  }
   0x9   :  { %17595 = sst [smem:[#allocation89_spill]] %s15244_s13  ;;  %s15130_s20 = smov 11  }
   0xa   :  { %17596 = sst [smem:[#allocation90_spill]] %s15249_s17  ;;  %s15132_s1 = smov 13  }
   0xb   :  { %17597 = sst [smem:[#allocation91_spill]] %s15254_s21  ;;  %s15133_s7 = smov 14  }
   0xc   :  { %17598 = sst [smem:[#allocation92_spill]] %s15259_s25  ;;  %s15135_s22 = smov 16  }
   0xd   :  { %s15264_s29 = sld [smem:[%s17516_s0 + %s15125_s26]]   ;;  %s15131_s26 = smov 12  }
   0xe   :  { %s15269_s3 = sld [smem:[%s17516_s0 + %s15126_s30]]   ;;  %s15136_s28 = smov 17  }
   0xf   :  { %s15274_s8 = sld [smem:[%s17516_s0 + %s15127_s4]]  }
  0x10   :  { %s15279_s14 = sld [smem:[%s17516_s0 + %s15128_s10]]  }
  0x11   :  { %s15284_s19 = sld [smem:[%s17516_s0 + %s15129_s15]]   ;;  %s15134_s15 = smov 15  }
  0x12   :  { %s15289_s24 = sld [smem:[%s17516_s0 + %s15130_s20]]  }
  0x13   :  { %s15294_s30 = sld [smem:[%s17516_s0 + %s15131_s26]]  }
  0x14   :  { %17599 = sst [smem:[#allocation93_spill]] %s15269_s3 }
  0x15   :  { %17600 = sst [smem:[#allocation94_spill]] %s15274_s8 }
  0x16   :  { %17601 = sst [smem:[#allocation95_spill]] %s15279_s14 }
  0x17   :  { %s15299_s6 = sld [smem:[%s17516_s0 + %s15132_s1]]   ;;  %s15172_s1 = smov 53  }
  0x18   :  { %17602 = sst [smem:[#allocation96_spill]] %s15289_s24 }
  0x19   :  { %s15304_s12 = sld [smem:[%s17516_s0 + %s15133_s7]]   ;;  %s15137_s7 = smov 18  }
  0x1a   :  { %s15309_s20 = sld [smem:[%s17516_s0 + %s15134_s15]]   ;;  %s15138_s15 = smov 19  }
  0x1b   :  { %s15314_s27 = sld [smem:[%s17516_s0 + %s15135_s22]]   ;;  %s15139_s22 = smov 20  }
  0x1c   :  { %s15319_s4 = sld [smem:[%s17516_s0 + %s15136_s28]]   ;;  %s15140_s28 = smov 21  }
  0x1d   :  { %17603 = sst [smem:[#allocation97_spill]] %s15299_s6 }
  0x1e   :  { %s15324_s13 = sld [smem:[%s17516_s0 + %s15137_s7]]   ;;  %s15141_s7 = smov 22  }
  0x1f   :  { %17604 = sst [smem:[#allocation98_spill]] %s15304_s12 }
  0x20   :  { %17605 = sst [smem:[#allocation99_spill]] %s15309_s20 }
  0x21   :  { %17606 = sst [smem:[#allocation100_spill]] %s15314_s27 }
  0x22   :  { %17607 = sst [smem:[#allocation101_spill]] %s15319_s4 }
  0x23   :  { %s15329_s20 = sld [smem:[%s17516_s0 + %s15138_s15]]   ;;  %s15142_s15 = smov 23  }
  0x24   :  { %17608 = sst [smem:[#allocation102_spill]] %s15324_s13 }
  0x25   :  { %s15334_s27 = sld [smem:[%s17516_s0 + %s15139_s22]]   ;;  %s15143_s22 = smov 24  }
  0x26   :  { %s15339_s4 = sld [smem:[%s17516_s0 + %s15140_s28]]   ;;  %s15144_s28 = smov 25  }
  0x27   :  { %s15344_s13 = sld [smem:[%s17516_s0 + %s15141_s7]]   ;;  %s15145_s7 = smov 26  }
  0x28   :  { %s15349_s9 = sld [smem:[%s17516_s0 + %s15142_s15]]   ;;  %s15146_s15 = smov 27  }
  0x29   :  { %17609 = sst [smem:[#allocation103_spill]] %s15329_s20 }
  0x2b   :  { %17610 = sst [smem:[#allocation104_spill]] %s15334_s27 }
  0x2c   :  { %17611 = sst [smem:[#allocation105_spill]] %s15339_s4 }
  0x2d   :  { %17612 = sst [smem:[#allocation106_spill]] %s15344_s13 }
  0x2e   :  { %17613 = sst [smem:[#allocation107_spill]] %s15349_s9 }
  0x2f   :  { %s15354_s27 = sld [smem:[%s17516_s0 + %s15143_s22]]   ;;  %s15147_s22 = smov 28  }
  0x30   :  { %s15359_s4 = sld [smem:[%s17516_s0 + %s15144_s28]]   ;;  %s15148_s28 = smov 29  }
  0x31   :  { %s15364_s13 = sld [smem:[%s17516_s0 + %s15145_s7]]   ;;  %s15149_s7 = smov 30  }
  0x32   :  { %s15369_s9 = sld [smem:[%s17516_s0 + %s15146_s15]]   ;;  %s15150_s15 = smov 31  }
  0x33   :  { %s15374_s5 = sld [smem:[%s17516_s0 + %s15147_s22]]   ;;  %s15151_s22 = smov 32  }
  0x34   :  { %s15384_s20 = sld [smem:[%s17516_s0 + %s15149_s7]]   ;;  %s15153_s7 = smov 34  }
  0x35   :  { %s15404_s6 = sld [smem:[%s17516_s0 + %s15153_s7]]   ;;  %s15157_s7 = smov 38  }
  0x36   :  { %17614 = sst [smem:[#allocation108_spill]] %s15359_s4 }
  0x37   :  { %17615 = sst [smem:[#allocation109_spill]] %s15364_s13 }
  0x38   :  { %17616 = sst [smem:[#allocation110_spill]] %s15369_s9 }
  0x39   :  { %17617 = sst [smem:[#allocation111_spill]] %s15374_s5 }
  0x3a   :  { %s15379_s4 = sld [smem:[%s17516_s0 + %s15148_s28]]   ;;  %s15152_s28 = smov 33  }
  0x3b   :  { %s15389_s9 = sld [smem:[%s17516_s0 + %s15150_s15]]   ;;  %s15154_s15 = smov 35  }
  0x3c   :  { %s15394_s5 = sld [smem:[%s17516_s0 + %s15151_s22]]   ;;  %s15155_s22 = smov 36  }
  0x3d   :  { %17622 = sst [smem:[#allocation116_spill]] %s15404_s6 }
  0x3e   :  { %s15414_s24 = sld [smem:[%s17516_s0 + %s15155_s22]]   ;;  %s15159_s22 = smov 40  }
  0x3f   :  { %s15424_s14 = sld [smem:[%s17516_s0 + %s15157_s7]]   ;;  %s15161_s7 = smov 42  }
  0x40   :  { %17618 = sst [smem:[#allocation112_spill]] %s15379_s4 }
  0x41   :  { %17619 = sst [smem:[#allocation113_spill]] %s15389_s9 }
  0x42   :  { %17620 = sst [smem:[#allocation114_spill]] %s15394_s5 }
  0x43   :  { %s15399_s4 = sld [smem:[%s17516_s0 + %s15152_s28]]   ;;  %s15156_s28 = smov 37  }
  0x44   :  { %s15409_s9 = sld [smem:[%s17516_s0 + %s15154_s15]]   ;;  %s15158_s15 = smov 39  }
  0x45   :  { %17625 = sst [smem:[#allocation119_spill]] %s15424_s14 }
  0x46   :  { %s15434_s3 = sld [smem:[%s17516_s0 + %s15159_s22]]   ;;  %s15163_s22 = smov 44  }
  0x47   :  { %s15444_s25 = sld [smem:[%s17516_s0 + %s15161_s7]]   ;;  %s15165_s7 = smov 46  }
  0x48   :  { %s15454_s17 = sld [smem:[%s17516_s0 + %s15163_s22]]   ;;  %s15167_s22 = smov 48  }
  0x49   :  { %17621 = sst [smem:[#allocation115_spill]] %s15399_s4 }
  0x4a   :  { %17623 = sst [smem:[#allocation117_spill]] %s15409_s9 }
  0x4b   :  { %s15419_s4 = sld [smem:[%s17516_s0 + %s15156_s28]]   ;;  %s15160_s28 = smov 41  }
  0x4c   :  { %s15429_s9 = sld [smem:[%s17516_s0 + %s15158_s15]]   ;;  %s15162_s15 = smov 43  }
  0x4d   :  { %17627 = sst [smem:[#allocation121_spill]] %s15434_s3 }
  0x4e   :  { %17629 = sst [smem:[#allocation123_spill]] %s15444_s25 }
  0x4f   :  { %17631 = sst [smem:[#allocation125_spill]] %s15454_s17 }
  0x50   :  { %s15464_s25 = sld [smem:[%s17516_s0 + %s15165_s7]]   ;;  %s15169_s7 = smov 50  }
  0x51   :  { %17624 = sst [smem:[#allocation118_spill]] %s15419_s4 }
  0x52   :  { %17626 = sst [smem:[#allocation120_spill]] %s15429_s9 }
  0x53   :  { %s15439_s4 = sld [smem:[%s17516_s0 + %s15160_s28]]   ;;  %s15164_s28 = smov 45  }
  0x54   :  { %s15449_s9 = sld [smem:[%s17516_s0 + %s15162_s15]]   ;;  %s15166_s15 = smov 47  }
  0x55   :  { %s15474_s17 = sld [smem:[%s17516_s0 + %s15167_s22]]   ;;  %s15171_s22 = smov 52  }
  0x56   :  { %17633 = sst [smem:[#allocation127_spill]] %s15464_s25 }
  0x57   :  { %s15484_s25 = sld [smem:[%s17516_s0 + %s15169_s7]]  }
  0x59   :  { %17628 = sst [smem:[#allocation122_spill]] %s15439_s4 }
  0x5a   :  { %17630 = sst [smem:[#allocation124_spill]] %s15449_s9 }
  0x5b   :  { %s15459_s4 = sld [smem:[%s17516_s0 + %s15164_s28]]   ;;  %s15168_s28 = smov 49  }
  0x5c   :  { %s15469_s9 = sld [smem:[%s17516_s0 + %s15166_s15]]   ;;  %s15170_s15 = smov 51  }
  0x5d   :  { %17635 = sst [smem:[#allocation129_spill]] %s15474_s17 }
  0x5e   :  { %s11151_s17 = sld [smem:[%s17516_s0 + %s15171_s22]]  }
  0x61   :  { %17632 = sst [smem:[#allocation126_spill]] %s15459_s4 }
  0x62   :  { %17634 = sst [smem:[#allocation128_spill]] %s15469_s9 }
  0x63   :  { %s15479_s4 = sld [smem:[%s17516_s0 + %s15168_s28]]  }
  0x64   :  { %s15489_s9 = sld [smem:[%s17516_s0 + %s15170_s15]]   ;;  %v112_v0 = vstv %s11151_s17 }
  0x65   :  { %113 = vst [vmem:[#allocation8] sm:$0x1] %v112_v0 }
  0x69   :  { %17636 = sst [smem:[#allocation130_spill]] %s15479_s4 }
  0x6a   :  { %17637 = sst [smem:[#allocation131_spill]] %s15489_s9 }
  0x6b   :  { %s15497_s4 = sld [smem:[%s17516_s0 + %s15172_s1]]  }
  0x6c   :  { %114 = vsyncpa [#allocation10], 0 }
  0x6d   :  { %115 = vsyncpa [#allocation13], 0 }
  0x6e   :  { %116 = vsyncpa [#allocation16], 0 }
  0x6f   :  { %117 = vsyncpa [#allocation19], 0 }
  0x70   :  { %118 = vsyncpa [#allocation22], 0 }
  0x71   :  { %119 = vsyncpa [#allocation25], 0 }
  0x72   :  { %120 = vsyncpa [#allocation28], 0 }
  0x73   :  { %121 = vsyncpa [#allocation31], 0 }
  0x74   :  { %122 = vsyncpa [#allocation34], 0 }
  0x75   :  { %123 = vsyncpa [#allocation37], 0 }
  0x76   :  { %124 = vsyncpa [#allocation40], 0 }
  0x77   :  { %125 = vsyncpa [#allocation43], 0 }
  0x78   :  { %126 = vsyncpa [#allocation46], 0 }
  0x79   :  { %127 = vsyncpa [#allocation49], 0 }
  0x7a   :  { %128 = vsyncpa [#allocation52], 0 }
  0x7b   :  { %129 = vsyncpa [#allocation55], 0 }
  0x7c   :  { %130 = vsyncpa [#allocation58], 0 }
  0x7d   :  { %131 = vsyncpa [#allocation61], 0 }
  0x7e   :  { %132 = vsyncpa [#allocation64], 0 }
  0x7f   :  { %133 = vsyncpa [#allocation11], 0 }
  0x80   :  { %135 = vsyncpa [#allocation11 + $0x1], 0  ;;  %s15499_s0 = smov 0   ;;  %s15501_s17 = smov 0  }
  0x81   :  { %s15503_s7 = smov 0   ;;  %s15505_s10 = smov 0  }
  0x82 LB: > { %s17638_s9 = sld [smem:[#allocation131_spill]]  ;;  %s17639_s14 = sld [smem:[#allocation119_spill]]  ;;  %s15106_s0 = sphi %s15499_s0, %s17806_s0   ;;  %s15118_s10 = sphi %s15505_s10, %s17803_s10   ;;  %s15114_s7 = sphi %s15503_s7, %s17805_s7   ;;  %s15110_s17 = sphi %s15501_s17, %s17807_s17  }
  0x83   : > { %s17640_s13 = sld [smem:[#allocation109_spill]]  ;;  %s17641_s12 = sld [smem:[#allocation98_spill]] }
  0x84   : > { %s17642_s8 = sld [smem:[#allocation94_spill]]  ;;  %s17643_s6 = sld [smem:[#allocation116_spill]] }
  0x85   : > { %s17644_s5 = sld [smem:[#allocation114_spill]]  ;;  %s17645_s3 = sld [smem:[#allocation121_spill]] }
  0x86   : > { %s17646_s21 = sld [smem:[#allocation91_spill]]  ;;  %17647 = sst [smem:[#allocation132_spill]] %s15114_s7 }
  0x87   : > { %s15520_s11 = sadd.s32 4294967295, %s15118_s10   ;;  %s11154_s15 = sadd.s32 4294967294, %s15118_s10  }
  0x88   : > { %s15524_s16 = sadd.s32 1, %s15118_s10   ;;  %s1266_s18 = sadd.s32 1, %s15114_s7 }
  0x89   : > { %17648 = sst [smem:[#allocation133_spill]] %s15524_s16  ;;  %s1263_s22 = ssub.s32 %s15118_s10, %s15524_s16 }
  0x8a   : > { %p1276_p0 = scmp.ne.s32.totalorder %s15114_s7, %s15110_s17  ;;  %p1264_p1 = scmp.eq.s32.totalorder %s1263_s22, 0 }
  0x8b   : > { %p1277_p2 = scmp.eq.s32.totalorder %s15520_s11, 1  ;;  %p1282_p3 = scmp.ne.s32.totalorder %s15110_s17, %s15106_s0 }
  0x8c   : > { %p1283_p4 = scmp.eq.s32.totalorder %s11154_s15, 1  ;;  %p11155_p7 = scmp.ge.s32.totalorder %s15118_s10, 1 }
  0x8d   : > { %s15535_s23 = scalar_select %p1264_p1, %s15114_s7, %s1266_s18  }
  0x8e   : > { %p15537_p5 = por %p1277_p2, %p1276_p0  ;;  %p15541_p6 = por %p1283_p4, %p1282_p3 }
  0x8f   : > { %17649 = sst [smem:[#allocation134_spill]] %s15535_s23  ;;  %p1290_p8 = scmp.lt.s32.totalorder %s15118_s10, 3 }
  0x90   : > { %s17650_s26 = scalar_select %p15537_p5, 1, 0 }
  0x91   : > { %s17651_s1 = scalar_select %p15541_p6, 1, 0 }
  0x92   : > { %p15547_p9 = pnand %p11155_p7, %p1290_p8 }
  0x93   : > { %p12855_p10 = scmp.eq.s32.totalorder (!%p15547_p9), %s15520_s11, 0  ;;  %s15173_s2 = smov (!%p15547_p9), [#allocation12]  }
  0x94   : > { %1294 = sbr.rel (%p15547_p9) target bundleno = 1050 (0x41a), region = 12  ;;  %s1322_s15 = sshll.u32 (!%p15547_p9), %s15173_s2, 4  ;;  %s1323_s15 = int_to_ptr.vmem [resolvable:$true] %s1322_s15 }
  0x95   : > { %s15174_s18 = smov (!%p15547_p9), [#allocation15]   ;;  %s14018_s23 = scalar_lea.hbm (!%p15547_p9), %s17646_s21, 16 }
  0x96   : > { %s1346_s22 = sshll.u32 (!%p15547_p9), %s15174_s18, 4  ;;  %p14019_p11 = scmp.ne.s32.totalorder (!%p15547_p9), %s17646_s21, %s14018_s23  ;;  %s1347_s22 = int_to_ptr.vmem [resolvable:$true] %s1346_s22 }
  0x97   : > { %p14024_p0 = scmp.lt.u32.totalorder (!%p15547_p9), %s14018_s23, %s17646_s21 }
  0x98   : > { %p14020_p12 = pnand (!%p15547_p9), %p14019_p11, %p12855_p10 }
  0x9a   : > { %p14021_p13 = pneg (!%p15547_p9), %p14020_p12 }
  0x9c   : > { %p14026_p1 = pnand %p14024_p0, %p14021_p13 }
  0x9e   : > { %14029 = shalt.err (!%p14026_p1)
}
  0x9f   : > { %s14030_s7 = scalar_lea.vmem %s1323_s15, 16  ;;  %s14036_s16 = scalar_lea.vmem %s1323_s15, 32 }
  0xa0   : > { %p14031_p2 = scmp.ne.s32.totalorder %s1323_s15, %s14030_s7  ;;  %p14037_p7 = scmp.lt.s32.totalorder %s1323_s15, %s1323_s15 }
  0xa1   : > { %p14038_p8 = scmp.lt.s32.totalorder %s14036_s16, %s14030_s7 }
  0xa2   : > { %p14032_p3 = pnand %p14031_p2, %p12855_p10 }
  0xa3   : > { %p14039_p6 = por %p14038_p8, %p14037_p7 }
  0xa4   : > { %p14033_p4 = pneg %p14032_p3 }
  0xa6   : > { %p14040_p5 = pnand %p14039_p6, %p14033_p4 }
  0xa8   : > { %14043 = shalt.err (!%p14040_p5)
}
  0xa9   : > { %12704 = dma.hbm_to_vmem [thread:$0]  (%p12855_p10), %s17646_s21, 16, %s1323_s15, [#allocation13]  }
  0xaa   : > { %s14044_s23 = scalar_lea.hbm %s15264_s29, 16 }
  0xab   : > { %p14045_p11 = scmp.ne.s32.totalorder %s15264_s29, %s14044_s23  ;;  %p14050_p0 = scmp.lt.u32.totalorder %s14044_s23, %s15264_s29 }
  0xad   : > { %p14046_p12 = pnand %p14045_p11, %p12855_p10 }
  0xaf   : > { %p14047_p13 = pneg %p14046_p12 }
  0xb1   : > { %p14052_p1 = pnand %p14050_p0, %p14047_p13 }
  0xb3   : > { %14055 = shalt.err (!%p14052_p1)
}
  0xb4   : > { %s14056_s7 = scalar_lea.vmem %s1347_s22, 16  ;;  %s14062_s16 = scalar_lea.vmem %s1347_s22, 32 }
  0xb5   : > { %p14057_p5 = scmp.ne.s32.totalorder %s1347_s22, %s14056_s7  ;;  %p14063_p3 = scmp.lt.s32.totalorder %s1347_s22, %s1347_s22 }
  0xb6   : > { %p14064_p4 = scmp.lt.s32.totalorder %s14062_s16, %s14056_s7 }
  0xb7   : > { %p14058_p6 = pnand %p14057_p5, %p12855_p10 }
  0xb8   : > { %p14065_p7 = por %p14064_p4, %p14063_p3 }
  0xb9   : > { %p14059_p2 = pneg %p14058_p6 }
  0xbb   : > { %p14066_p8 = pnand %p14065_p7, %p14059_p2 }
  0xbd   : > { %14069 = shalt.err (!%p14066_p8)
}
  0xbe   : > { %12708 = dma.hbm_to_vmem [thread:$0]  (%p12855_p10), %s15264_s29, 16, %s1347_s22, [#allocation16]  }
  0xbf   : > { %s15175_s2 = smov [#allocation18]   ;;  %s15176_s18 = smov [#allocation21]  }
  0xc0   : > { %s1370_s15 = sshll.u32 %s15175_s2, 4  ;;  %s1394_s23 = sshll.u32 %s15176_s18, 4  ;;  %s1371_s15 = int_to_ptr.vmem [resolvable:$true] %s1370_s15  ;;  %s1395_s23 = int_to_ptr.vmem [resolvable:$true] %s1394_s23 }
  0xc1   : > { %s14070_s21 = scalar_lea.hbm %s17642_s8, 16 }
  0xc2   : > { %p14071_p11 = scmp.ne.s32.totalorder %s17642_s8, %s14070_s21  ;;  %p14076_p0 = scmp.lt.u32.totalorder %s14070_s21, %s17642_s8 }
  0xc4   : > { %p14072_p12 = pnand %p14071_p11, %p12855_p10 }
  0xc6   : > { %p14073_p13 = pneg %p14072_p12 }
  0xc8   : > { %p14078_p1 = pnand %p14076_p0, %p14073_p13 }
  0xca   : > { %14081 = shalt.err (!%p14078_p1)
}
  0xcb   : > { %s14082_s7 = scalar_lea.vmem %s1371_s15, 16  ;;  %s14088_s22 = scalar_lea.vmem %s1371_s15, 32 }
  0xcc   : > { %p14083_p5 = scmp.ne.s32.totalorder %s1371_s15, %s14082_s7  ;;  %p14089_p3 = scmp.lt.s32.totalorder %s1371_s15, %s1371_s15 }
  0xcd   : > { %p14090_p4 = scmp.lt.s32.totalorder %s14088_s22, %s14082_s7 }
  0xce   : > { %p14084_p6 = pnand %p14083_p5, %p12855_p10 }
  0xcf   : > { %p14091_p7 = por %p14090_p4, %p14089_p3 }
  0xd0   : > { %p14085_p2 = pneg %p14084_p6 }
  0xd2   : > { %p14092_p8 = pnand %p14091_p7, %p14085_p2 }
  0xd4   : > { %14095 = shalt.err (!%p14092_p8)
}
  0xd5   : > { %12712 = dma.hbm_to_vmem [thread:$0]  (%p12855_p10), %s17642_s8, 16, %s1371_s15, [#allocation19]  }
  0xd6   : > { %s14096_s21 = scalar_lea.hbm %s15284_s19, 16 }
  0xd7   : > { %p14097_p11 = scmp.ne.s32.totalorder %s15284_s19, %s14096_s21  ;;  %p14102_p0 = scmp.lt.u32.totalorder %s14096_s21, %s15284_s19 }
  0xd9   : > { %p14098_p12 = pnand %p14097_p11, %p12855_p10 }
  0xdb   : > { %p14099_p13 = pneg %p14098_p12 }
  0xdd   : > { %p14104_p1 = pnand %p14102_p0, %p14099_p13 }
  0xdf   : > { %14107 = shalt.err (!%p14104_p1)
}
  0xe0   : > { %s14108_s16 = scalar_lea.vmem %s1395_s23, 16  ;;  %s14114_s2 = scalar_lea.vmem %s1395_s23, 32 }
  0xe1   : > { %p14109_p5 = scmp.ne.s32.totalorder %s1395_s23, %s14108_s16  ;;  %p14115_p3 = scmp.lt.s32.totalorder %s1395_s23, %s1395_s23 }
  0xe2   : > { %p14116_p4 = scmp.lt.s32.totalorder %s14114_s2, %s14108_s16 }
  0xe3   : > { %p14110_p6 = pnand %p14109_p5, %p12855_p10 }
  0xe4   : > { %p14117_p7 = por %p14116_p4, %p14115_p3 }
  0xe5   : > { %p14111_p2 = pneg %p14110_p6 }
  0xe7   : > { %p14118_p8 = pnand %p14117_p7, %p14111_p2 }
  0xe9   : > { %14121 = shalt.err (!%p14118_p8)
}
  0xea   : > { %12716 = dma.hbm_to_vmem [thread:$0]  (%p12855_p10), %s15284_s19, 16, %s1395_s23, [#allocation22]  }
  0xeb   : > { %s15177_s15 = smov [#allocation24]   ;;  %s15178_s7 = smov [#allocation27]  }
  0xec   : > { %s1418_s18 = sshll.u32 %s15177_s15, 4  ;;  %s1442_s22 = sshll.u32 %s15178_s7, 4  ;;  %s1419_s18 = int_to_ptr.vmem [resolvable:$true] %s1418_s18  ;;  %s1443_s22 = int_to_ptr.vmem [resolvable:$true] %s1442_s22 }
  0xed   : > { %s14122_s21 = scalar_lea.hbm %s15294_s30, 16 }
  0xee   : > { %p14123_p11 = scmp.ne.s32.totalorder %s15294_s30, %s14122_s21  ;;  %p14128_p0 = scmp.lt.u32.totalorder %s14122_s21, %s15294_s30 }
  0xf0   : > { %p14124_p12 = pnand %p14123_p11, %p12855_p10 }
  0xf2   : > { %p14125_p13 = pneg %p14124_p12 }
  0xf4   : > { %p14130_p1 = pnand %p14128_p0, %p14125_p13 }
  0xf6   : > { %14133 = shalt.err (!%p14130_p1)
}
  0xf7   : > { %s14134_s16 = scalar_lea.vmem %s1419_s18, 16  ;;  %s14140_s23 = scalar_lea.vmem %s1419_s18, 32 }
  0xf8   : > { %p14135_p5 = scmp.ne.s32.totalorder %s1419_s18, %s14134_s16  ;;  %p14141_p3 = scmp.lt.s32.totalorder %s1419_s18, %s1419_s18 }
  0xf9   : > { %p14142_p4 = scmp.lt.s32.totalorder %s14140_s23, %s14134_s16 }
  0xfa   : > { %p14136_p6 = pnand %p14135_p5, %p12855_p10 }
  0xfb   : > { %p14143_p7 = por %p14142_p4, %p14141_p3 }
  0xfc   : > { %p14137_p2 = pneg %p14136_p6 }
  0xfe   : > { %p14144_p8 = pnand %p14143_p7, %p14137_p2 }
 0x100   : > { %14147 = shalt.err (!%p14144_p8)
}
 0x101   : > { %12720 = dma.hbm_to_vmem [thread:$0]  (%p12855_p10), %s15294_s30, 16, %s1419_s18, [#allocation25]  }
 0x102   : > { %s14148_s2 = scalar_lea.hbm %s17641_s12, 16 }
 0x103   : > { %p14149_p11 = scmp.ne.s32.totalorder %s17641_s12, %s14148_s2  ;;  %p14154_p0 = scmp.lt.u32.totalorder %s14148_s2, %s17641_s12 }
 0x105   : > { %p14150_p12 = pnand %p14149_p11, %p12855_p10 }
 0x107   : > { %p14151_p13 = pneg %p14150_p12 }
 0x109   : > { %p14156_p1 = pnand %p14154_p0, %p14151_p13 }
 0x10b   : > { %14159 = shalt.err (!%p14156_p1)
}
 0x10c   : > { %s14160_s15 = scalar_lea.vmem %s1443_s22, 16  ;;  %s14166_s7 = scalar_lea.vmem %s1443_s22, 32 }
 0x10d   : > { %p14161_p5 = scmp.ne.s32.totalorder %s1443_s22, %s14160_s15  ;;  %p14167_p3 = scmp.lt.s32.totalorder %s1443_s22, %s1443_s22 }
 0x10e   : > { %p14168_p4 = scmp.lt.s32.totalorder %s14166_s7, %s14160_s15 }
 0x10f   : > { %p14162_p6 = pnand %p14161_p5, %p12855_p10 }
 0x110   : > { %p14169_p7 = por %p14168_p4, %p14167_p3 }
 0x111   : > { %p14163_p2 = pneg %p14162_p6 }
 0x113   : > { %p14170_p8 = pnand %p14169_p7, %p14163_p2 }
 0x115   : > { %14173 = shalt.err (!%p14170_p8)
}
 0x116   : > { %12724 = dma.hbm_to_vmem [thread:$0]  (%p12855_p10), %s17641_s12, 16, %s1443_s22, [#allocation28]  }
 0x117   : > { %s15179_s18 = smov [#allocation30]   ;;  %s15180_s16 = smov [#allocation33]  }
 0x118   : > { %s1490_s21 = sshll.u32 %s15179_s18, 4  ;;  %s1514_s23 = sshll.u32 %s15180_s16, 4  ;;  %s1491_s21 = int_to_ptr.vmem [resolvable:$true] %s1490_s21  ;;  %s1515_s23 = int_to_ptr.vmem [resolvable:$true] %s1514_s23 }
 0x119   : > { %s14174_s2 = scalar_lea.hbm %s15354_s27, 96 }
 0x11a   : > { %p14175_p11 = scmp.ne.s32.totalorder %s15354_s27, %s14174_s2  ;;  %p14180_p0 = scmp.lt.u32.totalorder %s14174_s2, %s15354_s27 }
 0x11c   : > { %p14176_p12 = pnand %p14175_p11, %p12855_p10 }
 0x11e   : > { %p14177_p13 = pneg %p14176_p12 }
 0x120   : > { %p14182_p1 = pnand %p14180_p0, %p14177_p13 }
 0x122   : > { %14185 = shalt.err (!%p14182_p1)
}
 0x123   : > { %s14186_s15 = scalar_lea.vmem %s1491_s21, 96  ;;  %p14193_p3 = scmp.lt.s32.totalorder %s1491_s21, %s1491_s21 }
 0x124   : > { %p14187_p5 = scmp.ne.s32.totalorder %s1491_s21, %s14186_s15  ;;  %p14194_p4 = scmp.lt.s32.totalorder %s14186_s15, %s14186_s15 }
 0x126   : > { %p14188_p6 = pnand %p14187_p5, %p12855_p10  ;;  %p14195_p7 = por %p14194_p4, %p14193_p3 }
 0x128   : > { %p14189_p2 = pneg %p14188_p6 }
 0x12a   : > { %p14196_p8 = pnand %p14195_p7, %p14189_p2 }
 0x12c   : > { %14199 = shalt.err (!%p14196_p8)
}
 0x12d   : > { %12728 = dma.hbm_to_vmem [thread:$0]  (%p12855_p10), %s15354_s27, 96, %s1491_s21, [#allocation31]  }
 0x12e   : > { %s14200_s22 = scalar_lea.hbm %s17640_s13, 32 }
 0x12f   : > { %p14201_p11 = scmp.ne.s32.totalorder %s17640_s13, %s14200_s22  ;;  %p14206_p0 = scmp.lt.u32.totalorder %s14200_s22, %s17640_s13 }
 0x131   : > { %p14202_p12 = pnand %p14201_p11, %p12855_p10 }
 0x133   : > { %p14203_p13 = pneg %p14202_p12 }
 0x135   : > { %p14208_p1 = pnand %p14206_p0, %p14203_p13 }
 0x137   : > { %14211 = shalt.err (!%p14208_p1)
}
 0x138   : > { %s14212_s7 = scalar_lea.vmem %s1515_s23, 32  ;;  %p14219_p3 = scmp.lt.s32.totalorder %s1515_s23, %s1515_s23 }
 0x139   : > { %p14213_p5 = scmp.ne.s32.totalorder %s1515_s23, %s14212_s7  ;;  %p14220_p4 = scmp.lt.s32.totalorder %s14212_s7, %s14212_s7 }
 0x13b   : > { %p14214_p6 = pnand %p14213_p5, %p12855_p10  ;;  %p14221_p7 = por %p14220_p4, %p14219_p3 }
 0x13d   : > { %p14215_p2 = pneg %p14214_p6 }
 0x13f   : > { %p14222_p8 = pnand %p14221_p7, %p14215_p2 }
 0x141   : > { %14225 = shalt.err (!%p14222_p8)
}
 0x142   : > { %12732 = dma.hbm_to_vmem [thread:$0]  (%p12855_p10), %s17640_s13, 32, %s1515_s23, [#allocation34]  }
 0x143   : > { %s15181_s18 = smov [#allocation36]   ;;  %s15182_s16 = smov [#allocation39]  }
 0x144   : > { %s1544_s21 = sshll.u32 %s15181_s18, 4  ;;  %s1568_s2 = sshll.u32 %s15182_s16, 4  ;;  %s1545_s21 = int_to_ptr.vmem [resolvable:$true] %s1544_s21  ;;  %s1569_s2 = int_to_ptr.vmem [resolvable:$true] %s1568_s2 }
 0x145   : > { %s14226_s15 = scalar_lea.hbm %s15384_s20, 64 }
 0x146   : > { %p14227_p11 = scmp.ne.s32.totalorder %s15384_s20, %s14226_s15  ;;  %p14232_p0 = scmp.lt.u32.totalorder %s14226_s15, %s15384_s20 }
 0x148   : > { %p14228_p12 = pnand %p14227_p11, %p12855_p10 }
 0x14a   : > { %p14229_p13 = pneg %p14228_p12 }
 0x14c   : > { %p14234_p1 = pnand %p14232_p0, %p14229_p13 }
 0x14e   : > { %14237 = shalt.err (!%p14234_p1)
}
 0x14f   : > { %s14238_s22 = scalar_lea.vmem %s1545_s21, 64  ;;  %p14245_p3 = scmp.lt.s32.totalorder %s1545_s21, %s1545_s21 }
 0x150   : > { %p14239_p5 = scmp.ne.s32.totalorder %s1545_s21, %s14238_s22  ;;  %p14246_p4 = scmp.lt.s32.totalorder %s14238_s22, %s14238_s22 }
 0x152   : > { %p14240_p6 = pnand %p14239_p5, %p12855_p10  ;;  %p14247_p7 = por %p14246_p4, %p14245_p3 }
 0x154   : > { %p14241_p2 = pneg %p14240_p6 }
 0x156   : > { %p14248_p8 = pnand %p14247_p7, %p14241_p2 }
 0x158   : > { %14251 = shalt.err (!%p14248_p8)
}
 0x159   : > { %12736 = dma.hbm_to_vmem [thread:$0]  (%p12855_p10), %s15384_s20, 64, %s1545_s21, [#allocation37]  }
 0x15a   : > { %s14252_s23 = scalar_lea.hbm %s17644_s5, 32 }
 0x15b   : > { %p14253_p11 = scmp.ne.s32.totalorder %s17644_s5, %s14252_s23  ;;  %p14258_p0 = scmp.lt.u32.totalorder %s14252_s23, %s17644_s5 }
 0x15d   : > { %p14254_p12 = pnand %p14253_p11, %p12855_p10 }
 0x15f   : > { %p14255_p13 = pneg %p14254_p12 }
 0x161   : > { %p14260_p1 = pnand %p14258_p0, %p14255_p13 }
 0x163   : > { %14263 = shalt.err (!%p14260_p1)
}
 0x164   : > { %s14264_s7 = scalar_lea.vmem %s1569_s2, 32  ;;  %p14271_p3 = scmp.lt.s32.totalorder %s1569_s2, %s1569_s2 }
 0x165   : > { %p14265_p5 = scmp.ne.s32.totalorder %s1569_s2, %s14264_s7  ;;  %p14272_p4 = scmp.lt.s32.totalorder %s14264_s7, %s14264_s7 }
 0x167   : > { %p14266_p6 = pnand %p14265_p5, %p12855_p10  ;;  %p14273_p7 = por %p14272_p4, %p14271_p3 }
 0x169   : > { %p14267_p2 = pneg %p14266_p6 }
 0x16b   : > { %p14274_p8 = pnand %p14273_p7, %p14267_p2 }
 0x16d   : > { %14277 = shalt.err (!%p14274_p8)
}
 0x16e   : > { %12740 = dma.hbm_to_vmem [thread:$0]  (%p12855_p10), %s17644_s5, 32, %s1569_s2, [#allocation40]  }
 0x16f   : > { %s15183_s18 = smov [#allocation42]   ;;  %s15184_s16 = smov [#allocation45]  }
 0x170   : > { %s1592_s21 = sshll.u32 %s15183_s18, 4  ;;  %s1616_s15 = sshll.u32 %s15184_s16, 4  ;;  %s1593_s21 = int_to_ptr.vmem [resolvable:$true] %s1592_s21  ;;  %s1617_s15 = int_to_ptr.vmem [resolvable:$true] %s1616_s15 }
 0x171   : > { %s14278_s22 = scalar_lea.hbm %s17643_s6, 32 }
 0x172   : > { %p14279_p11 = scmp.ne.s32.totalorder %s17643_s6, %s14278_s22  ;;  %p14284_p0 = scmp.lt.u32.totalorder %s14278_s22, %s17643_s6 }
 0x174   : > { %p14280_p12 = pnand %p14279_p11, %p12855_p10 }
 0x176   : > { %p14281_p13 = pneg %p14280_p12 }
 0x178   : > { %p14286_p1 = pnand %p14284_p0, %p14281_p13 }
 0x17a   : > { %14289 = shalt.err (!%p14286_p1)
}
 0x17b   : > { %s14290_s23 = scalar_lea.vmem %s1593_s21, 32  ;;  %p14297_p3 = scmp.lt.s32.totalorder %s1593_s21, %s1593_s21 }
 0x17c   : > { %p14291_p5 = scmp.ne.s32.totalorder %s1593_s21, %s14290_s23  ;;  %p14298_p4 = scmp.lt.s32.totalorder %s14290_s23, %s14290_s23 }
 0x17e   : > { %p14292_p6 = pnand %p14291_p5, %p12855_p10  ;;  %p14299_p7 = por %p14298_p4, %p14297_p3 }
 0x180   : > { %p14293_p2 = pneg %p14292_p6 }
 0x182   : > { %p14300_p8 = pnand %p14299_p7, %p14293_p2 }
 0x184   : > { %14303 = shalt.err (!%p14300_p8)
}
 0x185   : > { %12744 = dma.hbm_to_vmem [thread:$0]  (%p12855_p10), %s17643_s6, 32, %s1593_s21, [#allocation43]  }
 0x186   : > { %s14304_s2 = scalar_lea.hbm %s15414_s24, 32 }
 0x187   : > { %p14305_p11 = scmp.ne.s32.totalorder %s15414_s24, %s14304_s2  ;;  %p14310_p0 = scmp.lt.u32.totalorder %s14304_s2, %s15414_s24 }
 0x189   : > { %p14306_p12 = pnand %p14305_p11, %p12855_p10 }
 0x18b   : > { %p14307_p13 = pneg %p14306_p12 }
 0x18d   : > { %p14312_p1 = pnand %p14310_p0, %p14307_p13 }
 0x18f   : > { %14315 = shalt.err (!%p14312_p1)
}
 0x190   : > { %s14316_s7 = scalar_lea.vmem %s1617_s15, 32  ;;  %p14323_p3 = scmp.lt.s32.totalorder %s1617_s15, %s1617_s15 }
 0x191   : > { %p14317_p5 = scmp.ne.s32.totalorder %s1617_s15, %s14316_s7  ;;  %p14324_p4 = scmp.lt.s32.totalorder %s14316_s7, %s14316_s7 }
 0x193   : > { %p14318_p6 = pnand %p14317_p5, %p12855_p10  ;;  %p14325_p7 = por %p14324_p4, %p14323_p3 }
 0x195   : > { %p14319_p2 = pneg %p14318_p6 }
 0x197   : > { %p14326_p8 = pnand %p14325_p7, %p14319_p2 }
 0x199   : > { %14329 = shalt.err (!%p14326_p8)
}
 0x19a   : > { %12748 = dma.hbm_to_vmem [thread:$0]  (%p12855_p10), %s15414_s24, 32, %s1617_s15, [#allocation46]  }
 0x19b   : > { %s15185_s18 = smov [#allocation48]   ;;  %s15186_s16 = smov [#allocation51]  }
 0x19c   : > { %s1640_s21 = sshll.u32 %s15185_s18, 4  ;;  %s1664_s22 = sshll.u32 %s15186_s16, 4  ;;  %s1641_s21 = int_to_ptr.vmem [resolvable:$true] %s1640_s21  ;;  %s1665_s22 = int_to_ptr.vmem [resolvable:$true] %s1664_s22 }
 0x19d   : > { %s14330_s23 = scalar_lea.hbm %s17639_s14, 16 }
 0x19e   : > { %p14331_p11 = scmp.ne.s32.totalorder %s17639_s14, %s14330_s23  ;;  %p14336_p0 = scmp.lt.u32.totalorder %s14330_s23, %s17639_s14 }
 0x1a0   : > { %p14332_p12 = pnand %p14331_p11, %p12855_p10 }
 0x1a2   : > { %p14333_p13 = pneg %p14332_p12 }
 0x1a4   : > { %p14338_p1 = pnand %p14336_p0, %p14333_p13 }
 0x1a6   : > { %14341 = shalt.err (!%p14338_p1)
}
 0x1a7   : > { %s14342_s2 = scalar_lea.vmem %s1641_s21, 16  ;;  %s14348_s15 = scalar_lea.vmem %s1641_s21, 32 }
 0x1a8   : > { %p14343_p5 = scmp.ne.s32.totalorder %s1641_s21, %s14342_s2  ;;  %p14349_p3 = scmp.lt.s32.totalorder %s1641_s21, %s1641_s21 }
 0x1a9   : > { %p14350_p4 = scmp.lt.s32.totalorder %s14348_s15, %s14342_s2 }
 0x1aa   : > { %p14344_p6 = pnand %p14343_p5, %p12855_p10 }
 0x1ab   : > { %p14351_p7 = por %p14350_p4, %p14349_p3 }
 0x1ac   : > { %p14345_p2 = pneg %p14344_p6 }
 0x1ae   : > { %p14352_p8 = pnand %p14351_p7, %p14345_p2 }
 0x1b0   : > { %14355 = shalt.err (!%p14352_p8)
}
 0x1b1   : > { %12752 = dma.hbm_to_vmem [thread:$0]  (%p12855_p10), %s17639_s14, 16, %s1641_s21, [#allocation49]  }
 0x1b2   : > { %s14356_s7 = scalar_lea.hbm %s17645_s3, 16 }
 0x1b3   : > { %p14357_p11 = scmp.ne.s32.totalorder %s17645_s3, %s14356_s7  ;;  %p14362_p0 = scmp.lt.u32.totalorder %s14356_s7, %s17645_s3 }
 0x1b5   : > { %p14358_p12 = pnand %p14357_p11, %p12855_p10 }
 0x1b7   : > { %p14359_p13 = pneg %p14358_p12 }
 0x1b9   : > { %p14364_p1 = pnand %p14362_p0, %p14359_p13 }
 0x1bb   : > { %14367 = shalt.err (!%p14364_p1)
}
 0x1bc   : > { %s14368_s18 = scalar_lea.vmem %s1665_s22, 16  ;;  %s14374_s16 = scalar_lea.vmem %s1665_s22, 32 }
 0x1bd   : > { %p14369_p5 = scmp.ne.s32.totalorder %s1665_s22, %s14368_s18  ;;  %p14375_p3 = scmp.lt.s32.totalorder %s1665_s22, %s1665_s22 }
 0x1be   : > { %p14376_p4 = scmp.lt.s32.totalorder %s14374_s16, %s14368_s18 }
 0x1bf   : > { %p14370_p6 = pnand %p14369_p5, %p12855_p10 }
 0x1c0   : > { %p14377_p7 = por %p14376_p4, %p14375_p3 }
 0x1c1   : > { %p14371_p2 = pneg %p14370_p6 }
 0x1c3   : > { %p14378_p8 = pnand %p14377_p7, %p14371_p2 }
 0x1c5   : > { %14381 = shalt.err (!%p14378_p8)
}
 0x1c6   : > { %s17653_s21 = sld [smem:[#allocation123_spill]]  ;;  %s15187_s23 = smov [#allocation54]  }
 0x1c7   : > { %12756 = dma.hbm_to_vmem [thread:$0]  (%p12855_p10), %s17645_s3, 16, %s1665_s22, [#allocation52]  }
 0x1c8   : > { %s1688_s2 = sshll.u32 %s15187_s23, 4  ;;  %s1689_s2 = int_to_ptr.vmem [resolvable:$true] %s1688_s2 }
 0x1cc   : > { %s14382_s15 = scalar_lea.hbm %s17653_s21, 16 }
 0x1cd   : > { %p14383_p11 = scmp.ne.s32.totalorder %s17653_s21, %s14382_s15  ;;  %p14388_p0 = scmp.lt.u32.totalorder %s14382_s15, %s17653_s21 }
 0x1cf   : > { %p14384_p12 = pnand %p14383_p11, %p12855_p10 }
 0x1d1   : > { %p14385_p13 = pneg %p14384_p12 }
 0x1d3   : > { %p14390_p1 = pnand %p14388_p0, %p14385_p13 }
 0x1d5   : > { %14393 = shalt.err (!%p14390_p1)
}
 0x1d6   : > { %s14394_s7 = scalar_lea.vmem %s1689_s2, 16  ;;  %s14400_s18 = scalar_lea.vmem %s1689_s2, 32 }
 0x1d7   : > { %p14395_p5 = scmp.ne.s32.totalorder %s1689_s2, %s14394_s7  ;;  %p14401_p3 = scmp.lt.s32.totalorder %s1689_s2, %s1689_s2 }
 0x1d8   : > { %p14402_p4 = scmp.lt.s32.totalorder %s14400_s18, %s14394_s7 }
 0x1d9   : > { %p14396_p6 = pnand %p14395_p5, %p12855_p10 }
 0x1da   : > { %p14403_p7 = por %p14402_p4, %p14401_p3 }
 0x1db   : > { %p14397_p2 = pneg %p14396_p6 }
 0x1dd   : > { %p14404_p8 = pnand %p14403_p7, %p14397_p2 }
 0x1df   : > { %14407 = shalt.err (!%p14404_p8)
}
 0x1e0   : > { %s17654_s22 = sld [smem:[#allocation126_spill]]  ;;  %s15188_s16 = smov [#allocation57]  }
 0x1e1   : > { %12760 = dma.hbm_to_vmem [thread:$0]  (%p12855_p10), %s17653_s21, 16, %s1689_s2, [#allocation55]  }
 0x1e2   : > { %s1712_s23 = sshll.u32 %s15188_s16, 4  ;;  %s15189_s15 = smov [#allocation60]   ;;  %s1713_s23 = int_to_ptr.vmem [resolvable:$true] %s1712_s23 }
 0x1e3   : > { %s1736_s3 = sshll.u32 %s15189_s15, 4  ;;  %s15704_s3 = int_to_ptr.vmem [resolvable:$true] %s1736_s3 }
 0x1e6   : > { %s14408_s5 = scalar_lea.hbm %s17654_s22, 512 }
 0x1e7   : > { %p14409_p11 = scmp.ne.s32.totalorder %s17654_s22, %s14408_s5  ;;  %p14414_p0 = scmp.lt.u32.totalorder %s14408_s5, %s17654_s22 }
 0x1e9   : > { %p14410_p12 = pnand %p14409_p11, %p12855_p10 }
 0x1eb   : > { %p14411_p13 = pneg %p14410_p12 }
 0x1ed   : > { %p14416_p1 = pnand %p14414_p0, %p14411_p13 }
 0x1ef   : > { %14419 = shalt.err (!%p14416_p1)
}
 0x1f0   : > { %s14420_s7 = scalar_lea.vmem %s1713_s23, 512  ;;  %p14427_p3 = scmp.lt.s32.totalorder %s1713_s23, %s1713_s23 }
 0x1f1   : > { %p14421_p5 = scmp.ne.s32.totalorder %s1713_s23, %s14420_s7  ;;  %p14428_p4 = scmp.lt.s32.totalorder %s14420_s7, %s14420_s7 }
 0x1f3   : > { %p14422_p6 = pnand %p14421_p5, %p12855_p10  ;;  %p14429_p7 = por %p14428_p4, %p14427_p3 }
 0x1f5   : > { %p14423_p2 = pneg %p14422_p6 }
 0x1f7   : > { %p14430_p8 = pnand %p14429_p7, %p14423_p2 }
 0x1f9   : > { %14433 = shalt.err (!%p14430_p8)
}
 0x1fa   : > { %s17560_s2 = smov 64   ;;  %s17655_s18 = sld [smem:[#allocation128_spill]] }
 0x1fb   : > { %s17562_s5 = smov 4  }
 0x1fc   : > { %12764 = dma.hbm_to_vmem [thread:$0]  (%p12855_p10), %s17654_s22, 512, %s1713_s23, [#allocation58], %s17560_s2, %s17560_s2, %s17562_s5  }
 0x200   : > { %s14434_s16 = scalar_lea.hbm %s17655_s18, 512 }
 0x201   : > { %p14435_p11 = scmp.ne.s32.totalorder %s17655_s18, %s14434_s16  ;;  %p14440_p0 = scmp.lt.u32.totalorder %s14434_s16, %s17655_s18 }
 0x203   : > { %p14436_p12 = pnand %p14435_p11, %p12855_p10 }
 0x205   : > { %p14437_p13 = pneg %p14436_p12 }
 0x207   : > { %p14442_p1 = pnand %p14440_p0, %p14437_p13 }
 0x209   : > { %14445 = shalt.err (!%p14442_p1)
}
 0x20a   : > { %s14446_s15 = scalar_lea.vmem %s15704_s3, 512  ;;  %p14453_p3 = scmp.lt.s32.totalorder %s15704_s3, %s15704_s3 }
 0x20b   : > { %p14447_p5 = scmp.ne.s32.totalorder %s15704_s3, %s14446_s15  ;;  %p14454_p4 = scmp.lt.s32.totalorder %s14446_s15, %s14446_s15 }
 0x20d   : > { %p14448_p6 = pnand %p14447_p5, %p12855_p10  ;;  %p14455_p7 = por %p14454_p4, %p14453_p3 }
 0x20f   : > { %p14449_p2 = pneg %p14448_p6 }
 0x211   : > { %p14456_p8 = pnand %p14455_p7, %p14449_p2 }
 0x213   : > { %14459 = shalt.err (!%p14456_p8)
}
 0x214   : > { %s17656_s23 = sld [smem:[#allocation130_spill]]  ;;  %s15192_s7 = smov [#allocation63]  }
 0x215   : > { %12768 = dma.hbm_to_vmem [thread:$0]  (%p12855_p10), %s17655_s18, 512, %s15704_s3, [#allocation61], %s17560_s2, %s17560_s2, %s17562_s5  }
 0x216   : > { %s1760_s16 = sshll.u32 %s15192_s7, 4  ;;  %s15193_s6 = smov [#allocation9]   ;;  %s1761_s16 = int_to_ptr.vmem [resolvable:$true] %s1760_s16 }
 0x217   : > { %s1308_s15 = sshll.u32 %s15193_s6, 4  ;;  %s1309_s15 = int_to_ptr.vmem [resolvable:$true] %s1308_s15 }
 0x21a   : > { %s14460_s8 = scalar_lea.hbm %s17656_s23, 2048 }
 0x21b   : > { %p14461_p11 = scmp.ne.s32.totalorder %s17656_s23, %s14460_s8  ;;  %p14466_p0 = scmp.lt.u32.totalorder %s14460_s8, %s17656_s23 }
 0x21d   : > { %p14462_p12 = pnand %p14461_p11, %p12855_p10 }
 0x21f   : > { %p14463_p13 = pneg %p14462_p12 }
 0x221   : > { %p14468_p1 = pnand %p14466_p0, %p14463_p13 }
 0x223   : > { %14471 = shalt.err (!%p14468_p1)
}
 0x224   : > { %s14472_s12 = scalar_lea.vmem %s1761_s16, 2048  ;;  %p14479_p3 = scmp.lt.s32.totalorder %s1761_s16, %s1761_s16 }
 0x225   : > { %p14473_p5 = scmp.ne.s32.totalorder %s1761_s16, %s14472_s12  ;;  %p14480_p4 = scmp.lt.s32.totalorder %s14472_s12, %s14472_s12 }
 0x227   : > { %p14474_p6 = pnand %p14473_p5, %p12855_p10  ;;  %p14481_p7 = por %p14480_p4, %p14479_p3 }
 0x229   : > { %p14475_p2 = pneg %p14474_p6 }
 0x22b   : > { %p14482_p8 = pnand %p14481_p7, %p14475_p2 }
 0x22d   : > { %14485 = shalt.err (!%p14482_p8)
}
 0x22e   : > { %s17657_s3 = sld [smem:[#allocation90_spill]] }
 0x22f   : > { %12772 = dma.hbm_to_vmem [thread:$0]  (%p12855_p10), %s17656_s23, 2048, %s1761_s16, [#allocation64], %s17560_s2, %s17560_s2, %s17562_s5  }
 0x234   : > { %s14486_s8 = scalar_lea.hbm %s17657_s3, 1536 }
 0x235   : > { %p14487_p11 = scmp.ne.s32.totalorder %s17657_s3, %s14486_s8  ;;  %p14492_p0 = scmp.lt.u32.totalorder %s14486_s8, %s17657_s3 }
 0x237   : > { %p14488_p12 = pnand %p14487_p11, %p12855_p10 }
 0x239   : > { %p14489_p13 = pneg %p14488_p12 }
 0x23b   : > { %p14494_p1 = pnand %p14492_p0, %p14489_p13 }
 0x23d   : > { %14497 = shalt.err (!%p14494_p1)
}
 0x23e   : > { %s14498_s6 = scalar_lea.vmem %s1309_s15, 1536  ;;  %p14505_p3 = scmp.lt.s32.totalorder %s1309_s15, %s1309_s15 }
 0x23f   : > { %p14499_p5 = scmp.ne.s32.totalorder %s1309_s15, %s14498_s6  ;;  %p14506_p4 = scmp.lt.s32.totalorder %s14498_s6, %s14498_s6 }
 0x241   : > { %p14500_p6 = pnand %p14499_p5, %p12855_p10  ;;  %p14507_p7 = por %p14506_p4, %p14505_p3 }
 0x243   : > { %p14501_p2 = pneg %p14500_p6 }
 0x245   : > { %p14508_p8 = pnand %p14507_p7, %p14501_p2 }
 0x247   : > { %14511 = shalt.err (!%p14508_p8)
}
 0x248   : > { %s17658_s12 = sld [smem:[#allocation92_spill]]  ;;  %s15194_s7 = smov [#allocation14]  }
 0x249   : > { %12702 = dma.hbm_to_vmem [thread:$0]  (%p12855_p10), %s17657_s3, 1536, %s1309_s15, [#allocation10], %s17560_s2, %s17560_s2, %s17562_s5  }
 0x24a   : > { %s1332_s16 = sshll.u32 %s15194_s7, 4  ;;  %s15195_s8 = smov [#allocation17]   ;;  %s1333_s16 = int_to_ptr.vmem [resolvable:$true] %s1332_s16 }
 0x24b   : > { %s1356_s13 = sshll.u32 %s15195_s8, 4  ;;  %s1357_s13 = int_to_ptr.vmem [resolvable:$true] %s1356_s13 }
 0x24e   : > { %s14512_s6 = scalar_lea.hbm %s17658_s12, 512 }
 0x24f   : > { %p14513_p11 = scmp.ne.s32.totalorder %s17658_s12, %s14512_s6  ;;  %p14518_p0 = scmp.lt.u32.totalorder %s14512_s6, %s17658_s12 }
 0x251   : > { %p14514_p12 = pnand %p14513_p11, %p12855_p10 }
 0x253   : > { %p14515_p13 = pneg %p14514_p12 }
 0x255   : > { %p14520_p1 = pnand %p14518_p0, %p14515_p13 }
 0x257   : > { %14523 = shalt.err (!%p14520_p1)
}
 0x258   : > { %s14524_s14 = scalar_lea.vmem %s1333_s16, 512  ;;  %p14531_p3 = scmp.lt.s32.totalorder %s1333_s16, %s1333_s16 }
 0x259   : > { %p14525_p5 = scmp.ne.s32.totalorder %s1333_s16, %s14524_s14  ;;  %p14532_p4 = scmp.lt.s32.totalorder %s14524_s14, %s14524_s14 }
 0x25b   : > { %p14526_p6 = pnand %p14525_p5, %p12855_p10  ;;  %p14533_p7 = por %p14532_p4, %p14531_p3 }
 0x25d   : > { %p14527_p2 = pneg %p14526_p6 }
 0x25f   : > { %p14534_p8 = pnand %p14533_p7, %p14527_p2 }
 0x261   : > { %14537 = shalt.err (!%p14534_p8)
}
 0x262   : > { %s17659_s15 = sld [smem:[#allocation93_spill]] }
 0x263   : > { %12706 = dma.hbm_to_vmem [thread:$0]  (%p12855_p10), %s17658_s12, 512, %s1333_s16, [#allocation13], %s17560_s2, %s17560_s2, %s17562_s5  }
 0x268   : > { %s14538_s7 = scalar_lea.hbm %s17659_s15, 512 }
 0x269   : > { %p14539_p11 = scmp.ne.s32.totalorder %s17659_s15, %s14538_s7  ;;  %p14544_p0 = scmp.lt.u32.totalorder %s14538_s7, %s17659_s15 }
 0x26b   : > { %p14540_p12 = pnand %p14539_p11, %p12855_p10 }
 0x26d   : > { %p14541_p13 = pneg %p14540_p12 }
 0x26f   : > { %p14546_p1 = pnand %p14544_p0, %p14541_p13 }
 0x271   : > { %14549 = shalt.err (!%p14546_p1)
}
 0x272   : > { %s14550_s14 = scalar_lea.vmem %s1357_s13, 512  ;;  %p14557_p3 = scmp.lt.s32.totalorder %s1357_s13, %s1357_s13 }
 0x273   : > { %p14551_p5 = scmp.ne.s32.totalorder %s1357_s13, %s14550_s14  ;;  %p14558_p4 = scmp.lt.s32.totalorder %s14550_s14, %s14550_s14 }
 0x275   : > { %p14552_p6 = pnand %p14551_p5, %p12855_p10  ;;  %p14559_p7 = por %p14558_p4, %p14557_p3 }
 0x277   : > { %p14553_p2 = pneg %p14552_p6 }
 0x279   : > { %p14560_p8 = pnand %p14559_p7, %p14553_p2 }
 0x27b   : > { %14563 = shalt.err (!%p14560_p8)
}
 0x27c   : > { %s17660_s16 = sld [smem:[#allocation95_spill]]  ;;  %s15196_s8 = smov [#allocation20]  }
 0x27d   : > { %12710 = dma.hbm_to_vmem [thread:$0]  (%p12855_p10), %s17659_s15, 512, %s1357_s13, [#allocation16], %s17560_s2, %s17560_s2, %s17562_s5  }
 0x27e   : > { %s1380_s6 = sshll.u32 %s15196_s8, 4  ;;  %s15197_s7 = smov [#allocation23]   ;;  %s1381_s6 = int_to_ptr.vmem [resolvable:$true] %s1380_s6 }
 0x27f   : > { %s1404_s3 = sshll.u32 %s15197_s7, 4  ;;  %s1405_s3 = int_to_ptr.vmem [resolvable:$true] %s1404_s3 }
 0x282   : > { %s14564_s14 = scalar_lea.hbm %s17660_s16, 2048 }
 0x283   : > { %p14565_p11 = scmp.ne.s32.totalorder %s17660_s16, %s14564_s14  ;;  %p14570_p0 = scmp.lt.u32.totalorder %s14564_s14, %s17660_s16 }
 0x285   : > { %p14566_p12 = pnand %p14565_p11, %p12855_p10 }
 0x287   : > { %p14567_p13 = pneg %p14566_p12 }
 0x289   : > { %p14572_p1 = pnand %p14570_p0, %p14567_p13 }
 0x28b   : > { %14575 = shalt.err (!%p14572_p1)
}
 0x28c   : > { %s14576_s12 = scalar_lea.vmem %s1381_s6, 2048  ;;  %p14583_p3 = scmp.lt.s32.totalorder %s1381_s6, %s1381_s6 }
 0x28d   : > { %p14577_p5 = scmp.ne.s32.totalorder %s1381_s6, %s14576_s12  ;;  %p14584_p4 = scmp.lt.s32.totalorder %s14576_s12, %s14576_s12 }
 0x28f   : > { %p14578_p6 = pnand %p14577_p5, %p12855_p10  ;;  %p14585_p7 = por %p14584_p4, %p14583_p3 }
 0x291   : > { %p14579_p2 = pneg %p14578_p6 }
 0x293   : > { %p14586_p8 = pnand %p14585_p7, %p14579_p2 }
 0x295   : > { %14589 = shalt.err (!%p14586_p8)
}
 0x296   : > { %s17661_s13 = sld [smem:[#allocation96_spill]] }
 0x297   : > { %12714 = dma.hbm_to_vmem [thread:$0]  (%p12855_p10), %s17660_s16, 2048, %s1381_s6, [#allocation19], %s17560_s2, %s17560_s2, %s17562_s5  }
 0x29c   : > { %s14590_s8 = scalar_lea.hbm %s17661_s13, 1024 }
 0x29d   : > { %p14591_p11 = scmp.ne.s32.totalorder %s17661_s13, %s14590_s8  ;;  %p14596_p0 = scmp.lt.u32.totalorder %s14590_s8, %s17661_s13 }
 0x29f   : > { %p14592_p12 = pnand %p14591_p11, %p12855_p10 }
 0x2a1   : > { %p14593_p13 = pneg %p14592_p12 }
 0x2a3   : > { %p14598_p1 = pnand %p14596_p0, %p14593_p13 }
 0x2a5   : > { %14601 = shalt.err (!%p14598_p1)
}
 0x2a6   : > { %s14602_s12 = scalar_lea.vmem %s1405_s3, 1024  ;;  %p14609_p3 = scmp.lt.s32.totalorder %s1405_s3, %s1405_s3 }
 0x2a7   : > { %p14603_p5 = scmp.ne.s32.totalorder %s1405_s3, %s14602_s12  ;;  %p14610_p4 = scmp.lt.s32.totalorder %s14602_s12, %s14602_s12 }
 0x2a9   : > { %p14604_p6 = pnand %p14603_p5, %p12855_p10  ;;  %p14611_p7 = por %p14610_p4, %p14609_p3 }
 0x2ab   : > { %p14605_p2 = pneg %p14604_p6 }
 0x2ad   : > { %p14612_p8 = pnand %p14611_p7, %p14605_p2 }
 0x2af   : > { %14615 = shalt.err (!%p14612_p8)
}
 0x2b0   : > { %s17662_s6 = sld [smem:[#allocation97_spill]]  ;;  %s15198_s7 = smov [#allocation26]  }
 0x2b1   : > { %12718 = dma.hbm_to_vmem [thread:$0]  (%p12855_p10), %s17661_s13, 1024, %s1405_s3, [#allocation22], %s17560_s2, %s17560_s2, %s17562_s5  }
 0x2b2   : > { %s1428_s14 = sshll.u32 %s15198_s7, 4  ;;  %s15199_s8 = smov [#allocation29]   ;;  %s1429_s14 = int_to_ptr.vmem [resolvable:$true] %s1428_s14 }
 0x2b3   : > { %s1464_s15 = sshll.u32 %s15199_s8, 4  ;;  %s1465_s15 = int_to_ptr.vmem [resolvable:$true] %s1464_s15 }
 0x2b6   : > { %s14616_s12 = scalar_lea.hbm %s17662_s6, 1024 }
 0x2b7   : > { %p14617_p11 = scmp.ne.s32.totalorder %s17662_s6, %s14616_s12  ;;  %p14622_p0 = scmp.lt.u32.totalorder %s14616_s12, %s17662_s6 }
 0x2b9   : > { %p14618_p12 = pnand %p14617_p11, %p12855_p10 }
 0x2bb   : > { %p14619_p13 = pneg %p14618_p12 }
 0x2bd   : > { %p14624_p1 = pnand %p14622_p0, %p14619_p13 }
 0x2bf   : > { %14627 = shalt.err (!%p14624_p1)
}
 0x2c0   : > { %s14628_s16 = scalar_lea.vmem %s1429_s14, 1024  ;;  %p14635_p3 = scmp.lt.s32.totalorder %s1429_s14, %s1429_s14 }
 0x2c1   : > { %p14629_p5 = scmp.ne.s32.totalorder %s1429_s14, %s14628_s16  ;;  %p14636_p4 = scmp.lt.s32.totalorder %s14628_s16, %s14628_s16 }
 0x2c3   : > { %p14630_p6 = pnand %p14629_p5, %p12855_p10  ;;  %p14637_p7 = por %p14636_p4, %p14635_p3 }
 0x2c5   : > { %p14631_p2 = pneg %p14630_p6 }
 0x2c7   : > { %p14638_p8 = pnand %p14637_p7, %p14631_p2 }
 0x2c9   : > { %14641 = shalt.err (!%p14638_p8)
}
 0x2ca   : > { %s17663_s3 = sld [smem:[#allocation103_spill]] }
 0x2cb   : > { %12722 = dma.hbm_to_vmem [thread:$0]  (%p12855_p10), %s17662_s6, 1024, %s1429_s14, [#allocation25], %s17560_s2, %s17560_s2, %s17562_s5  }
 0x2d0   : > { %s14642_s7 = scalar_lea.hbm %s17663_s3, 4096 }
 0x2d1   : > { %p14643_p11 = scmp.ne.s32.totalorder %s17663_s3, %s14642_s7  ;;  %p14648_p0 = scmp.lt.u32.totalorder %s14642_s7, %s17663_s3 }
 0x2d3   : > { %p14644_p12 = pnand %p14643_p11, %p12855_p10 }
 0x2d5   : > { %p14645_p13 = pneg %p14644_p12 }
 0x2d7   : > { %p14650_p1 = pnand %p14648_p0, %p14645_p13 }
 0x2d9   : > { %14653 = shalt.err (!%p14650_p1)
}
 0x2da   : > { %s14654_s16 = scalar_lea.vmem %s1465_s15, 4096  ;;  %p14661_p3 = scmp.lt.s32.totalorder %s1465_s15, %s1465_s15 }
 0x2db   : > { %p14655_p5 = scmp.ne.s32.totalorder %s1465_s15, %s14654_s16  ;;  %p14662_p4 = scmp.lt.s32.totalorder %s14654_s16, %s14654_s16 }
 0x2dd   : > { %p14656_p6 = pnand %p14655_p5, %p12855_p10  ;;  %p14663_p7 = por %p14662_p4, %p14661_p3 }
 0x2df   : > { %p14657_p2 = pneg %p14656_p6 }
 0x2e1   : > { %p14664_p8 = pnand %p14663_p7, %p14657_p2 }
 0x2e3   : > { %14667 = shalt.err (!%p14664_p8)
}
 0x2e4   : > { %s17566_s14 = smov 128   ;;  %s17664_s8 = sld [smem:[#allocation108_spill]] }
 0x2e5   : > { %s17568_s12 = smov 8   ;;  %s15202_s7 = smov [#allocation32]  }
 0x2e6   : > { %12726 = dma.hbm_to_vmem [thread:$0]  (%p12855_p10), %s17663_s3, 4096, %s1465_s15, [#allocation28], %s17566_s14, %s17566_s14, %s17568_s12  }
 0x2e7   : > { %s1500_s2 = sshll.u32 %s15202_s7, 4  ;;  %s15203_s16 = smov [#allocation35]   ;;  %s1501_s2 = int_to_ptr.vmem [resolvable:$true] %s1500_s2 }
 0x2e8   : > { %s1530_s5 = sshll.u32 %s15203_s16, 4  ;;  %s1531_s5 = int_to_ptr.vmem [resolvable:$true] %s1530_s5 }
 0x2ea   : > { %s14668_s6 = scalar_lea.hbm %s17664_s8, 4096 }
 0x2eb   : > { %p14669_p11 = scmp.ne.s32.totalorder %s17664_s8, %s14668_s6  ;;  %p14674_p0 = scmp.lt.u32.totalorder %s14668_s6, %s17664_s8 }
 0x2ed   : > { %p14670_p12 = pnand %p14669_p11, %p12855_p10 }
 0x2ef   : > { %p14671_p13 = pneg %p14670_p12 }
 0x2f1   : > { %p14676_p1 = pnand %p14674_p0, %p14671_p13 }
 0x2f3   : > { %14679 = shalt.err (!%p14676_p1)
}
 0x2f4   : > { %s14680_s13 = scalar_lea.vmem %s1501_s2, 4096  ;;  %p14687_p3 = scmp.lt.s32.totalorder %s1501_s2, %s1501_s2 }
 0x2f5   : > { %p14681_p5 = scmp.ne.s32.totalorder %s1501_s2, %s14680_s13  ;;  %p14688_p4 = scmp.lt.s32.totalorder %s14680_s13, %s14680_s13 }
 0x2f7   : > { %p14682_p6 = pnand %p14681_p5, %p12855_p10  ;;  %p14689_p7 = por %p14688_p4, %p14687_p3 }
 0x2f9   : > { %p14683_p2 = pneg %p14682_p6 }
 0x2fb   : > { %p14690_p8 = pnand %p14689_p7, %p14683_p2 }
 0x2fd   : > { %14693 = shalt.err (!%p14690_p8)
}
 0x2fe   : > { %s17665_s15 = sld [smem:[#allocation112_spill]] }
 0x2ff   : > { %12730 = dma.hbm_to_vmem [thread:$0]  (%p12855_p10), %s17664_s8, 4096, %s1501_s2, [#allocation31], %s17566_s14, %s17566_s14, %s17568_s12  }
 0x304   : > { %s14694_s6 = scalar_lea.hbm %s17665_s15, 8192 }
 0x305   : > { %p14695_p11 = scmp.ne.s32.totalorder %s17665_s15, %s14694_s6  ;;  %p14700_p0 = scmp.lt.u32.totalorder %s14694_s6, %s17665_s15 }
 0x307   : > { %p14696_p12 = pnand %p14695_p11, %p12855_p10 }
 0x309   : > { %p14697_p13 = pneg %p14696_p12 }
 0x30b   : > { %p14702_p1 = pnand %p14700_p0, %p14697_p13 }
 0x30d   : > { %14705 = shalt.err (!%p14702_p1)
}
 0x30e   : > { %s14706_s13 = scalar_lea.vmem %s1531_s5, 8192  ;;  %p14713_p3 = scmp.lt.s32.totalorder %s1531_s5, %s1531_s5 }
 0x30f   : > { %p14707_p5 = scmp.ne.s32.totalorder %s1531_s5, %s14706_s13  ;;  %p14714_p4 = scmp.lt.s32.totalorder %s14706_s13, %s14706_s13 }
 0x311   : > { %p14708_p6 = pnand %p14707_p5, %p12855_p10  ;;  %p14715_p7 = por %p14714_p4, %p14713_p3 }
 0x313   : > { %p14709_p2 = pneg %p14708_p6 }
 0x315   : > { %p14716_p8 = pnand %p14715_p7, %p14709_p2 }
 0x317   : > { %14719 = shalt.err (!%p14716_p8)
}
 0x318   : > { %s15204_s2 = smov 256   ;;  %s17666_s7 = sld [smem:[#allocation113_spill]] }
 0x319   : > { %s15205_s6 = smov 16   ;;  %s15206_s14 = smov [#allocation38]  }
 0x31a   : > { %12734 = dma.hbm_to_vmem [thread:$0]  (%p12855_p10), %s17665_s15, 8192, %s1531_s5, [#allocation34], %s15204_s2, %s15204_s2, %s15205_s6  }
 0x31b   : > { %s1554_s12 = sshll.u32 %s15206_s14, 4  ;;  %s15207_s3 = smov [#allocation41]   ;;  %s1555_s12 = int_to_ptr.vmem [resolvable:$true] %s1554_s12 }
 0x31c   : > { %s1578_s8 = sshll.u32 %s15207_s3, 4  ;;  %s1579_s8 = int_to_ptr.vmem [resolvable:$true] %s1578_s8 }
 0x31e   : > { %s17667_s16 = smov %s17666_s7  ;;  %s14720_s18 = scalar_lea.hbm %s17666_s7, 8192 }
 0x31f   : > { %p14721_p11 = scmp.ne.s32.totalorder %s17667_s16, %s14720_s18  ;;  %p14726_p0 = scmp.lt.u32.totalorder %s14720_s18, %s17667_s16 }
 0x321   : > { %p14722_p12 = pnand %p14721_p11, %p12855_p10 }
 0x323   : > { %p14723_p13 = pneg %p14722_p12 }
 0x325   : > { %p14728_p1 = pnand %p14726_p0, %p14723_p13 }
 0x327   : > { %14731 = shalt.err (!%p14728_p1)
}
 0x328   : > { %s14732_s13 = scalar_lea.vmem %s1555_s12, 8192  ;;  %p14739_p3 = scmp.lt.s32.totalorder %s1555_s12, %s1555_s12 }
 0x329   : > { %p14733_p5 = scmp.ne.s32.totalorder %s1555_s12, %s14732_s13  ;;  %p14740_p4 = scmp.lt.s32.totalorder %s14732_s13, %s14732_s13 }
 0x32b   : > { %p14734_p6 = pnand %p14733_p5, %p12855_p10  ;;  %p14741_p7 = por %p14740_p4, %p14739_p3 }
 0x32d   : > { %p14735_p2 = pneg %p14734_p6 }
 0x32f   : > { %p14742_p8 = pnand %p14741_p7, %p14735_p2 }
 0x331   : > { %14745 = shalt.err (!%p14742_p8)
}
 0x332   : > { %s17668_s5 = smov 8   ;;  %s17669_s3 = smov 128  }
 0x333   : > { %s17670_s18 = sld [smem:[#allocation115_spill]] }
 0x334   : > { %12738 = dma.hbm_to_vmem [thread:$0]  (%p12855_p10), %s17667_s16, 8192, %s1555_s12, [#allocation37], %s17669_s3, %s17669_s3, %s17668_s5  }
 0x339   : > { %s14746_s14 = scalar_lea.hbm %s17670_s18, 4096 }
 0x33a   : > { %p14747_p11 = scmp.ne.s32.totalorder %s17670_s18, %s14746_s14  ;;  %p14752_p0 = scmp.lt.u32.totalorder %s14746_s14, %s17670_s18 }
 0x33c   : > { %p14748_p12 = pnand %p14747_p11, %p12855_p10 }
 0x33e   : > { %p14749_p13 = pneg %p14748_p12 }
 0x340   : > { %p14754_p1 = pnand %p14752_p0, %p14749_p13 }
 0x342   : > { %14757 = shalt.err (!%p14754_p1)
}
 0x343   : > { %s14758_s2 = scalar_lea.vmem %s1579_s8, 4096  ;;  %p14765_p3 = scmp.lt.s32.totalorder %s1579_s8, %s1579_s8 }
 0x344   : > { %p14759_p5 = scmp.ne.s32.totalorder %s1579_s8, %s14758_s2  ;;  %p14766_p4 = scmp.lt.s32.totalorder %s14758_s2, %s14758_s2 }
 0x346   : > { %p14760_p6 = pnand %p14759_p5, %p12855_p10  ;;  %p14767_p7 = por %p14766_p4, %p14765_p3 }
 0x348   : > { %p14761_p2 = pneg %p14760_p6 }
 0x34a   : > { %p14768_p8 = pnand %p14767_p7, %p14761_p2 }
 0x34c   : > { %14771 = shalt.err (!%p14768_p8)
}
 0x34d   : > { %s17671_s12 = sld [smem:[#allocation117_spill]]  ;;  %s15208_s7 = smov [#allocation44]  }
 0x34e   : > { %12742 = dma.hbm_to_vmem [thread:$0]  (%p12855_p10), %s17670_s18, 4096, %s1579_s8, [#allocation40], %s17669_s3, %s17669_s3, %s17668_s5  }
 0x34f   : > { %s1602_s6 = sshll.u32 %s15208_s7, 4  ;;  %s15209_s13 = smov [#allocation47]   ;;  %s1603_s6 = int_to_ptr.vmem [resolvable:$true] %s1602_s6 }
 0x350   : > { %s1626_s14 = sshll.u32 %s15209_s13, 4  ;;  %s1627_s14 = int_to_ptr.vmem [resolvable:$true] %s1626_s14 }
 0x353   : > { %s14772_s2 = scalar_lea.hbm %s17671_s12, 4096 }
 0x354   : > { %p14773_p11 = scmp.ne.s32.totalorder %s17671_s12, %s14772_s2  ;;  %p14778_p0 = scmp.lt.u32.totalorder %s14772_s2, %s17671_s12 }
 0x356   : > { %p14774_p12 = pnand %p14773_p11, %p12855_p10 }
 0x358   : > { %p14775_p13 = pneg %p14774_p12 }
 0x35a   : > { %p14780_p1 = pnand %p14778_p0, %p14775_p13 }
 0x35c   : > { %14783 = shalt.err (!%p14780_p1)
}
 0x35d   : > { %s14784_s15 = scalar_lea.vmem %s1603_s6, 4096  ;;  %p14791_p3 = scmp.lt.s32.totalorder %s1603_s6, %s1603_s6 }
 0x35e   : > { %p14785_p5 = scmp.ne.s32.totalorder %s1603_s6, %s14784_s15  ;;  %p14792_p4 = scmp.lt.s32.totalorder %s14784_s15, %s14784_s15 }
 0x360   : > { %p14786_p6 = pnand %p14785_p5, %p12855_p10  ;;  %p14793_p7 = por %p14792_p4, %p14791_p3 }
 0x362   : > { %p14787_p2 = pneg %p14786_p6 }
 0x364   : > { %p14794_p8 = pnand %p14793_p7, %p14787_p2 }
 0x366   : > { %14797 = shalt.err (!%p14794_p8)
}
 0x367   : > { %s17672_s8 = sld [smem:[#allocation118_spill]] }
 0x368   : > { %12746 = dma.hbm_to_vmem [thread:$0]  (%p12855_p10), %s17671_s12, 4096, %s1603_s6, [#allocation43], %s17669_s3, %s17669_s3, %s17668_s5  }
 0x36d   : > { %s14798_s7 = scalar_lea.hbm %s17672_s8, 8192 }
 0x36e   : > { %p14799_p11 = scmp.ne.s32.totalorder %s17672_s8, %s14798_s7  ;;  %p14804_p0 = scmp.lt.u32.totalorder %s14798_s7, %s17672_s8 }
 0x370   : > { %p14800_p12 = pnand %p14799_p11, %p12855_p10 }
 0x372   : > { %p14801_p13 = pneg %p14800_p12 }
 0x374   : > { %p14806_p1 = pnand %p14804_p0, %p14801_p13 }
 0x376   : > { %14809 = shalt.err (!%p14806_p1)
}
 0x377   : > { %s14810_s15 = scalar_lea.vmem %s1627_s14, 8192  ;;  %p14817_p3 = scmp.lt.s32.totalorder %s1627_s14, %s1627_s14 }
 0x378   : > { %p14811_p5 = scmp.ne.s32.totalorder %s1627_s14, %s14810_s15  ;;  %p14818_p4 = scmp.lt.s32.totalorder %s14810_s15, %s14810_s15 }
 0x37a   : > { %p14812_p6 = pnand %p14811_p5, %p12855_p10  ;;  %p14819_p7 = por %p14818_p4, %p14817_p3 }
 0x37c   : > { %p14813_p2 = pneg %p14812_p6 }
 0x37e   : > { %p14820_p8 = pnand %p14819_p7, %p14813_p2 }
 0x380   : > { %14823 = shalt.err (!%p14820_p8)
}
 0x381   : > { %s17673_s5 = smov 4   ;;  %s17674_s3 = smov 64  }
 0x382   : > { %s17675_s6 = sld [smem:[#allocation120_spill]]  ;;  %s15210_s13 = smov [#allocation50]  }
 0x383   : > { %12750 = dma.hbm_to_vmem [thread:$0]  (%p12855_p10), %s17672_s8, 8192, %s1627_s14, [#allocation46], %s17674_s3, %s17674_s3, %s17673_s5  }
 0x384   : > { %s1650_s2 = sshll.u32 %s15210_s13, 4  ;;  %s15211_s7 = smov [#allocation53]   ;;  %s1651_s2 = int_to_ptr.vmem [resolvable:$true] %s1650_s2 }
 0x385   : > { %s1674_s12 = sshll.u32 %s15211_s7, 4  ;;  %s1675_s12 = int_to_ptr.vmem [resolvable:$true] %s1674_s12 }
 0x388   : > { %s14824_s15 = scalar_lea.hbm %s17675_s6, 1024 }
 0x389   : > { %p14825_p11 = scmp.ne.s32.totalorder %s17675_s6, %s14824_s15  ;;  %p14830_p0 = scmp.lt.u32.totalorder %s14824_s15, %s17675_s6 }
 0x38b   : > { %p14826_p12 = pnand %p14825_p11, %p12855_p10 }
 0x38d   : > { %p14827_p13 = pneg %p14826_p12 }
 0x38f   : > { %p14832_p1 = pnand %p14830_p0, %p14827_p13 }
 0x391   : > { %14835 = shalt.err (!%p14832_p1)
}
 0x392   : > { %s14836_s16 = scalar_lea.vmem %s1651_s2, 1024  ;;  %p14843_p3 = scmp.lt.s32.totalorder %s1651_s2, %s1651_s2 }
 0x393   : > { %p14837_p5 = scmp.ne.s32.totalorder %s1651_s2, %s14836_s16  ;;  %p14844_p4 = scmp.lt.s32.totalorder %s14836_s16, %s14836_s16 }
 0x395   : > { %p14838_p6 = pnand %p14837_p5, %p12855_p10  ;;  %p14845_p7 = por %p14844_p4, %p14843_p3 }
 0x397   : > { %p14839_p2 = pneg %p14838_p6 }
 0x399   : > { %p14846_p8 = pnand %p14845_p7, %p14839_p2 }
 0x39b   : > { %14849 = shalt.err (!%p14846_p8)
}
 0x39c   : > { %s17676_s14 = sld [smem:[#allocation122_spill]] }
 0x39d   : > { %12754 = dma.hbm_to_vmem [thread:$0]  (%p12855_p10), %s17675_s6, 1024, %s1651_s2, [#allocation49], %s17674_s3, %s17674_s3, %s17673_s5  }
 0x3a2   : > { %s14850_s13 = scalar_lea.hbm %s17676_s14, 1024 }
 0x3a3   : > { %p14851_p11 = scmp.ne.s32.totalorder %s17676_s14, %s14850_s13  ;;  %p14856_p0 = scmp.lt.u32.totalorder %s14850_s13, %s17676_s14 }
 0x3a5   : > { %p14852_p12 = pnand %p14851_p11, %p12855_p10 }
 0x3a7   : > { %p14853_p13 = pneg %p14852_p12 }
 0x3a9   : > { %p14858_p1 = pnand %p14856_p0, %p14853_p13 }
 0x3ab   : > { %14861 = shalt.err (!%p14858_p1)
}
 0x3ac   : > { %s14862_s16 = scalar_lea.vmem %s1675_s12, 1024  ;;  %p14869_p3 = scmp.lt.s32.totalorder %s1675_s12, %s1675_s12 }
 0x3ad   : > { %p14863_p5 = scmp.ne.s32.totalorder %s1675_s12, %s14862_s16  ;;  %p14870_p4 = scmp.lt.s32.totalorder %s14862_s16, %s14862_s16 }
 0x3af   : > { %p14864_p6 = pnand %p14863_p5, %p12855_p10  ;;  %p14871_p7 = por %p14870_p4, %p14869_p3 }
 0x3b1   : > { %p14865_p2 = pneg %p14864_p6 }
 0x3b3   : > { %p14872_p8 = pnand %p14871_p7, %p14865_p2 }
 0x3b5   : > { %14875 = shalt.err (!%p14872_p8)
}
 0x3b6   : > { %s17677_s2 = sld [smem:[#allocation125_spill]]  ;;  %s15212_s7 = smov [#allocation56]  }
 0x3b7   : > { %12758 = dma.hbm_to_vmem [thread:$0]  (%p12855_p10), %s17676_s14, 1024, %s1675_s12, [#allocation52], %s17674_s3, %s17674_s3, %s17673_s5  }
 0x3b8   : > { %s1702_s15 = sshll.u32 %s15212_s7, 4  ;;  %s15213_s13 = smov [#allocation59]   ;;  %s1703_s15 = int_to_ptr.vmem [resolvable:$true] %s1702_s15 }
 0x3b9   : > { %s1726_s6 = sshll.u32 %s15213_s13, 4  ;;  %s1727_s6 = int_to_ptr.vmem [resolvable:$true] %s1726_s6 }
 0x3bc   : > { %s14876_s16 = scalar_lea.hbm %s17677_s2, 16 }
 0x3bd   : > { %p14877_p11 = scmp.ne.s32.totalorder %s17677_s2, %s14876_s16  ;;  %p14882_p0 = scmp.lt.u32.totalorder %s14876_s16, %s17677_s2 }
 0x3bf   : > { %p14878_p12 = pnand %p14877_p11, %p12855_p10 }
 0x3c1   : > { %p14879_p13 = pneg %p14878_p12 }
 0x3c3   : > { %p14884_p1 = pnand %p14882_p0, %p14879_p13 }
 0x3c5   : > { %14887 = shalt.err (!%p14884_p1)
}
 0x3c6   : > { %s14888_s8 = scalar_lea.vmem %s1703_s15, 16  ;;  %s14894_s12 = scalar_lea.vmem %s1703_s15, 32 }
 0x3c7   : > { %p14889_p5 = scmp.ne.s32.totalorder %s1703_s15, %s14888_s8  ;;  %p14895_p3 = scmp.lt.s32.totalorder %s1703_s15, %s1703_s15 }
 0x3c8   : > { %p14896_p4 = scmp.lt.s32.totalorder %s14894_s12, %s14888_s8 }
 0x3c9   : > { %p14890_p6 = pnand %p14889_p5, %p12855_p10 }
 0x3ca   : > { %p14897_p7 = por %p14896_p4, %p14895_p3 }
 0x3cb   : > { %p14891_p2 = pneg %p14890_p6 }
 0x3cd   : > { %p14898_p8 = pnand %p14897_p7, %p14891_p2 }
 0x3cf   : > { %14901 = shalt.err (!%p14898_p8)
}
 0x3d0   : > { %s17678_s5 = sld [smem:[#allocation127_spill]] }
 0x3d1   : > { %12762 = dma.hbm_to_vmem [thread:$0]  (%p12855_p10), %s17677_s2, 16, %s1703_s15, [#allocation55]  }
 0x3d6   : > { %s14902_s3 = scalar_lea.hbm %s17678_s5, 16 }
 0x3d7   : > { %p14903_p11 = scmp.ne.s32.totalorder %s17678_s5, %s14902_s3  ;;  %p14908_p0 = scmp.lt.u32.totalorder %s14902_s3, %s17678_s5 }
 0x3d9   : > { %p14904_p12 = pnand %p14903_p11, %p12855_p10 }
 0x3db   : > { %p14905_p13 = pneg %p14904_p12 }
 0x3dd   : > { %p14910_p1 = pnand %p14908_p0, %p14905_p13 }
 0x3df   : > { %14913 = shalt.err (!%p14910_p1)
}
 0x3e0   : > { %s14914_s8 = scalar_lea.vmem %s1727_s6, 16  ;;  %s14920_s7 = scalar_lea.vmem %s1727_s6, 32 }
 0x3e1   : > { %p14915_p5 = scmp.ne.s32.totalorder %s1727_s6, %s14914_s8  ;;  %p14921_p3 = scmp.lt.s32.totalorder %s1727_s6, %s1727_s6 }
 0x3e2   : > { %p14922_p4 = scmp.lt.s32.totalorder %s14920_s7, %s14914_s8 }
 0x3e3   : > { %p14916_p6 = pnand %p14915_p5, %p12855_p10 }
 0x3e4   : > { %p14923_p7 = por %p14922_p4, %p14921_p3 }
 0x3e5   : > { %p14917_p2 = pneg %p14916_p6 }
 0x3e7   : > { %p14924_p8 = pnand %p14923_p7, %p14917_p2 }
 0x3e9   : > { %14927 = shalt.err (!%p14924_p8)
}
 0x3ea   : > { %s17679_s15 = sld [smem:[#allocation129_spill]]  ;;  %s15214_s13 = smov [#allocation62]  }
 0x3eb   : > { %12766 = dma.hbm_to_vmem [thread:$0]  (%p12855_p10), %s17678_s5, 16, %s1727_s6, [#allocation58]  }
 0x3ec   : > { %s1750_s16 = sshll.u32 %s15214_s13, 4  ;;  %s15215_s12 = smov [#allocation65]   ;;  %s1751_s16 = int_to_ptr.vmem [resolvable:$true] %s1750_s16 }
 0x3ed   : > { %s1774_s3 = sshll.u32 %s15215_s12, 4  ;;  %s1775_s3 = int_to_ptr.vmem [resolvable:$true] %s1774_s3 }
 0x3f0   : > { %s14928_s2 = scalar_lea.hbm %s17679_s15, 16 }
 0x3f1   : > { %p14929_p11 = scmp.ne.s32.totalorder %s17679_s15, %s14928_s2  ;;  %p14934_p0 = scmp.lt.u32.totalorder %s14928_s2, %s17679_s15 }
 0x3f3   : > { %p14930_p12 = pnand %p14929_p11, %p12855_p10 }
 0x3f5   : > { %p14931_p13 = pneg %p14930_p12 }
 0x3f7   : > { %p14936_p1 = pnand %p14934_p0, %p14931_p13 }
 0x3f9   : > { %14939 = shalt.err (!%p14936_p1)
}
 0x3fa   : > { %s14940_s8 = scalar_lea.vmem %s1751_s16, 16  ;;  %s14946_s6 = scalar_lea.vmem %s1751_s16, 32 }
 0x3fb   : > { %p14941_p5 = scmp.ne.s32.totalorder %s1751_s16, %s14940_s8  ;;  %p14947_p3 = scmp.lt.s32.totalorder %s1751_s16, %s1751_s16 }
 0x3fc   : > { %p14948_p4 = scmp.lt.s32.totalorder %s14946_s6, %s14940_s8 }
 0x3fd   : > { %p14942_p6 = pnand %p14941_p5, %p12855_p10 }
 0x3fe   : > { %p14949_p7 = por %p14948_p4, %p14947_p3 }
 0x3ff   : > { %p14943_p2 = pneg %p14942_p6 }
 0x401   : > { %p14950_p8 = pnand %p14949_p7, %p14943_p2 }
 0x403   : > { %14953 = shalt.err (!%p14950_p8)
}
 0x404   : > { %12770 = dma.hbm_to_vmem [thread:$0]  (%p12855_p10), %s17679_s15, 16, %s1751_s16, [#allocation61]  }
 0x405   : > { %s14954_s2 = scalar_lea.hbm %s15484_s25, 16 }
 0x406   : > { %p14955_p11 = scmp.ne.s32.totalorder %s15484_s25, %s14954_s2  ;;  %p14960_p0 = scmp.lt.u32.totalorder %s14954_s2, %s15484_s25 }
 0x408   : > { %p14956_p12 = pnand %p14955_p11, %p12855_p10 }
 0x40a   : > { %p14957_p13 = pneg %p14956_p12 }
 0x40c   : > { %p14962_p1 = pnand %p14960_p0, %p14957_p13 }
 0x40e   : > { %14965 = shalt.err (!%p14962_p1)
}
 0x40f   : > { %s14966_s7 = scalar_lea.vmem %s1775_s3, 16  ;;  %s14972_s13 = scalar_lea.vmem %s1775_s3, 32 }
 0x410   : > { %p14967_p5 = scmp.ne.s32.totalorder %s1775_s3, %s14966_s7  ;;  %p14973_p3 = scmp.lt.s32.totalorder %s1775_s3, %s1775_s3 }
 0x411   : > { %p14974_p4 = scmp.lt.s32.totalorder %s14972_s13, %s14966_s7 }
 0x412   : > { %p14968_p6 = pnand %p14967_p5, %p12855_p10 }
 0x413   : > { %p14975_p7 = por %p14974_p4, %p14973_p3 }
 0x414   : > { %p14969_p2 = pneg %p14968_p6 }
 0x416   : > { %p14976_p8 = pnand %p14975_p7, %p14969_p2 }
 0x418   : > { %14979 = shalt.err (!%p14976_p8)
}
 0x419   : > { %12774 = dma.hbm_to_vmem [thread:$0]  (%p12855_p10), %s15484_s25, 16, %s1775_s3, [#allocation64]  }
 0x41a PF: > { %1801 = sbr.rel (%p15547_p9) target bundleno = 7237 (0x1c45), region = 232 }
 0x421   : > { %p12892_p11 = scmp.eq.s32.totalorder %s15520_s11, 0 }
 0x423   : > { %15025 = dma.done.wait (%p12892_p11), [#allocation10], 1536  }
 0x424   : > { %15027 = vsyncadd (%p12892_p11), [#allocation10], 4294965760 }
 0x425   : > { %15029 = dma.done.wait (%p12892_p11), [#allocation13], 528  }
 0x426   : > { %15031 = vsyncadd (%p12892_p11), [#allocation13], 4294966768 }
 0x427   : > { %15033 = dma.done.wait (%p12892_p11), [#allocation16], 528  }
 0x428   : > { %15035 = vsyncadd (%p12892_p11), [#allocation16], 4294966768 }
 0x429   : > { %15037 = dma.done.wait (%p12892_p11), [#allocation19], 2064  }
 0x42a   : > { %15039 = vsyncadd (%p12892_p11), [#allocation19], 4294965232 }
 0x42b   : > { %15041 = dma.done.wait (%p12892_p11), [#allocation22], 1040  }
 0x42c   : > { %15043 = vsyncadd (%p12892_p11), [#allocation22], 4294966256 }
 0x42d   : > { %15045 = dma.done.wait (%p12892_p11), [#allocation25], 1040  }
 0x42e   : > { %15047 = vsyncadd (%p12892_p11), [#allocation25], 4294966256 }
 0x42f   : > { %15049 = dma.done.wait (%p12892_p11), [#allocation28], 4112  }
 0x430   : > { %15051 = vsyncadd (%p12892_p11), [#allocation28], 4294963184 }
 0x431   : > { %15053 = dma.done.wait (%p12892_p11), [#allocation31], 4192  }
 0x432   : > { %15055 = vsyncadd (%p12892_p11), [#allocation31], 4294963104 }
 0x433   : > { %15057 = dma.done.wait (%p12892_p11), [#allocation34], 8224  }
 0x434   : > { %15059 = vsyncadd (%p12892_p11), [#allocation34], 4294959072 }
 0x435   : > { %15061 = dma.done.wait (%p12892_p11), [#allocation37], 8256  }
 0x436   : > { %15063 = vsyncadd (%p12892_p11), [#allocation37], 4294959040 }
 0x437   : > { %15065 = dma.done.wait (%p12892_p11), [#allocation40], 4128  }
 0x438   : > { %15067 = vsyncadd (%p12892_p11), [#allocation40], 4294963168 }
 0x439   : > { %15069 = dma.done.wait (%p12892_p11), [#allocation43], 4128  }
 0x43a   : > { %15071 = vsyncadd (%p12892_p11), [#allocation43], 4294963168 }
 0x43b   : > { %15073 = dma.done.wait (%p12892_p11), [#allocation46], 8224  }
 0x43c   : > { %15075 = vsyncadd (%p12892_p11), [#allocation46], 4294959072 }
 0x43d   : > { %15077 = dma.done.wait (%p12892_p11), [#allocation49], 1040  }
 0x43e   : > { %15079 = vsyncadd (%p12892_p11), [#allocation49], 4294966256 }
 0x43f   : > { %15081 = dma.done.wait (%p12892_p11), [#allocation52], 1040  }
 0x440   : > { %15083 = vsyncadd (%p12892_p11), [#allocation52], 4294966256 }
 0x441   : > { %15085 = dma.done.wait (%p12892_p11), [#allocation55], 32  }
 0x442   : > { %15087 = vsyncadd (%p12892_p11), [#allocation55], 4294967264 }
 0x443   : > { %15089 = dma.done.wait (%p12892_p11), [#allocation58], 528  }
 0x444   : > { %15091 = vsyncadd (%p12892_p11), [#allocation58], 4294966768 }
 0x445   : > { %15093 = dma.done.wait (%p12892_p11), [#allocation61], 528  }
 0x446   : > { %15095 = vsyncadd (%p12892_p11), [#allocation61], 4294966768 }
 0x447   : > { %15097 = dma.done.wait (%p12892_p11), [#allocation64], 2064  }
 0x448   : > { %15099 = vsyncadd (%p12892_p11), [#allocation64], 4294965232  ;;  %s17680_s28 = sld [smem:[#allocation87_spill]]  ;;  %p2068_p9 = scmp.lt.s32.totalorder %s15520_s11, 1  ;;  %v17579_v1 = vmov 0   ;;  %v15217_v7 = vmov 1  }
 0x449   : > { %13068 = vset.pattern.permute.xlu1 %v17579_v1  ;;  %13067 = vset.pattern.permute.xlu0 %v17579_v1  ;;  %s17692_s8 = sld [smem:[#allocation88_spill]]  ;;  %s17706_s6 = sld [smem:[#allocation89_spill]]  ;;  %vm2714_vm0 = vcmask 1040384   ;;  %vm2741_vm1 = vcmask 392192   ;;  %vm2750_vm2 = vcmask 386048   ;;  %vm3174_vm3 = vcmask 523264  }
 0x44a   : > { %s2069_s16 = scalar_select %p2068_p9, %s15520_s11, 1  ;;  %vm15219_vm4 = vmmov 0   ;;  %vm3368_vm5 = vcmask 517120   ;;  %vm5892_vm6 = vcmask 1043456   ;;  %vm5876_vm7 = vcmask 64512  }
 0x44b   : > { %s17728_s2 = sld [smem:[#allocation99_spill]]  ;;  %s17730_s7 = sld [smem:[#allocation101_spill]]  ;;  %vm8279_vm8 = vcmask 1046528   ;;  %vm9753_vm9 = vcmask 785408   ;;  %vm9858_vm10 = vcmask 15360   ;;  %vm9875_vm11 = vcmask 539648  }
 0x44c   : > { %s12700_s12 = smul.u32 72, %s2069_s16  ;;  %s17735_s16 = sld [smem:[#allocation104_spill]]  ;;  %vm10155_vm12 = vcmask 531464   ;;  %vm10311_vm13 = vcmask 539664   ;;  %vm10467_vm14 = vcmask 547864   ;;  %vm10623_vm15 = vcmask 556064  }
 0x44d   : > { %p17801_p12 = scmp.ne.s32.totalorder %s17650_s26, 0 }
 0x44e   : > { %s16066_s3 = scalar_lea.vmem %s17680_s28, %s12700_s12  ;;  %s17732_s28 = sld [smem:[#allocation100_spill]] }
 0x44f   : > { %v2077_v2 = vld [vmem:[%s16066_s3 + $0x10] sm:$0xff]  ;;  %v2075_v3 = vld [vmem:[%s16066_s3] sm:$0xff]  ;;  %v2078_v4 = vld [vmem:[%s16066_s3 + $0x18] sm:$0xff]  ;;  %s17736_s12 = sld [smem:[#allocation102_spill]] }
 0x450   : > { %2095 = vperm.xlu1 %13068, %v2077_v2   ;;  %2085 = vperm.xlu0 %13067, %v2075_v3   ;;  %v2076_v5 = vld [vmem:[%s16066_s3 + $0x8] sm:$0xff]  ;;  %v2079_v10 = vld [vmem:[%s16066_s3 + $0x20] sm:$0xff]  ;;  %v2203_v11 = vld [vmem:[%s16066_s3 + $0x31] sm:$0xff] }
 0x451   : > { %v2080_v6 = vld [vmem:[%s16066_s3 + $0x28] sm:$0xff]  ;;  %v2081_v12 = vld [vmem:[%s16066_s3 + $0x30] sm:$0xff]  ;;  %v2082_v14 = vld [vmem:[%s16066_s3 + $0x38] sm:$0xff]  ;;  %s17731_s13 = smov %s17730_s7 }
 0x452   : > { %v2198_v8 = vld [vmem:[%s16066_s3 + $0x9] sm:$0xff]  ;;  %v2201_v9 = vld [vmem:[%s16066_s3 + $0x21] sm:$0xff]  ;;  %v16090_v16 = vld [vmem:[%s16066_s3 + $0x32] sm:$0xff] }
 0x453   : > { %v16081_v13 = vld [vmem:[%s16066_s3 + $0xa] sm:$0xff]  ;;  %v16085_v15 = vld [vmem:[%s16066_s3 + $0x22] sm:$0xff]  ;;  %v16105_v21 = vld [vmem:[%s16066_s3 + $0x33] sm:$0xff] }
 0x454   : > { %2100 = vperm.xlu1 %13068, %v2078_v4   ;;  %2090 = vperm.xlu0 %13067, %v2076_v5   ;;  %v16094_v17 = vld [vmem:[%s16066_s3 + $0xb] sm:$0xff]  ;;  %v2197_v18 = vld [vmem:[%s16066_s3 + $0x1] sm:$0xff]  ;;  %v2200_v22 = vld [vmem:[%s16066_s3 + $0x19] sm:$0xff] }
 0x455   : > { %v16100_v19 = vld [vmem:[%s16066_s3 + $0x23] sm:$0xff]  ;;  %v2199_v20 = vld [vmem:[%s16066_s3 + $0x11] sm:$0xff]  ;;  %v2204_v26 = vld [vmem:[%s16066_s3 + $0x39] sm:$0xff] }
 0x456   : > { %v16110_v23 = vld [vmem:[%s16066_s3 + $0xc] sm:$0xff]  ;;  %v2567_v25 = vld [vmem:[%s16066_s3 + $0x24] sm:$0xff]  ;;  %v2569_v27 = vld [vmem:[%s16066_s3 + $0x34] sm:$0xff] }
 0x457   : > { %v2202_v24 = vld [vmem:[%s16066_s3 + $0x29] sm:$0xff]  ;;  %v2321_v29 = vld [vmem:[%s16066_s3 + $0x12] sm:$0xff]  ;;  %v2322_v30 = vld [vmem:[%s16066_s3 + $0x1a] sm:$0xff] }
 0x458   : > { %13069 = vset.pattern.permute.xlu1 %v15217_v7  ;;  %2110 = vperm.xlu0 %13067, %v2080_v6   ;;  %v2319_v28 = vld [vmem:[%s16066_s3 + $0x2] sm:$0xff]  ;;  %v2324_v31 = vld [vmem:[%s16066_s3 + $0x2a] sm:$0xff]  ;;  %v2326_v32 = vld [vmem:[%s16066_s3 + $0x3a] sm:$0xff] }
 0x459   : > { %2148 = vperm.xlu1 %13069, %v2076_v5   ;;  %v2441_v33 = vld [vmem:[%s16066_s3 + $0x3] sm:$0xff]  ;;  %v2444_v34 = vld [vmem:[%s16066_s3 + $0x1b] sm:$0xff]  ;;  %v2446_v35 = vld [vmem:[%s16066_s3 + $0x2b] sm:$0xff] }
 0x45a   : > { %v2443_v36 = vld [vmem:[%s16066_s3 + $0x13] sm:$0xff]  ;;  %v2448_v37 = vld [vmem:[%s16066_s3 + $0x3b] sm:$0xff]  ;;  %v2563_v38 = vld [vmem:[%s16066_s3 + $0x4] sm:$0xff] }
 0x45b   : > { %v2566_v39 = vld [vmem:[%s16066_s3 + $0x1c] sm:$0xff]  ;;  %v2568_v42 = vld [vmem:[%s16066_s3 + $0x2c] sm:$0xff]  ;;  %v2565_v56 = vld [vmem:[%s16066_s3 + $0x14] sm:$0xff] }
 0x45c   : > { %2212 = vperm.xlu0 %13067, %v2198_v8   ;;  %v2570_v45 = vld [vmem:[%s16066_s3 + $0x3c] sm:$0xff] }
 0x45d   : > { %2152 = vperm.xlu1 %13069, %v2077_v2  }
 0x460   : > { %2227 = vperm.xlu0 %13067, %v2201_v9  }
 0x461   : > { %13070 = vset.pattern.permute.xlu1 %v17579_v1 }
 0x462   : > { %2105 = vperm.xlu1 %13070, %v2079_v10  }
 0x464   : > { %2237 = vperm.xlu0 %13067, %v2203_v11  }
 0x466   : > { %2115 = vperm.xlu1 %13070, %v2081_v12  }
 0x468   : > { %2334 = vperm.xlu0 %13067, %v16081_v13  }
 0x46a   : > { %2120 = vperm.xlu1 %13070, %v2082_v14  }
 0x46c   : > { %2349 = vperm.xlu0 %13067, %v16085_v15  }
 0x46e   : > { %13071 = vset.pattern.permute.xlu1 %v15217_v7 }
 0x46f   : > { %2164 = vperm.xlu1 %13071, %v2080_v6  }
 0x470   : > { %2359 = vperm.xlu0 %13067, %v16090_v16  }
 0x473   : > { %2168 = vperm.xlu1 %13071, %v2081_v12  }
 0x474   : > { %2456 = vperm.xlu0 %13067, %v16094_v17  }
 0x477   : > { %13072 = vset.pattern.permute.xlu1 %v17579_v1 }
 0x478   : > { %2207 = vperm.xlu1 %13072, %v2197_v18   ;;  %2471 = vperm.xlu0 %13067, %v16100_v19  }
 0x47c   : > { %2217 = vperm.xlu1 %13072, %v2199_v20   ;;  %2481 = vperm.xlu0 %13067, %v16105_v21  }
 0x480   : > { %2222 = vperm.xlu1 %13072, %v2200_v22   ;;  %2578 = vperm.xlu0 %13067, %v16110_v23  }
 0x484   : > { %2232 = vperm.xlu1 %13072, %v2202_v24   ;;  %2593 = vperm.xlu0 %13067, %v2567_v25  }
 0x488   : > { %2242 = vperm.xlu1 %13072, %v2204_v26   ;;  %2603 = vperm.xlu0 %13067, %v2569_v27  }
 0x48c   : > { %13073 = vset.pattern.permute.xlu1 %v15217_v7  ;;  %13079 = vset.pattern.permute.xlu0 %v15217_v7 }
 0x48d   : > { %2270 = vperm.xlu1 %13073, %v2198_v8   ;;  %2144 = vperm.xlu0 %13079, %v2075_v3   ;;  %v14015_v8 = vld [vmem:[%s16066_s3 + $0x24] sm:$0xff] }
 0x491   : > { %2274 = vperm.xlu1 %13073, %v2199_v20   ;;  %2156 = vperm.xlu0 %13079, %v2078_v4   ;;  %v13085_v20 = vld [vmem:[#allocation9 + $0x28] sm:$0xff]  }
 0x495   : > { %2282 = vperm.xlu1 %13073, %v2201_v9   ;;  %2160 = vperm.xlu0 %13079, %v2079_v10  }
 0x499   : > { %2290 = vperm.xlu1 %13073, %v2203_v11   ;;  %2172 = vperm.xlu0 %13079, %v2082_v14   ;;  %v14016_v11 = vld [vmem:[%s16066_s3 + $0x34] sm:$0xff]  ;;  %s17737_s3 = sld [smem:[#allocation107_spill]] }
 0x49d   : > { %13074 = vset.pattern.permute.xlu1 %v17579_v1  ;;  %2266 = vperm.xlu0 %13079, %v2197_v18   ;;  %v13084_v18 = vld [vmem:[#allocation9 + $0x20] sm:$0xff]  }
 0x49e   : > { %2329 = vperm.xlu1 %13074, %v2319_v28  }
 0x4a1   : > { %2278 = vperm.xlu0 %13079, %v2200_v22  }
 0x4a2   : > { %2339 = vperm.xlu1 %13074, %v2321_v29  }
 0x4a5   : > { %2286 = vperm.xlu0 %13079, %v2202_v24  }
 0x4a6   : > { %2344 = vperm.xlu1 %13074, %v2322_v30  }
 0x4a9   : > { %2294 = vperm.xlu0 %13079, %v2204_v26  }
 0x4aa   : > { %2354 = vperm.xlu1 %13074, %v2324_v31  }
 0x4ad   : > { %2388 = vperm.xlu0 %13079, %v2319_v28  }
 0x4ae   : > { %2364 = vperm.xlu1 %13074, %v2326_v32  }
 0x4b1   : > { %2400 = vperm.xlu0 %13079, %v2322_v30  }
 0x4b2   : > { %13075 = vset.pattern.permute.xlu1 %v15217_v7 }
 0x4b3   : > { %2392 = vperm.xlu1 %13075, %v16081_v13  }
 0x4b5   : > { %2408 = vperm.xlu0 %13079, %v2324_v31  }
 0x4b7   : > { %2396 = vperm.xlu1 %13075, %v2321_v29  }
 0x4b9   : > { %2416 = vperm.xlu0 %13079, %v2326_v32  }
 0x4bb   : > { %2404 = vperm.xlu1 %13075, %v16085_v15   ;;  %v13083_v15 = vld [vmem:[#allocation9 + $0x18] sm:$0xff]  }
 0x4bc   : > { %12344 = vmatprep.subr.bf16.mxu0 %v13083_v15 }
 0x4bd   : > { %2510 = vperm.xlu0 %13079, %v2441_v33   ;;  %12345 = vmatpush3.bf16.msra.mxu0 %v13083_v15  ;;  %v13096_v15 = vld [vmem:[#allocation14 + $0x8] sm:$0xff]  }
 0x4be   : > { %12346 = vmatprep.subr.bf16.mxu0 %v13084_v18 }
 0x4bf   : > { %2412 = vperm.xlu1 %13075, %v16090_v16  }
 0x4c1   : > { %2522 = vperm.xlu0 %13079, %v2444_v34   ;;  %12347 = vmatpush3.bf16.msra.mxu0 %v13084_v18 }
 0x4c2   : > { %12348 = vmatprep.subr.bf16.mxu0 %v13085_v20 }
 0x4c3   : > { %13076 = vset.pattern.permute.xlu1 %v17579_v1 }
 0x4c4   : > { %2451 = vperm.xlu1 %13076, %v2441_v33  }
 0x4c5   : > { %2530 = vperm.xlu0 %13079, %v2446_v35   ;;  %12349 = vmatpush3.bf16.msra.mxu0 %v13085_v20 }
 0x4c8   : > { %2461 = vperm.xlu1 %13076, %v2443_v36  }
 0x4c9   : > { %2538 = vperm.xlu0 %13079, %v2448_v37  }
 0x4cc   : > { %2466 = vperm.xlu1 %13076, %v2444_v34  }
 0x4cd   : > { %2632 = vperm.xlu0 %13079, %v2563_v38  }
 0x4cf   : > { %v16138_v40 = vpop.permute.xlu1 %2095  ;;  %v16140_v41 = vpop.permute.xlu0 %2085 }
 0x4d0   : > { %2476 = vperm.xlu1 %13076, %v2446_v35   ;;  %v2123_v35 = vlaneseq }
 0x4d1   : > { %2644 = vperm.xlu0 %13079, %v2566_v39  }
 0x4d3   : > { %v16143_v43 = vpop.permute.xlu1 %2100  ;;  %v16145_v44 = vpop.permute.xlu0 %2090 }
 0x4d4   : > { %2486 = vperm.xlu1 %13076, %v2448_v37   ;;  %v16244_v37 = vshrl.u32 %v2123_v35, 7  ;;  %v2074_v35 = vld [vmem:[%s17692_s8] sm:$0x3] }
 0x4d5   : > { %2652 = vperm.xlu0 %13079, %v2568_v42  }
 0x4d6   : > { %17691 = vst [vmem:[#allocation145_spill] sm:$0xff] %v16244_v37 }
 0x4d7   : > { %v16148_v46 = vpop.permute.xlu0 %2110 }
 0x4d8   : > { %13077 = vset.pattern.permute.xlu1 %v15217_v7  ;;  %v16151_v47 = vpop.permute.xlu1 %2148 }
 0x4d9   : > { %2514 = vperm.xlu1 %13077, %v16094_v17   ;;  %2660 = vperm.xlu0 %13079, %v2570_v45  }
 0x4db   : > { %v16154_v48 = vpop.permute.xlu0 %2212 }
 0x4dc   : > { %v16156_v49 = vpop.permute.xlu1 %2152 }
 0x4dd   : > { %2518 = vperm.xlu1 %13077, %v2443_v36   ;;  %13082 = vset.pattern.permute.xlu0 %v17579_v1 }
 0x4df   : > { %v16159_v50 = vpop.permute.xlu0 %2227 }
 0x4e1   : > { %2526 = vperm.xlu1 %13077, %v16100_v19   ;;  %v16162_v51 = vpop.permute.xlu1 %2105 }
 0x4e3   : > { %v16164_v52 = vpop.permute.xlu0 %2237 }
 0x4e5   : > { %2534 = vperm.xlu1 %13077, %v16105_v21   ;;  %v16167_v53 = vpop.permute.xlu1 %2115 }
 0x4e7   : > { %v16169_v54 = vpop.permute.xlu0 %2334 }
 0x4e9   : > { %13078 = vset.pattern.permute.xlu1 %v17579_v1  ;;  %v16172_v55 = vpop.permute.xlu1 %2120 }
 0x4ea   : > { %2573 = vperm.xlu1 %13078, %v2563_v38  }
 0x4eb   : > { %v16175_v57 = vpop.permute.xlu0 %2349 }
 0x4ee   : > { %2583 = vperm.xlu1 %13078, %v2565_v56   ;;  %v16177_v58 = vpop.permute.xlu1 %2164 }
 0x4ef   : > { %v16179_v59 = vpop.permute.xlu0 %2359 }
 0x4f2   : > { %2588 = vperm.xlu1 %13078, %v2566_v39   ;;  %v16181_v60 = vpop.permute.xlu1 %2168 }
 0x4f3   : > { %v16183_v61 = vpop.permute.xlu0 %2456 }
 0x4f6   : > { %2598 = vperm.xlu1 %13078, %v2568_v42  }
 0x4f7   : > { %v16185_v62 = vpop.permute.xlu1 %2207  ;;  %v16187_v63 = vpop.permute.xlu0 %2471 }
 0x4f8   : > { %17681 = vst [vmem:[#allocation135_spill] sm:$0xff] %v16187_v63 }
 0x4fa   : > { %2608 = vperm.xlu1 %13078, %v2570_v45  }
 0x4fb   : > { %v16189_v0 = vpop.permute.xlu1 %2217  ;;  %v16191_v2 = vpop.permute.xlu0 %2481 }
 0x4fc   : > { %17682 = vst [vmem:[#allocation136_spill] sm:$0xff] %v16191_v2 }
 0x4fe   : > { %13080 = vset.pattern.permute.xlu1 %v15217_v7 }
 0x4ff   : > { %2636 = vperm.xlu1 %13080, %v16110_v23   ;;  %v16195_v3 = vpop.permute.xlu1 %2222  ;;  %v16197_v4 = vpop.permute.xlu0 %2578  ;;  %v13086_v23 = vld [vmem:[#allocation9] sm:$0xff]  }
 0x500   : > { %17683 = vst [vmem:[#allocation137_spill] sm:$0xff] %v16197_v4  ;;  %12354 = vmatprep.subr.bf16.mxu0 %v13086_v23 }
 0x503   : > { %2640 = vperm.xlu1 %13080, %v2565_v56   ;;  %v16199_v5 = vpop.permute.xlu1 %2232  ;;  %v16201_v6 = vpop.permute.xlu0 %2593  ;;  %v16253_v56 = vsub.s32 0, %v16244_v37 }
 0x504   : > { %17684 = vst [vmem:[#allocation138_spill] sm:$0xff] %v16201_v6  ;;  %v11233_v6 = vld [vmem:[%s17692_s8 + $0x2] sm:$0x3] }
 0x505   : > { %17695 = vst [vmem:[#allocation148_spill] sm:$0xff] %v16253_v56  ;;  %v2126_v4 = vrot.slane %v2074_v35, %v16253_v56  ;;  %v16279_v63 = vrot.slane %v11233_v6, %v16253_v56 }
 0x507   : > { %2648 = vperm.xlu1 %13080, %v14015_v8   ;;  %v16204_v9 = vpop.permute.xlu1 %2242  ;;  %v16206_v10 = vpop.permute.xlu0 %2603  ;;  %v16256_v8 = vsub.s32 1, %v16244_v37 }
 0x508   : > { %17685 = vst [vmem:[#allocation139_spill] sm:$0xff] %v16206_v10 }
 0x509   : > { %17696 = vst [vmem:[#allocation149_spill] sm:$0xff] %v16256_v8  ;;  %v2178_v37 = vrot.slane %v2074_v35, %v16256_v8 }
 0x50b   : > { %2656 = vperm.xlu1 %13080, %v14016_v11   ;;  %v13095_v11 = vld [vmem:[#allocation14] sm:$0xff]  }
 0x50c   : > { %v16209_v7 = vpop.permute.xlu1 %2270  ;;  %v2145_v12 = vpop.permute.xlu0 %2144  ;;  %12384 = vmatprep.subr.bf16.mxu1 %v13095_v11 }
 0x50d   : > { %12385 = vmatpush3.bf16.msra.mxu1 %v13095_v11  ;;  %v2179_v11 = vmul.f32 %v2178_v37, %v2145_v12  ;;  %v2128_v12 = vmul.f32 %v2126_v4, %v16145_v44  ;;  %v2250_v44 = vmul.f32 %v16279_v63, %v16154_v48  ;;  %v2129_v48 = vmul.f32 %v2126_v4, %v16138_v40 }
 0x50e   : > { %12386 = vmatprep.subr.bf16.mxu1 %v13096_v15  ;;  %v2253_v40 = vmul.f32 %v16279_v63, %v16159_v50 }
 0x50f   : > { %13081 = vset.pattern.permute.xlu1 %v17579_v1 }
 0x510   : > { %v16212_v13 = vpop.permute.xlu1 %2274  ;;  %v16214_v14 = vpop.permute.xlu0 %2156 }
 0x511   : > { %12387 = vmatpush3.bf16.msra.mxu1 %v13096_v15  ;;  %v11234_v15 = vld [vmem:[%s17692_s8 + $0x4] sm:$0x3] }
 0x514   : > { %v16216_v16 = vpop.permute.xlu1 %2282  ;;  %v16218_v17 = vpop.permute.xlu0 %2160 }
 0x518   : > { %v16220_v19 = vpop.permute.xlu1 %2290  ;;  %v16222_v21 = vpop.permute.xlu0 %2172 }
 0x519   : > { %17686 = vst [vmem:[#allocation140_spill] sm:$0xff] %v16220_v19  ;;  %v16295_v19 = vrot.slane %v11234_v15, %v16253_v56 }
 0x51c   : > { %v2267_v24 = vpop.permute.xlu0 %2266 }
 0x51d   : > { %v2330_v22 = vpop.permute.xlu1 %2329 }
 0x520   : > { %v16226_v26 = vpop.permute.xlu0 %2278 }
 0x521   : > { %v16224_v25 = vpop.permute.xlu1 %2339 }
 0x522   : > { %17687 = vst [vmem:[#allocation141_spill] sm:$0xff] %v16224_v25 }
 0x524   : > { %v16232_v29 = vpop.permute.xlu0 %2286 }
 0x525   : > { %v16228_v27 = vpop.permute.xlu1 %2344 }
 0x528   : > { %v16236_v31 = vpop.permute.xlu0 %2294 }
 0x529   : > { %v16230_v28 = vpop.permute.xlu1 %2354 }
 0x52c   : > { %v2389_v34 = vpop.permute.xlu0 %2388 }
 0x52d   : > { %v16234_v30 = vpop.permute.xlu1 %2364 }
 0x530   : > { %v16246_v38 = vpop.permute.xlu0 %2400 }
 0x532   : > { %v16238_v32 = vpop.permute.xlu1 %2392 }
 0x533   : > { %17688 = vst [vmem:[#allocation142_spill] sm:$0xff] %v16238_v32 }
 0x534   : > { %v16250_v42 = vpop.permute.xlu0 %2408 }
 0x535   : > { %17694 = vst [vmem:[#allocation147_spill] sm:$0xff] %v16250_v42  ;;  %v2249_v42 = vmul.f32 %v16279_v63, %v16185_v62 }
 0x536   : > { %v16240_v33 = vpop.permute.xlu1 %2396 }
 0x537   : > { %17689 = vst [vmem:[#allocation143_spill] sm:$0xff] %v16240_v33 }
 0x538   : > { %v16260_v20 = vpop.permute.xlu0 %2416 }
 0x53a   : > { %v16242_v36 = vpop.permute.xlu1 %2404 }
 0x53b   : > { %17690 = vst [vmem:[#allocation144_spill] sm:$0xff] %v16242_v36  ;;  %v16282_v36 = vrot.slane %v11233_v6, %v16256_v8  ;;  %v11236_v6 = vld [vmem:[%s17692_s8 + $0x8] sm:$0x3] }
 0x53c   : > { %v16265_v1 = vpop.permute.xlu0 %2510 }
 0x53d   : > { %v2301_v35 = vmul.f32 %v16282_v36, %v2267_v24  ;;  %v2371_v24 = vmul.f32 %v16295_v19, %v2330_v22  ;;  %v2302_v50 = vmul.f32 %v16282_v36, %v16209_v7  ;;  %v2252_v7 = vmul.f32 %v16279_v63, %v16195_v3  ;;  %v16374_v3 = vld [vmem:[%s17706_s6] ss:$0 sm:$0xff]  ;;  %s17738_s6 = sld [smem:[#allocation105_spill]] }
 0x53e   : > { %v16248_v39 = vpop.permute.xlu1 %2412 }
 0x53f   : > { %17693 = vst [vmem:[#allocation146_spill] sm:$0xff] %v16248_v39 }
 0x540   : > { %v16274_v39 = vpop.permute.xlu0 %2522 }
 0x541   : > { %17700 = vst [vmem:[#allocation153_spill] sm:$0xff] %v16274_v39  ;;  %v2180_v39 = vmul.f32 %v2178_v37, %v16151_v47  ;;  %v2181_v47 = vmul.f32 %v2178_v37, %v16156_v49  ;;  %v2185_v49 = vmul.f32 %v2178_v37, %v16181_v60  ;;  %v2131_v60 = vmul.f32 %v2126_v4, %v16162_v51 }
 0x543   : > { %v2452_v45 = vpop.permute.xlu1 %2451 }
 0x544   : > { %v16292_v25 = vpop.permute.xlu0 %2530 }
 0x545   : > { %17702 = vst [vmem:[#allocation155_spill] sm:$0xff] %v16292_v25 }
 0x547   : > { %v16258_v18 = vpop.permute.xlu1 %2461 }
 0x548   : > { %17697 = vst [vmem:[#allocation150_spill] sm:$0xff] %v16258_v18  ;;  %v2127_v18 = vmul.f32 %v2126_v4, %v16140_v41  ;;  %v11235_v41 = vld [vmem:[%s17692_s8 + $0x6] sm:$0x3]  ;;  %v16319_v22 = vpop.permute.xlu0 %2538 }
 0x549   : > { %v16308_v25 = vrot.slane %v11235_v41, %v16253_v56  ;;  %17705 = vst [vmem:[#allocation158_spill] sm:$0xff] %v16319_v22 }
 0x54b   : > { %v16262_v23 = vpop.permute.xlu1 %2466 }
 0x54f   : > { %v16267_v10 = vpop.permute.xlu1 %2476 }
 0x550   : > { %17698 = vst [vmem:[#allocation151_spill] sm:$0xff] %v16267_v10  ;;  %v2187_v10 = vadd.f32 %v2179_v11, %v2127_v18  ;;  %v16299_v18 = vrot.slane %v11234_v15, %v16256_v8 }
 0x552   : > { %v2423_v32 = vmul.f32 %v16299_v18, %v2389_v34  ;;  %v2493_v34 = vmul.f32 %v16308_v25, %v2452_v45  ;;  %v2183_v45 = vmul.f32 %v2178_v37, %v16218_v17  ;;  %v2254_v17 = vmul.f32 %v16279_v63, %v16199_v5 }
 0x553   : > { %v16271_v2 = vpop.permute.xlu1 %2486  ;;  %v2256_v5 = vmul.f32 %v16279_v63, %v16204_v9  ;;  %v2426_v9 = vmul.f32 %v16299_v18, %v16246_v38  ;;  %v2305_v38 = vmul.f32 %v16282_v36, %v16216_v16 }
 0x554   : > { %17699 = vst [vmem:[#allocation152_spill] sm:$0xff] %v16271_v2  ;;  %v2257_v2 = vadd.f32 %v2249_v42, %v2187_v10  ;;  %v16314_v42 = vrot.slane %v11236_v6, %v16253_v56 }
 0x556   : > { %v2309_v62 = vadd.f32 %v2301_v35, %v2257_v2  ;;  %v16317_v2 = vrot.slane %v11235_v41, %v16256_v8  ;;  %v2130_v35 = vmul.f32 %v2126_v4, %v16143_v43  ;;  %v2182_v41 = vmul.f32 %v2178_v37, %v16214_v14 }
 0x557   : > { %v2255_v43 = vmul.f32 %v16279_v63, %v16164_v52  ;;  %v2134_v14 = vmul.f32 %v2126_v4, %v16172_v55  ;;  %v2633_v52 = vpop.permute.xlu0 %2632  ;;  %v16356_v55 = vmul.f32 %v16308_v25, %v16183_v61 }
 0x558   : > { %v16284_v33 = vpop.permute.xlu1 %2514  ;;  %v2379_v15 = vadd.f32 %v2371_v24, %v2309_v62  ;;  %v2190_v51 = vadd.f32 %v2182_v41, %v2130_v35  ;;  %v2191_v24 = vadd.f32 %v2183_v45, %v2131_v60 }
 0x559   : > { %17701 = vst [vmem:[#allocation154_spill] sm:$0xff] %v16284_v33  ;;  %v2188_v33 = vadd.f32 %v2180_v39, %v2128_v12  ;;  %v16322_v39 = vrot.slane %v11236_v6, %v16256_v8  ;;  %v2132_v12 = vmul.f32 %v2126_v4, %v16148_v46  ;;  %v2184_v6 = vmul.f32 %v2178_v37, %v16177_v58 }
 0x55a   : > { %v2431_v8 = vadd.f32 %v2423_v32, %v2379_v15  ;;  %v2372_v46 = vmul.f32 %v16295_v19, %v16169_v54  ;;  %v16345_v32 = vmul.f32 %v16295_v19, %v16175_v57  ;;  %v16352_v54 = vmul.f32 %v16295_v19, %v16179_v59 }
 0x55b   : > { %v2258_v56 = vadd.f32 %v2250_v44, %v2188_v33  ;;  %v2192_v62 = vadd.f32 %v2184_v6, %v2132_v12  ;;  %v2545_v57 = vmul.f32 %v16317_v2, %v16265_v1  ;;  %v2304_v59 = vmul.f32 %v16282_v36, %v16226_v26 }
 0x55c   : > { %v16301_v11 = vpop.permute.xlu1 %2518  ;;  %v2501_v58 = vadd.f32 %v2493_v34, %v2431_v8  ;;  %v2260_v44 = vadd.f32 %v2252_v7, %v2190_v51  ;;  %v2308_v26 = vmul.f32 %v16282_v36, %v16236_v31  ;;  %v2303_v15 = vmul.f32 %v16282_v36, %v16212_v13  ;;  %v17708_v51 = vld [vmem:[#allocation152_spill] sm:$0xff] }
 0x55d   : > { %17703 = vst [vmem:[#allocation156_spill] sm:$0xff] %v16301_v11  ;;  %v2133_v11 = vmul.f32 %v2126_v4, %v16167_v53  ;;  %v2186_v53 = vmul.f32 %v2178_v37, %v16222_v21  ;;  %v2251_v4 = vmul.f32 %v16279_v63, %v16189_v0  ;;  %v2310_v1 = vadd.f32 %v2302_v50, %v2258_v56 }
 0x55e   : > { %v2553_v8 = vadd.f32 %v2545_v57, %v2501_v58  ;;  %v2374_v0 = vmul.f32 %v16295_v19, %v16228_v27  ;;  %v2262_v56 = vadd.f32 %v2254_v17, %v2192_v62  ;;  %v2312_v34 = vadd.f32 %v2304_v59, %v2260_v44  ;;  %v16383_v27 = vpop.permute.xlu0 %2644  ;;  %v17710_v62 = vld [vmem:[#allocation141_spill] sm:$0xff]  ;;  %v17713_v44 = vld [vmem:[#allocation151_spill] sm:$0xff] }
 0x55f   : > { %v2193_v33 = vadd.f32 %v2185_v49, %v2133_v11  ;;  %v2194_v61 = vadd.f32 %v2186_v53, %v2134_v14  ;;  %v2378_v63 = vmul.f32 %v16295_v19, %v16234_v30  ;;  %v2261_v41 = vadd.f32 %v2253_v40, %v2191_v24  ;;  %v17707_v53 = vld [vmem:[#allocation142_spill] sm:$0xff] }
 0x560   : > { %v16311_v10 = vpop.permute.xlu1 %2526  ;;  %v2382_v6 = vadd.f32 %v2374_v0, %v2312_v34  ;;  %v2380_v60 = vadd.f32 %v2372_v46, %v2310_v1  ;;  %v2496_v14 = vmul.f32 %v16308_v25, %v16262_v23  ;;  %v2376_v40 = vmul.f32 %v16295_v19, %v16230_v28  ;;  %v17709_v23 = vld [vmem:[#allocation140_spill] sm:$0xff]  ;;  %v17712_v1 = vld [vmem:[#allocation143_spill] sm:$0xff] }
 0x561   : > { %17704 = vst [vmem:[#allocation157_spill] sm:$0xff] %v16311_v10  ;;  %v2189_v10 = vadd.f32 %v2181_v47, %v2129_v48  ;;  %v16368_v37 = vadd.f32 %v2255_v43, %v2193_v33  ;;  %v2667_v47 = vmul.f32 %v16322_v39, %v2633_v52  ;;  %v2264_v12 = vadd.f32 %v2256_v5, %v2194_v61 }
 0x562   : > { %v2430_v43 = vmul.f32 %v16299_v18, %v16260_v20  ;;  %v2434_v50 = vadd.f32 %v2426_v9, %v2382_v6  ;;  %v2500_v20 = vmul.f32 %v16308_v25, %v17708_v51  ;;  %v2307_v52 = vmul.f32 %v16282_v36, %v17709_v23  ;;  %v2653_v7 = vpop.permute.xlu0 %2652  ;;  %v17717_v9 = vld [vmem:[#allocation135_spill] sm:$0xff] }
 0x563   : > { %v2259_v49 = vadd.f32 %v2251_v4, %v2189_v10  ;;  %v2306_v10 = vmul.f32 %v16282_v36, %v16232_v29  ;;  %v2316_v13 = vadd.f32 %v2308_v26, %v2264_v12  ;;  %v2424_v29 = vmul.f32 %v16299_v18, %v17707_v53  ;;  %v17711_v4 = vld [vmem:[#allocation147_spill] sm:$0xff]  ;;  %v17716_v12 = vld [vmem:[#allocation154_spill] sm:$0xff] }
 0x564   : > { %v16332_v22 = vpop.permute.xlu1 %2534  ;;  %v2373_v57 = vmul.f32 %v16295_v19, %v17710_v62  ;;  %v2428_v28 = vmul.f32 %v16299_v18, %v17711_v4  ;;  %v2313_v59 = vadd.f32 %v2305_v38, %v2261_v41  ;;  %v2425_v24 = vmul.f32 %v16299_v18, %v17712_v1  ;;  %v17714_v19 = vld [vmem:[#allocation153_spill] sm:$0xff] }
 0x565   : > { %v2311_v30 = vadd.f32 %v2303_v15, %v2259_v49  ;;  %v2386_v58 = vadd.f32 %v2378_v63, %v2316_v13  ;;  %v2314_v16 = vadd.f32 %v2306_v10, %v2262_v56  ;;  %v2498_v36 = vmul.f32 %v16308_v25, %v17713_v44  ;;  %v17715_v15 = vld [vmem:[#allocation144_spill] sm:$0xff]  ;;  %v17718_v10 = vld [vmem:[#allocation158_spill] sm:$0xff] }
 0x566   : > { %v2548_v5 = vmul.f32 %v16317_v2, %v17714_v19  ;;  %v2427_v34 = vmul.f32 %v16299_v18, %v17715_v15  ;;  %v2546_v63 = vmul.f32 %v16317_v2, %v17716_v12  ;;  %v2315_v41 = vadd.f32 %v2307_v52, %v16368_v37 }
 0x567   : > { %v2438_v17 = vadd.f32 %v2430_v43, %v2386_v58  ;;  %v2381_v49 = vadd.f32 %v2373_v57, %v2311_v30  ;;  %v2552_v6 = vmul.f32 %v16317_v2, %v17718_v10  ;;  %v2383_v43 = vadd.f32 %v16345_v32, %v2313_v59  ;;  %v2661_v30 = vpop.permute.xlu0 %2660  ;;  %v17721_v32 = vld [vmem:[#allocation146_spill] sm:$0xff]  ;;  %v17722_v57 = vld [vmem:[#allocation137_spill] sm:$0xff] }
 0x568   : > { %v2429_v23 = vmul.f32 %v16299_v18, %v17721_v32  ;;  %v2674_v52 = vmul.f32 %v16322_v39, %v2661_v30  ;;  %v2385_v4 = vadd.f32 %v16352_v54, %v2315_v41 }
 0x569   : > { %v2574_v21 = vpop.permute.xlu1 %2573  ;;  %v2508_v26 = vadd.f32 %v2500_v20, %v2438_v17  ;;  %v2433_v13 = vadd.f32 %v2425_v24, %v2381_v49  ;;  %v2435_v37 = vadd.f32 %v2427_v34, %v2383_v43  ;;  %v2551_v34 = vmul.f32 %v16317_v2, %v16332_v22 }
 0x56a   : > { %v2615_v11 = vmul.f32 %v16314_v42, %v2574_v21  ;;  %v2504_v21 = vadd.f32 %v2496_v14, %v2434_v50  ;;  %v17720_v50 = vld [vmem:[#allocation155_spill] sm:$0xff]  ;;  %v2437_v19 = vadd.f32 %v2429_v23, %v2385_v4 }
 0x56b   : > { %v2550_v51 = vmul.f32 %v16317_v2, %v17720_v50 }
 0x56c   : > { %v2623_v48 = vadd.f32 %v2615_v11, %v2553_v8  ;;  %v2384_v8 = vadd.f32 %v2376_v40, %v2314_v16  ;;  %v2432_v11 = vadd.f32 %v2424_v29, %v2380_v60  ;;  %v2556_v60 = vadd.f32 %v2548_v5, %v2504_v21  ;;  %v17719_v40 = vld [vmem:[#allocation150_spill] sm:$0xff] }
 0x56d   : > { %v16385_v35 = vpop.permute.xlu1 %2583  ;;  %v2495_v53 = vmul.f32 %v16308_v25, %v17719_v40  ;;  %v2616_v16 = vmul.f32 %v16314_v42, %v17722_v57 }
 0x56e   : > { %v2675_v31 = vadd.f32 %v2667_v47, %v2623_v48  ;;  %v2436_v56 = vadd.f32 %v2428_v28, %v2384_v8  ;;  %v17723_v28 = vld [vmem:[#allocation156_spill] sm:$0xff]  ;;  %v17724_v8 = vld [vmem:[#allocation157_spill] sm:$0xff] }
 0x56f   : > { %v2547_v17 = vmul.f32 %v16317_v2, %v17723_v28  ;;  %v2503_v21 = vadd.f32 %v2495_v53, %v2433_v13 }
 0x570   : > { %v2690_v33 = vadd.f32 %v16374_v3, %v2675_v31  ;;  %v2497_v31 = vmul.f32 %v16308_v25, %v17717_v9  ;;  %v2506_v14 = vadd.f32 %v2498_v36, %v2436_v56 }
 0x571   : > { %v2589_v46 = vpop.permute.xlu1 %2588  ;;  %v2555_v49 = vadd.f32 %v2547_v17, %v2503_v21 }
 0x572   : > { %v2698_v45 = vmax.f32 %v2690_v33, 0.0  ;;  %v2618_v48 = vmul.f32 %v16314_v42, %v2589_v46  ;;  %v2502_v33 = vadd.f32 %v16356_v55, %v2432_v11  ;;  %v2560_v46 = vadd.f32 %v2552_v6, %v2508_v26  ;;  %v17725_v26 = vld [vmem:[#allocation136_spill] sm:$0xff]  ;;  %v17726_v6 = vld [vmem:[#allocation138_spill] sm:$0xff] }
 0x573   : > { %v2670_v55 = vmul.f32 %v16322_v39, %v16383_v27  ;;  %v2558_v59 = vadd.f32 %v2550_v51, %v2506_v14  ;;  %v2549_v11 = vmul.f32 %v16317_v2, %v17724_v8  ;;  %v2617_v27 = vmul.f32 %v16314_v42, %v16385_v35 }
 0x574   : > { %v16412_v61 = vrot.slane %v2698_v45, 7  ;;  %v2626_v29 = vadd.f32 %v2618_v48, %v2556_v60  ;;  %v2554_v20 = vadd.f32 %v2546_v63, %v2502_v33  ;;  %v2505_v54 = vadd.f32 %v2497_v31, %v2435_v37 }
 0x575   : > { %v2599_v0 = vpop.permute.xlu1 %2598  ;;  %v2672_v48 = vmul.f32 %v16322_v39, %v2653_v7  ;;  %v2625_v9 = vadd.f32 %v2617_v27, %v2555_v49 }
 0x576   : > { %v2739_v47 = vsel %vm2714_vm0, 0.0, %v16412_v61  ;;  %v2620_v45 = vmul.f32 %v16314_v42, %v2599_v0  ;;  %v2678_v18 = vadd.f32 %v2670_v55, %v2626_v29  ;;  %v2624_v36 = vadd.f32 %v2616_v16, %v2554_v20 }
 0x577   : > { %2742 = vst.msk [vmem:[#allocation2] sm:$0xff] %vm2741_vm1, %v2739_v47  ;;  %v2499_v47 = vmul.f32 %v16308_v25, %v17725_v26  ;;  %v2557_v15 = vadd.f32 %v2549_v11, %v2505_v54  ;;  %v2619_v25 = vmul.f32 %v16314_v42, %v17726_v6  ;;  %v13087_v54 = vld [vmem:[#allocation9 + $0x8] sm:$0xff]   ;;  %v14017_v26 = vld [vmem:[#allocation9] sm:$0xff]  }
 0x578   : > { %v2628_v44 = vadd.f32 %v2620_v45, %v2558_v59  ;;  %v2693_v35 = vadd.f32 %v16374_v3, %v2678_v18 }
 0x579   : > { %v2609_v38 = vpop.permute.xlu1 %2608  ;;  %v2507_v7 = vadd.f32 %v2499_v47, %v2437_v19  ;;  %v2627_v30 = vadd.f32 %v2619_v25, %v2557_v15  ;;  %v13088_v47 = vld [vmem:[#allocation9 + $0x10] sm:$0xff]  }
 0x57a   : > { %v2622_v58 = vmul.f32 %v16314_v42, %v2609_v38  ;;  %v2680_v41 = vadd.f32 %v2672_v48, %v2628_v44  ;;  %v2701_v2 = vmax.f32 %v2693_v35, 0.0  ;;  %v13089_v48 = vld [vmem:[#allocation9 + $0x30] sm:$0xff]  }
 0x57b   : > { %v2559_v14 = vadd.f32 %v2551_v34, %v2507_v7 }
 0x57c   : > { %v2630_v62 = vadd.f32 %v2622_v58, %v2560_v46  ;;  %v2695_v38 = vadd.f32 %v16374_v3, %v2680_v41  ;;  %v17727_v46 = vld [vmem:[#allocation139_spill] sm:$0xff]  ;;  %v2720_v20 = vrot.slane %v2701_v2, 7 }
 0x57d   : > { %v2621_v58 = vmul.f32 %v16314_v42, %v17727_v46  ;;  %v13092_v41 = vld [vmem:[#allocation9 + $0x48] sm:$0xff]  }
 0x57e   : > { %v2682_v1 = vadd.f32 %v2674_v52, %v2630_v62  ;;  %v2637_v24 = vpop.permute.xlu1 %2636  ;;  %v2703_v23 = vmax.f32 %v2695_v38, 0.0  ;;  %v13099_v38 = vld [vmem:[#allocation17] sm:$0xff]  }
 0x57f   : > { %v2668_v0 = vmul.f32 %v16322_v39, %v2637_v24  ;;  %v2629_v32 = vadd.f32 %v2621_v58, %v2559_v14 }
 0x580   : > { %v2697_v5 = vadd.f32 %v16374_v3, %v2682_v1 }
 0x581   : > { %v2676_v56 = vadd.f32 %v2668_v0, %v2624_v36 }
 0x582   : > { %v2705_v12 = vmax.f32 %v2697_v5, 0.0  ;;  %v2641_v63 = vpop.permute.xlu1 %2640 }
 0x583   : > { %v2691_v31 = vadd.f32 %v16374_v3, %v2676_v56  ;;  %v2669_v10 = vmul.f32 %v16322_v39, %v2641_v63 }
 0x584   : > { %v2728_v60 = vrot.slane %v2705_v12, 7  ;;  %v13090_v12 = vld [vmem:[#allocation9 + $0x38] sm:$0xff]  }
 0x585   : > { %v2699_v13 = vmax.f32 %v2691_v31, 0.0  ;;  %v2677_v43 = vadd.f32 %v2669_v10, %v2625_v9  ;;  %v13091_v9 = vld [vmem:[#allocation9 + $0x40] sm:$0xff]  }
 0x586   : > { %v2740_v22 = vsel %vm2714_vm0, %v2728_v60, 0.0  ;;  %v2649_v33 = vpop.permute.xlu1 %2648 }
 0x587   : > { %2751 = vst.msk [vmem:[#allocation2 + $0x40] sm:$0x3] %vm2750_vm2, %v2740_v22  ;;  %v2716_v40 = vrot.slane %v2699_v13, 7  ;;  %v2692_v53 = vadd.f32 %v16374_v3, %v2677_v43  ;;  %v2671_v29 = vmul.f32 %v16322_v39, %v2649_v33  ;;  %v13094_v43 = vld [vmem:[#allocation9 + $0x58] sm:$0xff]  }
 0x588   : > { %v13097_v33 = vld [vmem:[#allocation14 + $0x10] sm:$0xff]  }
 0x589   : > { %v2717_v37 = vsel %vm2714_vm0, %v16412_v61, %v2716_v40  ;;  %v2700_v50 = vmax.f32 %v2692_v53, 0.0  ;;  %v2679_v51 = vadd.f32 %v2671_v29, %v2627_v30  ;;  %v2724_v61 = vrot.slane %v2703_v23, 7  ;;  %12388 = vmatprep.subr.bf16.mxu1 %v13097_v33  ;;  %v13098_v30 = vld [vmem:[#allocation14 + $0x18] sm:$0xff]  }
 0x58a   : > { %2743 = vst.msk [vmem:[#allocation2 + $0x8] sm:$0xff] %vm2741_vm1, %v2717_v37  ;;  %v2657_v45 = vpop.permute.xlu1 %2656  ;;  %12389 = vmatpush3.bf16.msra.mxu1 %v13097_v33 }
 0x58b   : > { %v2718_v55 = vrot.slane %v2700_v50, 7  ;;  %v2694_v52 = vadd.f32 %v16374_v3, %v2679_v51  ;;  %v2673_v62 = vmul.f32 %v16322_v39, %v2657_v45  ;;  %12390 = vmatprep.subr.bf16.mxu1 %v13098_v30 }
 0x58d   : > { %v2719_v57 = vsel %vm2714_vm0, %v2716_v40, %v2718_v55  ;;  %v2721_v42 = vsel %vm2714_vm0, %v2718_v55, %v2720_v20  ;;  %v2702_v16 = vmax.f32 %v2694_v52, 0.0  ;;  %v2681_v4 = vadd.f32 %v2673_v62, %v2629_v32  ;;  %v11258_v40 = vld [vmem:[#allocation12] ss:$0 sm:$0xff] }
 0x58e   : > { %2744 = vst.msk [vmem:[#allocation2 + $0x10] sm:$0xff] %vm2741_vm1, %v2719_v57  ;;  %2745 = vst.msk [vmem:[#allocation2 + $0x18] sm:$0xff] %vm2741_vm1, %v2721_v42  ;;  %12391 = vmatpush3.bf16.msra.mxu1 %v13098_v30  ;;  %v13100_v57 = vld [vmem:[#allocation17 + $0x8] sm:$0xff]   ;;  %v13101_v42 = vld [vmem:[#allocation17 + $0x10] sm:$0xff]  }
 0x58f   : > { %v2722_v28 = vrot.slane %v2702_v16, 7  ;;  %v2696_v17 = vadd.f32 %v16374_v3, %v2681_v4  ;;  %12396 = vmatprep.subr.bf16.mxu1 %v13099_v38  ;;  %v13102_v16 = vld [vmem:[#allocation17 + $0x18] sm:$0xff]   ;;  %v13103_v4 = vld [vmem:[#allocation20 + $0x20] sm:$0xff]  }
 0x591   : > { %v2723_v59 = vsel %vm2714_vm0, %v2720_v20, %v2722_v28  ;;  %v2725_v21 = vsel %vm2714_vm0, %v2722_v28, %v2724_v61  ;;  %v2704_v8 = vmax.f32 %v2696_v17, 0.0  ;;  %v2768_v1 = vld [vmem:[#allocation2 + $0x1] ss:$2 sm:$0xff]  ;;  %v2752_v19 = vld [vmem:[#allocation2] ss:$2 sm:$0xff]  ;;  %v15218_v28 = vmov 0.0  }
 0x592   : > { %2746 = vst.msk [vmem:[#allocation2 + $0x20] sm:$0xff] %vm2741_vm1, %v2723_v59  ;;  %2747 = vst.msk [vmem:[#allocation2 + $0x28] sm:$0xff] %vm2741_vm1, %v2725_v21  ;;  %v13105_v17 = vld [vmem:[#allocation20 + $0x28] sm:$0xff]   ;;  %v13107_v21 = vld [vmem:[#allocation20 + $0x30] sm:$0xff]  }
 0x593   : > { %v2726_v39 = vrot.slane %v2704_v8, 7  ;;  %v13106_v59 = vld [vmem:[#allocation20 + $0x8] sm:$0xff]   ;;  %v13108_v8 = vld [vmem:[#allocation20 + $0x10] sm:$0xff]  }
 0x595   : > { %v2727_v11 = vsel %vm2714_vm0, %v2724_v61, %v2726_v39  ;;  %v2729_v18 = vsel %vm2714_vm0, %v2726_v39, %v2728_v60  ;;  %v2770_v24 = vld [vmem:[#allocation2 + $0x11] ss:$2 sm:$0xff]  ;;  %v2754_v27 = vld [vmem:[#allocation2 + $0x10] ss:$2 sm:$0xff] }
 0x596   : > { %2748 = vst.msk [vmem:[#allocation2 + $0x30] sm:$0xff] %vm2741_vm1, %v2727_v11  ;;  %2749 = vst.msk [vmem:[#allocation2 + $0x38] sm:$0xff] %vm2741_vm1, %v2729_v18  ;;  %v2775_v3 = vpack.c.bf16 %v2770_v24, %v2768_v1  ;;  %v2759_v5 = vpack.c.bf16 %v2754_v27, %v2752_v19  ;;  %v2931_v35 = vld [vmem:[#allocation2 + $0x2] ss:$2 sm:$0xff]  ;;  %v3025_v7 = vld [vmem:[#allocation2 + $0x3] ss:$2 sm:$0xff] }
 0x597   : > { %v13093_v60 = vld [vmem:[#allocation9 + $0x50] sm:$0xff]   ;;  %v13104_v61 = vld [vmem:[#allocation20] sm:$0xff]   ;;  %v13109_v39 = vld [vmem:[#allocation20 + $0x38] sm:$0xff]  }
 0x598   : > { %12350 = vmatprep.mubr.msk.bf16.mxu0 %vm2741_vm1, %v2775_v3  ;;  %v13110_v11 = vld [vmem:[#allocation20 + $0x18] sm:$0xff]  }
 0x599   : > { %v2772_v44 = vld [vmem:[#allocation2 + $0x21] ss:$2 sm:$0xff]  ;;  %v2933_v56 = vld [vmem:[#allocation2 + $0x12] ss:$2 sm:$0xff]  ;;  %v11266_v27 = vld [vmem:[#allocation18] ss:$0 sm:$0xff] }
 0x59a   : > { %v2756_v15 = vld [vmem:[#allocation2 + $0x20] ss:$2 sm:$0xff]  ;;  %v2938_v63 = vpack.c.bf16 %v2933_v56, %v2931_v35  ;;  %v3027_v6 = vld [vmem:[#allocation2 + $0x13] ss:$2 sm:$0xff] }
 0x59b   : > { %v3032_v13 = vpack.c.bf16 %v3027_v6, %v3025_v7  ;;  %v11259_v6 = vld [vmem:[#allocation15] ss:$0 sm:$0xff] }
 0x59d   : > { %v2774_v36 = vld [vmem:[#allocation2 + $0x31] ss:$2 sm:$0xff]  ;;  %v2758_v49 = vld [vmem:[#allocation2 + $0x30] ss:$2 sm:$0xff] }
 0x59e   : > { %v2776_v0 = vpack.c.bf16 %v2774_v36, %v2772_v44  ;;  %v2760_v34 = vpack.c.bf16 %v2758_v49, %v2756_v15  ;;  %v2935_v31 = vld [vmem:[#allocation2 + $0x22] ss:$2 sm:$0xff]  ;;  %v2937_v10 = vld [vmem:[#allocation2 + $0x32] ss:$2 sm:$0xff]  ;;  %v3029_v14 = vld [vmem:[#allocation2 + $0x23] ss:$2 sm:$0xff] }
 0x59f   : > { %v2939_v25 = vpack.c.bf16 %v2937_v10, %v2935_v31  ;;  %v3031_v2 = vld [vmem:[#allocation2 + $0x33] ss:$2 sm:$0xff] }
 0x5a0   : > { %12351 = vmatmul.mubr.msk.bf16.vlgmr.msra.gmra.mrb[0].mxu0 %vm2741_vm1, %v2776_v0  ;;  %v3033_v22 = vpack.c.bf16 %v3031_v2, %v3029_v14 }
 0x5a1   : > { %12355 = vmatpush3.bf16.msra.mxu0 %v14017_v26  ;;  %12360 = vmatprep.mubr.msk.bf16.mxu0 %vm2741_vm1, %v2759_v5 }
 0x5a2   : > { %12356 = vmatprep.subr.bf16.mxu0 %v13087_v54 }
 0x5a5   : > { %12357 = vmatpush3.bf16.msra.mxu0 %v13087_v54 }
 0x5a6   : > { %12358 = vmatprep.subr.bf16.mxu0 %v13088_v47 }
 0x5a9   : > { %12359 = vmatpush3.bf16.msra.mxu0 %v13088_v47 }
 0x5aa   : > { %12364 = vmatprep.subr.bf16.mxu0 %v13089_v48 }
 0x5ac   : > { %12361 = vmatmul.mubr.msk.bf16.vlgmr.msra.gmra.mrb[0].mxu0 %vm2741_vm1, %v2760_v34 }
 0x5ad   : > { %12365 = vmatpush3.bf16.msra.mxu0 %v13089_v48  ;;  %12370 = vmatprep.mubr.msk.bf16.mxu0 %vm2741_vm1, %v2938_v63 }
 0x5ae   : > { %12366 = vmatprep.subr.bf16.mxu0 %v13090_v12 }
 0x5b1   : > { %12367 = vmatpush3.bf16.msra.mxu0 %v13090_v12 }
 0x5b2   : > { %12368 = vmatprep.subr.bf16.mxu0 %v13091_v9 }
 0x5b5   : > { %12369 = vmatpush3.bf16.msra.mxu0 %v13091_v9 }
 0x5b6   : > { %12374 = vmatprep.subr.bf16.mxu0 %v13092_v41 }
 0x5b8   : > { %12371 = vmatmul.mubr.msk.bf16.vlgmr.msra.gmra.mrb[0].mxu0 %vm2741_vm1, %v2939_v25 }
 0x5b9   : > { %12375 = vmatpush3.bf16.msra.mxu0 %v13092_v41  ;;  %12380 = vmatprep.mubr.msk.bf16.mxu0 %vm2741_vm1, %v3032_v13 }
 0x5ba   : > { %12376 = vmatprep.subr.bf16.mxu0 %v13093_v60 }
 0x5bd   : > { %12377 = vmatpush3.bf16.msra.mxu0 %v13093_v60 }
 0x5be   : > { %12378 = vmatprep.subr.bf16.mxu0 %v13094_v43 }
 0x5c1   : > { %12379 = vmatpush3.bf16.msra.mxu0 %v13094_v43 }
 0x5c2   : > { %12420 = vmatprep.subr.bf16.mxu0 %v15218_v28 }
 0x5c4   : > { %12381 = vmatmul.mubr.msk.bf16.vlgmr.msra.gmra.mrb[0].mxu0 %vm2741_vm1, %v3033_v22 }
 0x5c5   : > { %12421 = vmatpush3.bf16.msra.mxu0 %v13104_v61  ;;  %12428 = vmatprep.mubr.msk.bf16.mxu0 %vm15219_vm4, %v15218_v28  ;;  %v13114_v61 = vld [vmem:[#allocation20 + $0x68] sm:$0xff]  }
 0x5c6   : > { %12422 = vmatprep.subr.bf16.mxu0 %v15218_v28 }
 0x5c9   : > { %12423 = vmatpush3.bf16.msra.mxu0 %v13106_v59  ;;  %v13116_v59 = vld [vmem:[#allocation20 + $0x70] sm:$0xff]  }
 0x5ca   : > { %12424 = vmatprep.subr.bf16.mxu0 %v15218_v28 }
 0x5cd   : > { %12425 = vmatpush3.bf16.msra.mxu0 %v13108_v8  ;;  %v13118_v8 = vld [vmem:[#allocation20 + $0x78] sm:$0xff]  }
 0x5ce   : > { %12426 = vmatprep.subr.bf16.mxu0 %v15218_v28 }
 0x5d1   : > { %12427 = vmatpush3.bf16.msra.mxu0 %v13110_v11 }
 0x5d2   : > { %12444 = vmatprep.subr.bf16.mxu0 %v15218_v28 }
 0x697   : > { %v12382_v53 = vpop.f32.mrb[0].mxu0 }
 0x698   : > { %v3127_v29 = vadd.f32 %v12382_v53, %v11258_v40  ;;  %v3099_v46 = vpop.f32.mrb[1].mxu0 }
 0x699   : > { %v3125_v58 = vadd.f32 %v11258_v40, %v3099_v46  ;;  %v12383_v37 = vpop.f32.mrb[2].mxu0 }
 0x69a   : > { %v3128_v50 = vadd.f32 %v12383_v37, %v11258_v40  ;;  %v3102_v51 = vpop.f32.mrb[3].mxu0  ;;  %v3131_v45 = vmax.f32 %v3127_v29, 0.0 }
 0x69b   : > { %v3126_v20 = vadd.f32 %v11258_v40, %v3102_v51  ;;  %v3129_v23 = vmax.f32 %v3125_v58, 0.0 }
 0x69c   : > { %v3132_v32 = vmax.f32 %v3128_v50, 0.0 }
 0x69d   : > { %v3130_v55 = vmax.f32 %v3126_v20, 0.0 }
 0x69e   : > { %v3134_v52 = vpack.c.bf16 %v3132_v32, %v3131_v45  ;;  %v13111_v32 = vld [vmem:[#allocation20 + $0x40] sm:$0xff]  }
 0x69f   : > { %v3133_v62 = vpack.c.bf16 %v3130_v55, %v3129_v23 }
 0x6a1   : > { %12392 = vmatprep.mubr.msk.bf16.mxu1 %vm3174_vm3, %v3133_v62 }
 0x6a2   : > { %12393 = vmatmul.mubr.msk.bf16.vlgmr.msra.gmra.mrb[0].mxu1 %vm3174_vm3, %v3134_v52 }
 0x6a3   : > { %12397 = vmatpush3.bf16.msra.mxu1 %v13099_v38  ;;  %12404 = vmatprep.mubr.msk.bf16.mxu1 %vm3174_vm3, %v3133_v62 }
 0x6a4   : > { %12398 = vmatprep.subr.bf16.mxu1 %v13100_v57 }
 0x6a7   : > { %12399 = vmatpush3.bf16.msra.mxu1 %v13100_v57 }
 0x6a8   : > { %12400 = vmatprep.subr.bf16.mxu1 %v13101_v42 }
 0x6ab   : > { %12401 = vmatpush3.bf16.msra.mxu1 %v13101_v42  ;;  %v13112_v42 = vld [vmem:[#allocation20 + $0x60] sm:$0xff]  }
 0x6ac   : > { %12402 = vmatprep.subr.bf16.mxu1 %v13102_v16 }
 0x6af   : > { %12403 = vmatpush3.bf16.msra.mxu1 %v13102_v16 }
 0x6b0   : > { %12408 = vmatprep.subr.bf16.mxu1 %v15218_v28 }
 0x6b2   : > { %12405 = vmatmul.mubr.msk.bf16.vlgmr.msra.gmra.mrb[4].mxu1 %vm3174_vm3, %v3134_v52 }
 0x6b3   : > { %12409 = vmatpush3.bf16.msra.mxu1 %v13103_v4  ;;  %12416 = vmatprep.mubr.msk.bf16.mxu1 %vm15219_vm4, %v15218_v28  ;;  %v13113_v4 = vld [vmem:[#allocation20 + $0x48] sm:$0xff]  }
 0x6b4   : > { %12410 = vmatprep.subr.bf16.mxu1 %v15218_v28 }
 0x6b7   : > { %12411 = vmatpush3.bf16.msra.mxu1 %v13105_v17  ;;  %v13115_v17 = vld [vmem:[#allocation20 + $0x50] sm:$0xff]  }
 0x6b8   : > { %12412 = vmatprep.subr.bf16.mxu1 %v15218_v28 }
 0x6bb   : > { %12413 = vmatpush3.bf16.msra.mxu1 %v13107_v21  ;;  %v13117_v21 = vld [vmem:[#allocation20 + $0x58] sm:$0xff]  }
 0x6bc   : > { %12414 = vmatprep.subr.bf16.mxu1 %v15218_v28 }
 0x6bf   : > { %12415 = vmatpush3.bf16.msra.mxu1 %v13109_v39 }
 0x6c0   : > { %12432 = vmatprep.subr.bf16.mxu1 %v15218_v28 }
 0x775   : > { %v12394_v18 = vpop.f32.mrb[0].mxu1 }
 0x776   : > { %v3215_v1 = vpop.f32.mrb[1].mxu1  ;;  %v3224_v25 = vadd.f32 %v12394_v18, %v11259_v6 }
 0x777   : > { %v12395_v24 = vpop.f32.mrb[2].mxu1  ;;  %v3216_v60 = vadd.f32 %v11259_v6, %v3215_v1 }
 0x778   : > { %v3218_v3 = vpop.f32.mrb[3].mxu1  ;;  %v3227_v43 = vadd.f32 %v12395_v24, %v11259_v6  ;;  %v13119_v24 = vld [vmem:[#allocation23] sm:$0xff]  }
 0x779   : > { %v3219_v22 = vadd.f32 %v11259_v6, %v3218_v3 }
 0x785   : > { %v12406_v44 = vpop.f32.mrb[4].mxu1 }
 0x786   : > { %v3312_v36 = vadd.f32 %v12406_v44, %v11266_v27  ;;  %v3303_v0 = vpop.f32.mrb[5].mxu1 }
 0x787   : > { %v3304_v19 = vadd.f32 %v11266_v27, %v3303_v0  ;;  %v12407_v54 = vpop.f32.mrb[6].mxu1  ;;  %v13122_v0 = vld [vmem:[#allocation26 + $0x8] sm:$0xff]  }
 0x788   : > { %v11275_v5 = vmul.f32 -1.442695, %v3312_v36  ;;  %v3315_v26 = vadd.f32 %v12407_v54, %v11266_v27  ;;  %v3306_v47 = vpop.f32.mrb[7].mxu1  ;;  %v13121_v36 = vld [vmem:[#allocation23 + $0x8] sm:$0xff]   ;;  %v13124_v54 = vld [vmem:[#allocation26 + $0x10] sm:$0xff]  }
 0x789   : > { %v11273_v48 = vmul.f32 -1.442695, %v3304_v19  ;;  %v3307_v49 = vadd.f32 %v11266_v27, %v3306_v47  ;;  %v13120_v27 = vld [vmem:[#allocation26] sm:$0xff]   ;;  %v13123_v19 = vld [vmem:[#allocation23 + $0x10] sm:$0xff]  }
 0x78a   : > { %13943 = vpow2.f32 %v11275_v5  ;;  %v11276_v56 = vmul.f32 -1.442695, %v3315_v26  ;;  %v13125_v5 = vld [vmem:[#allocation23 + $0x18] sm:$0xff]   ;;  %v13127_v47 = vld [vmem:[#allocation23 + $0x20] sm:$0xff]  }
 0x78b   : > { %13945 = vpow2.f32 %v11273_v48  ;;  %v11274_v15 = vmul.f32 -1.442695, %v3307_v49  ;;  %v13126_v26 = vld [vmem:[#allocation26 + $0x18] sm:$0xff]   ;;  %v13128_v48 = vld [vmem:[#allocation26 + $0x20] sm:$0xff]  }
 0x78c   : > { %13947 = vpow2.f32 %v11276_v56  ;;  %v13129_v49 = vld [vmem:[#allocation23 + $0x28] sm:$0xff]  }
 0x78d   : > { %13949 = vpow2.f32 %v11274_v15  ;;  %v13130_v56 = vld [vmem:[#allocation26 + $0x28] sm:$0xff]  }
 0x78e   : > { %v13131_v15 = vld [vmem:[#allocation23 + $0x30] sm:$0xff]  }
 0x794   : > { %v13944_v34 = vpop.eup %13943 }
 0x795   : > { %v13946_v35 = vpop.eup %13945  ;;  %v3332_v12 = vadd.f32 1.0, %v13944_v34  ;;  %v13132_v34 = vld [vmem:[#allocation26 + $0x30] sm:$0xff]  }
 0x796   : > { %v13948_v63 = vpop.eup %13947  ;;  %v3330_v9 = vadd.f32 1.0, %v13946_v35  ;;  %v13133_v35 = vld [vmem:[#allocation23 + $0x38] sm:$0xff]  }
 0x797   : > { %v13950_v41 = vpop.eup %13949  ;;  %13951 = vrcp.f32 %v3332_v12  ;;  %v3333_v31 = vadd.f32 1.0, %v13948_v63  ;;  %v13134_v12 = vld [vmem:[#allocation26 + $0x38] sm:$0xff]  }
 0x798   : > { %13953 = vrcp.f32 %v3330_v9  ;;  %v3331_v10 = vadd.f32 1.0, %v13950_v41 }
 0x799   : > { %13955 = vrcp.f32 %v3333_v31 }
 0x79a   : > { %13957 = vrcp.f32 %v3331_v10 }
 0x7a1   : > { %v13952_v7 = vpop.eup %13951 }
 0x7a2   : > { %v13954_v13 = vpop.eup %13953  ;;  %v16517_v14 = vmul.f32 %v13952_v7, %v3224_v25 }
 0x7a3   : > { %v13956_v2 = vpop.eup %13955  ;;  %v16519_v33 = vmul.f32 %v13954_v13, %v3216_v60 }
 0x7a4   : > { %v13958_v30 = vpop.eup %13957  ;;  %v16521_v38 = vmul.f32 %v13956_v2, %v3227_v43  ;;  %v3353_v29 = vrot.slane %v16517_v14, 7 }
 0x7a5   : > { %v3350_v40 = vrot.slane %v16519_v33, 7  ;;  %v16524_v53 = vmul.f32 %v13958_v30, %v3219_v22 }
 0x7a6   : > { %v3355_v46 = vrot.slane %v16521_v38, 7 }
 0x7a7   : > { %v3362_v58 = vsel %vm2714_vm0, 0.0, %v3350_v40  ;;  %v3351_v37 = vrot.slane %v16524_v53, 7 }
 0x7a8   : > { %3364 = vst.msk [vmem:[#allocation3] sm:$0xff] %vm3174_vm3, %v3362_v58  ;;  %v3356_v50 = vsel %vm2714_vm0, %v3353_v29, %v3355_v46  ;;  %v3363_v51 = vsel %vm2714_vm0, %v3355_v46, 0.0 }
 0x7a9   : > { %3367 = vst.msk [vmem:[#allocation3 + $0x18] sm:$0xff] %vm3174_vm3, %v3356_v50  ;;  %v3352_v20 = vsel %vm2714_vm0, %v3350_v40, %v3351_v37  ;;  %v3354_v45 = vsel %vm2714_vm0, %v3351_v37, %v3353_v29  ;;  %v11297_v40 = vld [vmem:[#allocation21] ss:$0 sm:$0xff] }
 0x7aa   : > { %3369 = vst.msk [vmem:[#allocation3 + $0x20] sm:$0x3] %vm3368_vm5, %v3363_v51 }
 0x7ab   : > { %3365 = vst.msk [vmem:[#allocation3 + $0x8] sm:$0xff] %vm3174_vm3, %v3352_v20  ;;  %3366 = vst.msk [vmem:[#allocation3 + $0x10] sm:$0xff] %vm3174_vm3, %v3354_v45 }
 0x7b2   : > { %v3383_v23 = vld [vmem:[#allocation3 + $0x1] ss:$2 sm:$0xff]  ;;  %v3385_v55 = vld [vmem:[#allocation3 + $0x11] ss:$2 sm:$0xff]  ;;  %v3370_v52 = vld [vmem:[#allocation3] ss:$2 sm:$0xff] }
 0x7b3   : > { %v3386_v62 = vpack.c.bf16 %v3385_v55, %v3383_v23  ;;  %v3372_v57 = vld [vmem:[#allocation3 + $0x10] ss:$2 sm:$0xff]  ;;  %v3617_v18 = vld [vmem:[#allocation3 + $0x3] ss:$2 sm:$0xff]  ;;  %v3619_v1 = vld [vmem:[#allocation3 + $0x13] ss:$2 sm:$0xff] }
 0x7b4   : > { %v3373_v16 = vpack.c.bf16 %v3372_v57, %v3370_v52  ;;  %v3533_v39 = vld [vmem:[#allocation3 + $0x2] ss:$2 sm:$0xff]  ;;  %v3535_v11 = vld [vmem:[#allocation3 + $0x12] ss:$2 sm:$0xff]  ;;  %v3620_v44 = vpack.c.bf16 %v3619_v1, %v3617_v18  ;;  %v17729_v57 = vmov 0  }
 0x7b5   : > { %12417 = vmatmul.mubr.msk.bf16.vlgmr.msra.gmra.mrb[8].mxu1 %vm3174_vm3, %v3386_v62  ;;  %v3536_v3 = vpack.c.bf16 %v3535_v11, %v3533_v39  ;;  %v13149_v39 = vld [vmem:[%s17728_s2 + $0xa4] ss:$8 sps:$4 sm:$0xff]   ;;  %v13147_v18 = vld [vmem:[%s17728_s2 + $0xa0] ss:$8 sps:$4 sm:$0xff]  }
 0x7b6   : > { %12429 = vmatmul.mubr.msk.bf16.vlgmr.msra.gmra.mrb[4].mxu0 %vm3174_vm3, %v3373_v16  ;;  %12433 = vmatpush3.bf16.msra.mxu1 %v13111_v32  ;;  %v13140_v16 = vld [vmem:[%s17728_s2 + $0x4] ss:$8 sps:$4 sm:$0xff]   ;;  %v13150_v1 = vld [vmem:[%s17728_s2 + $0x20] ss:$8 sps:$4 sm:$0xff]  }
 0x7b7   : > { %12445 = vmatpush3.bf16.msra.mxu0 %v13112_v42  ;;  %12434 = vmatprep.subr.bf16.mxu1 %v15218_v28  ;;  %v13137_v42 = vld [vmem:[%s17728_s2 + $0x84] ss:$8 sps:$4 sm:$0xff]  }
 0x7b8   : > { %12446 = vmatprep.subr.bf16.mxu0 %v15218_v28  ;;  %12440 = vmatprep.mubr.msk.bf16.mxu1 %vm15219_vm4, %v15218_v28  ;;  %v13152_v11 = vld [vmem:[%s17728_s2 + $0x24] ss:$8 sps:$4 sm:$0xff]  }
 0x7b9   : > { %12452 = vmatprep.mubr.msk.bf16.mxu0 %vm15219_vm4, %v15218_v28 }
 0x7ba   : > { %12435 = vmatpush3.bf16.msra.mxu1 %v13113_v4  ;;  %v13135_v4 = vld [vmem:[%s17728_s2 + $0x80] ss:$8 sps:$4 sm:$0xff]  }
 0x7bb   : > { %12447 = vmatpush3.bf16.msra.mxu0 %v13114_v61  ;;  %12436 = vmatprep.subr.bf16.mxu1 %v15218_v28  ;;  %v13138_v61 = vld [vmem:[%s17728_s2] ss:$8 sps:$4 sm:$0xff]  }
 0x7bc   : > { %12448 = vmatprep.subr.bf16.mxu0 %v15218_v28 }
 0x7be   : > { %12437 = vmatpush3.bf16.msra.mxu1 %v13115_v17  ;;  %v13143_v17 = vld [vmem:[%s17728_s2 + $0x94] ss:$8 sps:$4 sm:$0xff]  }
 0x7bf   : > { %12449 = vmatpush3.bf16.msra.mxu0 %v13116_v59  ;;  %12438 = vmatprep.subr.bf16.mxu1 %v15218_v28  ;;  %v13146_v59 = vld [vmem:[%s17728_s2 + $0x14] ss:$8 sps:$4 sm:$0xff]  }
 0x7c0   : > { %12450 = vmatprep.subr.bf16.mxu0 %v15218_v28 }
 0x7c2   : > { %12439 = vmatpush3.bf16.msra.mxu1 %v13117_v21  ;;  %v13141_v21 = vld [vmem:[%s17728_s2 + $0x90] ss:$8 sps:$4 sm:$0xff]  }
 0x7c3   : > { %12451 = vmatpush3.bf16.msra.mxu0 %v13118_v8  ;;  %12456 = vmatprep.subr.bf16.mxu1 %v15218_v28  ;;  %v13144_v8 = vld [vmem:[%s17728_s2 + $0x10] ss:$8 sps:$4 sm:$0xff]  }
 0x7c4   : > { %12476 = vmatprep.subr.bf16.mxu0 %v15218_v28 }
 0x7c5   : > { %12441 = vmatmul.mubr.msk.bf16.vlgmr.msra.gmra.mrb[12].mxu1 %vm3174_vm3, %v3536_v3  ;;  %v13158_v3 = vld [vmem:[%s17728_s2 + $0x34] ss:$8 sps:$4 sm:$0xff]  }
 0x7c6   : > { %12453 = vmatmul.mubr.msk.bf16.vlgmr.msra.gmra.mrb[8].mxu0 %vm3174_vm3, %v3620_v44  ;;  %12457 = vmatpush3.bf16.msra.mxu1 %v13119_v24  ;;  %v13155_v24 = vld [vmem:[%s17728_s2 + $0xb4] ss:$8 sps:$4 sm:$0xff]   ;;  %v13156_v44 = vld [vmem:[%s17728_s2 + $0x30] ss:$8 sps:$4 sm:$0xff]  }
 0x7c7   : > { %12477 = vmatpush3.bf16.msra.mxu0 %v13120_v27  ;;  %12458 = vmatprep.subr.bf16.mxu1 %v15218_v28  ;;  %v13153_v27 = vld [vmem:[%s17728_s2 + $0xb0] ss:$8 sps:$4 sm:$0xff]  }
 0x7c8   : > { %12478 = vmatprep.subr.bf16.mxu0 %v15218_v28  ;;  %12472 = vmatprep.mubr.msk.bf16.mxu1 %vm15219_vm4, %v15218_v28 }
 0x7c9   : > { %12492 = vmatprep.mubr.msk.bf16.mxu0 %vm15219_vm4, %v15218_v28 }
 0x7ca   : > { %12459 = vmatpush3.bf16.msra.mxu1 %v13121_v36  ;;  %v13161_v36 = vld [vmem:[%s17728_s2 + $0xc4] ss:$8 sps:$4 sm:$0xff]  }
 0x7cb   : > { %12479 = vmatpush3.bf16.msra.mxu0 %v13122_v0  ;;  %12460 = vmatprep.subr.bf16.mxu1 %v15218_v28  ;;  %v13164_v0 = vld [vmem:[%s17728_s2 + $0x44] ss:$8 sps:$4 sm:$0xff]  }
 0x7cc   : > { %12480 = vmatprep.subr.bf16.mxu0 %v15218_v28 }
 0x7ce   : > { %12461 = vmatpush3.bf16.msra.mxu1 %v13123_v19  ;;  %v13159_v19 = vld [vmem:[%s17728_s2 + $0xc0] ss:$8 sps:$4 sm:$0xff]  }
 0x7cf   : > { %12481 = vmatpush3.bf16.msra.mxu0 %v13124_v54  ;;  %12462 = vmatprep.subr.bf16.mxu1 %v15218_v28  ;;  %v13162_v54 = vld [vmem:[%s17728_s2 + $0x40] ss:$8 sps:$4 sm:$0xff]  }
 0x7d0   : > { %12482 = vmatprep.subr.bf16.mxu0 %v15218_v28 }
 0x7d2   : > { %12463 = vmatpush3.bf16.msra.mxu1 %v13125_v5  ;;  %v13167_v5 = vld [vmem:[%s17728_s2 + $0xd4] ss:$8 sps:$4 sm:$0xff]  }
 0x7d3   : > { %12483 = vmatpush3.bf16.msra.mxu0 %v13126_v26  ;;  %12464 = vmatprep.subr.bf16.mxu1 %v15218_v28  ;;  %v13170_v26 = vld [vmem:[%s17728_s2 + $0x54] ss:$8 sps:$4 sm:$0xff]  }
 0x7d4   : > { %12484 = vmatprep.subr.bf16.mxu0 %v15218_v28 }
 0x7d6   : > { %12465 = vmatpush3.bf16.msra.mxu1 %v13127_v47  ;;  %v13165_v47 = vld [vmem:[%s17728_s2 + $0xd0] ss:$8 sps:$4 sm:$0xff]  }
 0x7d7   : > { %12485 = vmatpush3.bf16.msra.mxu0 %v13128_v48  ;;  %12466 = vmatprep.subr.bf16.mxu1 %v15218_v28  ;;  %v13168_v48 = vld [vmem:[%s17728_s2 + $0x50] ss:$8 sps:$4 sm:$0xff]  }
 0x7d8   : > { %12486 = vmatprep.subr.bf16.mxu0 %v15218_v28 }
 0x7da   : > { %12467 = vmatpush3.bf16.msra.mxu1 %v13129_v49  ;;  %v13171_v49 = vld [vmem:[%s17728_s2 + $0xe0] ss:$8 sps:$4 sm:$0xff]  }
 0x7db   : > { %12487 = vmatpush3.bf16.msra.mxu0 %v13130_v56  ;;  %12468 = vmatprep.subr.bf16.mxu1 %v15218_v28  ;;  %v13173_v56 = vld [vmem:[%s17728_s2 + $0xe4] ss:$8 sps:$4 sm:$0xff]  }
 0x7dc   : > { %12488 = vmatprep.subr.bf16.mxu0 %v15218_v28 }
 0x7de   : > { %12469 = vmatpush3.bf16.msra.mxu1 %v13131_v15  ;;  %v13174_v15 = vld [vmem:[%s17728_s2 + $0x60] ss:$8 sps:$4 sm:$0xff]  }
 0x7df   : > { %12489 = vmatpush3.bf16.msra.mxu0 %v13132_v34  ;;  %12470 = vmatprep.subr.bf16.mxu1 %v15218_v28  ;;  %v13176_v34 = vld [vmem:[%s17728_s2 + $0x64] ss:$8 sps:$4 sm:$0xff]  }
 0x7e0   : > { %12490 = vmatprep.subr.bf16.mxu0 %v15218_v28 }
 0x7e2   : > { %12471 = vmatpush3.bf16.msra.mxu1 %v13133_v35  ;;  %v13179_v35 = vld [vmem:[%s17728_s2 + $0xf4] ss:$8 sps:$4 sm:$0xff]  }
 0x7e3   : > { %12491 = vmatpush3.bf16.msra.mxu0 %v13134_v12  ;;  %4081 = vmatprep.subr.bf16.mxu1 %v13137_v42  ;;  %v13182_v12 = vld [vmem:[%s17728_s2 + $0x74] ss:$8 sps:$4 sm:$0xff]  }
 0x7e4   : > { %4202 = vmatprep.subr.bf16.mxu0 %v13140_v16 }
 0x888   : > { %v3457_v63 = vpop.f32.mrb[8].mxu1 }
 0x889   : > { %v3525_v9 = vpop.f32.mrb[4].mxu0  ;;  %v12418_v41 = vpop.f32.mrb[9].mxu1 }
 0x88a   : > { %v3526_v31 = vadd.f32 %v3525_v9, %v3457_v63  ;;  %v12430_v10 = vpop.f32.mrb[5].mxu0  ;;  %v3460_v6 = vpop.f32.mrb[10].mxu1  ;;  %v13177_v63 = vld [vmem:[%s17728_s2 + $0xf0] ss:$8 sps:$4 sm:$0xff]   ;;  %v13185_v41 = vld [vmem:[%s17728_s2 + $0x104] ss:$8 sps:$4 sm:$0xff]  }
 0x88b   : > { %v3528_v25 = vpop.f32.mrb[6].mxu0  ;;  %v12419_v7 = vpop.f32.mrb[11].mxu1  ;;  %v13180_v9 = vld [vmem:[%s17728_s2 + $0x70] ss:$8 sps:$4 sm:$0xff]   ;;  %v11307_v10 = vld [vmem:[#allocation27] ss:$0 sm:$0xff] }
 0x88c   : > { %v3529_v60 = vadd.f32 %v3528_v25, %v3460_v6  ;;  %v12431_v13 = vpop.f32.mrb[7].mxu0 }
 0x898   : > { %v3607_v43 = vpop.f32.mrb[12].mxu1 }
 0x899   : > { %v3614_v2 = vadd.f32 %v3607_v43, %v3526_v31  ;;  %v3691_v22 = vpop.f32.mrb[8].mxu0  ;;  %v12442_v30 = vpop.f32.mrb[13].mxu1  ;;  %v13188_v31 = vld [vmem:[%s17728_s2 + $0x184] ss:$8 sps:$4 sm:$0xff]  }
 0x89a   : > { %v12454_v29 = vpop.f32.mrb[9].mxu0  ;;  %v3610_v46 = vpop.f32.mrb[14].mxu1 }
 0x89b   : > { %v3698_v58 = vadd.f32 %v3691_v22, %v3614_v2  ;;  %v3615_v37 = vadd.f32 %v3610_v46, %v3529_v60  ;;  %v3694_v50 = vpop.f32.mrb[10].mxu0  ;;  %v12443_v51 = vpop.f32.mrb[15].mxu1 }
 0x89c   : > { %v12455_v20 = vpop.f32.mrb[11].mxu0 }
 0x89d   : > { %v3707_v45 = vadd.f32 %v11297_v40, %v3698_v58  ;;  %v3699_v32 = vadd.f32 %v3694_v50, %v3615_v37  ;;  %v11298_v20 = vld [vmem:[#allocation24] ss:$0 sm:$0xff] }
 0x89f   : > { %v3708_v23 = vadd.f32 %v11297_v40, %v3699_v32  ;;  %v3709_v55 = vmax.f32 %v3707_v45, 0.0 }
 0x8a1   : > { %v3710_v52 = vmax.f32 %v3708_v23, 0.0 }
 0x8a3   : > { %v3711_v62 = vpack.c.bf16 %v3710_v52, %v3709_v55 }
 0x8a5   : > { %12473 = vmatmul.mubr.bf16.vlgmr.msra.gmra.mrb[16].mxu1 %v3711_v62  ;;  %12493 = vmatmul.mubr.bf16.vlgmr.msra.gmra.mrb[12].mxu0 %v3711_v62 }
 0x8a6   : > { %4113 = vmatprep.mubr.bf16.mxu1 %v17729_v57  ;;  %4234 = vmatprep.mubr.bf16.mxu0 %v17729_v57 }
 0x8a7   : > { %4082 = vmatpush1.bf16.msra.mxu1 %v13135_v4  ;;  %4203 = vmatpush1.bf16.msra.mxu0 %v13138_v61 }
 0x8a8   : > { %4083 = vmatprep.subr.bf16.mxu1 %v13143_v17  ;;  %4204 = vmatprep.subr.bf16.mxu0 %v13146_v59  ;;  %v13183_v59 = vld [vmem:[%s17728_s2 + $0x100] ss:$8 sps:$4 sm:$0xff]  }
 0x8ab   : > { %4084 = vmatpush1.bf16.msra.mxu1 %v13141_v21  ;;  %4205 = vmatpush1.bf16.msra.mxu0 %v13144_v8  ;;  %v13186_v21 = vld [vmem:[%s17728_s2 + $0x180] ss:$8 sps:$4 sm:$0xff]  }
 0x8ac   : > { %4085 = vmatprep.subr.bf16.mxu1 %v13149_v39  ;;  %4206 = vmatprep.subr.bf16.mxu0 %v13152_v11 }
 0x8af   : > { %4086 = vmatpush1.bf16.msra.mxu1 %v13147_v18  ;;  %4207 = vmatpush1.bf16.msra.mxu0 %v13150_v1  ;;  %v13191_v1 = vld [vmem:[%s17728_s2 + $0x114] ss:$8 sps:$4 sm:$0xff]  }
 0x8b0   : > { %4087 = vmatprep.subr.bf16.mxu1 %v13155_v24  ;;  %4208 = vmatprep.subr.bf16.mxu0 %v13158_v3  ;;  %v13194_v24 = vld [vmem:[%s17728_s2 + $0x194] ss:$8 sps:$4 sm:$0xff]   ;;  %v13189_v3 = vld [vmem:[%s17728_s2 + $0x110] ss:$8 sps:$4 sm:$0xff]  }
 0x8b3   : > { %4088 = vmatpush1.bf16.msra.mxu1 %v13153_v27  ;;  %4209 = vmatpush1.bf16.msra.mxu0 %v13156_v44  ;;  %v13192_v27 = vld [vmem:[%s17728_s2 + $0x190] ss:$8 sps:$4 sm:$0xff]   ;;  %v13197_v44 = vld [vmem:[%s17728_s2 + $0x124] ss:$8 sps:$4 sm:$0xff]  }
 0x8b4   : > { %4089 = vmatprep.subr.bf16.mxu1 %v13161_v36  ;;  %4210 = vmatprep.subr.bf16.mxu0 %v13164_v0  ;;  %v13200_v36 = vld [vmem:[%s17728_s2 + $0x1a4] ss:$8 sps:$4 sm:$0xff]   ;;  %v13195_v0 = vld [vmem:[%s17728_s2 + $0x120] ss:$8 sps:$4 sm:$0xff]  }
 0x8b7   : > { %4090 = vmatpush1.bf16.msra.mxu1 %v13159_v19  ;;  %4211 = vmatpush1.bf16.msra.mxu0 %v13162_v54  ;;  %v13198_v19 = vld [vmem:[%s17728_s2 + $0x1a0] ss:$8 sps:$4 sm:$0xff]   ;;  %v13203_v54 = vld [vmem:[%s17728_s2 + $0x134] ss:$8 sps:$4 sm:$0xff]  }
 0x8b8   : > { %4091 = vmatprep.subr.bf16.mxu1 %v13167_v5  ;;  %4212 = vmatprep.subr.bf16.mxu0 %v13170_v26  ;;  %v13206_v5 = vld [vmem:[%s17728_s2 + $0x1b4] ss:$8 sps:$4 sm:$0xff]   ;;  %v13201_v26 = vld [vmem:[%s17728_s2 + $0x130] ss:$8 sps:$4 sm:$0xff]  }
 0x8bb   : > { %4092 = vmatpush1.bf16.msra.mxu1 %v13165_v47  ;;  %4213 = vmatpush1.bf16.msra.mxu0 %v13168_v48  ;;  %v13204_v47 = vld [vmem:[%s17728_s2 + $0x1b0] ss:$8 sps:$4 sm:$0xff]   ;;  %v13209_v48 = vld [vmem:[%s17728_s2 + $0x144] ss:$8 sps:$4 sm:$0xff]  }
 0x8bc   : > { %4093 = vmatprep.subr.bf16.mxu1 %v13173_v56  ;;  %4214 = vmatprep.subr.bf16.mxu0 %v13176_v34  ;;  %v13207_v56 = vld [vmem:[%s17728_s2 + $0x140] ss:$8 sps:$4 sm:$0xff]   ;;  %v13215_v34 = vld [vmem:[%s17728_s2 + $0x154] ss:$8 sps:$4 sm:$0xff]  }
 0x8bf   : > { %4094 = vmatpush1.bf16.msra.mxu1 %v13171_v49  ;;  %4215 = vmatpush1.bf16.msra.mxu0 %v13174_v15  ;;  %v13212_v49 = vld [vmem:[%s17728_s2 + $0x1c4] ss:$8 sps:$4 sm:$0xff]   ;;  %v13210_v15 = vld [vmem:[%s17728_s2 + $0x1c0] ss:$8 sps:$4 sm:$0xff]  }
 0x8c0   : > { %4095 = vmatprep.subr.bf16.mxu1 %v13179_v35  ;;  %4216 = vmatprep.subr.bf16.mxu0 %v13182_v12  ;;  %v13218_v35 = vld [vmem:[%s17728_s2 + $0x1d4] ss:$8 sps:$4 sm:$0xff]   ;;  %v13213_v12 = vld [vmem:[%s17728_s2 + $0x150] ss:$8 sps:$4 sm:$0xff]  }
 0x8c3   : > { %4096 = vmatpush1.bf16.msra.mxu1 %v13177_v63  ;;  %4217 = vmatpush1.bf16.msra.mxu0 %v13180_v9  ;;  %v13216_v63 = vld [vmem:[%s17728_s2 + $0x1d0] ss:$8 sps:$4 sm:$0xff]   ;;  %v13221_v9 = vld [vmem:[%s17728_s2 + $0x164] ss:$8 sps:$4 sm:$0xff]  }
 0x8c4   : > { %4343 = vmatprep.subr.bf16.mxu1 %v13185_v41  ;;  %4486 = vmatprep.subr.bf16.mxu0 %v13188_v31  ;;  %v13224_v41 = vld [vmem:[%s17728_s2 + $0x1e4] ss:$8 sps:$4 sm:$0xff]   ;;  %v13219_v31 = vld [vmem:[%s17728_s2 + $0x160] ss:$8 sps:$4 sm:$0xff]  }
 0x978   : > { %v3817_v6 = vpop.f32.mrb[16].mxu1  ;;  %v3929_v25 = vpop.f32.mrb[12].mxu0 }
 0x979   : > { %v3930_v7 = vadd.f32 %v11307_v10, %v3929_v25  ;;  %v12474_v60 = vpop.f32.mrb[17].mxu1  ;;  %v12494_v13 = vpop.f32.mrb[13].mxu0  ;;  %v3818_v45 = vadd.f32 %v11298_v20, %v3817_v6  ;;  %v13227_v6 = vld [vmem:[%s17728_s2 + $0x174] ss:$8 sps:$4 sm:$0xff]  }
 0x97a   : > { %v3820_v43 = vpop.f32.mrb[18].mxu1  ;;  %v3932_v2 = vpop.f32.mrb[14].mxu0  ;;  %v13230_v25 = vld [vmem:[%s17728_s2 + $0x1f4] ss:$8 sps:$4 sm:$0xff]   ;;  %v13228_v60 = vld [vmem:[%s17728_s2 + $0x1f0] ss:$8 sps:$4 sm:$0xff]  }
 0x97b   : > { %v11316_v22 = vmul.f32 -1.442695, %v3930_v7  ;;  %v3933_v30 = vadd.f32 %v11307_v10, %v3932_v2  ;;  %v12475_v40 = vpop.f32.mrb[19].mxu1  ;;  %v12495_v29 = vpop.f32.mrb[15].mxu0  ;;  %v3821_v55 = vadd.f32 %v11298_v20, %v3820_v43  ;;  %v13222_v10 = vld [vmem:[%s17728_s2 + $0x1e0] ss:$8 sps:$4 sm:$0xff]  }
 0x97c   : > { %v13225_v7 = vld [vmem:[%s17728_s2 + $0x170] ss:$8 sps:$4 sm:$0xff]   ;;  %v13233_v13 = vld [vmem:[%s17730_s7 + $0x4] ss:$8 sps:$4 sm:$0xff]   ;;  %s17739_s7 = sld [smem:[#allocation106_spill]] }
 0x97d   : > { %13959 = vpow2.f32 %v11316_v22  ;;  %v11317_v46 = vmul.f32 -1.442695, %v3933_v30  ;;  %v13236_v43 = vld [vmem:[#allocation29 + $0x4] ss:$8 sps:$4 sm:$0xff]   ;;  %v13234_v40 = vld [vmem:[#allocation29] ss:$8 sps:$4 sm:$0xff]  }
 0x97e   : > { %v13231_v30 = vld [vmem:[%s17731_s13] ss:$8 sps:$4 sm:$0xff]   ;;  %v13245_v20 = vld [vmem:[%s17731_s13 + $0x24] ss:$8 sps:$4 sm:$0xff]  }
 0x97f   : > { %13961 = vpow2.f32 %v11317_v46 }
 0x987   : > { %v13960_v58 = vpop.eup %13959 }
 0x988   : > { %v3942_v37 = vadd.f32 1.0, %v13960_v58  ;;  %v13239_v58 = vld [vmem:[%s17731_s13 + $0x14] ss:$8 sps:$4 sm:$0xff]  }
 0x989   : > { %v13962_v50 = vpop.eup %13961 }
 0x98a   : > { %13963 = vrcp.f32 %v3942_v37  ;;  %v3943_v51 = vadd.f32 1.0, %v13962_v50  ;;  %v13242_v37 = vld [vmem:[#allocation29 + $0x14] ss:$8 sps:$4 sm:$0xff]  }
 0x98b   : > { %v13237_v50 = vld [vmem:[%s17731_s13 + $0x10] ss:$8 sps:$4 sm:$0xff]  }
 0x98c   : > { %13965 = vrcp.f32 %v3943_v51  ;;  %v13240_v51 = vld [vmem:[#allocation29 + $0x10] ss:$8 sps:$4 sm:$0xff]  }
 0x994   : > { %v13964_v32 = vpop.eup %13963 }
 0x995   : > { %v16608_v23 = vmul.f32 %v13964_v32, %v3818_v45  ;;  %v13248_v45 = vld [vmem:[#allocation29 + $0x24] ss:$8 sps:$4 sm:$0xff]  }
 0x996   : > { %v13966_v52 = vpop.eup %13965  ;;  %v13243_v32 = vld [vmem:[%s17731_s13 + $0x20] ss:$8 sps:$4 sm:$0xff]  }
 0x997   : > { %v3952_v62 = vrot.slane %v16608_v23, 7  ;;  %v16611_v42 = vmul.f32 %v13966_v52, %v3821_v55  ;;  %v13246_v55 = vld [vmem:[#allocation29 + $0x20] ss:$8 sps:$4 sm:$0xff]   ;;  %v13251_v52 = vld [vmem:[%s17731_s13 + $0x34] ss:$8 sps:$4 sm:$0xff]  }
 0x999   : > { %v3958_v16 = vsel %vm2714_vm0, 0.0, %v3952_v62  ;;  %v3953_v4 = vrot.slane %v16611_v42, 7 }
 0x99a   : > { %3960 = vst [vmem:[#allocation4] sm:$0xff] %v3958_v16  ;;  %v13249_v16 = vld [vmem:[%s17731_s13 + $0x30] ss:$8 sps:$4 sm:$0xff]  }
 0x99b   : > { %v3954_v61 = vsel %vm2714_vm0, %v3952_v62, %v3953_v4  ;;  %v3959_v17 = vsel %vm2714_vm0, %v3953_v4, 0.0  ;;  %v13254_v62 = vld [vmem:[#allocation29 + $0x34] ss:$8 sps:$4 sm:$0xff]   ;;  %v13252_v4 = vld [vmem:[#allocation29 + $0x30] ss:$8 sps:$4 sm:$0xff]  }
 0x99c   : > { %3961 = vst [vmem:[#allocation4 + $0x8] sm:$0xff] %v3954_v61  ;;  %3962 = vst [vmem:[#allocation4 + $0x10] sm:$0x3] %v3959_v17  ;;  %v13257_v61 = vld [vmem:[%s17731_s13 + $0x44] ss:$8 sps:$4 sm:$0xff]  }
 0x99d   : > { %v13260_v17 = vld [vmem:[#allocation29 + $0x44] ss:$8 sps:$4 sm:$0xff]  }
 0x9a3   : > { %v3982_v8 = vld [vmem:[#allocation4 + $0x1] ss:$2 sm:$0xff]  ;;  %v3963_v39 = vld [vmem:[#allocation4] ss:$2 sm:$0xff] }
 0x9a4   : > { %v3983_v11 = vpack.c.bf16 %v3982_v8, %v3982_v8  ;;  %v3964_v18 = vpack.c.bf16 %v3963_v39, %v3963_v39  ;;  %v4244_v2 = vld [vmem:[#allocation4 + $0x2] ss:$2 sm:$0xff]  ;;  %v4387_v22 = vld [vmem:[#allocation4 + $0x3] ss:$2 sm:$0xff] }
 0x9a5   : > { %v4245_v29 = vpack.c.bf16 %v4244_v2, %v4244_v2  ;;  %v4388_v46 = vpack.c.bf16 %v4387_v22, %v4387_v22  ;;  %v13263_v8 = vld [vmem:[%s17731_s13 + $0x54] ss:$8 sps:$4 sm:$0xff]   ;;  %v13309_v2 = vld [vmem:[%s17731_s13 + $0xd0] ss:$8 sps:$4 sm:$0xff]  }
 0x9a6   : > { %4114 = vmatmul.mubr.bf16.vlgmr.msra.gmra.mrb[20].mxu1 %v3983_v11  ;;  %4235 = vmatmul.mubr.bf16.vlgmr.msra.gmra.mrb[16].mxu0 %v3964_v18  ;;  %v13266_v39 = vld [vmem:[#allocation29 + $0x54] ss:$8 sps:$4 sm:$0xff]   ;;  %v13264_v18 = vld [vmem:[#allocation29 + $0x50] ss:$8 sps:$4 sm:$0xff]  }
 0x9a7   : > { %4344 = vmatpush1.bf16.msra.mxu1 %v13183_v59  ;;  %4487 = vmatpush1.bf16.msra.mxu0 %v13186_v21  ;;  %v13255_v59 = vld [vmem:[%s17731_s13 + $0x40] ss:$8 sps:$4 sm:$0xff]   ;;  %v13261_v11 = vld [vmem:[%s17731_s13 + $0x50] ss:$8 sps:$4 sm:$0xff]  }
 0x9a8   : > { %4345 = vmatprep.subr.bf16.mxu1 %v13191_v1  ;;  %4488 = vmatprep.subr.bf16.mxu0 %v13194_v24  ;;  %v13258_v21 = vld [vmem:[#allocation29 + $0x40] ss:$8 sps:$4 sm:$0xff]   ;;  %v13312_v22 = vld [vmem:[#allocation29 + $0xd0] ss:$8 sps:$4 sm:$0xff]  }
 0x9a9   : > { %4375 = vmatprep.mubr.bf16.mxu1 %v17729_v57  ;;  %4518 = vmatprep.mubr.bf16.mxu0 %v17729_v57  ;;  %v13267_v1 = vld [vmem:[%s17731_s13 + $0x60] ss:$8 sps:$4 sm:$0xff]   ;;  %v13269_v24 = vld [vmem:[%s17731_s13 + $0x64] ss:$8 sps:$4 sm:$0xff]  }
 0x9ab   : > { %4346 = vmatpush1.bf16.msra.mxu1 %v13189_v3  ;;  %4489 = vmatpush1.bf16.msra.mxu0 %v13192_v27  ;;  %v13270_v3 = vld [vmem:[#allocation29 + $0x60] ss:$8 sps:$4 sm:$0xff]   ;;  %v13272_v27 = vld [vmem:[#allocation29 + $0x64] ss:$8 sps:$4 sm:$0xff]  }
 0x9ac   : > { %4347 = vmatprep.subr.bf16.mxu1 %v13197_v44  ;;  %4490 = vmatprep.subr.bf16.mxu0 %v13200_v36  ;;  %v13275_v44 = vld [vmem:[%s17731_s13 + $0x74] ss:$8 sps:$4 sm:$0xff]  }
 0x9ad   : > { %v13278_v36 = vld [vmem:[#allocation29 + $0x74] ss:$8 sps:$4 sm:$0xff]  }
 0x9af   : > { %4348 = vmatpush1.bf16.msra.mxu1 %v13195_v0  ;;  %4491 = vmatpush1.bf16.msra.mxu0 %v13198_v19  ;;  %v13273_v0 = vld [vmem:[%s17731_s13 + $0x70] ss:$8 sps:$4 sm:$0xff]  }
 0x9b0   : > { %4349 = vmatprep.subr.bf16.mxu1 %v13203_v54  ;;  %4492 = vmatprep.subr.bf16.mxu0 %v13206_v5  ;;  %v13276_v19 = vld [vmem:[#allocation29 + $0x70] ss:$8 sps:$4 sm:$0xff]   ;;  %v13281_v54 = vld [vmem:[%s17731_s13 + $0x84] ss:$8 sps:$4 sm:$0xff]  }
 0x9b1   : > { %v13284_v5 = vld [vmem:[#allocation29 + $0x84] ss:$8 sps:$4 sm:$0xff]  }
 0x9b3   : > { %4350 = vmatpush1.bf16.msra.mxu1 %v13201_v26  ;;  %4493 = vmatpush1.bf16.msra.mxu0 %v13204_v47  ;;  %v13279_v26 = vld [vmem:[%s17731_s13 + $0x80] ss:$8 sps:$4 sm:$0xff]  }
 0x9b4   : > { %4351 = vmatprep.subr.bf16.mxu1 %v13209_v48  ;;  %4494 = vmatprep.subr.bf16.mxu0 %v13212_v49  ;;  %v13282_v47 = vld [vmem:[#allocation29 + $0x80] ss:$8 sps:$4 sm:$0xff]   ;;  %v13287_v48 = vld [vmem:[%s17731_s13 + $0x94] ss:$8 sps:$4 sm:$0xff]  }
 0x9b5   : > { %v13290_v49 = vld [vmem:[#allocation29 + $0x94] ss:$8 sps:$4 sm:$0xff]  }
 0x9b7   : > { %4352 = vmatpush1.bf16.msra.mxu1 %v13207_v56  ;;  %4495 = vmatpush1.bf16.msra.mxu0 %v13210_v15  ;;  %v13285_v56 = vld [vmem:[%s17731_s13 + $0x90] ss:$8 sps:$4 sm:$0xff]  }
 0x9b8   : > { %4353 = vmatprep.subr.bf16.mxu1 %v13215_v34  ;;  %4496 = vmatprep.subr.bf16.mxu0 %v13218_v35  ;;  %v13288_v15 = vld [vmem:[#allocation29 + $0x90] ss:$8 sps:$4 sm:$0xff]   ;;  %v13293_v34 = vld [vmem:[%s17731_s13 + $0xa4] ss:$8 sps:$4 sm:$0xff]  }
 0x9b9   : > { %v13296_v35 = vld [vmem:[#allocation29 + $0xa4] ss:$8 sps:$4 sm:$0xff]  }
 0x9bb   : > { %4354 = vmatpush1.bf16.msra.mxu1 %v13213_v12  ;;  %4497 = vmatpush1.bf16.msra.mxu0 %v13216_v63  ;;  %v13291_v12 = vld [vmem:[%s17731_s13 + $0xa0] ss:$8 sps:$4 sm:$0xff]  }
 0x9bc   : > { %4355 = vmatprep.subr.bf16.mxu1 %v13221_v9  ;;  %4498 = vmatprep.subr.bf16.mxu0 %v13224_v41  ;;  %v13294_v63 = vld [vmem:[#allocation29 + $0xa0] ss:$8 sps:$4 sm:$0xff]   ;;  %v13299_v9 = vld [vmem:[%s17731_s13 + $0xb4] ss:$8 sps:$4 sm:$0xff]  }
 0x9bd   : > { %v13302_v41 = vld [vmem:[#allocation29 + $0xb4] ss:$8 sps:$4 sm:$0xff]  }
 0x9bf   : > { %4356 = vmatpush1.bf16.msra.mxu1 %v13219_v31  ;;  %4499 = vmatpush1.bf16.msra.mxu0 %v13222_v10  ;;  %v13297_v31 = vld [vmem:[%s17731_s13 + $0xb0] ss:$8 sps:$4 sm:$0xff]  }
 0x9c0   : > { %4357 = vmatprep.subr.bf16.mxu1 %v13227_v6  ;;  %4500 = vmatprep.subr.bf16.mxu0 %v13230_v25  ;;  %v13300_v10 = vld [vmem:[#allocation29 + $0xb0] ss:$8 sps:$4 sm:$0xff]   ;;  %v13305_v6 = vld [vmem:[%s17731_s13 + $0xc4] ss:$8 sps:$4 sm:$0xff]  }
 0x9c1   : > { %v13308_v25 = vld [vmem:[#allocation29 + $0xc4] ss:$8 sps:$4 sm:$0xff]  }
 0x9c3   : > { %4358 = vmatpush1.bf16.msra.mxu1 %v13225_v7  ;;  %4501 = vmatpush1.bf16.msra.mxu0 %v13228_v60  ;;  %v13303_v7 = vld [vmem:[%s17731_s13 + $0xc0] ss:$8 sps:$4 sm:$0xff]  }
 0x9c4   : > { %4751 = vmatprep.subr.bf16.mxu1 %v13233_v13  ;;  %4996 = vmatprep.subr.bf16.mxu0 %v13236_v43  ;;  %v13306_v60 = vld [vmem:[#allocation29 + $0xc0] ss:$8 sps:$4 sm:$0xff]   ;;  %v13311_v13 = vld [vmem:[%s17731_s13 + $0xd4] ss:$8 sps:$4 sm:$0xff]  }
 0x9c5   : > { %v13314_v43 = vld [vmem:[#allocation29 + $0xd4] ss:$8 sps:$4 sm:$0xff]  }
 0x9c6   : > { %4376 = vmatmul.mubr.bf16.vlgmr.msra.gmra.mrb[24].mxu1 %v4245_v29  ;;  %4519 = vmatmul.mubr.bf16.vlgmr.msra.gmra.mrb[20].mxu0 %v4388_v46  ;;  %v13315_v29 = vld [vmem:[%s17731_s13 + $0xe0] ss:$8 sps:$4 sm:$0xff]  }
 0x9c7   : > { %4752 = vmatpush1.bf16.msra.mxu1 %v13231_v30  ;;  %4997 = vmatpush1.bf16.msra.mxu0 %v13234_v40  ;;  %v13317_v30 = vld [vmem:[%s17731_s13 + $0xe4] ss:$8 sps:$4 sm:$0xff]  }
 0x9c8   : > { %4753 = vmatprep.subr.bf16.mxu1 %v13239_v58  ;;  %4998 = vmatprep.subr.bf16.mxu0 %v13242_v37  ;;  %v13320_v40 = vld [vmem:[#allocation29 + $0xe4] ss:$8 sps:$4 sm:$0xff]   ;;  %v13318_v46 = vld [vmem:[#allocation29 + $0xe0] ss:$8 sps:$4 sm:$0xff]   ;;  %v13326_v37 = vld [vmem:[#allocation29 + $0xf4] ss:$8 sps:$4 sm:$0xff]  }
 0x9c9   : > { %v13323_v58 = vld [vmem:[%s17731_s13 + $0xf4] ss:$8 sps:$4 sm:$0xff]  }
 0x9cb   : > { %4754 = vmatpush1.bf16.msra.mxu1 %v13237_v50  ;;  %4999 = vmatpush1.bf16.msra.mxu0 %v13240_v51  ;;  %v13321_v50 = vld [vmem:[%s17731_s13 + $0xf0] ss:$8 sps:$4 sm:$0xff]  }
 0x9cc   : > { %4755 = vmatprep.subr.bf16.mxu1 %v13245_v20  ;;  %5000 = vmatprep.subr.bf16.mxu0 %v13248_v45  ;;  %v13324_v51 = vld [vmem:[#allocation29 + $0xf0] ss:$8 sps:$4 sm:$0xff]  }
 0x9cf   : > { %4756 = vmatpush1.bf16.msra.mxu1 %v13243_v32  ;;  %5001 = vmatpush1.bf16.msra.mxu0 %v13246_v55 }
 0x9d0   : > { %4757 = vmatprep.subr.bf16.mxu1 %v13251_v52  ;;  %5002 = vmatprep.subr.bf16.mxu0 %v13254_v62 }
 0x9d3   : > { %4758 = vmatpush1.bf16.msra.mxu1 %v13249_v16  ;;  %5003 = vmatpush1.bf16.msra.mxu0 %v13252_v4 }
 0x9d4   : > { %4759 = vmatprep.subr.bf16.mxu1 %v13257_v61  ;;  %5004 = vmatprep.subr.bf16.mxu0 %v13260_v17 }
 0x9d7   : > { %4760 = vmatpush1.bf16.msra.mxu1 %v13255_v59  ;;  %5005 = vmatpush1.bf16.msra.mxu0 %v13258_v21  ;;  %v4529_v59 = vld [vmem:[%s17732_s28] sm:$0x3]  ;;  %s17741_s28 = sld [smem:[#allocation110_spill]] }
 0x9d8   : > { %4761 = vmatprep.subr.bf16.mxu1 %v13263_v8  ;;  %5006 = vmatprep.subr.bf16.mxu0 %v13266_v39 }
 0x9db   : > { %4762 = vmatpush1.bf16.msra.mxu1 %v13261_v11  ;;  %5007 = vmatpush1.bf16.msra.mxu0 %v13264_v18  ;;  %v17733_v11 = vld [vmem:[#allocation148_spill] sm:$0xff] }
 0x9dc   : > { %4763 = vmatprep.subr.bf16.mxu1 %v13269_v24  ;;  %5008 = vmatprep.subr.bf16.mxu0 %v13272_v27  ;;  %v4534_v18 = vrot.slane %v4529_v59, %v17733_v11  ;;  %v17734_v27 = vld [vmem:[#allocation149_spill] sm:$0xff] }
 0x9df   : > { %4764 = vmatpush1.bf16.msra.mxu1 %v13267_v1  ;;  %5009 = vmatpush1.bf16.msra.mxu0 %v13270_v3 }
 0x9e0   : > { %4765 = vmatprep.subr.bf16.mxu1 %v13275_v44  ;;  %5010 = vmatprep.subr.bf16.mxu0 %v13278_v36  ;;  %v4538_v44 = vrot.slane %v4529_v59, %v17734_v27  ;;  %v13335_v59 = vld [vmem:[%s17737_s3 + $0x34] ss:$24 sps:$4 sm:$0xff]  }
 0x9e3   : > { %4766 = vmatpush1.bf16.msra.mxu1 %v13273_v0  ;;  %5011 = vmatpush1.bf16.msra.mxu0 %v13276_v19 }
 0x9e4   : > { %4767 = vmatprep.subr.bf16.mxu1 %v13281_v54  ;;  %5012 = vmatprep.subr.bf16.mxu0 %v13284_v5 }
 0x9e7   : > { %4768 = vmatpush1.bf16.msra.mxu1 %v13279_v26  ;;  %5013 = vmatpush1.bf16.msra.mxu0 %v13282_v47 }
 0x9e8   : > { %4769 = vmatprep.subr.bf16.mxu1 %v13287_v48  ;;  %5014 = vmatprep.subr.bf16.mxu0 %v13290_v49 }
 0x9eb   : > { %4770 = vmatpush1.bf16.msra.mxu1 %v13285_v56  ;;  %5015 = vmatpush1.bf16.msra.mxu0 %v13288_v15 }
 0x9ec   : > { %4771 = vmatprep.subr.bf16.mxu1 %v13293_v34  ;;  %5016 = vmatprep.subr.bf16.mxu0 %v13296_v35  ;;  %v4824_v35 = vld [vmem:[%s17735_s16] sm:$0x3]  ;;  %s17742_s16 = sld [smem:[#allocation111_spill]] }
 0x9ef   : > { %4772 = vmatpush1.bf16.msra.mxu1 %v13291_v12  ;;  %5017 = vmatpush1.bf16.msra.mxu0 %v13294_v63  ;;  %v4829_v12 = vrot.slane %v4824_v35, %v17733_v11  ;;  %v4833_v63 = vrot.slane %v4824_v35, %v17734_v27  ;;  %v13368_v35 = vld [vmem:[%s17737_s3 + $0x12c] ss:$24 sps:$4 sm:$0xff]  }
 0x9f0   : > { %4773 = vmatprep.subr.bf16.mxu1 %v13299_v9  ;;  %5018 = vmatprep.subr.bf16.mxu0 %v13302_v41 }
 0x9f3   : > { %4774 = vmatpush1.bf16.msra.mxu1 %v13297_v31  ;;  %5019 = vmatpush1.bf16.msra.mxu0 %v13300_v10 }
 0x9f4   : > { %4775 = vmatprep.subr.bf16.mxu1 %v13305_v6  ;;  %5020 = vmatprep.subr.bf16.mxu0 %v13308_v25 }
 0x9f7   : > { %4776 = vmatpush1.bf16.msra.mxu1 %v13303_v7  ;;  %5021 = vmatpush1.bf16.msra.mxu0 %v13306_v60 }
 0x9f8   : > { %4777 = vmatprep.subr.bf16.mxu1 %v13311_v13  ;;  %5022 = vmatprep.subr.bf16.mxu0 %v13314_v43 }
 0x9fb   : > { %4778 = vmatpush1.bf16.msra.mxu1 %v13309_v2  ;;  %5023 = vmatpush1.bf16.msra.mxu0 %v13312_v22 }
 0x9fc   : > { %4779 = vmatprep.subr.bf16.mxu1 %v13317_v30  ;;  %5024 = vmatprep.subr.bf16.mxu0 %v13320_v40 }
 0x9ff   : > { %4780 = vmatpush1.bf16.msra.mxu1 %v13315_v29  ;;  %5025 = vmatpush1.bf16.msra.mxu0 %v13318_v46 }
 0xa00   : > { %4781 = vmatprep.subr.bf16.mxu1 %v13323_v58  ;;  %5026 = vmatprep.subr.bf16.mxu0 %v13326_v37  ;;  %v4579_v58 = vld [vmem:[%s17736_s12] sm:$0x3]  ;;  %s17743_s12 = sld [smem:[#allocation124_spill]] }
 0xa01   : > { %v4584_v37 = vrot.slane %v4579_v58, %v17733_v11 }
 0xa03   : > { %4782 = vmatpush1.bf16.msra.mxu1 %v13321_v50  ;;  %5027 = vmatpush1.bf16.msra.mxu0 %v13324_v51  ;;  %v4588_v50 = vrot.slane %v4579_v58, %v17734_v27 }
 0xa79   : > { %v4115_v20 = vpop.f32.mrb[20].mxu1  ;;  %v4236_v45 = vpop.f32.mrb[16].mxu0 }
 0xa7a   : > { %v4237_v32 = vadd.f32 %v4236_v45, %v4115_v20  ;;  %v4117_v55 = vpop.f32.mrb[21].mxu1  ;;  %v4238_v52 = vpop.f32.mrb[17].mxu0 }
 0xa7b   : > { %v4239_v62 = vadd.f32 %v4238_v52, %v4117_v55  ;;  %v4119_v16 = vpop.f32.mrb[22].mxu1  ;;  %v4240_v4 = vpop.f32.mrb[18].mxu0 }
 0xa7c   : > { %v4120_v61 = vpop.f32.mrb[23].mxu1  ;;  %v4241_v17 = vpop.f32.mrb[19].mxu0  ;;  %v13327_v16 = vld [vmem:[%s17737_s3] ss:$24 sps:$4 sm:$0xff]   ;;  %v13329_v4 = vld [vmem:[%s17737_s3 + $0x4] ss:$24 sps:$4 sm:$0xff]  }
 0xa7d   : > { %v13330_v61 = vld [vmem:[%s17737_s3 + $0x8] ss:$24 sps:$4 sm:$0xff]   ;;  %v13332_v17 = vld [vmem:[%s17737_s3 + $0xc] ss:$24 sps:$4 sm:$0xff]   ;;  %5706 = vmatprep.subr.bf16.mxu1 %v13329_v4  ;;  %v13398_v4 = vld [vmem:[%s17737_s3 + $0x21c] ss:$24 sps:$4 sm:$0xff]  }
 0xa7e   : > { %5747 = vmatprep.subr.bf16.mxu0 %v13332_v17  ;;  %v13399_v17 = vld [vmem:[%s17737_s3 + $0x240] ss:$24 sps:$4 sm:$0xff]  }
 0xa99   : > { %v4377_v21 = vpop.f32.mrb[24].mxu1  ;;  %v4520_v8 = vpop.f32.mrb[20].mxu0 }
 0xa9a   : > { %v4384_v39 = vadd.f32 %v4377_v21, %v4237_v32  ;;  %v4379_v1 = vpop.f32.mrb[25].mxu1  ;;  %v4522_v24 = vpop.f32.mrb[21].mxu0  ;;  %v13338_v21 = vld [vmem:[%s17737_s3 + $0x3c] ss:$24 sps:$4 sm:$0xff]  }
 0xa9b   : > { %v4385_v3 = vadd.f32 %v4379_v1, %v4239_v62  ;;  %v4381_v36 = vpop.f32.mrb[26].mxu1  ;;  %v4524_v0 = vpop.f32.mrb[22].mxu0  ;;  %v13344_v1 = vld [vmem:[%s17737_s3 + $0x6c] ss:$24 sps:$4 sm:$0xff]  }
 0xa9c   : > { %v4527_v19 = vadd.f32 %v4520_v8, %v4384_v39  ;;  %v4382_v54 = vpop.f32.mrb[27].mxu1  ;;  %v4525_v5 = vpop.f32.mrb[23].mxu0  ;;  %v13333_v8 = vld [vmem:[%s17737_s3 + $0x30] ss:$24 sps:$4 sm:$0xff]   ;;  %v13350_v36 = vld [vmem:[%s17737_s3 + $0x9c] ss:$24 sps:$4 sm:$0xff]  }
 0xa9d   : > { %v4528_v26 = vadd.f32 %v4522_v24, %v4385_v3  ;;  %v13336_v39 = vld [vmem:[%s17737_s3 + $0x38] ss:$24 sps:$4 sm:$0xff]   ;;  %v13342_v3 = vld [vmem:[%s17737_s3 + $0x68] ss:$24 sps:$4 sm:$0xff]   ;;  %v13353_v54 = vld [vmem:[%s17737_s3 + $0xc4] ss:$24 sps:$4 sm:$0xff]  }
 0xa9e   : > { %v4541_v47 = vadd.f32 %v4534_v18, %v4527_v19  ;;  %v13341_v18 = vld [vmem:[%s17737_s3 + $0x64] ss:$24 sps:$4 sm:$0xff]   ;;  %v13339_v24 = vld [vmem:[%s17737_s3 + $0x60] ss:$24 sps:$4 sm:$0xff]   ;;  %v13345_v0 = vld [vmem:[%s17737_s3 + $0x90] ss:$24 sps:$4 sm:$0xff]  }
 0xa9f   : > { %v4542_v48 = vadd.f32 %v4538_v44, %v4528_v26  ;;  %v13347_v44 = vld [vmem:[%s17737_s3 + $0x94] ss:$24 sps:$4 sm:$0xff]   ;;  %v13348_v19 = vld [vmem:[%s17737_s3 + $0x98] ss:$24 sps:$4 sm:$0xff]  }
 0xaa0   : > { %v4543_v49 = vmax.f32 %v4541_v47, 0.0  ;;  %v13356_v5 = vld [vmem:[%s17737_s3 + $0xcc] ss:$24 sps:$4 sm:$0xff]   ;;  %v13351_v26 = vld [vmem:[%s17737_s3 + $0xc0] ss:$24 sps:$4 sm:$0xff]  }
 0xaa1   : > { %v4544_v56 = vmax.f32 %v4542_v48, 0.0  ;;  %v13354_v47 = vld [vmem:[%s17737_s3 + $0xc8] ss:$24 sps:$4 sm:$0xff]   ;;  %v13359_v48 = vld [vmem:[%s17737_s3 + $0xf4] ss:$24 sps:$4 sm:$0xff]  }
 0xaa2   : > { %v4545_v34 = vpack.c.bf16 %v4543_v49, %v4543_v49  ;;  %v13362_v49 = vld [vmem:[%s17737_s3 + $0xfc] ss:$24 sps:$4 sm:$0xff]  }
 0xaa3   : > { %v4546_v15 = vpack.c.bf16 %v4544_v56, %v4544_v56  ;;  %v13357_v56 = vld [vmem:[%s17737_s3 + $0xf0] ss:$24 sps:$4 sm:$0xff]  }
 0xaa5   : > { %4783 = vmatprep.mubr.bf16.mxu1 %v4546_v15  ;;  %5028 = vmatprep.mubr.bf16.mxu0 %v4546_v15  ;;  %v13360_v15 = vld [vmem:[%s17737_s3 + $0xf8] ss:$24 sps:$4 sm:$0xff]  }
 0xaa6   : > { %4784 = vmatmul.mubr.bf16.vlgmr.msra.gmra.mrb[28].mxu1 %v4545_v34  ;;  %5029 = vmatmul.mubr.bf16.vlgmr.msra.gmra.mrb[24].mxu0 %v4545_v34  ;;  %v13365_v34 = vld [vmem:[%s17737_s3 + $0x124] ss:$24 sps:$4 sm:$0xff]  }
 0xaa7   : > { %5707 = vmatpush1.bf16.msra.mxu1 %v13327_v16  ;;  %5748 = vmatpush1.bf16.msra.mxu0 %v13330_v61  ;;  %v13393_v16 = vld [vmem:[%s17737_s3 + $0x210] ss:$24 sps:$4 sm:$0xff]  }
 0xaa8   : > { %5708 = vmatprep.subr.bf16.mxu1 %v13335_v59  ;;  %5749 = vmatprep.subr.bf16.mxu0 %v13338_v21  ;;  %v13396_v61 = vld [vmem:[%s17737_s3 + $0x218] ss:$24 sps:$4 sm:$0xff]   ;;  %v13401_v59 = vld [vmem:[%s17737_s3 + $0x244] ss:$24 sps:$4 sm:$0xff]   ;;  %v13402_v21 = vld [vmem:[%s17737_s3 + $0x248] ss:$24 sps:$4 sm:$0xff]  }
 0xaab   : > { %5709 = vmatpush1.bf16.msra.mxu1 %v13333_v8  ;;  %5750 = vmatpush1.bf16.msra.mxu0 %v13336_v39  ;;  %v13404_v8 = vld [vmem:[%s17737_s3 + $0x24c] ss:$24 sps:$4 sm:$0xff]  }
 0xaac   : > { %5710 = vmatprep.subr.bf16.mxu1 %v13341_v18  ;;  %5751 = vmatprep.subr.bf16.mxu0 %v13344_v1  ;;  %v13407_v39 = vld [vmem:[%s17737_s3 + $0x274] ss:$24 sps:$4 sm:$0xff]   ;;  %v13405_v1 = vld [vmem:[%s17737_s3 + $0x270] ss:$24 sps:$4 sm:$0xff]  }
 0xaad   : > { %v13410_v18 = vld [vmem:[%s17737_s3 + $0x27c] ss:$24 sps:$4 sm:$0xff]  }
 0xaaf   : > { %5711 = vmatpush1.bf16.msra.mxu1 %v13339_v24  ;;  %5752 = vmatpush1.bf16.msra.mxu0 %v13342_v3  ;;  %v13408_v24 = vld [vmem:[%s17737_s3 + $0x278] ss:$24 sps:$4 sm:$0xff]   ;;  %v13413_v3 = vld [vmem:[%s17737_s3 + $0x2a4] ss:$24 sps:$4 sm:$0xff]  }
 0xab0   : > { %5712 = vmatprep.subr.bf16.mxu1 %v13347_v44  ;;  %5753 = vmatprep.subr.bf16.mxu0 %v13350_v36  ;;  %v13416_v44 = vld [vmem:[%s17737_s3 + $0x2ac] ss:$24 sps:$4 sm:$0xff]   ;;  %v13411_v36 = vld [vmem:[%s17737_s3 + $0x2a0] ss:$24 sps:$4 sm:$0xff]  }
 0xab3   : > { %5713 = vmatpush1.bf16.msra.mxu1 %v13345_v0  ;;  %5754 = vmatpush1.bf16.msra.mxu0 %v13348_v19  ;;  %v13414_v0 = vld [vmem:[%s17737_s3 + $0x2a8] ss:$24 sps:$4 sm:$0xff]   ;;  %v13419_v19 = vld [vmem:[%s17737_s3 + $0x2d4] ss:$24 sps:$4 sm:$0xff]  }
 0xab4   : > { %5714 = vmatprep.subr.bf16.mxu1 %v13353_v54  ;;  %5755 = vmatprep.subr.bf16.mxu0 %v13356_v5  ;;  %v13422_v54 = vld [vmem:[%s17737_s3 + $0x2dc] ss:$24 sps:$4 sm:$0xff]   ;;  %v13417_v5 = vld [vmem:[%s17737_s3 + $0x2d0] ss:$24 sps:$4 sm:$0xff]  }
 0xab7   : > { %5715 = vmatpush1.bf16.msra.mxu1 %v13351_v26  ;;  %5756 = vmatpush1.bf16.msra.mxu0 %v13354_v47  ;;  %v13420_v26 = vld [vmem:[%s17737_s3 + $0x2d8] ss:$24 sps:$4 sm:$0xff]   ;;  %v13425_v47 = vld [vmem:[%s17737_s3 + $0x14] ss:$24 sps:$4 sm:$0xff]  }
 0xab8   : > { %5716 = vmatprep.subr.bf16.mxu1 %v13359_v48  ;;  %5757 = vmatprep.subr.bf16.mxu0 %v13362_v49 }
 0xabb   : > { %5717 = vmatpush1.bf16.msra.mxu1 %v13357_v56  ;;  %5758 = vmatpush1.bf16.msra.mxu0 %v13360_v15  ;;  %v5068_v15 = vld [vmem:[%s17738_s6] sm:$0x3]  ;;  %s15220_s6 = smov 2  }
 0xabc   : > { %5718 = vmatprep.subr.bf16.mxu1 %v13365_v34  ;;  %5759 = vmatprep.subr.bf16.mxu0 %v13368_v35  ;;  %v5082_v34 = vld [vmem:[%s17739_s7] sm:$0x3]  ;;  %v5073_v35 = vrot.slane %v5068_v15, %v17733_v11  ;;  %s15221_s7 = smov 125  }
 0xb79   : > { %v4785_v9 = vpop.f32.mrb[28].mxu1  ;;  %v5030_v41 = vpop.f32.mrb[24].mxu0 }
 0xb7a   : > { %v5031_v31 = vadd.f32 %v5030_v41, %v4829_v12  ;;  %v4787_v10 = vpop.f32.mrb[29].mxu1  ;;  %v5032_v6 = vpop.f32.mrb[25].mxu0  ;;  %v4786_v51 = vadd.f32 %v4785_v9, %v4584_v37  ;;  %v13363_v12 = vld [vmem:[%s17737_s3 + $0x120] ss:$24 sps:$4 sm:$0xff]   ;;  %v13371_v9 = vld [vmem:[%s17737_s3 + $0x154] ss:$24 sps:$4 sm:$0xff]  }
 0xb7b   : > { %v5033_v25 = vadd.f32 %v5032_v6, %v4833_v63  ;;  %v4789_v7 = vpop.f32.mrb[30].mxu1  ;;  %v5034_v60 = vpop.f32.mrb[26].mxu0  ;;  %v4788_v45 = vadd.f32 %v4787_v10, %v4588_v50  ;;  %v13366_v63 = vld [vmem:[%s17737_s3 + $0x128] ss:$24 sps:$4 sm:$0xff]   ;;  %v13374_v41 = vld [vmem:[%s17737_s3 + $0x15c] ss:$24 sps:$4 sm:$0xff]   ;;  %5719 = vmatpush1.bf16.msra.mxu1 %v13363_v12  ;;  %v5077_v12 = vrot.slane %v5068_v15, %v17734_v27 }
 0xb7c   : > { %v11494_v13 = vmul.f32 -1.442695, %v5031_v31  ;;  %v4790_v43 = vpop.f32.mrb[31].mxu1  ;;  %v5035_v2 = vpop.f32.mrb[27].mxu0  ;;  %v13369_v31 = vld [vmem:[%s17737_s3 + $0x150] ss:$24 sps:$4 sm:$0xff]   ;;  %5760 = vmatpush1.bf16.msra.mxu0 %v13366_v63  ;;  %5720 = vmatprep.subr.bf16.mxu1 %v13371_v9 }
 0xb7d   : > { %v11495_v22 = vmul.f32 -1.442695, %v5033_v25  ;;  %v13372_v10 = vld [vmem:[%s17737_s3 + $0x158] ss:$24 sps:$4 sm:$0xff]   ;;  %v13377_v6 = vld [vmem:[%s17737_s3 + $0x184] ss:$24 sps:$4 sm:$0xff]   ;;  %5761 = vmatprep.subr.bf16.mxu0 %v13374_v41  ;;  %v5087_v41 = vrot.slane %v5082_v34, %v17733_v11 }
 0xb7e   : > { %13967 = vpow2.f32 %v11494_v13  ;;  %v13380_v25 = vld [vmem:[%s17737_s3 + $0x18c] ss:$24 sps:$4 sm:$0xff]   ;;  %v13375_v7 = vld [vmem:[%s17737_s3 + $0x180] ss:$24 sps:$4 sm:$0xff]   ;;  %v13386_v43 = vld [vmem:[%s17737_s3 + $0x1bc] ss:$24 sps:$4 sm:$0xff]  }
 0xb7f   : > { %13969 = vpow2.f32 %v11495_v22  ;;  %5721 = vmatpush1.bf16.msra.mxu1 %v13369_v31  ;;  %v13378_v60 = vld [vmem:[%s17737_s3 + $0x188] ss:$24 sps:$4 sm:$0xff]   ;;  %v13383_v13 = vld [vmem:[%s17737_s3 + $0x1b4] ss:$24 sps:$4 sm:$0xff]   ;;  %v13384_v22 = vld [vmem:[%s17737_s3 + $0x1b8] ss:$24 sps:$4 sm:$0xff]   ;;  %v5091_v31 = vrot.slane %v5082_v34, %v17734_v27 }
 0xb80   : > { %5762 = vmatpush1.bf16.msra.mxu0 %v13372_v10  ;;  %5722 = vmatprep.subr.bf16.mxu1 %v13377_v6  ;;  %v13381_v2 = vld [vmem:[%s17737_s3 + $0x1b0] ss:$24 sps:$4 sm:$0xff]  }
 0xb81   : > { %5763 = vmatprep.subr.bf16.mxu0 %v13380_v25 }
 0xb83   : > { %5723 = vmatpush1.bf16.msra.mxu1 %v13375_v7 }
 0xb84   : > { %5764 = vmatpush1.bf16.msra.mxu0 %v13378_v60  ;;  %5724 = vmatprep.subr.bf16.mxu1 %v13383_v13 }
 0xb85   : > { %5765 = vmatprep.subr.bf16.mxu0 %v13386_v43  ;;  %v13423_v43 = vld [vmem:[%s17737_s3 + $0x10] ss:$24 sps:$4 sm:$0xff]  }
 0xb87   : > { %5725 = vmatpush1.bf16.msra.mxu1 %v13381_v2 }
 0xb88   : > { %v13968_v30 = vpop.eup %13967  ;;  %5766 = vmatpush1.bf16.msra.mxu0 %v13384_v22  ;;  %v13428_v22 = vld [vmem:[%s17737_s3 + $0x44] ss:$24 sps:$4 sm:$0xff]  }
 0xb89   : > { %v13970_v40 = vpop.eup %13969  ;;  %v5043_v29 = vadd.f32 1.0, %v13968_v30  ;;  %v13389_v30 = vld [vmem:[%s17737_s3 + $0x1e4] ss:$24 sps:$4 sm:$0xff]  }
 0xb8a   : > { %v5044_v46 = vadd.f32 1.0, %v13970_v40  ;;  %v13387_v40 = vld [vmem:[%s17737_s3 + $0x1e0] ss:$24 sps:$4 sm:$0xff]   ;;  %5726 = vmatprep.subr.bf16.mxu1 %v13389_v30 }
 0xb8b   : > { %13971 = vrcp.f32 %v5043_v29  ;;  %5727 = vmatpush1.bf16.msra.mxu1 %v13387_v40  ;;  %v13426_v30 = vld [vmem:[%s17737_s3 + $0x40] ss:$24 sps:$4 sm:$0xff]   ;;  %v13431_v40 = vld [vmem:[%s17737_s3 + $0x74] ss:$24 sps:$4 sm:$0xff]  }
 0xb8c   : > { %13973 = vrcp.f32 %v5044_v46 }
 0xb95   : > { %v13972_v20 = vpop.eup %13971 }
 0xb96   : > { %v13974_v32 = vpop.eup %13973  ;;  %v16690_v55 = vmul.f32 %v13972_v20, %v4786_v51 }
 0xb97   : > { %v16692_v52 = vmul.f32 %v13974_v32, %v4788_v45  ;;  %v13392_v45 = vld [vmem:[%s17737_s3 + $0x1ec] ss:$24 sps:$4 sm:$0xff]   ;;  %v13390_v32 = vld [vmem:[%s17737_s3 + $0x1e8] ss:$24 sps:$4 sm:$0xff]  }
 0xb98   : > { %5767 = vmatprep.subr.bf16.mxu0 %v13392_v45  ;;  %v13443_v45 = vld [vmem:[%s17737_s3 + $0x134] ss:$24 sps:$4 sm:$0xff]  }
 0xb99   : > { %v5051_v62 = vadd.f32 %v16692_v52, %v16690_v55  ;;  %5768 = vmatpush1.bf16.msra.mxu0 %v13390_v32  ;;  %v13441_v32 = vld [vmem:[%s17737_s3 + $0x130] ss:$24 sps:$4 sm:$0xff]  }
 0xb9a   : > { %5769 = vmatprep.subr.bf16.mxu0 %v13398_v4  ;;  %v13449_v4 = vld [vmem:[%s17737_s3 + $0x194] ss:$24 sps:$4 sm:$0xff]  }
 0xb9b   : > { %5052 = vadd.xlane.f32.xlu1 %v5051_v62  ;;  %v13395_v62 = vld [vmem:[%s17737_s3 + $0x214] ss:$24 sps:$4 sm:$0xff]  }
 0xb9c   : > { %5728 = vmatprep.subr.bf16.mxu1 %v13395_v62  ;;  %v13446_v62 = vld [vmem:[%s17737_s3 + $0x164] ss:$24 sps:$4 sm:$0xff]  }
 0xb9d   : > { %5729 = vmatpush1.bf16.msra.mxu1 %v13393_v16  ;;  %5770 = vmatpush1.bf16.msra.mxu0 %v13396_v61  ;;  %v13444_v16 = vld [vmem:[%s17737_s3 + $0x160] ss:$24 sps:$4 sm:$0xff]   ;;  %v13447_v61 = vld [vmem:[%s17737_s3 + $0x190] ss:$24 sps:$4 sm:$0xff]  }
 0xb9e   : > { %5730 = vmatprep.subr.bf16.mxu1 %v13401_v59  ;;  %5771 = vmatprep.subr.bf16.mxu0 %v13404_v8  ;;  %v13450_v59 = vld [vmem:[%s17737_s3 + $0x1c0] ss:$24 sps:$4 sm:$0xff]   ;;  %v13453_v8 = vld [vmem:[%s17737_s3 + $0x1f0] ss:$24 sps:$4 sm:$0xff]  }
 0xba1   : > { %5731 = vmatpush1.bf16.msra.mxu1 %v13399_v17  ;;  %5772 = vmatpush1.bf16.msra.mxu0 %v13402_v21  ;;  %v13452_v17 = vld [vmem:[%s17737_s3 + $0x1c4] ss:$24 sps:$4 sm:$0xff]   ;;  %v13455_v21 = vld [vmem:[%s17737_s3 + $0x1f4] ss:$24 sps:$4 sm:$0xff]  }
 0xba2   : > { %5732 = vmatprep.subr.bf16.mxu1 %v13407_v39  ;;  %5773 = vmatprep.subr.bf16.mxu0 %v13410_v18  ;;  %v13458_v39 = vld [vmem:[%s17737_s3 + $0x224] ss:$24 sps:$4 sm:$0xff]   ;;  %v13456_v18 = vld [vmem:[%s17737_s3 + $0x220] ss:$24 sps:$4 sm:$0xff]  }
 0xba5   : > { %5733 = vmatpush1.bf16.msra.mxu1 %v13405_v1  ;;  %5774 = vmatpush1.bf16.msra.mxu0 %v13408_v24  ;;  %v13461_v1 = vld [vmem:[%s17737_s3 + $0x254] ss:$24 sps:$4 sm:$0xff]   ;;  %v13459_v24 = vld [vmem:[%s17737_s3 + $0x250] ss:$24 sps:$4 sm:$0xff]  }
 0xba6   : > { %5734 = vmatprep.subr.bf16.mxu1 %v13413_v3  ;;  %5775 = vmatprep.subr.bf16.mxu0 %v13416_v44  ;;  %v13464_v3 = vld [vmem:[%s17737_s3 + $0x284] ss:$24 sps:$4 sm:$0xff]   ;;  %v13462_v44 = vld [vmem:[%s17737_s3 + $0x280] ss:$24 sps:$4 sm:$0xff]  }
 0xba9   : > { %5735 = vmatpush1.bf16.msra.mxu1 %v13411_v36  ;;  %5776 = vmatpush1.bf16.msra.mxu0 %v13414_v0  ;;  %v13467_v36 = vld [vmem:[%s17737_s3 + $0x2b4] ss:$24 sps:$4 sm:$0xff]   ;;  %v13465_v0 = vld [vmem:[%s17737_s3 + $0x2b0] ss:$24 sps:$4 sm:$0xff]  }
 0xbaa   : > { %5736 = vmatprep.subr.bf16.mxu1 %v13419_v19  ;;  %5777 = vmatprep.subr.bf16.mxu0 %v13422_v54  ;;  %v13470_v19 = vld [vmem:[%s17737_s3 + $0x2e4] ss:$24 sps:$4 sm:$0xff]   ;;  %v13468_v54 = vld [vmem:[%s17737_s3 + $0x2e0] ss:$24 sps:$4 sm:$0xff]  }
 0xbad   : > { %5737 = vmatpush1.bf16.msra.mxu1 %v13417_v5  ;;  %5778 = vmatpush1.bf16.msra.mxu0 %v13420_v26  ;;  %v17740_v5 = vld [vmem:[#allocation145_spill] sm:$0xff] }
 0xbae   : > { %5788 = vmatprep.subr.bf16.mxu1 %v13425_v47  ;;  %v5206_v26 = vsub.s32 2, %v17740_v5  ;;  %v5194_v47 = vld [vmem:[#allocation30] sm:$0x3f] }
 0xc28   : > { %v5053_v29 = vpop.xlane.xlu1 %5052 }
 0xc29   : > { %v5055_v46 = vmul.f32 0.00390625, %v5053_v29  ;;  %v13429_v29 = vld [vmem:[%s17737_s3 + $0x70] ss:$24 sps:$4 sm:$0xff]  }
 0xc2b   : > { %v16739_v58 = vsub.f32 %v16690_v55, %v5055_v46  ;;  %v5057_v37 = vsub.f32 %v16692_v52, %v5055_v46  ;;  %v13434_v46 = vld [vmem:[%s17737_s3 + $0xa4] ss:$24 sps:$4 sm:$0xff]  }
 0xc2d   : > { %v5058_v50 = vmul.f32 %v16739_v58, %v16739_v58  ;;  %v5059_v51 = vmul.f32 %v5057_v37, %v5057_v37 }
 0xc2f   : > { %v5060_v20 = vadd.f32 %v5059_v51, %v5058_v50  ;;  %v13435_v50 = vld [vmem:[%s17737_s3 + $0xd0] ss:$24 sps:$4 sm:$0xff]   ;;  %v13440_v51 = vld [vmem:[%s17737_s3 + $0x104] ss:$24 sps:$4 sm:$0xff]  }
 0xc31   : > { %5061 = vadd.xlane.f32.xlu0 %v5060_v20  ;;  %v13438_v20 = vld [vmem:[%s17737_s3 + $0x100] ss:$24 sps:$4 sm:$0xff]  }
 0xcbe   : > { %v5062_v48 = vpop.xlane.xlu0 %5061 }
 0xcbf   : > { %v5063_v49 = vmul.f32 0.00390625, %v5062_v48  ;;  %v5210_v48 = vsub.s32 3, %v17740_v5 }
 0xcc1   : > { %v5064_v56 = vadd.f32 1e-05, %v5063_v49  ;;  %v5207_v49 = vrot.slane %v5194_v47, %v5206_v26  ;;  %v5211_v15 = vrot.slane %v5194_v47, %v5210_v48 }
 0xcc3   : > { %13975 = vrsqrt.f32 %v5064_v56  ;;  %v5203_v56 = vrot.slane %v5194_v47, %v17734_v27 }
 0xccd   : > { %v13976_v63 = vpop.eup %13975 }
 0xcce   : > { %v5067_v9 = vmul.f32 %v13976_v63, %v5057_v37  ;;  %v5066_v10 = vmul.f32 %v13976_v63, %v16739_v58  ;;  %v13432_v58 = vld [vmem:[%s17737_s3 + $0xa0] ss:$24 sps:$4 sm:$0xff]   ;;  %v13437_v37 = vld [vmem:[%s17737_s3 + $0xd4] ss:$24 sps:$4 sm:$0xff]  }
 0xcd0   : > { %v5081_v6 = vmul.f32 %v5077_v12, %v5067_v9  ;;  %v5080_v25 = vmul.f32 %v5073_v35, %v5066_v10 }
 0xcd2   : > { %v5095_v7 = vadd.f32 %v5091_v31, %v5081_v6  ;;  %v5094_v60 = vadd.f32 %v5087_v41, %v5080_v25 }
 0xcd4   : > { %v5097_v13 = vpack.c.bf16 %v5095_v7, %v5095_v7  ;;  %v16775_v2 = vpack.c.bf16 %v5094_v60, %v5094_v60  ;;  %v5199_v60 = vrot.slane %v5194_v47, %v17733_v11 }
 0xcd6   : > { %5738 = vmatprep.mubr.bf16.mxu1 %v5097_v13  ;;  %5779 = vmatprep.mubr.bf16.mxu0 %v5097_v13 }
 0xcd7   : > { %5739 = vmatmul.mubr.bf16.vlgmr.msra.gmra.mrb[32].mxu1 %v16775_v2  ;;  %5780 = vmatmul.mubr.bf16.vlgmr.msra.gmra.mrb[28].mxu0 %v16775_v2 }
 0xcd8   : > { %5789 = vmatpush1.bf16.msra.mxu1 %v13423_v43  ;;  %5820 = vmatprep.mubr.bf16.mxu1 %v5097_v13 }
 0xcd9   : > { %5790 = vmatprep.subr.bf16.mxu1 %v13428_v22 }
 0xcdc   : > { %5791 = vmatpush1.bf16.msra.mxu1 %v13426_v30 }
 0xcdd   : > { %5792 = vmatprep.subr.bf16.mxu1 %v13431_v40  ;;  %v5214_v40 = vsub.s32 4, %v17740_v5 }
 0xce0   : > { %5793 = vmatpush1.bf16.msra.mxu1 %v13429_v29  ;;  %v5218_v29 = vsub.s32 5, %v17740_v5  ;;  %v13711_v5 = vld [vmem:[#allocation41] ss:$8 sps:$4 sm:$0xff]  }
 0xce1   : > { %5794 = vmatprep.subr.bf16.mxu1 %v13434_v46  ;;  %v5215_v46 = vrot.slane %v5194_v47, %v5214_v40  ;;  %v13506_v40 = vld [vmem:[#allocation32 + $0xb4] ss:$8 sps:$4 sm:$0xff]  }
 0xce4   : > { %5795 = vmatpush1.bf16.msra.mxu1 %v13432_v58  ;;  %v5219_v58 = vrot.slane %v5194_v47, %v5218_v29  ;;  %v13504_v29 = vld [vmem:[#allocation32 + $0xb0] ss:$8 sps:$4 sm:$0xff]  }
 0xce5   : > { %5796 = vmatprep.subr.bf16.mxu1 %v13437_v37 }
 0xce8   : > { %5797 = vmatpush1.bf16.msra.mxu1 %v13435_v50 }
 0xce9   : > { %5798 = vmatprep.subr.bf16.mxu1 %v13440_v51 }
 0xcec   : > { %5799 = vmatpush1.bf16.msra.mxu1 %v13438_v20 }
 0xced   : > { %5800 = vmatprep.subr.bf16.mxu1 %v13443_v45 }
 0xcf0   : > { %5801 = vmatpush1.bf16.msra.mxu1 %v13441_v32 }
 0xcf1   : > { %5802 = vmatprep.subr.bf16.mxu1 %v13446_v62 }
 0xcf4   : > { %5803 = vmatpush1.bf16.msra.mxu1 %v13444_v16 }
 0xcf5   : > { %5804 = vmatprep.subr.bf16.mxu1 %v13449_v4 }
 0xcf8   : > { %5805 = vmatpush1.bf16.msra.mxu1 %v13447_v61 }
 0xcf9   : > { %5806 = vmatprep.subr.bf16.mxu1 %v13452_v17 }
 0xcfc   : > { %5807 = vmatpush1.bf16.msra.mxu1 %v13450_v59 }
 0xcfd   : > { %5808 = vmatprep.subr.bf16.mxu1 %v13455_v21 }
 0xd00   : > { %5809 = vmatpush1.bf16.msra.mxu1 %v13453_v8 }
 0xd01   : > { %5810 = vmatprep.subr.bf16.mxu1 %v13458_v39 }
 0xd04   : > { %5811 = vmatpush1.bf16.msra.mxu1 %v13456_v18 }
 0xd05   : > { %5812 = vmatprep.subr.bf16.mxu1 %v13461_v1 }
 0xd08   : > { %5813 = vmatpush1.bf16.msra.mxu1 %v13459_v24 }
 0xd09   : > { %5814 = vmatprep.subr.bf16.mxu1 %v13464_v3 }
 0xd0c   : > { %5815 = vmatpush1.bf16.msra.mxu1 %v13462_v44  ;;  %v13473_v44 = vld [vmem:[#allocation32 + $0x4] ss:$8 sps:$4 sm:$0xff]  }
 0xd0d   : > { %5816 = vmatprep.subr.bf16.mxu1 %v13467_v36 }
 0xd10   : > { %5817 = vmatpush1.bf16.msra.mxu1 %v13465_v0 }
 0xd11   : > { %5818 = vmatprep.subr.bf16.mxu1 %v13470_v19 }
 0xd14   : > { %5819 = vmatpush1.bf16.msra.mxu1 %v13468_v54  ;;  %v13471_v54 = vld [vmem:[#allocation32] ss:$8 sps:$4 sm:$0xff]  }
 0xd17   : > { %5821 = vmatmul.mubr.bf16.vlgmr.msra.gmra.mrb[36].mxu1 %v16775_v2 }
 0xdaa   : > { %v5740_v34 = vpop.f32.mrb[32].mxu1  ;;  %v5781_v35 = vpop.f32.mrb[28].mxu0 }
 0xdab   : > { %v5782_v12 = vadd.f32 %v5781_v35, %v5207_v49  ;;  %v5742_v63 = vpop.f32.mrb[33].mxu1  ;;  %v5783_v9 = vpop.f32.mrb[29].mxu0  ;;  %v5741_v22 = vadd.f32 %v5740_v34, %v5199_v60  ;;  %v13476_v49 = vld [vmem:[#allocation32 + $0x14] ss:$8 sps:$4 sm:$0xff]   ;;  %v13477_v34 = vld [vmem:[#allocation32 + $0x20] ss:$8 sps:$4 sm:$0xff]  }
 0xdac   : > { %v5743_v41 = vadd.f32 %v5742_v63, %v5203_v56  ;;  %v5784_v31 = vadd.f32 %v5783_v9, %v5211_v15  ;;  %v5744_v10 = vpop.f32.mrb[34].mxu1  ;;  %v5785_v6 = vpop.f32.mrb[30].mxu0  ;;  %v13474_v56 = vld [vmem:[#allocation32 + $0x10] ss:$8 sps:$4 sm:$0xff]   ;;  %v13479_v15 = vld [vmem:[#allocation32 + $0x24] ss:$8 sps:$4 sm:$0xff]  }
 0xdad   : > { %v5745_v25 = vpop.f32.mrb[35].mxu1  ;;  %v5786_v7 = vpop.f32.mrb[31].mxu0  ;;  %v5831_v2 = vpack.c.bf16 %v5782_v12, %v5782_v12  ;;  %v5829_v30 = vpack.c.bf16 %v5741_v22, %v5741_v22  ;;  %v13482_v35 = vld [vmem:[#allocation32 + $0x34] ss:$8 sps:$4 sm:$0xff]   ;;  %v13480_v12 = vld [vmem:[#allocation32 + $0x30] ss:$8 sps:$4 sm:$0xff]  }
 0xdae   : > { %v5830_v13 = vpack.c.bf16 %v5743_v41, %v5743_v41  ;;  %v5832_v43 = vpack.c.bf16 %v5784_v31, %v5784_v31  ;;  %v13485_v63 = vld [vmem:[#allocation32 + $0x44] ss:$8 sps:$4 sm:$0xff]   ;;  %v13483_v9 = vld [vmem:[#allocation32 + $0x40] ss:$8 sps:$4 sm:$0xff]   ;;  %v13488_v41 = vld [vmem:[#allocation32 + $0x54] ss:$8 sps:$4 sm:$0xff]  }
 0xdaf   : > { %v13486_v31 = vld [vmem:[#allocation32 + $0x50] ss:$8 sps:$4 sm:$0xff]   ;;  %v13491_v10 = vld [vmem:[#allocation32 + $0x64] ss:$8 sps:$4 sm:$0xff]   ;;  %v13489_v6 = vld [vmem:[#allocation32 + $0x60] ss:$8 sps:$4 sm:$0xff]  }
 0xdb0   : > { %5835 = vmatprep.subr.bf16.mxu0 %v5832_v43  ;;  %5867 = vmatprep.mubr.bf16.mxu0 %v5830_v13  ;;  %v13494_v25 = vld [vmem:[#allocation32 + $0x74] ss:$8 sps:$4 sm:$0xff]   ;;  %v13492_v7 = vld [vmem:[#allocation32 + $0x70] ss:$8 sps:$4 sm:$0xff]   ;;  %v13497_v60 = vld [vmem:[#allocation32 + $0x84] ss:$8 sps:$4 sm:$0xff]  }
 0xdb1   : > { %5836 = vmatpush1.bf16.xpose.msra.mxu0 %v5831_v2  ;;  %v13495_v13 = vld [vmem:[#allocation32 + $0x80] ss:$8 sps:$4 sm:$0xff]   ;;  %v13500_v43 = vld [vmem:[#allocation32 + $0x94] ss:$8 sps:$4 sm:$0xff]   ;;  %v13498_v2 = vld [vmem:[#allocation32 + $0x90] ss:$8 sps:$4 sm:$0xff]  }
 0xdb2   : > { %v13503_v22 = vld [vmem:[#allocation32 + $0xa4] ss:$8 sps:$4 sm:$0xff]  }
 0xdb8   : > { %5868 = vmatmul.mubr.bf16.vlgmr.msra.gmra.mrb[32].mxu0 %v5829_v30  ;;  %v13501_v30 = vld [vmem:[#allocation32 + $0xa0] ss:$8 sps:$4 sm:$0xff]  }
 0xdb9   : > { %5931 = vmatprep.mubr.bf16.mxu0 %v17729_v57 }
 0xdea   : > { %v5822_v37 = vpop.f32.mrb[36].mxu1 }
 0xdeb   : > { %v5823_v50 = vadd.f32 %v5822_v37, %v5215_v46  ;;  %v5824_v51 = vpop.f32.mrb[37].mxu1  ;;  %v13509_v46 = vld [vmem:[#allocation32 + $0xc4] ss:$8 sps:$4 sm:$0xff]   ;;  %v13512_v37 = vld [vmem:[#allocation32 + $0xd4] ss:$8 sps:$4 sm:$0xff]  }
 0xdec   : > { %v5825_v20 = vadd.f32 %v5824_v51, %v5219_v58  ;;  %v5826_v45 = vpop.f32.mrb[38].mxu1  ;;  %v13507_v58 = vld [vmem:[#allocation32 + $0xc0] ss:$8 sps:$4 sm:$0xff]   ;;  %v13515_v51 = vld [vmem:[#allocation32 + $0xe4] ss:$8 sps:$4 sm:$0xff]  }
 0xded   : > { %v5833_v32 = vpack.c.bf16 %v5823_v50, %v5823_v50  ;;  %v5827_v62 = vpop.f32.mrb[39].mxu1  ;;  %v13510_v50 = vld [vmem:[#allocation32 + $0xd0] ss:$8 sps:$4 sm:$0xff]   ;;  %v13518_v45 = vld [vmem:[#allocation32 + $0xf4] ss:$8 sps:$4 sm:$0xff]  }
 0xdee   : > { %v5834_v16 = vpack.c.bf16 %v5825_v20, %v5825_v20  ;;  %v13513_v20 = vld [vmem:[#allocation32 + $0xe0] ss:$8 sps:$4 sm:$0xff]  }
 0xdef   : > { %v5894_v4 = vsel %vm5892_vm6, %v5833_v32, 0  ;;  %v13516_v32 = vld [vmem:[#allocation32 + $0xf0] ss:$8 sps:$4 sm:$0xff]  }
 0xdf0   : > { %11592 = vmatprep.subr.msk.bf16.mxu0 %vm5892_vm6, %v5834_v16 }
 0xdf1   : > { %5900 = vmatpush1.bf16.msra.mxu0 %v5894_v4 }
 0xdf2   : > { %6134 = vmatprep.subr.bf16.mxu0 %v13473_v44 }
 0xe8b   : > { %v5869_v61 = vpop.f32.mrb[32].mxu0 }
 0xe8c   : > { %v5875_v57 = vmul.f32 0.0625, %v5869_v61  ;;  %v5871_v17 = vpop.f32.mrb[33].mxu0 }
 0xe8d   : > { %v5872_v59 = vpop.f32.mrb[34].mxu0 }
 0xe8e   : > { %v5873_v21 = vpop.f32.mrb[35].mxu0  ;;  %v5877_v8 = vsel %vm5876_vm7, %v5875_v57, -inf  ;;  %v6177_v59 = vld [vmem:[#allocation33] sm:$0x3] }
 0xe8f   : > { %5878 = vmax.xlane.f32.xlu0 %v5877_v8  ;;  %v6182_v21 = vrot.slane %v6177_v59, %v17733_v11 }
 0xf1c   : > { %v5879_v39 = vpop.xlane.xlu0 %5878 }
 0xf1d   : > { %v5880_v18 = vsub.f32 %v5875_v57, %v5879_v39  ;;  %v6186_v39 = vrot.slane %v6177_v59, %v17734_v27  ;;  %v13573_v59 = vld [vmem:[#allocation35 + $0x120] ss:$16 sps:$4 sm:$0xff]  }
 0xf1f   : > { %v5881_v1 = vmul.f32 1.442695, %v5880_v18 }
 0xf21   : > { %13977 = vpow2.f32 %v5881_v1 }
 0xf2b   : > { %v13978_v24 = vpop.eup %13977 }
 0xf2c   : > { %v5883_v3 = vsel %vm5876_vm7, %v13978_v24, 0.0 }
 0xf2d   : > { %5884 = vadd.xlane.f32.xlu1 %v5883_v3 }
 0xfba   : > { %v5885_v36 = vpop.xlane.xlu1 %5884 }
 0xfbb   : > { %13979 = vrcp.f32 %v5885_v36 }
 0xfc5   : > { %v13980_v0 = vpop.eup %13979 }
 0xfc6   : > { %v5887_v19 = vmul.f32 %v13980_v0, %v13978_v24 }
 0xfc8   : > { %v5888_v47 = vpack.c.bf16 %v5887_v19, %v5887_v19 }
 0xfca   : > { %11593 = vmatmul.mubr.msk.bf16.vlgmr.msra.gmra.mrb[36].mxu0 %vm5876_vm7, %v5888_v47  ;;  %v13521_v47 = vld [vmem:[#allocation35 + $0x4] ss:$16 sps:$4 sm:$0xff]  }
 0xfcb   : > { %6135 = vmatpush1.bf16.msra.mxu0 %v13471_v54  ;;  %v13519_v54 = vld [vmem:[#allocation35] ss:$16 sps:$4 sm:$0xff]   ;;  %6643 = vmatprep.subr.bf16.mxu1 %v13521_v47 }
 0xfcc   : > { %6136 = vmatprep.subr.bf16.mxu0 %v13476_v49  ;;  %v13522_v49 = vld [vmem:[#allocation35 + $0x8] ss:$16 sps:$4 sm:$0xff]   ;;  %6644 = vmatpush1.bf16.msra.mxu1 %v13519_v54  ;;  %v13584_v54 = vld [vmem:[#allocation35 + $0x14c] ss:$16 sps:$4 sm:$0xff]   ;;  %v13579_v47 = vld [vmem:[#allocation35 + $0x140] ss:$16 sps:$4 sm:$0xff]  }
 0xfcf   : > { %6137 = vmatpush1.bf16.msra.mxu0 %v13474_v56  ;;  %v13524_v56 = vld [vmem:[#allocation35 + $0xc] ss:$16 sps:$4 sm:$0xff]  }
 0xfd0   : > { %6138 = vmatprep.subr.bf16.mxu0 %v13479_v15  ;;  %v13527_v15 = vld [vmem:[#allocation35 + $0x24] ss:$16 sps:$4 sm:$0xff]  }
 0xfd1   : > { %6645 = vmatprep.subr.bf16.mxu1 %v13527_v15  ;;  %v13590_v15 = vld [vmem:[#allocation35 + $0x16c] ss:$16 sps:$4 sm:$0xff]  }
 0xfd3   : > { %6139 = vmatpush1.bf16.msra.mxu0 %v13477_v34  ;;  %v13530_v34 = vld [vmem:[#allocation35 + $0x2c] ss:$16 sps:$4 sm:$0xff]  }
 0xfd4   : > { %6140 = vmatprep.subr.bf16.mxu0 %v13482_v35  ;;  %v13525_v35 = vld [vmem:[#allocation35 + $0x20] ss:$16 sps:$4 sm:$0xff]  }
 0xfd5   : > { %6646 = vmatpush1.bf16.msra.mxu1 %v13525_v35  ;;  %v13588_v35 = vld [vmem:[#allocation35 + $0x168] ss:$16 sps:$4 sm:$0xff]  }
 0xfd7   : > { %6141 = vmatpush1.bf16.msra.mxu0 %v13480_v12  ;;  %v13528_v12 = vld [vmem:[#allocation35 + $0x28] ss:$16 sps:$4 sm:$0xff]  }
 0xfd8   : > { %6142 = vmatprep.subr.bf16.mxu0 %v13485_v63  ;;  %v13533_v63 = vld [vmem:[#allocation35 + $0x44] ss:$16 sps:$4 sm:$0xff]  }
 0xfd9   : > { %6647 = vmatprep.subr.bf16.mxu1 %v13533_v63  ;;  %v13596_v63 = vld [vmem:[#allocation35 + $0x18c] ss:$16 sps:$4 sm:$0xff]  }
 0xfdb   : > { %6143 = vmatpush1.bf16.msra.mxu0 %v13483_v9  ;;  %v13536_v9 = vld [vmem:[#allocation35 + $0x4c] ss:$16 sps:$4 sm:$0xff]  }
 0xfdc   : > { %6144 = vmatprep.subr.bf16.mxu0 %v13488_v41  ;;  %v13531_v41 = vld [vmem:[#allocation35 + $0x40] ss:$16 sps:$4 sm:$0xff]  }
 0xfdd   : > { %6648 = vmatpush1.bf16.msra.mxu1 %v13531_v41  ;;  %v13594_v41 = vld [vmem:[#allocation35 + $0x188] ss:$16 sps:$4 sm:$0xff]  }
 0xfdf   : > { %6145 = vmatpush1.bf16.msra.mxu0 %v13486_v31  ;;  %v13534_v31 = vld [vmem:[#allocation35 + $0x48] ss:$16 sps:$4 sm:$0xff]  }
 0xfe0   : > { %6146 = vmatprep.subr.bf16.mxu0 %v13491_v10  ;;  %v13539_v10 = vld [vmem:[#allocation35 + $0x64] ss:$16 sps:$4 sm:$0xff]  }
 0xfe1   : > { %6649 = vmatprep.subr.bf16.mxu1 %v13539_v10  ;;  %v13602_v10 = vld [vmem:[#allocation35 + $0x1ac] ss:$16 sps:$4 sm:$0xff]  }
 0xfe3   : > { %6147 = vmatpush1.bf16.msra.mxu0 %v13489_v6  ;;  %v13542_v6 = vld [vmem:[#allocation35 + $0x6c] ss:$16 sps:$4 sm:$0xff]  }
 0xfe4   : > { %6148 = vmatprep.subr.bf16.mxu0 %v13494_v25  ;;  %v13537_v25 = vld [vmem:[#allocation35 + $0x60] ss:$16 sps:$4 sm:$0xff]  }
 0xfe5   : > { %6650 = vmatpush1.bf16.msra.mxu1 %v13537_v25  ;;  %v13600_v25 = vld [vmem:[#allocation35 + $0x1a8] ss:$16 sps:$4 sm:$0xff]  }
 0xfe7   : > { %6149 = vmatpush1.bf16.msra.mxu0 %v13492_v7  ;;  %v13540_v7 = vld [vmem:[#allocation35 + $0x68] ss:$16 sps:$4 sm:$0xff]  }
 0xfe8   : > { %6150 = vmatprep.subr.bf16.mxu0 %v13497_v60  ;;  %v13545_v60 = vld [vmem:[#allocation35 + $0x84] ss:$16 sps:$4 sm:$0xff]  }
 0xfe9   : > { %6651 = vmatprep.subr.bf16.mxu1 %v13545_v60  ;;  %v13608_v60 = vld [vmem:[#allocation35 + $0x1cc] ss:$16 sps:$4 sm:$0xff]  }
 0xfeb   : > { %6151 = vmatpush1.bf16.msra.mxu0 %v13495_v13  ;;  %v13548_v13 = vld [vmem:[#allocation35 + $0x8c] ss:$16 sps:$4 sm:$0xff]  }
 0xfec   : > { %6152 = vmatprep.subr.bf16.mxu0 %v13500_v43  ;;  %v13543_v43 = vld [vmem:[#allocation35 + $0x80] ss:$16 sps:$4 sm:$0xff]  }
 0xfed   : > { %6652 = vmatpush1.bf16.msra.mxu1 %v13543_v43  ;;  %v13606_v43 = vld [vmem:[#allocation35 + $0x1c8] ss:$16 sps:$4 sm:$0xff]  }
 0xfef   : > { %6153 = vmatpush1.bf16.msra.mxu0 %v13498_v2  ;;  %v13546_v2 = vld [vmem:[#allocation35 + $0x88] ss:$16 sps:$4 sm:$0xff]  }
 0xff0   : > { %6154 = vmatprep.subr.bf16.mxu0 %v13503_v22  ;;  %v13551_v22 = vld [vmem:[#allocation35 + $0xa4] ss:$16 sps:$4 sm:$0xff]  }
 0xff1   : > { %6653 = vmatprep.subr.bf16.mxu1 %v13551_v22  ;;  %v13614_v22 = vld [vmem:[#allocation35 + $0x1ec] ss:$16 sps:$4 sm:$0xff]  }
 0xff3   : > { %6155 = vmatpush1.bf16.msra.mxu0 %v13501_v30  ;;  %v13554_v30 = vld [vmem:[#allocation35 + $0xac] ss:$16 sps:$4 sm:$0xff]  }
 0xff4   : > { %6156 = vmatprep.subr.bf16.mxu0 %v13506_v40  ;;  %v13549_v40 = vld [vmem:[#allocation35 + $0xa0] ss:$16 sps:$4 sm:$0xff]  }
 0xff5   : > { %6654 = vmatpush1.bf16.msra.mxu1 %v13549_v40  ;;  %v13612_v40 = vld [vmem:[#allocation35 + $0x1e8] ss:$16 sps:$4 sm:$0xff]  }
 0xff7   : > { %6157 = vmatpush1.bf16.msra.mxu0 %v13504_v29  ;;  %v13552_v29 = vld [vmem:[#allocation35 + $0xa8] ss:$16 sps:$4 sm:$0xff]  }
 0xff8   : > { %6158 = vmatprep.subr.bf16.mxu0 %v13509_v46  ;;  %v13557_v46 = vld [vmem:[#allocation35 + $0xc4] ss:$16 sps:$4 sm:$0xff]  }
 0xff9   : > { %6655 = vmatprep.subr.bf16.mxu1 %v13557_v46  ;;  %v13620_v46 = vld [vmem:[#allocation38 + $0x104] ss:$8 sps:$4 sm:$0xff]  }
 0xffb   : > { %6159 = vmatpush1.bf16.msra.mxu0 %v13507_v58  ;;  %v13560_v58 = vld [vmem:[#allocation35 + $0xcc] ss:$16 sps:$4 sm:$0xff]  }
 0xffc   : > { %6160 = vmatprep.subr.bf16.mxu0 %v13512_v37  ;;  %v13555_v37 = vld [vmem:[#allocation35 + $0xc0] ss:$16 sps:$4 sm:$0xff]  }
 0xffd   : > { %6656 = vmatpush1.bf16.msra.mxu1 %v13555_v37 }
 0xfff   : > { %6161 = vmatpush1.bf16.msra.mxu0 %v13510_v50  ;;  %v13558_v50 = vld [vmem:[#allocation35 + $0xc8] ss:$16 sps:$4 sm:$0xff]  }
0x1000   : > { %6162 = vmatprep.subr.bf16.mxu0 %v13515_v51  ;;  %v13563_v51 = vld [vmem:[#allocation35 + $0xe4] ss:$16 sps:$4 sm:$0xff]  }
0x1001   : > { %6657 = vmatprep.subr.bf16.mxu1 %v13563_v51  ;;  %v6207_v51 = vld [vmem:[%s17741_s28] sm:$0x3]  ;;  %s15222_s28 = smov 127  }
0x1003   : > { %6163 = vmatpush1.bf16.msra.mxu0 %v13513_v20  ;;  %v13566_v20 = vld [vmem:[#allocation35 + $0xec] ss:$16 sps:$4 sm:$0xff]  }
0x1004   : > { %6164 = vmatprep.subr.bf16.mxu0 %v13518_v45  ;;  %v13561_v45 = vld [vmem:[#allocation35 + $0xe0] ss:$16 sps:$4 sm:$0xff]  }
0x1005   : > { %6658 = vmatpush1.bf16.msra.mxu1 %v13561_v45  ;;  %v6212_v45 = vrot.slane %v6207_v51, %v17733_v11 }
0x1007   : > { %6165 = vmatpush1.bf16.msra.mxu0 %v13516_v32  ;;  %v13564_v32 = vld [vmem:[#allocation35 + $0xe8] ss:$16 sps:$4 sm:$0xff]  }
0x1008   : > { %6684 = vmatprep.subr.bf16.mxu0 %v13524_v56  ;;  %v13587_v56 = vld [vmem:[#allocation35 + $0x164] ss:$16 sps:$4 sm:$0xff]  }
0x109d   : > { %v5933_v62 = vpop.f32.mrb[36].mxu0 }
0x109e   : > { %v5935_v16 = vpop.f32.mrb[37].mxu0  ;;  %v5940_v57 = vpack.c.bf16 %v5933_v62, %v5933_v62  ;;  %v13569_v62 = vld [vmem:[#allocation35 + $0x104] ss:$16 sps:$4 sm:$0xff]  }
0x109f   : > { %v5941_v4 = vpack.c.bf16 %v5935_v16, %v5935_v16  ;;  %v5937_v61 = vpop.f32.mrb[38].mxu0  ;;  %v13572_v16 = vld [vmem:[#allocation35 + $0x10c] ss:$16 sps:$4 sm:$0xff]   ;;  %6659 = vmatprep.subr.bf16.mxu1 %v13569_v62 }
0x10a0   : > { %v5938_v17 = vpop.f32.mrb[39].mxu0  ;;  %v13570_v61 = vld [vmem:[#allocation35 + $0x108] ss:$16 sps:$4 sm:$0xff]  }
0x10a1   : > { %6166 = vmatprep.mubr.bf16.mxu0 %v5941_v4  ;;  %v13567_v4 = vld [vmem:[#allocation35 + $0x100] ss:$16 sps:$4 sm:$0xff]   ;;  %v13578_v17 = vld [vmem:[#allocation35 + $0x12c] ss:$16 sps:$4 sm:$0xff]  }
0x10a2   : > { %6167 = vmatmul.mubr.bf16.vlgmr.msra.gmra.mrb[40].mxu0 %v5940_v57  ;;  %v13575_v57 = vld [vmem:[#allocation35 + $0x124] ss:$16 sps:$4 sm:$0xff]   ;;  %6660 = vmatpush1.bf16.msra.mxu1 %v13567_v4 }
0x10a3   : > { %6685 = vmatpush1.bf16.msra.mxu0 %v13522_v49  ;;  %6661 = vmatprep.subr.bf16.mxu1 %v13575_v57  ;;  %v13582_v49 = vld [vmem:[#allocation35 + $0x148] ss:$16 sps:$4 sm:$0xff]  }
0x10a4   : > { %6686 = vmatprep.subr.bf16.mxu0 %v13530_v34  ;;  %v13585_v34 = vld [vmem:[#allocation35 + $0x160] ss:$16 sps:$4 sm:$0xff]  }
0x10a6   : > { %6662 = vmatpush1.bf16.msra.mxu1 %v13573_v59 }
0x10a7   : > { %6687 = vmatpush1.bf16.msra.mxu0 %v13528_v12  ;;  %v13593_v12 = vld [vmem:[#allocation35 + $0x184] ss:$16 sps:$4 sm:$0xff]  }
0x10a8   : > { %6688 = vmatprep.subr.bf16.mxu0 %v13536_v9  ;;  %v13591_v9 = vld [vmem:[#allocation35 + $0x180] ss:$16 sps:$4 sm:$0xff]  }
0x10ab   : > { %6689 = vmatpush1.bf16.msra.mxu0 %v13534_v31  ;;  %v13599_v31 = vld [vmem:[#allocation35 + $0x1a4] ss:$16 sps:$4 sm:$0xff]  }
0x10ac   : > { %6690 = vmatprep.subr.bf16.mxu0 %v13542_v6  ;;  %v13597_v6 = vld [vmem:[#allocation35 + $0x1a0] ss:$16 sps:$4 sm:$0xff]  }
0x10af   : > { %6691 = vmatpush1.bf16.msra.mxu0 %v13540_v7  ;;  %v13605_v7 = vld [vmem:[#allocation35 + $0x1c4] ss:$16 sps:$4 sm:$0xff]  }
0x10b0   : > { %6692 = vmatprep.subr.bf16.mxu0 %v13548_v13  ;;  %v13603_v13 = vld [vmem:[#allocation35 + $0x1c0] ss:$16 sps:$4 sm:$0xff]  }
0x10b3   : > { %6693 = vmatpush1.bf16.msra.mxu0 %v13546_v2  ;;  %v13611_v2 = vld [vmem:[#allocation35 + $0x1e4] ss:$16 sps:$4 sm:$0xff]  }
0x10b4   : > { %6694 = vmatprep.subr.bf16.mxu0 %v13554_v30  ;;  %v13609_v30 = vld [vmem:[#allocation35 + $0x1e0] ss:$16 sps:$4 sm:$0xff]  }
0x10b7   : > { %6695 = vmatpush1.bf16.msra.mxu0 %v13552_v29  ;;  %v13617_v29 = vld [vmem:[#allocation38 + $0x4] ss:$8 sps:$4 sm:$0xff]  }
0x10b8   : > { %6696 = vmatprep.subr.bf16.mxu0 %v13560_v58 }
0x10bb   : > { %6697 = vmatpush1.bf16.msra.mxu0 %v13558_v50 }
0x10bc   : > { %6698 = vmatprep.subr.bf16.mxu0 %v13566_v20  ;;  %v6221_v20 = vld [vmem:[%s17742_s16] sm:$0x3]  ;;  %s15223_s16 = smov 126  }
0x10bd   : > { %v6226_v4 = vrot.slane %v6221_v20, %v17733_v11 }
0x10bf   : > { %6699 = vmatpush1.bf16.msra.mxu0 %v13564_v32  ;;  %v6216_v32 = vrot.slane %v6207_v51, %v17734_v27  ;;  %v13666_v51 = vld [vmem:[#allocation38 + $0x180] ss:$8 sps:$4 sm:$0xff]  }
0x10c0   : > { %6700 = vmatprep.subr.bf16.mxu0 %v13572_v16 }
0x10c3   : > { %6701 = vmatpush1.bf16.msra.mxu0 %v13570_v61  ;;  %v6230_v61 = vrot.slane %v6221_v20, %v17734_v27  ;;  %v13671_v20 = vld [vmem:[#allocation38 + $0x94] ss:$8 sps:$4 sm:$0xff]  }
0x10c4   : > { %6702 = vmatprep.subr.bf16.mxu0 %v13578_v17 }
0x1175   : > { %v6168_v8 = vpop.f32.mrb[40].mxu0 }
0x1176   : > { %v6175_v18 = vadd.f32 %v6168_v8, %v16690_v55  ;;  %v6170_v1 = vpop.f32.mrb[41].mxu0 }
0x1177   : > { %v6176_v24 = vadd.f32 %v6170_v1, %v16692_v52  ;;  %v6172_v3 = vpop.f32.mrb[42].mxu0 }
0x1178   : > { %v16828_v44 = vadd.f32 %v6182_v21, %v6175_v18  ;;  %v6173_v36 = vpop.f32.mrb[43].mxu0  ;;  %v13576_v21 = vld [vmem:[#allocation35 + $0x128] ss:$16 sps:$4 sm:$0xff]  }
0x1179   : > { %v16830_v0 = vadd.f32 %v6186_v39, %v6176_v24  ;;  %6703 = vmatpush1.bf16.msra.mxu0 %v13576_v21 }
0x117a   : > { %6704 = vmatprep.subr.bf16.mxu0 %v13584_v54  ;;  %v13626_v54 = vld [vmem:[#allocation38 + $0x114] ss:$8 sps:$4 sm:$0xff]  }
0x117b   : > { %v6191_v19 = vadd.f32 %v16830_v0, %v16828_v44 }
0x117d   : > { %6192 = vadd.xlane.f32.xlu0 %v6191_v19  ;;  %v13581_v19 = vld [vmem:[#allocation35 + $0x144] ss:$16 sps:$4 sm:$0xff]   ;;  %6705 = vmatpush1.bf16.msra.mxu0 %v13582_v49  ;;  %v13632_v49 = vld [vmem:[#allocation38 + $0x124] ss:$8 sps:$4 sm:$0xff]  }
0x117e   : > { %6663 = vmatprep.subr.bf16.mxu1 %v13581_v19  ;;  %6706 = vmatprep.subr.bf16.mxu0 %v13590_v15  ;;  %v13623_v19 = vld [vmem:[#allocation38 + $0x14] ss:$8 sps:$4 sm:$0xff]   ;;  %v13630_v15 = vld [vmem:[#allocation38 + $0x120] ss:$8 sps:$4 sm:$0xff]  }
0x117f   : > { %6664 = vmatpush1.bf16.msra.mxu1 %v13579_v47  ;;  %v13624_v47 = vld [vmem:[#allocation38 + $0x110] ss:$8 sps:$4 sm:$0xff]  }
0x1180   : > { %6665 = vmatprep.subr.bf16.mxu1 %v13587_v56  ;;  %v13627_v56 = vld [vmem:[#allocation38 + $0x20] ss:$8 sps:$4 sm:$0xff]  }
0x1181   : > { %6707 = vmatpush1.bf16.msra.mxu0 %v13588_v35  ;;  %v13638_v35 = vld [vmem:[#allocation38 + $0x134] ss:$8 sps:$4 sm:$0xff]  }
0x1182   : > { %6708 = vmatprep.subr.bf16.mxu0 %v13596_v63  ;;  %v13636_v63 = vld [vmem:[#allocation38 + $0x130] ss:$8 sps:$4 sm:$0xff]  }
0x1183   : > { %6666 = vmatpush1.bf16.msra.mxu1 %v13585_v34  ;;  %v13635_v34 = vld [vmem:[#allocation38 + $0x34] ss:$8 sps:$4 sm:$0xff]  }
0x1184   : > { %6667 = vmatprep.subr.bf16.mxu1 %v13593_v12  ;;  %v13633_v12 = vld [vmem:[#allocation38 + $0x30] ss:$8 sps:$4 sm:$0xff]  }
0x1185   : > { %6709 = vmatpush1.bf16.msra.mxu0 %v13594_v41  ;;  %v13644_v41 = vld [vmem:[#allocation38 + $0x144] ss:$8 sps:$4 sm:$0xff]  }
0x1186   : > { %6710 = vmatprep.subr.bf16.mxu0 %v13602_v10  ;;  %v13642_v10 = vld [vmem:[#allocation38 + $0x140] ss:$8 sps:$4 sm:$0xff]  }
0x1187   : > { %6668 = vmatpush1.bf16.msra.mxu1 %v13591_v9  ;;  %v13641_v9 = vld [vmem:[#allocation38 + $0x44] ss:$8 sps:$4 sm:$0xff]  }
0x1188   : > { %6669 = vmatprep.subr.bf16.mxu1 %v13599_v31  ;;  %v13639_v31 = vld [vmem:[#allocation38 + $0x40] ss:$8 sps:$4 sm:$0xff]  }
0x1189   : > { %6711 = vmatpush1.bf16.msra.mxu0 %v13600_v25  ;;  %v13650_v25 = vld [vmem:[#allocation38 + $0x154] ss:$8 sps:$4 sm:$0xff]  }
0x118a   : > { %6712 = vmatprep.subr.bf16.mxu0 %v13608_v60  ;;  %v13648_v60 = vld [vmem:[#allocation38 + $0x150] ss:$8 sps:$4 sm:$0xff]  }
0x118b   : > { %6670 = vmatpush1.bf16.msra.mxu1 %v13597_v6  ;;  %v13647_v6 = vld [vmem:[#allocation38 + $0x54] ss:$8 sps:$4 sm:$0xff]  }
0x118c   : > { %6671 = vmatprep.subr.bf16.mxu1 %v13605_v7  ;;  %v13645_v7 = vld [vmem:[#allocation38 + $0x50] ss:$8 sps:$4 sm:$0xff]  }
0x118d   : > { %6713 = vmatpush1.bf16.msra.mxu0 %v13606_v43  ;;  %v13656_v43 = vld [vmem:[#allocation38 + $0x164] ss:$8 sps:$4 sm:$0xff]  }
0x118e   : > { %6714 = vmatprep.subr.bf16.mxu0 %v13614_v22  ;;  %v13654_v22 = vld [vmem:[#allocation38 + $0x160] ss:$8 sps:$4 sm:$0xff]  }
0x118f   : > { %6672 = vmatpush1.bf16.msra.mxu1 %v13603_v13  ;;  %v13653_v13 = vld [vmem:[#allocation38 + $0x64] ss:$8 sps:$4 sm:$0xff]  }
0x1190   : > { %6673 = vmatprep.subr.bf16.mxu1 %v13611_v2  ;;  %v13651_v2 = vld [vmem:[#allocation38 + $0x60] ss:$8 sps:$4 sm:$0xff]  }
0x1191   : > { %6715 = vmatpush1.bf16.msra.mxu0 %v13612_v40  ;;  %v13662_v40 = vld [vmem:[#allocation38 + $0x174] ss:$8 sps:$4 sm:$0xff]  }
0x1192   : > { %7158 = vmatprep.subr.bf16.mxu0 %v13620_v46  ;;  %v13660_v46 = vld [vmem:[#allocation38 + $0x170] ss:$8 sps:$4 sm:$0xff]  }
0x1193   : > { %6674 = vmatpush1.bf16.msra.mxu1 %v13609_v30  ;;  %v13659_v30 = vld [vmem:[#allocation38 + $0x74] ss:$8 sps:$4 sm:$0xff]  }
0x1194   : > { %7117 = vmatprep.subr.bf16.mxu1 %v13617_v29  ;;  %v13657_v29 = vld [vmem:[#allocation38 + $0x70] ss:$8 sps:$4 sm:$0xff]  }
0x120a   : > { %v6193_v8 = vpop.xlane.xlu0 %6192 }
0x120b   : > { %v6194_v39 = vmul.f32 0.00390625, %v6193_v8 }
0x120d   : > { %v16835_v18 = vsub.f32 %v16828_v44, %v6194_v39  ;;  %v16838_v1 = vsub.f32 %v16830_v0, %v6194_v39 }
0x120f   : > { %v6197_v24 = vmul.f32 %v16835_v18, %v16835_v18  ;;  %v6198_v3 = vmul.f32 %v16838_v1, %v16838_v1 }
0x1211   : > { %v6199_v36 = vadd.f32 %v6198_v3, %v6197_v24  ;;  %v13615_v3 = vld [vmem:[#allocation38] ss:$8 sps:$4 sm:$0xff]  }
0x1213   : > { %6200 = vadd.xlane.f32.xlu1 %v6199_v36  ;;  %v13618_v36 = vld [vmem:[#allocation38 + $0x100] ss:$8 sps:$4 sm:$0xff]  }
0x12a0   : > { %v6201_v58 = vpop.xlane.xlu1 %6200 }
0x12a1   : > { %v6202_v37 = vmul.f32 0.00390625, %v6201_v58  ;;  %v13665_v58 = vld [vmem:[#allocation38 + $0x84] ss:$8 sps:$4 sm:$0xff]  }
0x12a3   : > { %v6203_v50 = vadd.f32 1e-05, %v6202_v37  ;;  %v13668_v37 = vld [vmem:[#allocation38 + $0x184] ss:$8 sps:$4 sm:$0xff]  }
0x12a5   : > { %13981 = vrsqrt.f32 %v6203_v50  ;;  %v13663_v50 = vld [vmem:[#allocation38 + $0x80] ss:$8 sps:$4 sm:$0xff]  }
0x12af   : > { %v13982_v62 = vpop.eup %13981 }
0x12b0   : > { %v6206_v16 = vmul.f32 %v13982_v62, %v16838_v1  ;;  %v6205_v57 = vmul.f32 %v13982_v62, %v16835_v18  ;;  %v13621_v1 = vld [vmem:[#allocation38 + $0x10] ss:$8 sps:$4 sm:$0xff]   ;;  %v13629_v18 = vld [vmem:[#allocation38 + $0x24] ss:$8 sps:$4 sm:$0xff]  }
0x12b1   : > { %v13672_v62 = vld [vmem:[#allocation38 + $0x190] ss:$8 sps:$4 sm:$0xff]  }
0x12b2   : > { %v6220_v17 = vmul.f32 %v6216_v32, %v6206_v16  ;;  %v6219_v59 = vmul.f32 %v6212_v45, %v6205_v57  ;;  %v13674_v45 = vld [vmem:[#allocation38 + $0x194] ss:$8 sps:$4 sm:$0xff]   ;;  %v13669_v32 = vld [vmem:[#allocation38 + $0x90] ss:$8 sps:$4 sm:$0xff]   ;;  %v13677_v16 = vld [vmem:[#allocation38 + $0xa4] ss:$8 sps:$4 sm:$0xff]  }
0x12b3   : > { %v13678_v57 = vld [vmem:[#allocation38 + $0x1a0] ss:$8 sps:$4 sm:$0xff]  }
0x12b4   : > { %v6234_v21 = vadd.f32 %v6230_v61, %v6220_v17  ;;  %v6233_v8 = vadd.f32 %v6226_v4, %v6219_v59  ;;  %v13680_v4 = vld [vmem:[#allocation38 + $0x1a4] ss:$8 sps:$4 sm:$0xff]   ;;  %v13675_v61 = vld [vmem:[#allocation38 + $0xa0] ss:$8 sps:$4 sm:$0xff]   ;;  %v13683_v17 = vld [vmem:[#allocation38 + $0xb4] ss:$8 sps:$4 sm:$0xff]  }
0x12b5   : > { %v13686_v59 = vld [vmem:[#allocation38 + $0x1b4] ss:$8 sps:$4 sm:$0xff]  }
0x12b6   : > { %v6236_v39 = vpack.c.bf16 %v6234_v21, %v6234_v21  ;;  %v6235_v24 = vpack.c.bf16 %v6233_v8, %v6233_v8  ;;  %v13681_v21 = vld [vmem:[#allocation38 + $0xb0] ss:$8 sps:$4 sm:$0xff]  }
0x12b7   : > { %v13684_v8 = vld [vmem:[#allocation38 + $0x1b0] ss:$8 sps:$4 sm:$0xff]  }
0x12b8   : > { %6675 = vmatprep.mubr.bf16.mxu1 %v6236_v39  ;;  %6716 = vmatprep.mubr.bf16.mxu0 %v6236_v39  ;;  %v13689_v39 = vld [vmem:[#allocation38 + $0xc4] ss:$8 sps:$4 sm:$0xff]  }
0x12b9   : > { %6676 = vmatmul.mubr.bf16.vlgmr.msra.gmra.mrb[40].mxu1 %v6235_v24  ;;  %6717 = vmatmul.mubr.bf16.vlgmr.msra.gmra.mrb[44].mxu0 %v6235_v24  ;;  %v13692_v24 = vld [vmem:[#allocation38 + $0x1c4] ss:$8 sps:$4 sm:$0xff]  }
0x12ba   : > { %7118 = vmatpush1.bf16.msra.mxu1 %v13615_v3  ;;  %7159 = vmatpush1.bf16.msra.mxu0 %v13618_v36  ;;  %v13687_v3 = vld [vmem:[#allocation38 + $0xc0] ss:$8 sps:$4 sm:$0xff]  }
0x12bb   : > { %7119 = vmatprep.subr.bf16.mxu1 %v13623_v19  ;;  %7160 = vmatprep.subr.bf16.mxu0 %v13626_v54  ;;  %v13690_v36 = vld [vmem:[#allocation38 + $0x1c0] ss:$8 sps:$4 sm:$0xff]   ;;  %v13695_v19 = vld [vmem:[#allocation38 + $0xd4] ss:$8 sps:$4 sm:$0xff]  }
0x12bc   : > { %v13698_v54 = vld [vmem:[#allocation38 + $0x1d4] ss:$8 sps:$4 sm:$0xff]  }
0x12be   : > { %7120 = vmatpush1.bf16.msra.mxu1 %v13621_v1  ;;  %7161 = vmatpush1.bf16.msra.mxu0 %v13624_v47  ;;  %v13693_v1 = vld [vmem:[#allocation38 + $0xd0] ss:$8 sps:$4 sm:$0xff]  }
0x12bf   : > { %7121 = vmatprep.subr.bf16.mxu1 %v13629_v18  ;;  %7162 = vmatprep.subr.bf16.mxu0 %v13632_v49  ;;  %v13696_v47 = vld [vmem:[#allocation38 + $0x1d0] ss:$8 sps:$4 sm:$0xff]   ;;  %v13701_v18 = vld [vmem:[#allocation38 + $0xe4] ss:$8 sps:$4 sm:$0xff]  }
0x12c0   : > { %v13704_v49 = vld [vmem:[#allocation38 + $0x1e4] ss:$8 sps:$4 sm:$0xff]  }
0x12c2   : > { %7122 = vmatpush1.bf16.msra.mxu1 %v13627_v56  ;;  %7163 = vmatpush1.bf16.msra.mxu0 %v13630_v15  ;;  %v13699_v56 = vld [vmem:[#allocation38 + $0xe0] ss:$8 sps:$4 sm:$0xff]  }
0x12c3   : > { %7123 = vmatprep.subr.bf16.mxu1 %v13635_v34  ;;  %7164 = vmatprep.subr.bf16.mxu0 %v13638_v35  ;;  %v13702_v15 = vld [vmem:[#allocation38 + $0x1e0] ss:$8 sps:$4 sm:$0xff]   ;;  %v13707_v34 = vld [vmem:[#allocation38 + $0xf4] ss:$8 sps:$4 sm:$0xff]  }
0x12c4   : > { %v13710_v35 = vld [vmem:[#allocation38 + $0x1f4] ss:$8 sps:$4 sm:$0xff]  }
0x12c6   : > { %7124 = vmatpush1.bf16.msra.mxu1 %v13633_v12  ;;  %7165 = vmatpush1.bf16.msra.mxu0 %v13636_v63  ;;  %v13705_v12 = vld [vmem:[#allocation38 + $0xf0] ss:$8 sps:$4 sm:$0xff]  }
0x12c7   : > { %7125 = vmatprep.subr.bf16.mxu1 %v13641_v9  ;;  %7166 = vmatprep.subr.bf16.mxu0 %v13644_v41  ;;  %v13708_v63 = vld [vmem:[#allocation38 + $0x1f0] ss:$8 sps:$4 sm:$0xff]  }
0x12c8   : > { %v13713_v9 = vld [vmem:[#allocation41 + $0x4] ss:$8 sps:$4 sm:$0xff]  }
0x12c9   : > { %v13716_v41 = vld [vmem:[#allocation44 + $0x4] ss:$8 sps:$4 sm:$0xff]  }
0x12ca   : > { %7126 = vmatpush1.bf16.msra.mxu1 %v13639_v31  ;;  %7167 = vmatpush1.bf16.msra.mxu0 %v13642_v10  ;;  %v6301_v31 = vld [vmem:[#allocation36] sm:$0xf] }
0x12cb   : > { %7127 = vmatprep.subr.bf16.mxu1 %v13647_v6  ;;  %7168 = vmatprep.subr.bf16.mxu0 %v13650_v25  ;;  %v6306_v10 = vrot.slane %v6301_v31, %v17733_v11  ;;  %v6314_v6 = vrot.slane %v6301_v31, %v5206_v26  ;;  %v6310_v25 = vrot.slane %v6301_v31, %v17734_v27 }
0x12ce   : > { %7128 = vmatpush1.bf16.msra.mxu1 %v13645_v7  ;;  %7169 = vmatpush1.bf16.msra.mxu0 %v13648_v60  ;;  %v6318_v7 = vrot.slane %v6301_v31, %v5210_v48  ;;  %v13714_v48 = vld [vmem:[#allocation44] ss:$8 sps:$4 sm:$0xff]   ;;  %v13755_v31 = vld [vmem:[#allocation41 + $0x74] ss:$8 sps:$4 sm:$0xff]  }
0x12cf   : > { %7129 = vmatprep.subr.bf16.mxu1 %v13653_v13  ;;  %7170 = vmatprep.subr.bf16.mxu0 %v13656_v43 }
0x12d2   : > { %7130 = vmatpush1.bf16.msra.mxu1 %v13651_v2  ;;  %7171 = vmatpush1.bf16.msra.mxu0 %v13654_v22 }
0x12d3   : > { %7131 = vmatprep.subr.bf16.mxu1 %v13659_v30  ;;  %7172 = vmatprep.subr.bf16.mxu0 %v13662_v40 }
0x12d6   : > { %7132 = vmatpush1.bf16.msra.mxu1 %v13657_v29  ;;  %7173 = vmatpush1.bf16.msra.mxu0 %v13660_v46 }
0x12d7   : > { %7133 = vmatprep.subr.bf16.mxu1 %v13665_v58  ;;  %7174 = vmatprep.subr.bf16.mxu0 %v13668_v37 }
0x12da   : > { %7134 = vmatpush1.bf16.msra.mxu1 %v13663_v50  ;;  %7175 = vmatpush1.bf16.msra.mxu0 %v13666_v51 }
0x12db   : > { %7135 = vmatprep.subr.bf16.mxu1 %v13671_v20  ;;  %7176 = vmatprep.subr.bf16.mxu0 %v13674_v45 }
0x12de   : > { %7136 = vmatpush1.bf16.msra.mxu1 %v13669_v32  ;;  %7177 = vmatpush1.bf16.msra.mxu0 %v13672_v62 }
0x12df   : > { %7137 = vmatprep.subr.bf16.mxu1 %v13677_v16  ;;  %7178 = vmatprep.subr.bf16.mxu0 %v13680_v4 }
0x12e2   : > { %7138 = vmatpush1.bf16.msra.mxu1 %v13675_v61  ;;  %7179 = vmatpush1.bf16.msra.mxu0 %v13678_v57  ;;  %v13719_v61 = vld [vmem:[#allocation41 + $0x14] ss:$8 sps:$4 sm:$0xff]  }
0x12e3   : > { %7139 = vmatprep.subr.bf16.mxu1 %v13683_v17  ;;  %7180 = vmatprep.subr.bf16.mxu0 %v13686_v59  ;;  %v13722_v57 = vld [vmem:[#allocation44 + $0x14] ss:$8 sps:$4 sm:$0xff]   ;;  %v13720_v59 = vld [vmem:[#allocation44 + $0x10] ss:$8 sps:$4 sm:$0xff]  }
0x12e4   : > { %v13717_v17 = vld [vmem:[#allocation41 + $0x10] ss:$8 sps:$4 sm:$0xff]  }
0x12e6   : > { %7140 = vmatpush1.bf16.msra.mxu1 %v13681_v21  ;;  %7181 = vmatpush1.bf16.msra.mxu0 %v13684_v8  ;;  %v13725_v21 = vld [vmem:[#allocation41 + $0x24] ss:$8 sps:$4 sm:$0xff]  }
0x12e7   : > { %7141 = vmatprep.subr.bf16.mxu1 %v13689_v39  ;;  %7182 = vmatprep.subr.bf16.mxu0 %v13692_v24  ;;  %v13728_v8 = vld [vmem:[#allocation44 + $0x24] ss:$8 sps:$4 sm:$0xff]   ;;  %v13726_v24 = vld [vmem:[#allocation44 + $0x20] ss:$8 sps:$4 sm:$0xff]  }
0x12e8   : > { %v13723_v39 = vld [vmem:[#allocation41 + $0x20] ss:$8 sps:$4 sm:$0xff]  }
0x12ea   : > { %7142 = vmatpush1.bf16.msra.mxu1 %v13687_v3  ;;  %7183 = vmatpush1.bf16.msra.mxu0 %v13690_v36  ;;  %v13731_v3 = vld [vmem:[#allocation41 + $0x34] ss:$8 sps:$4 sm:$0xff]  }
0x12eb   : > { %7143 = vmatprep.subr.bf16.mxu1 %v13695_v19  ;;  %7184 = vmatprep.subr.bf16.mxu0 %v13698_v54  ;;  %v13734_v36 = vld [vmem:[#allocation44 + $0x34] ss:$8 sps:$4 sm:$0xff]   ;;  %v13732_v54 = vld [vmem:[#allocation44 + $0x30] ss:$8 sps:$4 sm:$0xff]  }
0x12ec   : > { %v13729_v19 = vld [vmem:[#allocation41 + $0x30] ss:$8 sps:$4 sm:$0xff]  }
0x12ee   : > { %7144 = vmatpush1.bf16.msra.mxu1 %v13693_v1  ;;  %7185 = vmatpush1.bf16.msra.mxu0 %v13696_v47  ;;  %v13737_v1 = vld [vmem:[#allocation41 + $0x44] ss:$8 sps:$4 sm:$0xff]  }
0x12ef   : > { %7145 = vmatprep.subr.bf16.mxu1 %v13701_v18  ;;  %7186 = vmatprep.subr.bf16.mxu0 %v13704_v49  ;;  %v13740_v47 = vld [vmem:[#allocation44 + $0x44] ss:$8 sps:$4 sm:$0xff]   ;;  %v13738_v49 = vld [vmem:[#allocation44 + $0x40] ss:$8 sps:$4 sm:$0xff]  }
0x12f0   : > { %v13735_v18 = vld [vmem:[#allocation41 + $0x40] ss:$8 sps:$4 sm:$0xff]  }
0x12f2   : > { %7146 = vmatpush1.bf16.msra.mxu1 %v13699_v56  ;;  %7187 = vmatpush1.bf16.msra.mxu0 %v13702_v15  ;;  %v13743_v56 = vld [vmem:[#allocation41 + $0x54] ss:$8 sps:$4 sm:$0xff]  }
0x12f3   : > { %7147 = vmatprep.subr.bf16.mxu1 %v13707_v34  ;;  %7188 = vmatprep.subr.bf16.mxu0 %v13710_v35  ;;  %v13746_v15 = vld [vmem:[#allocation44 + $0x54] ss:$8 sps:$4 sm:$0xff]   ;;  %v13744_v35 = vld [vmem:[#allocation44 + $0x50] ss:$8 sps:$4 sm:$0xff]  }
0x12f4   : > { %v13741_v34 = vld [vmem:[#allocation41 + $0x50] ss:$8 sps:$4 sm:$0xff]  }
0x12f6   : > { %7148 = vmatpush1.bf16.msra.mxu1 %v13705_v12  ;;  %7189 = vmatpush1.bf16.msra.mxu0 %v13708_v63  ;;  %v13749_v12 = vld [vmem:[#allocation41 + $0x64] ss:$8 sps:$4 sm:$0xff]  }
0x12f7   : > { %7423 = vmatprep.subr.bf16.mxu1 %v13713_v9  ;;  %7668 = vmatprep.subr.bf16.mxu0 %v13716_v41  ;;  %v13752_v63 = vld [vmem:[#allocation44 + $0x64] ss:$8 sps:$4 sm:$0xff]   ;;  %v13750_v41 = vld [vmem:[#allocation44 + $0x60] ss:$8 sps:$4 sm:$0xff]  }
0x12f8   : > { %v13747_v9 = vld [vmem:[#allocation41 + $0x60] ss:$8 sps:$4 sm:$0xff]  }
0x138c   : > { %v6677_v60 = vpop.f32.mrb[40].mxu1  ;;  %v6718_v13 = vpop.f32.mrb[44].mxu0 }
0x138d   : > { %v6678_v43 = vadd.f32 %v6677_v60, %v6306_v10  ;;  %v6719_v2 = vadd.f32 %v6718_v13, %v6314_v6  ;;  %v6679_v22 = vpop.f32.mrb[41].mxu1  ;;  %v6720_v30 = vpop.f32.mrb[45].mxu0  ;;  %v13758_v10 = vld [vmem:[#allocation44 + $0x74] ss:$8 sps:$4 sm:$0xff]   ;;  %v13764_v60 = vld [vmem:[#allocation44 + $0x84] ss:$8 sps:$4 sm:$0xff]  }
0x138e   : > { %v6680_v40 = vadd.f32 %v6679_v22, %v6310_v25  ;;  %v6721_v29 = vadd.f32 %v6720_v30, %v6318_v7  ;;  %v6681_v46 = vpop.f32.mrb[42].mxu1  ;;  %v6722_v58 = vpop.f32.mrb[46].mxu0  ;;  %v13753_v6 = vld [vmem:[#allocation41 + $0x70] ss:$8 sps:$4 sm:$0xff]   ;;  %v13761_v7 = vld [vmem:[#allocation41 + $0x84] ss:$8 sps:$4 sm:$0xff]  }
0x138f   : > { %v6725_v37 = vmax.f32 %v6678_v43, 0.0  ;;  %v6727_v50 = vmax.f32 %v6719_v2, 0.0  ;;  %v6682_v51 = vpop.f32.mrb[43].mxu1  ;;  %v6723_v20 = vpop.f32.mrb[47].mxu0  ;;  %v13756_v25 = vld [vmem:[#allocation44 + $0x70] ss:$8 sps:$4 sm:$0xff]  }
0x1390   : > { %v6726_v26 = vmax.f32 %v6680_v40, 0.0  ;;  %v6728_v45 = vmax.f32 %v6721_v29, 0.0  ;;  %v13759_v13 = vld [vmem:[#allocation41 + $0x80] ss:$8 sps:$4 sm:$0xff]   ;;  %v13767_v2 = vld [vmem:[#allocation41 + $0x94] ss:$8 sps:$4 sm:$0xff]  }
0x1391   : > { %v6729_v16 = vpack.c.bf16 %v6725_v37, %v6725_v37  ;;  %v6731_v4 = vpack.c.bf16 %v6727_v50, %v6727_v50  ;;  %v13762_v43 = vld [vmem:[#allocation44 + $0x80] ss:$8 sps:$4 sm:$0xff]   ;;  %v13770_v22 = vld [vmem:[#allocation44 + $0x94] ss:$8 sps:$4 sm:$0xff]   ;;  %v13768_v40 = vld [vmem:[#allocation44 + $0x90] ss:$8 sps:$4 sm:$0xff]  }
0x1392   : > { %v6730_v32 = vpack.c.bf16 %v6726_v26, %v6726_v26  ;;  %v6732_v62 = vpack.c.bf16 %v6728_v45, %v6728_v45  ;;  %v13765_v30 = vld [vmem:[#allocation41 + $0x90] ss:$8 sps:$4 sm:$0xff]   ;;  %v13773_v29 = vld [vmem:[#allocation41 + $0xa4] ss:$8 sps:$4 sm:$0xff]   ;;  %v13771_v58 = vld [vmem:[#allocation41 + $0xa0] ss:$8 sps:$4 sm:$0xff]  }
0x1393   : > { %v13776_v46 = vld [vmem:[#allocation44 + $0xa4] ss:$8 sps:$4 sm:$0xff]   ;;  %v13774_v37 = vld [vmem:[#allocation44 + $0xa0] ss:$8 sps:$4 sm:$0xff]   ;;  %v13779_v50 = vld [vmem:[#allocation41 + $0xb4] ss:$8 sps:$4 sm:$0xff]  }
0x1394   : > { %7149 = vmatprep.mubr.bf16.mxu1 %v6730_v32  ;;  %7190 = vmatprep.mubr.bf16.mxu0 %v6732_v62  ;;  %v13782_v51 = vld [vmem:[#allocation44 + $0xb4] ss:$8 sps:$4 sm:$0xff]   ;;  %v13780_v26 = vld [vmem:[#allocation44 + $0xb0] ss:$8 sps:$4 sm:$0xff]   ;;  %v13785_v45 = vld [vmem:[#allocation41 + $0xc4] ss:$8 sps:$4 sm:$0xff]  }
0x1395   : > { %7150 = vmatmul.mubr.bf16.vlgmr.msra.gmra.mrb[44].mxu1 %v6729_v16  ;;  %7191 = vmatmul.mubr.bf16.vlgmr.msra.gmra.mrb[48].mxu0 %v6731_v4  ;;  %v13777_v20 = vld [vmem:[#allocation41 + $0xb0] ss:$8 sps:$4 sm:$0xff]   ;;  %v13783_v62 = vld [vmem:[#allocation41 + $0xc0] ss:$8 sps:$4 sm:$0xff]  }
0x1396   : > { %7424 = vmatpush1.bf16.msra.mxu1 %v13711_v5  ;;  %7669 = vmatpush1.bf16.msra.mxu0 %v13714_v48  ;;  %v13788_v32 = vld [vmem:[#allocation44 + $0xc4] ss:$8 sps:$4 sm:$0xff]   ;;  %v13786_v5 = vld [vmem:[#allocation44 + $0xc0] ss:$8 sps:$4 sm:$0xff]   ;;  %v13791_v48 = vld [vmem:[#allocation41 + $0xd4] ss:$8 sps:$4 sm:$0xff]  }
0x1397   : > { %7425 = vmatprep.subr.bf16.mxu1 %v13719_v61  ;;  %7670 = vmatprep.subr.bf16.mxu0 %v13722_v57  ;;  %v13794_v16 = vld [vmem:[#allocation44 + $0xd4] ss:$8 sps:$4 sm:$0xff]   ;;  %v13792_v61 = vld [vmem:[#allocation44 + $0xd0] ss:$8 sps:$4 sm:$0xff]   ;;  %v13797_v57 = vld [vmem:[#allocation41 + $0xe4] ss:$8 sps:$4 sm:$0xff]  }
0x1398   : > { %v13789_v4 = vld [vmem:[#allocation41 + $0xd0] ss:$8 sps:$4 sm:$0xff]  }
0x139a   : > { %7426 = vmatpush1.bf16.msra.mxu1 %v13717_v17  ;;  %7671 = vmatpush1.bf16.msra.mxu0 %v13720_v59  ;;  %v13800_v17 = vld [vmem:[#allocation44 + $0xe4] ss:$8 sps:$4 sm:$0xff]  }
0x139b   : > { %7427 = vmatprep.subr.bf16.mxu1 %v13725_v21  ;;  %7672 = vmatprep.subr.bf16.mxu0 %v13728_v8  ;;  %v13795_v59 = vld [vmem:[#allocation41 + $0xe0] ss:$8 sps:$4 sm:$0xff]   ;;  %v13803_v8 = vld [vmem:[#allocation41 + $0xf4] ss:$8 sps:$4 sm:$0xff]  }
0x139c   : > { %v13798_v21 = vld [vmem:[#allocation44 + $0xe0] ss:$8 sps:$4 sm:$0xff]  }
0x139e   : > { %7428 = vmatpush1.bf16.msra.mxu1 %v13723_v39  ;;  %7673 = vmatpush1.bf16.msra.mxu0 %v13726_v24  ;;  %v13806_v39 = vld [vmem:[#allocation44 + $0xf4] ss:$8 sps:$4 sm:$0xff]  }
0x139f   : > { %7429 = vmatprep.subr.bf16.mxu1 %v13731_v3  ;;  %7674 = vmatprep.subr.bf16.mxu0 %v13734_v36  ;;  %v13801_v24 = vld [vmem:[#allocation41 + $0xf0] ss:$8 sps:$4 sm:$0xff]   ;;  %v7201_v36 = vld [vmem:[#allocation39] sm:$0x3] }
0x13a0   : > { %v13804_v3 = vld [vmem:[#allocation44 + $0xf0] ss:$8 sps:$4 sm:$0xff]  }
0x13a2   : > { %7430 = vmatpush1.bf16.msra.mxu1 %v13729_v19  ;;  %7675 = vmatpush1.bf16.msra.mxu0 %v13732_v54 }
0x13a3   : > { %7431 = vmatprep.subr.bf16.mxu1 %v13737_v1  ;;  %7676 = vmatprep.subr.bf16.mxu0 %v13740_v47  ;;  %v7206_v47 = vrot.slane %v7201_v36, %v17733_v11 }
0x13a6   : > { %7432 = vmatpush1.bf16.msra.mxu1 %v13735_v18  ;;  %7677 = vmatpush1.bf16.msra.mxu0 %v13738_v49 }
0x13a7   : > { %7433 = vmatprep.subr.bf16.mxu1 %v13743_v56  ;;  %7678 = vmatprep.subr.bf16.mxu0 %v13746_v15  ;;  %v7210_v15 = vrot.slane %v7201_v36, %v17734_v27  ;;  %v7496_v36 = vld [vmem:[#allocation45] sm:$0x3] }
0x13aa   : > { %7434 = vmatpush1.bf16.msra.mxu1 %v13741_v34  ;;  %7679 = vmatpush1.bf16.msra.mxu0 %v13744_v35 }
0x13ab   : > { %7435 = vmatprep.subr.bf16.mxu1 %v13749_v12  ;;  %7680 = vmatprep.subr.bf16.mxu0 %v13752_v63 }
0x13ae   : > { %7436 = vmatpush1.bf16.msra.mxu1 %v13747_v9  ;;  %7681 = vmatpush1.bf16.msra.mxu0 %v13750_v41 }
0x13af   : > { %7437 = vmatprep.subr.bf16.mxu1 %v13755_v31  ;;  %7682 = vmatprep.subr.bf16.mxu0 %v13758_v10 }
0x13b2   : > { %7438 = vmatpush1.bf16.msra.mxu1 %v13753_v6  ;;  %7683 = vmatpush1.bf16.msra.mxu0 %v13756_v25 }
0x13b3   : > { %7439 = vmatprep.subr.bf16.mxu1 %v13761_v7  ;;  %7684 = vmatprep.subr.bf16.mxu0 %v13764_v60 }
0x13b6   : > { %7440 = vmatpush1.bf16.msra.mxu1 %v13759_v13  ;;  %7685 = vmatpush1.bf16.msra.mxu0 %v13762_v43  ;;  %v13807_v13 = vld [vmem:[#allocation47 + $0x40] sm:$0xff]  }
0x13b7   : > { %7441 = vmatprep.subr.bf16.mxu1 %v13767_v2  ;;  %7686 = vmatprep.subr.bf16.mxu0 %v13770_v22  ;;  %v13808_v43 = vld [vmem:[#allocation47 + $0x1c0] sm:$0xff]   ;;  %v13812_v22 = vld [vmem:[#allocation47 + $0x1c8] sm:$0xff]  }
0x13b8   : > { %v13809_v2 = vld [vmem:[#allocation47] sm:$0xff]  }
0x13ba   : > { %7442 = vmatpush1.bf16.msra.mxu1 %v13765_v30  ;;  %7687 = vmatpush1.bf16.msra.mxu0 %v13768_v40  ;;  %v13813_v30 = vld [vmem:[#allocation47 + $0x8] sm:$0xff]   ;;  %v13816_v40 = vld [vmem:[#allocation47 + $0x1d0] sm:$0xff]  }
0x13bb   : > { %7443 = vmatprep.subr.bf16.mxu1 %v13773_v29  ;;  %7688 = vmatprep.subr.bf16.mxu0 %v13776_v46  ;;  %v13817_v29 = vld [vmem:[#allocation47 + $0x10] sm:$0xff]  }
0x13bc   : > { %v13818_v46 = vld [vmem:[#allocation47 + $0x190] sm:$0xff]  }
0x13be   : > { %7444 = vmatpush1.bf16.msra.mxu1 %v13771_v58  ;;  %7689 = vmatpush1.bf16.msra.mxu0 %v13774_v37  ;;  %v13819_v58 = vld [vmem:[#allocation47 + $0x58] sm:$0xff]  }
0x13bf   : > { %7445 = vmatprep.subr.bf16.mxu1 %v13779_v50  ;;  %7690 = vmatprep.subr.bf16.mxu0 %v13782_v51  ;;  %v13820_v37 = vld [vmem:[#allocation47 + $0x1d8] sm:$0xff]  }
0x13c0   : > { %v13821_v50 = vld [vmem:[#allocation47 + $0x18] sm:$0xff]  }
0x13c1   : > { %v13822_v51 = vld [vmem:[#allocation47 + $0x198] sm:$0xff]  }
0x13c2   : > { %7446 = vmatpush1.bf16.msra.mxu1 %v13777_v20  ;;  %7691 = vmatpush1.bf16.msra.mxu0 %v13780_v26  ;;  %v13823_v20 = vld [vmem:[#allocation47 + $0x60] sm:$0xff]  }
0x13c3   : > { %7447 = vmatprep.subr.bf16.mxu1 %v13785_v45  ;;  %7692 = vmatprep.subr.bf16.mxu0 %v13788_v32  ;;  %v13824_v26 = vld [vmem:[#allocation47 + $0x1e0] sm:$0xff]  }
0x13c4   : > { %v13825_v45 = vld [vmem:[#allocation47 + $0x20] sm:$0xff]  }
0x13c5   : > { %v13826_v32 = vld [vmem:[#allocation47 + $0x1a0] sm:$0xff]  }
0x13c6   : > { %7448 = vmatpush1.bf16.msra.mxu1 %v13783_v62  ;;  %7693 = vmatpush1.bf16.msra.mxu0 %v13786_v5  ;;  %v13827_v62 = vld [vmem:[#allocation47 + $0x68] sm:$0xff]  }
0x13c7   : > { %7449 = vmatprep.subr.bf16.mxu1 %v13791_v48  ;;  %7694 = vmatprep.subr.bf16.mxu0 %v13794_v16  ;;  %v13828_v5 = vld [vmem:[#allocation47 + $0x1e8] sm:$0xff]  }
0x13c8   : > { %v13829_v48 = vld [vmem:[#allocation47 + $0x28] sm:$0xff]  }
0x13c9   : > { %v13830_v16 = vld [vmem:[#allocation47 + $0x1a8] sm:$0xff]  }
0x13ca   : > { %7450 = vmatpush1.bf16.msra.mxu1 %v13789_v4  ;;  %7695 = vmatpush1.bf16.msra.mxu0 %v13792_v61  ;;  %v13831_v4 = vld [vmem:[#allocation47 + $0x70] sm:$0xff]  }
0x13cb   : > { %7451 = vmatprep.subr.bf16.mxu1 %v13797_v57  ;;  %7696 = vmatprep.subr.bf16.mxu0 %v13800_v17  ;;  %v13832_v61 = vld [vmem:[#allocation47 + $0x1f0] sm:$0xff]  }
0x13cc   : > { %v13833_v57 = vld [vmem:[#allocation47 + $0x30] sm:$0xff]  }
0x13cd   : > { %v13834_v17 = vld [vmem:[#allocation47 + $0x1b0] sm:$0xff]  }
0x13ce   : > { %7452 = vmatpush1.bf16.msra.mxu1 %v13795_v59  ;;  %7697 = vmatpush1.bf16.msra.mxu0 %v13798_v21  ;;  %v13835_v59 = vld [vmem:[#allocation47 + $0x78] sm:$0xff]  }
0x13cf   : > { %7453 = vmatprep.subr.bf16.mxu1 %v13803_v8  ;;  %7698 = vmatprep.subr.bf16.mxu0 %v13806_v39  ;;  %v13836_v21 = vld [vmem:[#allocation47 + $0x1f8] sm:$0xff]  }
0x13d0   : > { %v13837_v8 = vld [vmem:[#allocation47 + $0x38] sm:$0xff]  }
0x13d1   : > { %v13838_v39 = vld [vmem:[#allocation47 + $0x1b8] sm:$0xff]  }
0x13d2   : > { %7454 = vmatpush1.bf16.msra.mxu1 %v13801_v24  ;;  %7699 = vmatpush1.bf16.msra.mxu0 %v13804_v3  ;;  %v13839_v24 = vld [vmem:[#allocation47 + $0xc0] sm:$0xff]  }
0x13d3   : > { %12166 = vmatprep.subr.bf16.mxu1 %v13807_v13  ;;  %12188 = vmatprep.subr.bf16.mxu0 %v13808_v43  ;;  %v13840_v3 = vld [vmem:[#allocation47 + $0x140] sm:$0xff]  }
0x1468   : > { %v7151_v19 = vpop.f32.mrb[44].mxu1  ;;  %v7192_v54 = vpop.f32.mrb[48].mxu0 }
0x1469   : > { %v7193_v1 = vadd.f32 %v7192_v54, %v7151_v19  ;;  %v7153_v18 = vpop.f32.mrb[45].mxu1  ;;  %v7194_v49 = vpop.f32.mrb[49].mxu0  ;;  %v7501_v19 = vrot.slane %v7496_v36, %v17733_v11  ;;  %v7505_v54 = vrot.slane %v7496_v36, %v17734_v27  ;;  %v13867_v36 = vld [vmem:[#allocation47 + $0xf8] sm:$0xff]  }
0x146a   : > { %v7195_v56 = vadd.f32 %v7194_v49, %v7153_v18  ;;  %v7155_v34 = vpop.f32.mrb[46].mxu1  ;;  %v7196_v35 = vpop.f32.mrb[50].mxu0 }
0x146b   : > { %v7199_v12 = vadd.f32 %v7193_v1, %v16828_v44  ;;  %v7156_v63 = vpop.f32.mrb[47].mxu1  ;;  %v7197_v9 = vpop.f32.mrb[51].mxu0  ;;  %v13810_v44 = vld [vmem:[#allocation47 + $0x180] sm:$0xff]  }
0x146c   : > { %v7200_v41 = vadd.f32 %v7195_v56, %v16830_v0  ;;  %v13811_v0 = vld [vmem:[#allocation47 + $0x48] sm:$0xff]  }
0x146d   : > { %v7213_v31 = vadd.f32 %v7206_v47, %v7199_v12 }
0x146e   : > { %v7214_v10 = vadd.f32 %v7210_v15, %v7200_v41 }
0x146f   : > { %v7215_v6 = vadd.f32 %v7213_v31, %v16690_v55  ;;  %v13814_v55 = vld [vmem:[#allocation47 + $0x188] sm:$0xff]  }
0x1470   : > { %v7216_v25 = vadd.f32 %v7214_v10, %v16692_v52  ;;  %v13815_v52 = vld [vmem:[#allocation47 + $0x50] sm:$0xff]  }
0x1471   : > { %v7217_v60 = vpack.c.bf16 %v7215_v6, %v7215_v6 }
0x1472   : > { %v7218_v7 = vpack.c.bf16 %v7216_v25, %v7216_v25 }
0x1474   : > { %7455 = vmatprep.mubr.bf16.mxu1 %v7218_v7  ;;  %7700 = vmatprep.mubr.bf16.mxu0 %v7218_v7  ;;  %v7251_v7 = vld [vmem:[#allocation42] sm:$0x3] }
0x1475   : > { %7456 = vmatmul.mubr.bf16.vlgmr.msra.gmra.mrb[48].mxu1 %v7217_v60  ;;  %7701 = vmatmul.mubr.bf16.vlgmr.msra.gmra.mrb[52].mxu0 %v7217_v60  ;;  %v7256_v60 = vrot.slane %v7251_v7, %v17733_v11  ;;  %v7260_v13 = vrot.slane %v7251_v7, %v17734_v27  ;;  %v13845_v27 = vld [vmem:[#allocation47 + $0x88] sm:$0xff]   ;;  %v13886_v7 = vld [vmem:[#allocation53 + $0x38] sm:$0xff]  }
0x1476   : > { %12167 = vmatpush3.bf16.msra.mxu1 %v13809_v2  ;;  %12189 = vmatpush3.bf16.msra.mxu0 %v13810_v44 }
0x1477   : > { %12168 = vmatprep.subr.bf16.mxu1 %v13811_v0  ;;  %12190 = vmatprep.subr.bf16.mxu0 %v13812_v22 }
0x147a   : > { %12169 = vmatpush3.bf16.msra.mxu1 %v13813_v30  ;;  %12191 = vmatpush3.bf16.msra.mxu0 %v13814_v55 }
0x147b   : > { %12170 = vmatprep.subr.bf16.mxu1 %v13815_v52  ;;  %12192 = vmatprep.subr.bf16.mxu0 %v13816_v40  ;;  %v13841_v52 = vld [vmem:[#allocation47 + $0x80] sm:$0xff]  }
0x147c   : > { %v13842_v40 = vld [vmem:[#allocation47 + $0x100] sm:$0xff]  }
0x147e   : > { %12171 = vmatpush3.bf16.msra.mxu1 %v13817_v29  ;;  %12193 = vmatpush3.bf16.msra.mxu0 %v13818_v46  ;;  %v13843_v46 = vld [vmem:[#allocation47 + $0xc8] sm:$0xff]  }
0x147f   : > { %12172 = vmatprep.subr.bf16.mxu1 %v13819_v58  ;;  %12194 = vmatprep.subr.bf16.mxu0 %v13820_v37  ;;  %v13844_v58 = vld [vmem:[#allocation47 + $0x148] sm:$0xff]  }
0x1480   : > { %v13846_v37 = vld [vmem:[#allocation47 + $0x108] sm:$0xff]  }
0x1482   : > { %12173 = vmatpush3.bf16.msra.mxu1 %v13821_v50  ;;  %12195 = vmatpush3.bf16.msra.mxu0 %v13822_v51  ;;  %v13847_v50 = vld [vmem:[#allocation47 + $0xd0] sm:$0xff]  }
0x1483   : > { %12174 = vmatprep.subr.bf16.mxu1 %v13823_v20  ;;  %12196 = vmatprep.subr.bf16.mxu0 %v13824_v26  ;;  %v13848_v51 = vld [vmem:[#allocation47 + $0x150] sm:$0xff]  }
0x1484   : > { %v13849_v20 = vld [vmem:[#allocation47 + $0x90] sm:$0xff]  }
0x1485   : > { %v13850_v26 = vld [vmem:[#allocation47 + $0x110] sm:$0xff]  }
0x1486   : > { %12175 = vmatpush3.bf16.msra.mxu1 %v13825_v45  ;;  %12197 = vmatpush3.bf16.msra.mxu0 %v13826_v32  ;;  %v13851_v45 = vld [vmem:[#allocation47 + $0xd8] sm:$0xff]  }
0x1487   : > { %12176 = vmatprep.subr.bf16.mxu1 %v13827_v62  ;;  %12198 = vmatprep.subr.bf16.mxu0 %v13828_v5  ;;  %v13852_v32 = vld [vmem:[#allocation47 + $0x158] sm:$0xff]  }
0x1488   : > { %v13853_v62 = vld [vmem:[#allocation47 + $0x98] sm:$0xff]  }
0x1489   : > { %v13854_v5 = vld [vmem:[#allocation47 + $0x118] sm:$0xff]  }
0x148a   : > { %12177 = vmatpush3.bf16.msra.mxu1 %v13829_v48  ;;  %12199 = vmatpush3.bf16.msra.mxu0 %v13830_v16  ;;  %v13855_v48 = vld [vmem:[#allocation47 + $0xe0] sm:$0xff]  }
0x148b   : > { %12178 = vmatprep.subr.bf16.mxu1 %v13831_v4  ;;  %12200 = vmatprep.subr.bf16.mxu0 %v13832_v61  ;;  %v13856_v16 = vld [vmem:[#allocation47 + $0x160] sm:$0xff]  }
0x148c   : > { %v13857_v4 = vld [vmem:[#allocation47 + $0xa0] sm:$0xff]  }
0x148d   : > { %v13858_v61 = vld [vmem:[#allocation47 + $0x120] sm:$0xff]  }
0x148e   : > { %12179 = vmatpush3.bf16.msra.mxu1 %v13833_v57  ;;  %12201 = vmatpush3.bf16.msra.mxu0 %v13834_v17  ;;  %v13859_v57 = vld [vmem:[#allocation47 + $0xe8] sm:$0xff]  }
0x148f   : > { %12180 = vmatprep.subr.bf16.mxu1 %v13835_v59  ;;  %12202 = vmatprep.subr.bf16.mxu0 %v13836_v21  ;;  %v13860_v17 = vld [vmem:[#allocation47 + $0x168] sm:$0xff]  }
0x1490   : > { %v13861_v59 = vld [vmem:[#allocation47 + $0xa8] sm:$0xff]  }
0x1491   : > { %v13862_v21 = vld [vmem:[#allocation47 + $0x128] sm:$0xff]  }
0x1492   : > { %12181 = vmatpush3.bf16.msra.mxu1 %v13837_v8  ;;  %12203 = vmatpush3.bf16.msra.mxu0 %v13838_v39  ;;  %v13863_v8 = vld [vmem:[#allocation47 + $0xf0] sm:$0xff]  }
0x1493   : > { %12210 = vmatprep.subr.bf16.mxu1 %v13839_v24  ;;  %12232 = vmatprep.subr.bf16.mxu0 %v13840_v3  ;;  %v13864_v39 = vld [vmem:[#allocation47 + $0x170] sm:$0xff]  }
0x1494   : > { %v13865_v24 = vld [vmem:[#allocation47 + $0xb0] sm:$0xff]  }
0x1495   : > { %v13866_v3 = vld [vmem:[#allocation47 + $0x130] sm:$0xff]  }
0x1548   : > { %v7457_v1 = vpop.f32.mrb[48].mxu1  ;;  %v7702_v47 = vpop.f32.mrb[52].mxu0 }
0x1549   : > { %v7703_v18 = vadd.f32 %v7702_v47, %v7501_v19  ;;  %v7459_v49 = vpop.f32.mrb[49].mxu1  ;;  %v7704_v56 = vpop.f32.mrb[53].mxu0  ;;  %v7458_v43 = vadd.f32 %v7457_v1, %v7256_v60  ;;  %v13868_v19 = vld [vmem:[#allocation47 + $0x178] sm:$0xff]   ;;  %v13871_v47 = vld [vmem:[#allocation50] sm:$0xff]  }
0x154a   : > { %v7705_v15 = vadd.f32 %v7704_v56, %v7505_v54  ;;  %v7461_v34 = vpop.f32.mrb[50].mxu1  ;;  %v7706_v35 = vpop.f32.mrb[54].mxu0  ;;  %v7460_v44 = vadd.f32 %v7459_v49, %v7260_v13  ;;  %v13869_v54 = vld [vmem:[#allocation47 + $0xb8] sm:$0xff]   ;;  %v13873_v49 = vld [vmem:[#allocation50 + $0x8] sm:$0xff]  }
0x154b   : > { %v11818_v12 = vmul.f32 -1.442695, %v7703_v18  ;;  %v7462_v63 = vpop.f32.mrb[51].mxu1  ;;  %v7707_v9 = vpop.f32.mrb[55].mxu0  ;;  %v13870_v1 = vld [vmem:[#allocation47 + $0x138] sm:$0xff]   ;;  %v13872_v18 = vld [vmem:[#allocation53] sm:$0xff]  }
0x154c   : > { %v11819_v41 = vmul.f32 -1.442695, %v7705_v15  ;;  %v13874_v56 = vld [vmem:[#allocation53 + $0x8] sm:$0xff]   ;;  %v13876_v34 = vld [vmem:[#allocation53 + $0x10] sm:$0xff]   ;;  %v13879_v63 = vld [vmem:[#allocation50 + $0x20] sm:$0xff]  }
0x154d   : > { %13983 = vpow2.f32 %v11818_v12  ;;  %v13875_v15 = vld [vmem:[#allocation50 + $0x10] sm:$0xff]   ;;  %v13877_v35 = vld [vmem:[#allocation50 + $0x18] sm:$0xff]   ;;  %v13880_v9 = vld [vmem:[#allocation53 + $0x20] sm:$0xff]  }
0x154e   : > { %13985 = vpow2.f32 %v11819_v41  ;;  %v13878_v12 = vld [vmem:[#allocation53 + $0x18] sm:$0xff]   ;;  %v13881_v41 = vld [vmem:[#allocation50 + $0x28] sm:$0xff]  }
0x1557   : > { %v13984_v31 = vpop.eup %13983 }
0x1558   : > { %v13986_v10 = vpop.eup %13985  ;;  %v7715_v6 = vadd.f32 1.0, %v13984_v31  ;;  %v13882_v31 = vld [vmem:[#allocation53 + $0x28] sm:$0xff]  }
0x1559   : > { %v7716_v25 = vadd.f32 1.0, %v13986_v10  ;;  %v13883_v10 = vld [vmem:[#allocation50 + $0x30] sm:$0xff]  }
0x155a   : > { %13987 = vrcp.f32 %v7715_v6  ;;  %v13884_v6 = vld [vmem:[#allocation53 + $0x30] sm:$0xff]  }
0x155b   : > { %13989 = vrcp.f32 %v7716_v25  ;;  %v13885_v25 = vld [vmem:[#allocation50 + $0x38] sm:$0xff]  }
0x1564   : > { %v13988_v2 = vpop.eup %13987 }
0x1565   : > { %v13990_v0 = vpop.eup %13989  ;;  %v7721_v22 = vmul.f32 %v13988_v2, %v7458_v43 }
0x1566   : > { %v7722_v30 = vmul.f32 %v13990_v0, %v7460_v44 }
0x1567   : > { %v16868_v29 = vpack.c.bf16 %v7721_v22, %v7721_v22 }
0x1568   : > { %v7724_v55 = vpack.c.bf16 %v7722_v30, %v7722_v30 }
0x156a   : > { %7885 = vmatprep.mubr.bf16.mxu1 %v7724_v55  ;;  %8120 = vmatprep.mubr.bf16.mxu0 %v7724_v55 }
0x156b   : > { %7886 = vmatmul.mubr.bf16.vlgmr.msra.gmra.mrb[52].mxu1 %v16868_v29  ;;  %8121 = vmatmul.mubr.bf16.vlgmr.msra.gmra.mrb[56].mxu0 %v16868_v29 }
0x156c   : > { %12211 = vmatpush3.bf16.msra.mxu1 %v13841_v52  ;;  %12233 = vmatpush3.bf16.msra.mxu0 %v13842_v40 }
0x156d   : > { %8260 = vmatprep.mubr.bf16.mxu1 %v7724_v55  ;;  %8409 = vmatprep.mubr.bf16.mxu0 %v7724_v55 }
0x156e   : > { %12212 = vmatprep.subr.bf16.mxu1 %v13843_v46  ;;  %12234 = vmatprep.subr.bf16.mxu0 %v13844_v58 }
0x1570   : > { %12213 = vmatpush3.bf16.msra.mxu1 %v13845_v27  ;;  %12235 = vmatpush3.bf16.msra.mxu0 %v13846_v37 }
0x1571   : > { %12214 = vmatprep.subr.bf16.mxu1 %v13847_v50  ;;  %12236 = vmatprep.subr.bf16.mxu0 %v13848_v51 }
0x1574   : > { %12215 = vmatpush3.bf16.msra.mxu1 %v13849_v20  ;;  %12237 = vmatpush3.bf16.msra.mxu0 %v13850_v26 }
0x1575   : > { %12216 = vmatprep.subr.bf16.mxu1 %v13851_v45  ;;  %12238 = vmatprep.subr.bf16.mxu0 %v13852_v32 }
0x1578   : > { %12217 = vmatpush3.bf16.msra.mxu1 %v13853_v62  ;;  %12239 = vmatpush3.bf16.msra.mxu0 %v13854_v5  ;;  %v11868_v62 = vld [vmem:[#allocation48] ss:$0 sm:$0xff] }
0x1579   : > { %12218 = vmatprep.subr.bf16.mxu1 %v13855_v48  ;;  %12240 = vmatprep.subr.bf16.mxu0 %v13856_v16 }
0x157c   : > { %12219 = vmatpush3.bf16.msra.mxu1 %v13857_v4  ;;  %12241 = vmatpush3.bf16.msra.mxu0 %v13858_v61 }
0x157d   : > { %12220 = vmatprep.subr.bf16.mxu1 %v13859_v57  ;;  %12242 = vmatprep.subr.bf16.mxu0 %v13860_v17 }
0x1580   : > { %12221 = vmatpush3.bf16.msra.mxu1 %v13861_v59  ;;  %12243 = vmatpush3.bf16.msra.mxu0 %v13862_v21 }
0x1581   : > { %12222 = vmatprep.subr.bf16.mxu1 %v13863_v8  ;;  %12244 = vmatprep.subr.bf16.mxu0 %v13864_v39 }
0x1584   : > { %12223 = vmatpush3.bf16.msra.mxu1 %v13865_v24  ;;  %12245 = vmatpush3.bf16.msra.mxu0 %v13866_v3 }
0x1585   : > { %12224 = vmatprep.subr.bf16.mxu1 %v13867_v36  ;;  %12246 = vmatprep.subr.bf16.mxu0 %v13868_v19  ;;  %v13887_v36 = vld [vmem:[%s17743_s12] sm:$0xff]  }
0x1586   : > { %v13888_v19 = vld [vmem:[%s17743_s12 + $0xc0] sm:$0xff]  }
0x1588   : > { %12225 = vmatpush3.bf16.msra.mxu1 %v13869_v54  ;;  %12247 = vmatpush3.bf16.msra.mxu0 %v13870_v1  ;;  %v13891_v54 = vld [vmem:[%s17743_s12 + $0x10] sm:$0xff]  }
0x1589   : > { %12496 = vmatprep.subr.bf16.mxu1 %v15218_v28  ;;  %12516 = vmatprep.subr.bf16.mxu0 %v15218_v28  ;;  %v13892_v1 = vld [vmem:[%s17743_s12 + $0xd0] sm:$0xff]  }
0x158b   : > { %8261 = vmatmul.mubr.bf16.vlgmr.msra.gmra.mrb[56].mxu1 %v16868_v29  ;;  %8410 = vmatmul.mubr.bf16.vlgmr.msra.gmra.mrb[60].mxu0 %v16868_v29 }
0x158c   : > { %12512 = vmatprep.mubr.msk.bf16.mxu1 %vm15219_vm4, %v15218_v28  ;;  %12532 = vmatprep.mubr.msk.bf16.mxu0 %vm15219_vm4, %v15218_v28 }
0x158d   : > { %12497 = vmatpush3.bf16.msra.mxu1 %v13871_v47  ;;  %12517 = vmatpush3.bf16.msra.mxu0 %v13872_v18  ;;  %v13893_v47 = vld [vmem:[%s17743_s12 + $0x18] sm:$0xff]  }
0x158e   : > { %12498 = vmatprep.subr.bf16.mxu1 %v15218_v28  ;;  %12518 = vmatprep.subr.bf16.mxu0 %v15218_v28  ;;  %v13894_v18 = vld [vmem:[%s17743_s12 + $0xd8] sm:$0xff]  }
0x1591   : > { %12499 = vmatpush3.bf16.msra.mxu1 %v13873_v49  ;;  %12519 = vmatpush3.bf16.msra.mxu0 %v13874_v56  ;;  %v13895_v49 = vld [vmem:[%s17743_s12 + $0x20] sm:$0xff]  }
0x1592   : > { %12500 = vmatprep.subr.bf16.mxu1 %v15218_v28  ;;  %12520 = vmatprep.subr.bf16.mxu0 %v15218_v28  ;;  %v13896_v56 = vld [vmem:[%s17743_s12 + $0xe0] sm:$0xff]  }
0x1595   : > { %12501 = vmatpush3.bf16.msra.mxu1 %v13875_v15  ;;  %12521 = vmatpush3.bf16.msra.mxu0 %v13876_v34  ;;  %v13897_v15 = vld [vmem:[%s17743_s12 + $0x28] sm:$0xff]  }
0x1596   : > { %12502 = vmatprep.subr.bf16.mxu1 %v15218_v28  ;;  %12522 = vmatprep.subr.bf16.mxu0 %v15218_v28  ;;  %v13898_v34 = vld [vmem:[%s17743_s12 + $0xe8] sm:$0xff]  }
0x1599   : > { %12503 = vmatpush3.bf16.msra.mxu1 %v13877_v35  ;;  %12523 = vmatpush3.bf16.msra.mxu0 %v13878_v12  ;;  %v13899_v35 = vld [vmem:[%s17743_s12 + $0x30] sm:$0xff]  }
0x159a   : > { %12504 = vmatprep.subr.bf16.mxu1 %v15218_v28  ;;  %12524 = vmatprep.subr.bf16.mxu0 %v15218_v28  ;;  %v13900_v12 = vld [vmem:[%s17743_s12 + $0xf0] sm:$0xff]  }
0x159d   : > { %12505 = vmatpush3.bf16.msra.mxu1 %v13879_v63  ;;  %12525 = vmatpush3.bf16.msra.mxu0 %v13880_v9  ;;  %v13901_v63 = vld [vmem:[%s17743_s12 + $0x38] sm:$0xff]  }
0x159e   : > { %12506 = vmatprep.subr.bf16.mxu1 %v15218_v28  ;;  %12526 = vmatprep.subr.bf16.mxu0 %v15218_v28  ;;  %v13902_v9 = vld [vmem:[%s17743_s12 + $0xf8] sm:$0xff]  }
0x15a1   : > { %12507 = vmatpush3.bf16.msra.mxu1 %v13881_v41  ;;  %12527 = vmatpush3.bf16.msra.mxu0 %v13882_v31  ;;  %v11894_v41 = vld [vmem:[#allocation54] ss:$0 sm:$0xff] }
0x15a2   : > { %12508 = vmatprep.subr.bf16.mxu1 %v15218_v28  ;;  %12528 = vmatprep.subr.bf16.mxu0 %v15218_v28 }
0x15a5   : > { %12509 = vmatpush3.bf16.msra.mxu1 %v13883_v10  ;;  %12529 = vmatpush3.bf16.msra.mxu0 %v13884_v6 }
0x15a6   : > { %12510 = vmatprep.subr.bf16.mxu1 %v15218_v28  ;;  %12530 = vmatprep.subr.bf16.mxu0 %v15218_v28 }
0x15a9   : > { %12511 = vmatpush3.bf16.msra.mxu1 %v13885_v25  ;;  %12531 = vmatpush3.bf16.msra.mxu0 %v13886_v7 }
0x15aa   : > { %12536 = vmatprep.subr.bf16.mxu1 %v15218_v28  ;;  %12556 = vmatprep.subr.bf16.mxu0 %v15218_v28 }
0x163e   : > { %v12182_v60 = vpop.f32.mrb[52].mxu1  ;;  %v12204_v13 = vpop.f32.mrb[56].mxu0 }
0x163f   : > { %v12183_v43 = vpop.f32.mrb[53].mxu1  ;;  %v12205_v2 = vpop.f32.mrb[57].mxu0 }
0x1640   : > { %v12184_v44 = vadd.f32 %v12183_v43, %v12182_v60  ;;  %v12206_v0 = vadd.f32 %v12205_v2, %v12204_v13  ;;  %v12185_v22 = vpop.f32.mrb[54].mxu1  ;;  %v12207_v30 = vpop.f32.mrb[58].mxu0 }
0x1641   : > { %v12186_v55 = vpop.f32.mrb[55].mxu1  ;;  %v12208_v52 = vpop.f32.mrb[59].mxu0 }
0x1642   : > { %v8277_v40 = vrot.slane %v12184_v44, 1  ;;  %v8129_v29 = vrot.slane %v12206_v0, 7 }
0x1644   : > { %v8280_v45 = vsel %vm8279_vm8, %v8277_v40, 0.0  ;;  %v8131_v32 = vsel %vm2714_vm0, 0.0, %v8129_v29  ;;  %v11885_v29 = vld [vmem:[#allocation51] ss:$0 sm:$0xff] }
0x165e   : > { %v12226_v46 = vpop.f32.mrb[56].mxu1  ;;  %v12248_v58 = vpop.f32.mrb[60].mxu0 }
0x165f   : > { %v12227_v27 = vpop.f32.mrb[57].mxu1  ;;  %v12249_v37 = vpop.f32.mrb[61].mxu0 }
0x1660   : > { %v12228_v50 = vadd.f32 %v12227_v27, %v12226_v46  ;;  %v12250_v51 = vadd.f32 %v12249_v37, %v12248_v58  ;;  %v12229_v20 = vpop.f32.mrb[58].mxu1  ;;  %v12251_v26 = vpop.f32.mrb[62].mxu0 }
0x1661   : > { %v12230_v5 = vpop.f32.mrb[59].mxu1  ;;  %v12252_v48 = vpop.f32.mrb[63].mxu0  ;;  %v13903_v20 = vld [vmem:[%s17743_s12 + $0x40] sm:$0xff]  }
0x1662   : > { %v8263_v16 = vadd.f32 %v12228_v50, %v8131_v32  ;;  %v8412_v4 = vadd.f32 %v12250_v51, %v8280_v45  ;;  %v13904_v26 = vld [vmem:[%s17743_s12 + $0x80] sm:$0xff]   ;;  %v13905_v32 = vld [vmem:[%s17743_s12 + $0x48] sm:$0xff]   ;;  %v13907_v5 = vld [vmem:[%s17743_s12 + $0x50] sm:$0xff]  }
0x1663   : > { %v13908_v48 = vld [vmem:[%s17743_s12 + $0x90] sm:$0xff]  }
0x1664   : > { %v8275_v61 = vadd.f32 %v11868_v62, %v8263_v16  ;;  %v8417_v57 = vadd.f32 %v11868_v62, %v8412_v4  ;;  %v13906_v62 = vld [vmem:[%s17743_s12 + $0x88] sm:$0xff]   ;;  %v13909_v16 = vld [vmem:[%s17743_s12 + $0x58] sm:$0xff]  }
0x1665   : > { %v13910_v4 = vld [vmem:[%s17743_s12 + $0x98] sm:$0xff]  }
0x1666   : > { %v8418_v17 = vmax.f32 %v8275_v61, 0.0  ;;  %v8419_v59 = vmax.f32 %v8417_v57, 0.0  ;;  %v13911_v61 = vld [vmem:[%s17743_s12 + $0x60] sm:$0xff]  }
0x1667   : > { %v13912_v57 = vld [vmem:[%s17743_s12 + $0xa0] sm:$0xff]  }
0x1668   : > { %8420 = vst [vmem:[#allocation5] ss:$2 sm:$0xff] %v8418_v17  ;;  %8422 = vst [vmem:[#allocation5 + $0x1] ss:$2 sm:$0xff] %v8419_v59  ;;  %v13913_v17 = vld [vmem:[%s17743_s12 + $0x68] sm:$0xff]  }
0x1669   : > { %v13914_v59 = vld [vmem:[%s17743_s12 + $0xa8] sm:$0xff]  }
0x166f   : > { %v8423_v21 = vld [vmem:[#allocation5] sm:$0xff]  ;;  %v8424_v8 = vld [vmem:[#allocation5 + $0x8] sm:$0xff] }
0x1670   : > { %v8425_v39 = vadd.f32 %v8423_v21, %v16608_v23  ;;  %v8426_v24 = vadd.f32 %v8424_v8, %v16611_v42  ;;  %v13889_v23 = vld [vmem:[%s17743_s12 + $0x8] sm:$0xff]   ;;  %v13915_v21 = vld [vmem:[%s17743_s12 + $0x70] sm:$0xff]  }
0x1671   : > { %v13890_v42 = vld [vmem:[%s17743_s12 + $0xc8] sm:$0xff]   ;;  %v13916_v8 = vld [vmem:[%s17743_s12 + $0xb0] sm:$0xff]  }
0x1672   : > { %v8427_v3 = vpack.c.bf16 %v8426_v24, %v8425_v39  ;;  %v13917_v39 = vld [vmem:[%s17743_s12 + $0x78] sm:$0xff]  }
0x1673   : > { %v13918_v24 = vld [vmem:[%s17743_s12 + $0xb8] sm:$0xff]  }
0x1674   : > { %12513 = vmatmul.mubr.bf16.vlgmr.msra.gmra.mrb[60].mxu1 %v8427_v3  ;;  %12533 = vmatmul.mubr.bf16.vlgmr.msra.gmra.mrb[64].mxu0 %v8427_v3  ;;  %v13919_v3 = vld [vmem:[#allocation57] sm:$0xff]  }
0x1675   : > { %12552 = vmatprep.mubr.msk.bf16.mxu1 %vm15219_vm4, %v15218_v28  ;;  %12572 = vmatprep.mubr.msk.bf16.mxu0 %vm15219_vm4, %v15218_v28 }
0x1676   : > { %12537 = vmatpush3.bf16.msra.mxu1 %v13887_v36  ;;  %12557 = vmatpush3.bf16.msra.mxu0 %v13888_v19  ;;  %v13920_v36 = vld [vmem:[#allocation57 + $0x8] sm:$0xff]   ;;  %v13921_v19 = vld [vmem:[#allocation57 + $0x10] sm:$0xff]  }
0x1677   : > { %12538 = vmatprep.subr.bf16.mxu1 %v15218_v28  ;;  %12558 = vmatprep.subr.bf16.mxu0 %v15218_v28 }
0x167a   : > { %12539 = vmatpush3.bf16.msra.mxu1 %v13889_v23  ;;  %12559 = vmatpush3.bf16.msra.mxu0 %v13890_v42  ;;  %v13922_v23 = vld [vmem:[#allocation57 + $0x18] sm:$0xff]   ;;  %v13923_v42 = vld [vmem:[#allocation60] sm:$0xff]  }
0x167b   : > { %12540 = vmatprep.subr.bf16.mxu1 %v15218_v28  ;;  %12560 = vmatprep.subr.bf16.mxu0 %v15218_v28 }
0x167e   : > { %12541 = vmatpush3.bf16.msra.mxu1 %v13891_v54  ;;  %12561 = vmatpush3.bf16.msra.mxu0 %v13892_v1 }
0x167f   : > { %12542 = vmatprep.subr.bf16.mxu1 %v15218_v28  ;;  %12562 = vmatprep.subr.bf16.mxu0 %v15218_v28 }
0x1682   : > { %12543 = vmatpush3.bf16.msra.mxu1 %v13893_v47  ;;  %12563 = vmatpush3.bf16.msra.mxu0 %v13894_v18 }
0x1683   : > { %12544 = vmatprep.subr.bf16.mxu1 %v15218_v28  ;;  %12564 = vmatprep.subr.bf16.mxu0 %v15218_v28 }
0x1686   : > { %12545 = vmatpush3.bf16.msra.mxu1 %v13895_v49  ;;  %12565 = vmatpush3.bf16.msra.mxu0 %v13896_v56 }
0x1687   : > { %12546 = vmatprep.subr.bf16.mxu1 %v15218_v28  ;;  %12566 = vmatprep.subr.bf16.mxu0 %v15218_v28 }
0x168a   : > { %12547 = vmatpush3.bf16.msra.mxu1 %v13897_v15  ;;  %12567 = vmatpush3.bf16.msra.mxu0 %v13898_v34 }
0x168b   : > { %12548 = vmatprep.subr.bf16.mxu1 %v15218_v28  ;;  %12568 = vmatprep.subr.bf16.mxu0 %v15218_v28 }
0x168e   : > { %12549 = vmatpush3.bf16.msra.mxu1 %v13899_v35  ;;  %12569 = vmatpush3.bf16.msra.mxu0 %v13900_v12 }
0x168f   : > { %12550 = vmatprep.subr.bf16.mxu1 %v15218_v28  ;;  %12570 = vmatprep.subr.bf16.mxu0 %v15218_v28 }
0x1692   : > { %12551 = vmatpush3.bf16.msra.mxu1 %v13901_v63  ;;  %12571 = vmatpush3.bf16.msra.mxu0 %v13902_v9 }
0x1693   : > { %12576 = vmatprep.subr.bf16.mxu1 %v15218_v28  ;;  %12596 = vmatprep.subr.bf16.mxu0 %v15218_v28 }
0x1747   : > { %v8533_v31 = vpop.f32.mrb[60].mxu1  ;;  %v8645_v10 = vpop.f32.mrb[64].mxu0 }
0x1748   : > { %v8646_v6 = vadd.f32 %v11894_v41, %v8645_v10  ;;  %v12514_v25 = vpop.f32.mrb[61].mxu1  ;;  %v12534_v7 = vpop.f32.mrb[65].mxu0  ;;  %v8534_v46 = vadd.f32 %v11885_v29, %v8533_v31 }
0x1749   : > { %v8536_v60 = vpop.f32.mrb[62].mxu1  ;;  %v8648_v13 = vpop.f32.mrb[66].mxu0 }
0x174a   : > { %v11903_v43 = vmul.f32 -1.442695, %v8646_v6  ;;  %v8649_v2 = vadd.f32 %v11894_v41, %v8648_v13  ;;  %v12515_v44 = vpop.f32.mrb[63].mxu1  ;;  %v12535_v0 = vpop.f32.mrb[67].mxu0  ;;  %v8537_v27 = vadd.f32 %v11885_v29, %v8536_v60  ;;  %v11977_v6 = vld [vmem:[#allocation56] ss:$0 sm:$0xff] }
0x174c   : > { %13991 = vpow2.f32 %v11903_v43  ;;  %v11904_v22 = vmul.f32 -1.442695, %v8649_v2 }
0x174e   : > { %13993 = vpow2.f32 %v11904_v22 }
0x1756   : > { %v13992_v30 = vpop.eup %13991 }
0x1757   : > { %v8658_v55 = vadd.f32 1.0, %v13992_v30 }
0x1758   : > { %v13994_v52 = vpop.eup %13993 }
0x1759   : > { %13995 = vrcp.f32 %v8658_v55  ;;  %v8659_v40 = vadd.f32 1.0, %v13994_v52 }
0x175b   : > { %13997 = vrcp.f32 %v8659_v40 }
0x1763   : > { %v13996_v58 = vpop.eup %13995 }
0x1764   : > { %v8664_v37 = vmul.f32 %v13996_v58, %v8534_v46 }
0x1765   : > { %v13998_v50 = vpop.eup %13997 }
0x1766   : > { %v8665_v51 = vmul.f32 %v13998_v50, %v8537_v27 }
0x1768   : > { %v8666_v45 = vpack.c.bf16 %v8665_v51, %v8664_v37 }
0x176a   : > { %12553 = vmatmul.mubr.bf16.vlgmr.msra.gmra.mrb[64].mxu1 %v8666_v45  ;;  %12573 = vmatmul.mubr.bf16.vlgmr.msra.gmra.mrb[68].mxu0 %v8666_v45 }
0x176b   : > { %12577 = vmatpush3.bf16.msra.mxu1 %v13903_v20  ;;  %12597 = vmatpush3.bf16.msra.mxu0 %v13904_v26 }
0x176c   : > { %12578 = vmatprep.subr.bf16.mxu1 %v15218_v28  ;;  %12598 = vmatprep.subr.bf16.mxu0 %v15218_v28 }
0x176d   : > { %12592 = vmatprep.mubr.msk.bf16.mxu1 %vm15219_vm4, %v15218_v28  ;;  %12612 = vmatprep.mubr.msk.bf16.mxu0 %vm15219_vm4, %v15218_v28 }
0x176f   : > { %12579 = vmatpush3.bf16.msra.mxu1 %v13905_v32  ;;  %12599 = vmatpush3.bf16.msra.mxu0 %v13906_v62 }
0x1770   : > { %12580 = vmatprep.subr.bf16.mxu1 %v15218_v28  ;;  %12600 = vmatprep.subr.bf16.mxu0 %v15218_v28 }
0x1773   : > { %12581 = vmatpush3.bf16.msra.mxu1 %v13907_v5  ;;  %12601 = vmatpush3.bf16.msra.mxu0 %v13908_v48 }
0x1774   : > { %12582 = vmatprep.subr.bf16.mxu1 %v15218_v28  ;;  %12602 = vmatprep.subr.bf16.mxu0 %v15218_v28 }
0x1777   : > { %12583 = vmatpush3.bf16.msra.mxu1 %v13909_v16  ;;  %12603 = vmatpush3.bf16.msra.mxu0 %v13910_v4 }
0x1778   : > { %12584 = vmatprep.subr.bf16.mxu1 %v15218_v28  ;;  %12604 = vmatprep.subr.bf16.mxu0 %v15218_v28 }
0x177b   : > { %12585 = vmatpush3.bf16.msra.mxu1 %v13911_v61  ;;  %12605 = vmatpush3.bf16.msra.mxu0 %v13912_v57  ;;  %v13924_v57 = vld [vmem:[#allocation60 + $0x8] sm:$0xff]  }
0x177c   : > { %12586 = vmatprep.subr.bf16.mxu1 %v15218_v28  ;;  %12606 = vmatprep.subr.bf16.mxu0 %v15218_v28 }
0x177f   : > { %12587 = vmatpush3.bf16.msra.mxu1 %v13913_v17  ;;  %12607 = vmatpush3.bf16.msra.mxu0 %v13914_v59  ;;  %v13928_v17 = vld [vmem:[#allocation63 + $0x60] sm:$0xff]  }
0x1780   : > { %12588 = vmatprep.subr.bf16.mxu1 %v15218_v28  ;;  %12608 = vmatprep.subr.bf16.mxu0 %v15218_v28  ;;  %v12034_v59 = vld [vmem:[%s17638_s9 + $0xa8] sm:$0xff] }
0x1783   : > { %12589 = vmatpush3.bf16.msra.mxu1 %v13915_v21  ;;  %12609 = vmatpush3.bf16.msra.mxu0 %v13916_v8  ;;  %v13929_v21 = vld [vmem:[#allocation63 + $0x8] sm:$0xff]  }
0x1784   : > { %12590 = vmatprep.subr.bf16.mxu1 %v15218_v28  ;;  %12610 = vmatprep.subr.bf16.mxu0 %v15218_v28  ;;  %v13930_v8 = vld [vmem:[#allocation63 + $0x68] sm:$0xff]  }
0x1787   : > { %12591 = vmatpush3.bf16.msra.mxu1 %v13917_v39  ;;  %12611 = vmatpush3.bf16.msra.mxu0 %v13918_v24  ;;  %v12036_v39 = vld [vmem:[%s17638_s9 + $0xb8] sm:$0xff]  ;;  %v9892_v24 = vld [vmem:[%s17638_s9] sm:$0xff] }
0x1788   : > { %12616 = vmatprep.subr.bf16.mxu1 %v13919_v3  ;;  %9910 = vperm.xlu1 %13081, %v9892_v24   ;;  %v12048_v24 = vld [vmem:[%s17638_s9 + $0x118] sm:$0xff] }
0x178a   : > { %12593 = vmatmul.mubr.bf16.vlgmr.msra.gmra.mrb[68].mxu1 %v8666_v45  ;;  %12613 = vmatmul.mubr.bf16.vlgmr.msra.gmra.mrb[72].mxu0 %v8666_v45 }
0x178b   : > { %12617 = vmatpush3.bf16.msra.mxu1 %v13919_v3  ;;  %v13931_v3 = vld [vmem:[#allocation63 + $0x10] sm:$0xff]  }
0x178c   : > { %12618 = vmatprep.subr.bf16.mxu1 %v13920_v36 }
0x178f   : > { %12619 = vmatpush3.bf16.msra.mxu1 %v13920_v36  ;;  %v13932_v36 = vld [vmem:[#allocation63 + $0x70] sm:$0xff]  }
0x1790   : > { %12620 = vmatprep.subr.bf16.mxu1 %v13921_v19 }
0x1793   : > { %12621 = vmatpush3.bf16.msra.mxu1 %v13921_v19  ;;  %v9893_v19 = vld [vmem:[%s17638_s9 + $0x8] sm:$0xff] }
0x1794   : > { %12622 = vmatprep.subr.bf16.mxu1 %v13922_v23  ;;  %9915 = vperm.xlu1 %13081, %v9893_v19  }
0x1797   : > { %12623 = vmatpush3.bf16.msra.mxu1 %v13922_v23  ;;  %v12038_v23 = vld [vmem:[%s17638_s9 + $0xc8] sm:$0xff] }
0x1798   : > { %12628 = vmatprep.subr.bf16.mxu1 %v13923_v42 }
0x183d   : > { %v8765_v54 = vpop.f32.mrb[64].mxu1  ;;  %v8905_v28 = vpop.f32.mrb[68].mxu0 }
0x183e   : > { %v12554_v1 = vpop.f32.mrb[65].mxu1  ;;  %v12574_v47 = vpop.f32.mrb[69].mxu0  ;;  %v9020_v56 = vrot.slane %v8765_v54, 1  ;;  %v8914_v15 = vrot.slane %v8905_v28, 7  ;;  %v13934_v54 = vld [vmem:[#allocation63 + $0x78] sm:$0xff]   ;;  %v9894_v28 = vld [vmem:[%s17638_s9 + $0x10] sm:$0xff] }
0x183f   : > { %v8768_v18 = vpop.f32.mrb[66].mxu1  ;;  %v8908_v49 = vpop.f32.mrb[70].mxu0  ;;  %v12040_v1 = vld [vmem:[%s17638_s9 + $0xd8] sm:$0xff]  ;;  %9920 = vperm.xlu1 %13081, %v9894_v28   ;;  %v16990_v47 = vld [vmem:[#allocation63 + $0x20] sm:$0xff]  }
0x1840   : > { %v9021_v34 = vrot.slane %v8768_v18, 1  ;;  %v8915_v35 = vrot.slane %v8908_v49, 7  ;;  %v12555_v12 = vpop.f32.mrb[67].mxu1  ;;  %v12575_v63 = vpop.f32.mrb[71].mxu0  ;;  %v8919_v31 = vsel %vm2714_vm0, 0.0, %v8914_v15  ;;  %v16992_v18 = vld [vmem:[#allocation63 + $0x40] sm:$0xff]  }
0x1841   : > { %v12042_v49 = vld [vmem:[%s17638_s9 + $0xe8] sm:$0xff]  ;;  %v12047_v63 = vld [vmem:[%s17638_s9 + $0x110] sm:$0xff] }
0x1842   : > { %v9022_v9 = vsel %vm8279_vm8, %v9020_v56, %v9021_v34  ;;  %v8916_v41 = vsel %vm2714_vm0, %v8914_v15, %v8915_v35  ;;  %v9025_v44 = vsel %vm8279_vm8, %v9021_v34, 0.0  ;;  %v9895_v56 = vld [vmem:[%s17638_s9 + $0x18] sm:$0xff]  ;;  %v9896_v34 = vld [vmem:[%s17638_s9 + $0x20] sm:$0xff]  ;;  %v9897_v12 = vld [vmem:[%s17638_s9 + $0x28] sm:$0xff] }
0x1843   : > { %9925 = vperm.xlu1 %13081, %v9895_v56   ;;  %v12044_v15 = vld [vmem:[%s17638_s9 + $0xf8] sm:$0xff]  ;;  %v12045_v35 = vld [vmem:[%s17638_s9 + $0x100] sm:$0xff]  ;;  %v12050_v56 = vld [vmem:[%s17638_s9 + $0x128] sm:$0xff] }
0x1847   : > { %9930 = vperm.xlu1 %13081, %v9896_v34  }
0x184b   : > { %9935 = vperm.xlu1 %13081, %v9897_v12  }
0x185d   : > { %v9002_v10 = vpop.f32.mrb[68].mxu1  ;;  %v9108_v25 = vpop.f32.mrb[72].mxu0 }
0x185e   : > { %v9003_v7 = vadd.f32 %v9002_v10, %v8919_v31  ;;  %v9109_v60 = vadd.f32 %v9108_v25, %v9022_v9  ;;  %v12594_v13 = vpop.f32.mrb[69].mxu1  ;;  %v12614_v43 = vpop.f32.mrb[73].mxu0  ;;  %v9898_v9 = vld [vmem:[%s17638_s9 + $0x30] sm:$0xff]  ;;  %v9899_v31 = vld [vmem:[%s17638_s9 + $0x38] sm:$0xff]  ;;  %v12062_v25 = vld [vmem:[%s17638_s9 + $0x188] sm:$0xff] }
0x185f   : > { %v9005_v2 = vpop.f32.mrb[70].mxu1  ;;  %v9111_v0 = vpop.f32.mrb[74].mxu0  ;;  %9940 = vperm.xlu1 %13081, %v9898_v9   ;;  %v12051_v10 = vld [vmem:[%s17638_s9 + $0x130] sm:$0xff]  ;;  %v12064_v43 = vld [vmem:[%s17638_s9 + $0x198] sm:$0xff] }
0x1860   : > { %v9016_v22 = vadd.f32 %v11977_v6, %v9003_v7  ;;  %v9115_v30 = vadd.f32 %v11977_v6, %v9109_v60  ;;  %v9006_v55 = vadd.f32 %v9005_v2, %v8916_v41  ;;  %v9112_v52 = vadd.f32 %v9111_v0, %v9025_v44  ;;  %v12595_v40 = vpop.f32.mrb[71].mxu1  ;;  %v12615_v29 = vpop.f32.mrb[75].mxu0  ;;  %v12049_v41 = vld [vmem:[%s17638_s9 + $0x120] sm:$0xff]  ;;  %v9901_v7 = vld [vmem:[%s17638_s9 + $0x48] sm:$0xff]  ;;  %v9902_v13 = vld [vmem:[%s17638_s9 + $0x50] sm:$0xff] }
0x1861   : > { %v12077_v60 = vld [vmem:[%s17638_s9 + $0x200] sm:$0xff]  ;;  %v9903_v2 = vld [vmem:[%s17638_s9 + $0x58] sm:$0xff]  ;;  %v12082_v40 = vld [vmem:[%s17638_s9 + $0x228] sm:$0xff] }
0x1862   : > { %v9117_v46 = vmax.f32 %v9016_v22, 0.0  ;;  %v9119_v58 = vmax.f32 %v9115_v30, 0.0  ;;  %v9017_v27 = vadd.f32 %v11977_v6, %v9006_v55  ;;  %v9116_v37 = vadd.f32 %v11977_v6, %v9112_v52  ;;  %v9900_v6 = vld [vmem:[%s17638_s9 + $0x40] sm:$0xff]  ;;  %v12066_v22 = vld [vmem:[%s17638_s9 + $0x1a8] sm:$0xff]  ;;  %v12052_v55 = vld [vmem:[%s17638_s9 + $0x138] sm:$0xff] }
0x1863   : > { %9945 = vperm.xlu1 %13081, %v9899_v31   ;;  %v12065_v44 = vld [vmem:[%s17638_s9 + $0x1a0] sm:$0xff]  ;;  %v9905_v30 = vld [vmem:[%s17638_s9 + $0x68] sm:$0xff]  ;;  %v9906_v52 = vld [vmem:[%s17638_s9 + $0x70] sm:$0xff] }
0x1864   : > { %9121 = vst [vmem:[#allocation6] ss:$2 sm:$0xff] %v9117_v46  ;;  %9125 = vst [vmem:[#allocation6 + $0x1] ss:$2 sm:$0xff] %v9119_v58  ;;  %v9118_v50 = vmax.f32 %v9017_v27, 0.0  ;;  %v9120_v51 = vmax.f32 %v9116_v37, 0.0 }
0x1865   : > { %v9904_v0 = vld [vmem:[%s17638_s9 + $0x60] sm:$0xff]  ;;  %v9907_v29 = vld [vmem:[%s17638_s9 + $0x78] sm:$0xff]  ;;  %v12054_v27 = vld [vmem:[%s17638_s9 + $0x148] sm:$0xff] }
0x1866   : > { %9123 = vst [vmem:[#allocation6 + $0x10] ss:$2 sm:$0xff] %v9118_v50  ;;  %9127 = vst [vmem:[#allocation6 + $0x11] ss:$2 sm:$0xff] %v9120_v51  ;;  %v12068_v46 = vld [vmem:[%s17638_s9 + $0x1b8] sm:$0xff]  ;;  %v12029_v58 = vld [vmem:[%s17638_s9 + $0x80] sm:$0xff] }
0x1867   : > { %9950 = vperm.xlu1 %13081, %v9900_v6   ;;  %v12030_v37 = vld [vmem:[%s17638_s9 + $0x88] sm:$0xff]  ;;  %v12084_v50 = vld [vmem:[%s17638_s9 + $0x238] sm:$0xff]  ;;  %v12063_v9 = vld [vmem:[%s17638_s9 + $0x190] sm:$0xff] }
0x1868   : > { %v12032_v51 = vld [vmem:[%s17638_s9 + $0x98] sm:$0xff]  ;;  %v12078_v31 = vld [vmem:[%s17638_s9 + $0x208] sm:$0xff] }
0x186b   : > { %v9128_v20 = vld [vmem:[#allocation6] sm:$0xff]  ;;  %v9129_v26 = vld [vmem:[#allocation6 + $0x8] sm:$0xff]  ;;  %9955 = vperm.xlu1 %13081, %v9901_v7  }
0x186c   : > { %v9132_v45 = vadd.f32 %v9128_v20, %v16519_v33  ;;  %v9133_v32 = vadd.f32 %v9129_v26, %v16524_v53  ;;  %v13925_v33 = vld [vmem:[#allocation60 + $0x10] sm:$0xff]   ;;  %v13926_v53 = vld [vmem:[#allocation60 + $0x18] sm:$0xff]   ;;  %v12070_v20 = vld [vmem:[%s17638_s9 + $0x1c8] sm:$0xff] }
0x186d   : > { %v9130_v62 = vld [vmem:[#allocation6 + $0x10] sm:$0xff]  ;;  %v9131_v5 = vld [vmem:[#allocation6 + $0x18] sm:$0xff]  ;;  %v12033_v26 = vld [vmem:[%s17638_s9 + $0xa0] sm:$0xff] }
0x186e   : > { %v9136_v48 = vpack.c.bf16 %v9133_v32, %v9132_v45  ;;  %v9134_v16 = vadd.f32 %v9130_v62, %v16517_v14  ;;  %v9135_v4 = vadd.f32 %v9131_v5, %v16521_v38  ;;  %v12031_v14 = vld [vmem:[%s17638_s9 + $0x90] sm:$0xff]  ;;  %v13927_v38 = vld [vmem:[#allocation63] sm:$0xff]   ;;  %v12056_v45 = vld [vmem:[%s17638_s9 + $0x158] sm:$0xff] }
0x186f   : > { %10071 = vperm.xlu0 %13082, %v12031_v14   ;;  %12640 = vmatprep.subr.bf16.mxu0 %v13927_v38  ;;  %v12035_v32 = vld [vmem:[%s17638_s9 + $0xb0] sm:$0xff]  ;;  %v12086_v62 = vld [vmem:[%s17638_s9 + $0x248] sm:$0xff]  ;;  %v12037_v5 = vld [vmem:[%s17638_s9 + $0xc0] sm:$0xff] }
0x1870   : > { %12624 = vmatprep.mubr.msk.bf16.mxu1 %vm3174_vm3, %v9136_v48  ;;  %v9137_v61 = vpack.c.bf16 %v9135_v4, %v9134_v16  ;;  %12641 = vmatpush3.bf16.msra.mxu0 %v13927_v38  ;;  %v12039_v16 = vld [vmem:[%s17638_s9 + $0xd0] sm:$0xff]  ;;  %v12041_v14 = vld [vmem:[%s17638_s9 + $0xe0] sm:$0xff]  ;;  %v12088_v38 = vld [vmem:[%s17638_s9 + $0x258] sm:$0xff] }
0x1871   : > { %12642 = vmatprep.subr.bf16.mxu0 %v13929_v21  ;;  %9960 = vperm.xlu1 %13081, %v9902_v13  }
0x1872   : > { %12625 = vmatmul.mubr.msk.bf16.vlgmr.msra.gmra.mrb[72].mxu1 %vm3174_vm3, %v9137_v61 }
0x1873   : > { %12629 = vmatpush3.bf16.msra.mxu1 %v13923_v42  ;;  %12636 = vmatprep.mubr.msk.bf16.mxu1 %vm3174_vm3, %v9136_v48  ;;  %v13933_v42 = vld [vmem:[#allocation63 + $0x18] sm:$0xff]  }
0x1874   : > { %12630 = vmatprep.subr.bf16.mxu1 %v13924_v57  ;;  %10086 = vperm.xlu0 %13082, %v12034_v59   ;;  %v12072_v48 = vld [vmem:[%s17638_s9 + $0x1d8] sm:$0xff]  ;;  %v12074_v59 = vld [vmem:[%s17638_s9 + $0x1e8] sm:$0xff] }
0x1875   : > { %12643 = vmatpush3.bf16.msra.mxu0 %v13929_v21  ;;  %9965 = vperm.xlu1 %13081, %v9903_v2   ;;  %v12046_v21 = vld [vmem:[%s17638_s9 + $0x108] sm:$0xff]  ;;  %v12079_v2 = vld [vmem:[%s17638_s9 + $0x210] sm:$0xff] }
0x1876   : > { %12644 = vmatprep.subr.bf16.mxu0 %v13931_v3 }
0x1877   : > { %12631 = vmatpush3.bf16.msra.mxu1 %v13924_v57 }
0x1878   : > { %12632 = vmatprep.subr.bf16.mxu1 %v13925_v33  ;;  %10096 = vperm.xlu0 %13082, %v12036_v39   ;;  %v12060_v39 = vld [vmem:[%s17638_s9 + $0x178] sm:$0xff] }
0x1879   : > { %12645 = vmatpush3.bf16.msra.mxu0 %v13931_v3  ;;  %9970 = vperm.xlu1 %13081, %v9904_v0   ;;  %v11986_v0 = vld [vmem:[#allocation59] ss:$0 sm:$0xff] }
0x187a   : > { %12646 = vmatprep.subr.bf16.mxu0 %v13933_v42 }
0x187b   : > { %12633 = vmatpush3.bf16.msra.mxu1 %v13925_v33  ;;  %v12058_v33 = vld [vmem:[%s17638_s9 + $0x168] sm:$0xff] }
0x187c   : > { %12634 = vmatprep.subr.bf16.mxu1 %v13926_v53  ;;  %10106 = vperm.xlu0 %13082, %v12038_v23  }
0x187d   : > { %12647 = vmatpush3.bf16.msra.mxu0 %v13933_v42  ;;  %9975 = vperm.xlu1 %13081, %v9905_v30   ;;  %v12081_v30 = vld [vmem:[%s17638_s9 + $0x220] sm:$0xff] }
0x187e   : > { %12664 = vmatprep.subr.bf16.mxu0 %v16990_v47 }
0x187f   : > { %12635 = vmatpush3.bf16.msra.mxu1 %v13926_v53 }
0x1880   : > { %12652 = vmatprep.subr.bf16.mxu1 %v13928_v17  ;;  %10116 = vperm.xlu0 %13082, %v12040_v1  }
0x1881   : > { %9980 = vperm.xlu1 %13081, %v9906_v52  }
0x1882   : > { %12637 = vmatmul.mubr.msk.bf16.vlgmr.msra.gmra.mrb[76].mxu1 %vm3174_vm3, %v9137_v61 }
0x1883   : > { %12653 = vmatpush3.bf16.msra.mxu1 %v13928_v17  ;;  %v12043_v17 = vld [vmem:[%s17638_s9 + $0xf0] sm:$0xff] }
0x1884   : > { %12654 = vmatprep.subr.bf16.mxu1 %v13930_v8  ;;  %10126 = vperm.xlu0 %13082, %v12042_v49  }
0x1885   : > { %9985 = vperm.xlu1 %13081, %v9907_v29  }
0x1887   : > { %12655 = vmatpush3.bf16.msra.mxu1 %v13930_v8  ;;  %v11993_v8 = vld [vmem:[#allocation62] ss:$0 sm:$0xff] }
0x1888   : > { %12656 = vmatprep.subr.bf16.mxu1 %v13932_v36  ;;  %10136 = vperm.xlu0 %13082, %v12044_v15  }
0x1889   : > { %10061 = vperm.xlu1 %13081, %v12029_v58  }
0x188b   : > { %12657 = vmatpush3.bf16.msra.mxu1 %v13932_v36 }
0x188c   : > { %12658 = vmatprep.subr.bf16.mxu1 %v13934_v54  ;;  %10217 = vperm.xlu0 %13082, %v12045_v35  }
0x188d   : > { %10066 = vperm.xlu1 %13081, %v12030_v37  }
0x188f   : > { %12659 = vmatpush3.bf16.msra.mxu1 %v13934_v54  ;;  %v12090_v54 = vld [vmem:[%s17638_s9 + $0x268] sm:$0xff] }
0x1890   : > { %12676 = vmatprep.subr.bf16.mxu1 %v16992_v18  ;;  %10227 = vperm.xlu0 %13082, %v12047_v63   ;;  %v12061_v63 = vld [vmem:[%s17638_s9 + $0x180] sm:$0xff] }
0x1891   : > { %10076 = vperm.xlu1 %13081, %v12032_v51  }
0x1894   : > { %10237 = vperm.xlu0 %13082, %v12049_v41  }
0x1895   : > { %10081 = vperm.xlu1 %13081, %v12033_v26  }
0x1898   : > { %10247 = vperm.xlu0 %13082, %v12051_v10  }
0x1899   : > { %10091 = vperm.xlu1 %13081, %v12035_v32  }
0x189c   : > { %10378 = vperm.xlu0 %13082, %v12062_v25  }
0x189d   : > { %10101 = vperm.xlu1 %13081, %v12037_v5   ;;  %v13938_v5 = vld [vmem:[#allocation63 + $0x48] sm:$0xff]  }
0x18a0   : > { %10529 = vperm.xlu0 %13082, %v12077_v60  }
0x18a1   : > { %10111 = vperm.xlu1 %13081, %v12039_v16   ;;  %v13939_v16 = vld [vmem:[#allocation63 + $0x30] sm:$0xff]  }
0x18a4   : > { %10388 = vperm.xlu0 %13082, %v12064_v43  }
0x18a5   : > { %10121 = vperm.xlu1 %13081, %v12041_v14   ;;  %v12071_v14 = vld [vmem:[%s17638_s9 + $0x1d0] sm:$0xff] }
0x18a8   : > { %10393 = vperm.xlu0 %13082, %v12065_v44   ;;  %v12080_v44 = vld [vmem:[%s17638_s9 + $0x218] sm:$0xff] }
0x18a9   : > { %10131 = vperm.xlu1 %13081, %v12043_v17   ;;  %v12087_v17 = vld [vmem:[%s17638_s9 + $0x250] sm:$0xff] }
0x18ac   : > { %10398 = vperm.xlu0 %13082, %v12066_v22  }
0x18ad   : > { %10222 = vperm.xlu1 %13081, %v12046_v21   ;;  %v12059_v21 = vld [vmem:[%s17638_s9 + $0x170] sm:$0xff] }
0x18b0   : > { %10252 = vperm.xlu0 %13082, %v12052_v55  }
0x18b1   : > { %10232 = vperm.xlu1 %13081, %v12048_v24   ;;  %v12076_v24 = vld [vmem:[%s17638_s9 + $0x1f8] sm:$0xff] }
0x18b4   : > { %10554 = vperm.xlu0 %13082, %v12082_v40  }
0x18b5   : > { %10242 = vperm.xlu1 %13081, %v12050_v56  }
0x18b8   : > { %10408 = vperm.xlu0 %13082, %v12068_v46  }
0x18b9   : > { %10373 = vperm.xlu1 %13081, %v12061_v63  }
0x18bc   : > { %10262 = vperm.xlu0 %13082, %v12054_v27  }
0x18bd   : > { %10383 = vperm.xlu1 %13081, %v12063_v9  }
0x18c0   : > { %10564 = vperm.xlu0 %13082, %v12084_v50  }
0x18c1   : > { %10534 = vperm.xlu1 %13081, %v12078_v31  }
0x18c4   : > { %10418 = vperm.xlu0 %13082, %v12070_v20   ;;  %v12067_v20 = vld [vmem:[%s17638_s9 + $0x1b0] sm:$0xff] }
0x18c5   : > { %10539 = vperm.xlu1 %13081, %v12079_v2  }
0x18c8   : > { %10272 = vperm.xlu0 %13082, %v12056_v45  }
0x18c9   : > { %10544 = vperm.xlu1 %13081, %v12080_v44  }
0x18cc   : > { %10574 = vperm.xlu0 %13082, %v12086_v62   ;;  %v13937_v62 = vld [vmem:[#allocation63 + $0x28] sm:$0xff]  }
0x18cd   : > { %10549 = vperm.xlu1 %13081, %v12081_v30  }
0x18d0   : > { %10428 = vperm.xlu0 %13082, %v12072_v48   ;;  %v12053_v48 = vld [vmem:[%s17638_s9 + $0x140] sm:$0xff] }
0x18d1   : > { %10403 = vperm.xlu1 %13081, %v12067_v20  }
0x18d4   : > { %10282 = vperm.xlu0 %13082, %v12058_v33   ;;  %v12055_v33 = vld [vmem:[%s17638_s9 + $0x150] sm:$0xff] }
0x18d5   : > { %10257 = vperm.xlu1 %13081, %v12053_v48  }
0x18d8   : > { %10584 = vperm.xlu0 %13082, %v12088_v38   ;;  %v12057_v38 = vld [vmem:[%s17638_s9 + $0x160] sm:$0xff] }
0x18dc   : > { %10438 = vperm.xlu0 %13082, %v12074_v59   ;;  %v12073_v59 = vld [vmem:[%s17638_s9 + $0x1e0] sm:$0xff] }
0x18e0   : > { %10292 = vperm.xlu0 %13082, %v12060_v39   ;;  %v12075_v39 = vld [vmem:[%s17638_s9 + $0x1f0] sm:$0xff] }
0x18e4   : > { %10594 = vperm.xlu0 %13082, %v12090_v54  }
0x1945   : > { %v17036_v4 = vpop.f32.mrb[72].mxu1 }
0x1946   : > { %v17038_v61 = vpop.f32.mrb[73].mxu1  ;;  %v9226_v22 = vadd.f32 %v17036_v4, %v11986_v0  ;;  %v13940_v4 = vld [vmem:[#allocation63 + $0x50] sm:$0xff]  }
0x1947   : > { %v17040_v57 = vpop.f32.mrb[74].mxu1  ;;  %v9218_v52 = vadd.f32 %v11986_v0, %v17038_v61  ;;  %v12083_v61 = vld [vmem:[%s17638_s9 + $0x230] sm:$0xff] }
0x1948   : > { %v17043_v53 = vpop.f32.mrb[75].mxu1  ;;  %v9229_v29 = vadd.f32 %v17040_v57, %v11986_v0  ;;  %10559 = vperm.xlu1 %13081, %v12083_v61   ;;  %v12069_v57 = vld [vmem:[%s17638_s9 + $0x1c0] sm:$0xff] }
0x1949   : > { %v9221_v27 = vadd.f32 %v11986_v0, %v17043_v53  ;;  %v12085_v53 = vld [vmem:[%s17638_s9 + $0x240] sm:$0xff] }
0x194c   : > { %10413 = vperm.xlu1 %13081, %v12069_v57  }
0x1950   : > { %10267 = vperm.xlu1 %13081, %v12055_v33  }
0x1954   : > { %10569 = vperm.xlu1 %13081, %v12085_v53  }
0x1955   : > { %v12638_v3 = vpop.f32.mrb[76].mxu1 }
0x1956   : > { %v9314_v36 = vadd.f32 %v12638_v3, %v11993_v8  ;;  %v9305_v19 = vpop.f32.mrb[77].mxu1  ;;  %v17088_v3 = vpop.permute.xlu0 %10071 }
0x1957   : > { %v9306_v23 = vadd.f32 %v11993_v8, %v9305_v19  ;;  %v12639_v42 = vpop.f32.mrb[78].mxu1  ;;  %v17092_v19 = vpop.permute.xlu1 %9910 }
0x1958   : > { %v12002_v28 = vmul.f32 -1.442695, %v9314_v36  ;;  %v9317_v1 = vadd.f32 %v12639_v42, %v11993_v8  ;;  %v9308_v49 = vpop.f32.mrb[79].mxu1  ;;  %10423 = vperm.xlu1 %13081, %v12071_v14  }
0x1959   : > { %v12000_v15 = vmul.f32 -1.442695, %v9306_v23  ;;  %v9309_v34 = vadd.f32 %v11993_v8, %v9308_v49  ;;  %v12089_v8 = vld [vmem:[%s17638_s9 + $0x260] sm:$0xff] }
0x195a   : > { %13999 = vpow2.f32 %v12002_v28  ;;  %v12003_v35 = vmul.f32 -1.442695, %v9317_v1  ;;  %v17090_v36 = vpop.permute.xlu0 %10086 }
0x195b   : > { %14001 = vpow2.f32 %v12000_v15  ;;  %v12001_v12 = vmul.f32 -1.442695, %v9309_v34  ;;  %v17096_v42 = vpop.permute.xlu1 %9915 }
0x195c   : > { %14003 = vpow2.f32 %v12003_v35  ;;  %10277 = vperm.xlu1 %13081, %v12057_v38  }
0x195d   : > { %14005 = vpow2.f32 %v12001_v12 }
0x195e   : > { %v17094_v23 = vpop.permute.xlu0 %10096 }
0x195f   : > { %v17100_v28 = vpop.permute.xlu1 %9920 }
0x1960   : > { %10579 = vperm.xlu1 %13081, %v12087_v17  }
0x1962   : > { %v17098_v54 = vpop.permute.xlu0 %10106 }
0x1963   : > { %v17104_v49 = vpop.permute.xlu1 %9925 }
0x1964   : > { %v14000_v41 = vpop.eup %13999  ;;  %10433 = vperm.xlu1 %13081, %v12073_v59  }
0x1965   : > { %v14002_v10 = vpop.eup %14001  ;;  %v9334_v6 = vadd.f32 1.0, %v14000_v41 }
0x1966   : > { %v14004_v25 = vpop.eup %14003  ;;  %v9332_v7 = vadd.f32 1.0, %v14002_v10  ;;  %v17102_v1 = vpop.permute.xlu0 %10116 }
0x1967   : > { %v14006_v60 = vpop.eup %14005  ;;  %14007 = vrcp.f32 %v9334_v6  ;;  %v9335_v13 = vadd.f32 1.0, %v14004_v25  ;;  %17744 = vst [vmem:[#allocation142_spill] sm:$0xff] %v17102_v1 }
0x1968   : > { %14009 = vrcp.f32 %v9332_v7  ;;  %v9333_v43 = vadd.f32 1.0, %v14006_v60  ;;  %10287 = vperm.xlu1 %13081, %v12059_v21  }
0x1969   : > { %14011 = vrcp.f32 %v9335_v13 }
0x196a   : > { %14013 = vrcp.f32 %v9333_v43 }
0x196c   : > { %10589 = vperm.xlu1 %13081, %v12089_v8  }
0x1970   : > { %10443 = vperm.xlu1 %13081, %v12075_v39  }
0x1971   : > { %v14008_v55 = vpop.eup %14007 }
0x1972   : > { %v14010_v40 = vpop.eup %14009  ;;  %v9346_v46 = vmul.f32 %v14008_v55, %v9226_v22 }
0x1973   : > { %v14012_v58 = vpop.eup %14011  ;;  %v9344_v37 = vmul.f32 %v14010_v40, %v9218_v52  ;;  %v17112_v52 = vpop.permute.xlu0 %10126 }
0x1974   : > { %v14014_v50 = vpop.eup %14013  ;;  %v9347_v51 = vmul.f32 %v14012_v58, %v9229_v29  ;;  %10448 = vperm.xlu1 %13081, %v12076_v24   ;;  %17745 = vst [vmem:[#allocation152_spill] sm:$0xff] %v17112_v52  ;;  %v17114_v40 = vpop.permute.xlu1 %9930 }
0x1975   : > { %v9345_v26 = vmul.f32 %v14014_v50, %v9221_v27  ;;  %v12022_v27 = vld [vmem:[#allocation65] ss:$0 sm:$0xff] }
0x1976   : > { %v9349_v45 = vpack.c.bf16 %v9347_v51, %v9346_v46 }
0x1977   : > { %v9348_v32 = vpack.c.bf16 %v9345_v26, %v9344_v37  ;;  %v17116_v29 = vpop.permute.xlu0 %10136 }
0x1978   : > { %17746 = vst [vmem:[#allocation140_spill] sm:$0xff] %v17116_v29  ;;  %v17118_v46 = vpop.permute.xlu1 %9935 }
0x1979   : > { %12648 = vmatprep.mubr.msk.bf16.mxu0 %vm3174_vm3, %v9348_v32  ;;  %12660 = vmatprep.mubr.msk.bf16.mxu1 %vm3174_vm3, %v9348_v32 }
0x197a   : > { %12649 = vmatmul.mubr.msk.bf16.vlgmr.msra.gmra.mrb[76].mxu0 %vm3174_vm3, %v9349_v45  ;;  %12661 = vmatmul.mubr.msk.bf16.vlgmr.msra.gmra.mrb[80].mxu1 %vm3174_vm3, %v9349_v45 }
0x197b   : > { %12665 = vmatpush3.bf16.msra.mxu0 %v16990_v47  ;;  %12677 = vmatpush3.bf16.msra.mxu1 %v16992_v18  ;;  %v13941_v47 = vld [vmem:[#allocation63 + $0x38] sm:$0xff]   ;;  %v17122_v24 = vpop.permute.xlu0 %10217 }
0x197c   : > { %12672 = vmatprep.mubr.msk.bf16.mxu0 %vm3174_vm3, %v9348_v32  ;;  %12684 = vmatprep.mubr.msk.bf16.mxu1 %vm3174_vm3, %v9348_v32  ;;  %v13942_v18 = vld [vmem:[#allocation63 + $0x58] sm:$0xff]  }
0x197d   : > { %12666 = vmatprep.subr.bf16.mxu0 %v13937_v62  ;;  %12678 = vmatprep.subr.bf16.mxu1 %v13938_v5 }
0x197f   : > { %12667 = vmatpush3.bf16.msra.mxu0 %v13937_v62  ;;  %12679 = vmatpush3.bf16.msra.mxu1 %v13938_v5 }
0x1980   : > { %12668 = vmatprep.subr.bf16.mxu0 %v13939_v16  ;;  %12680 = vmatprep.subr.bf16.mxu1 %v13940_v4 }
0x1983   : > { %12669 = vmatpush3.bf16.msra.mxu0 %v13939_v16  ;;  %12681 = vmatpush3.bf16.msra.mxu1 %v13940_v4 }
0x1984   : > { %12670 = vmatprep.subr.bf16.mxu0 %v13941_v47  ;;  %12682 = vmatprep.subr.bf16.mxu1 %v13942_v18 }
0x1987   : > { %12671 = vmatpush3.bf16.msra.mxu0 %v13941_v47  ;;  %12683 = vmatpush3.bf16.msra.mxu1 %v13942_v18 }
0x198a   : > { %12673 = vmatmul.mubr.msk.bf16.vlgmr.msra.gmra.mrb[80].mxu0 %vm3174_vm3, %v9349_v45  ;;  %12685 = vmatmul.mubr.msk.bf16.vlgmr.msra.gmra.mrb[84].mxu1 %vm3174_vm3, %v9349_v45 }
0x1a4d   : > { %v12650_v56 = vpop.f32.mrb[76].mxu0  ;;  %v12662_v15 = vpop.f32.mrb[80].mxu1 }
0x1a4e   : > { %v9422_v34 = vpop.f32.mrb[77].mxu0  ;;  %v9522_v35 = vpop.f32.mrb[81].mxu1  ;;  %v9644_v9 = vrot.slane %v12650_v56, 1  ;;  %v9544_v41 = vrot.slane %v12662_v15, 7 }
0x1a4f   : > { %v12651_v12 = vpop.f32.mrb[78].mxu0  ;;  %v12663_v63 = vpop.f32.mrb[82].mxu1  ;;  %v9641_v7 = vrot.slane %v9422_v34, 1  ;;  %v9541_v60 = vrot.slane %v9522_v35, 7 }
0x1a50   : > { %v9646_v31 = vrot.slane %v12651_v12, 1  ;;  %v9546_v10 = vrot.slane %v12663_v63, 7  ;;  %v9425_v6 = vpop.f32.mrb[79].mxu0  ;;  %v9525_v25 = vpop.f32.mrb[83].mxu1 }
0x1a51   : > { %v9642_v13 = vrot.slane %v9425_v6, 1  ;;  %v9542_v43 = vrot.slane %v9525_v25, 7  ;;  %v9552_v20 = vsel %vm2714_vm0, 0.0, %v9541_v60  ;;  %v17124_v56 = vpop.permute.xlu1 %9940  ;;  %v17126_v15 = vpop.permute.xlu0 %10227 }
0x1a52   : > { %v9647_v2 = vsel %vm8279_vm8, %v9644_v9, %v9646_v31  ;;  %v9547_v44 = vsel %vm2714_vm0, %v9544_v41, %v9546_v10  ;;  %v9652_v48 = vsel %vm8279_vm8, %v9646_v31, 0.0 }
0x1a53   : > { %v9545_v0 = vsel %vm2714_vm0, %v9542_v43, %v9544_v41  ;;  %v9643_v22 = vsel %vm8279_vm8, %v9641_v7, %v9642_v13  ;;  %v9543_v30 = vsel %vm2714_vm0, %v9541_v60, %v9542_v43  ;;  %v9645_v55 = vsel %vm8279_vm8, %v9642_v13, %v9644_v9 }
0x1a54   : > { %vm10677_vm0 = vcmask 516096  }
0x1a55   : > { %v17128_v35 = vpop.permute.xlu1 %9945  ;;  %v17132_v41 = vpop.permute.xlu0 %10237 }
0x1a59   : > { %v17134_v10 = vpop.permute.xlu1 %9950  ;;  %v17137_v7 = vpop.permute.xlu0 %10247 }
0x1a5d   : > { %v12674_v58 = vpop.f32.mrb[80].mxu0  ;;  %v12686_v37 = vpop.f32.mrb[84].mxu1 }
0x1a5e   : > { %v9620_v50 = vadd.f32 %v12674_v58, %v9545_v0  ;;  %v9720_v51 = vadd.f32 %v12686_v37, %v9647_v2  ;;  %v9611_v26 = vpop.f32.mrb[81].mxu0  ;;  %v9711_v45 = vpop.f32.mrb[85].mxu1 }
0x1a5f   : > { %v9612_v32 = vadd.f32 %v9611_v26, %v9552_v20  ;;  %v9712_v62 = vadd.f32 %v9711_v45, %v9643_v22  ;;  %v12675_v5 = vpop.f32.mrb[82].mxu0  ;;  %v12687_v16 = vpop.f32.mrb[86].mxu1 }
0x1a60   : > { %v9635_v4 = vadd.f32 %v12022_v27, %v9620_v50  ;;  %v9728_v61 = vadd.f32 %v12022_v27, %v9720_v51  ;;  %v9623_v47 = vadd.f32 %v12675_v5, %v9547_v44  ;;  %v9723_v18 = vadd.f32 %v12687_v16, %v9652_v48  ;;  %v9614_v57 = vpop.f32.mrb[83].mxu0  ;;  %v9714_v33 = vpop.f32.mrb[87].mxu1 }
0x1a61   : > { %v9633_v53 = vadd.f32 %v12022_v27, %v9612_v32  ;;  %v9726_v14 = vadd.f32 %v12022_v27, %v9712_v62  ;;  %v9615_v38 = vadd.f32 %v9614_v57, %v9543_v30  ;;  %v9715_v17 = vadd.f32 %v9714_v33, %v9645_v55  ;;  %v17139_v60 = vpop.permute.xlu1 %9955  ;;  %v17143_v44 = vpop.permute.xlu0 %10378 }
0x1a62   : > { %9734 = vst [vmem:[#allocation7 + $0x20] ss:$2 sm:$0xff] %v9635_v4  ;;  %9742 = vst [vmem:[#allocation7 + $0x21] ss:$2 sm:$0xff] %v9728_v61  ;;  %v9636_v59 = vadd.f32 %v12022_v27, %v9623_v47  ;;  %v9729_v21 = vadd.f32 %v12022_v27, %v9723_v18 }
0x1a63   : > { %9730 = vst [vmem:[#allocation7] ss:$2 sm:$0xff] %v9633_v53  ;;  %9738 = vst [vmem:[#allocation7 + $0x1] ss:$2 sm:$0xff] %v9726_v14  ;;  %v9634_v8 = vadd.f32 %v12022_v27, %v9615_v38  ;;  %v9727_v39 = vadd.f32 %v12022_v27, %v9715_v17 }
0x1a64   : > { %9736 = vst [vmem:[#allocation7 + $0x30] ss:$2 sm:$0xff] %v9636_v59  ;;  %9744 = vst [vmem:[#allocation7 + $0x31] ss:$2 sm:$0xff] %v9729_v21 }
0x1a65   : > { %9732 = vst [vmem:[#allocation7 + $0x10] ss:$2 sm:$0xff] %v9634_v8  ;;  %9740 = vst [vmem:[#allocation7 + $0x11] ss:$2 sm:$0xff] %v9727_v39  ;;  %v17145_v22 = vpop.permute.xlu1 %9960  ;;  %v17148_v58 = vpop.permute.xlu0 %10529 }
0x1a69   : > { %v9749_v43 = vld [vmem:[#allocation7 + $0x20] sm:$0xff]  ;;  %v9750_v0 = vld [vmem:[#allocation7 + $0x28] sm:$0xff]  ;;  %v17150_v27 = vpop.permute.xlu1 %9965  ;;  %v17154_v20 = vpop.permute.xlu0 %10388 }
0x1a6a   : > { %v9745_v34 = vld [vmem:[#allocation7] sm:$0xff]  ;;  %v9746_v63 = vld [vmem:[#allocation7 + $0x8] sm:$0xff]  ;;  %v9758_v2 = vsel %vm9753_vm9, %v9749_v43, 0.0  ;;  %v9759_v30 = vsel %vm9753_vm9, %v9750_v0, 0.0  ;;  %17747 = vst [vmem:[#allocation141_spill] sm:$0xff] %v17150_v27 }
0x1a6b   : > { %v9754_v12 = vsel %vm9753_vm9, %v9745_v34, 0.0  ;;  %v9755_v9 = vsel %vm9753_vm9, %v9746_v63, 0.0  ;;  %v9751_v55 = vld [vmem:[#allocation7 + $0x30] sm:$0xff]  ;;  %v9752_v50 = vld [vmem:[#allocation7 + $0x38] sm:$0xff] }
0x1a6c   : > { %9762 = vxpose.xlu0.b32.start [1/8] (short) %v9754_v12, 128  ;;  %v9747_v31 = vld [vmem:[#allocation7 + $0x10] sm:$0xff]  ;;  %v9748_v25 = vld [vmem:[#allocation7 + $0x18] sm:$0xff]  ;;  %v9760_v37 = vsel %vm9753_vm9, %v9751_v55, 0.0  ;;  %v9761_v51 = vsel %vm9753_vm9, %v9752_v50, 0.0 }
0x1a6d   : > { %v9756_v6 = vsel %vm9753_vm9, %v9747_v31, 0.0  ;;  %v9757_v13 = vsel %vm9753_vm9, %v9748_v25, 0.0  ;;  %v17156_v26 = vpop.permute.xlu1 %9970  ;;  %v17158_v45 = vpop.permute.xlu0 %10393 }
0x1a6e   : > { %17748 = vst [vmem:[#allocation147_spill] sm:$0xff] %v17156_v26 }
0x1a70   : > { %9763 = vxpose.xlu0.b32.cont [2/8] (short) %v9755_v9, 128 }
0x1a71   : > { %v17160_v32 = vpop.permute.xlu1 %9975  ;;  %v17162_v62 = vpop.permute.xlu0 %10398 }
0x1a72   : > { %17749 = vst [vmem:[#allocation143_spill] sm:$0xff] %v17160_v32 }
0x1a74   : > { %9764 = vxpose.xlu0.b32.cont [3/8] (short) %v9756_v6, 128 }
0x1a75   : > { %v17164_v5 = vpop.permute.xlu1 %9980  ;;  %v17166_v48 = vpop.permute.xlu0 %10252 }
0x1a76   : > { %17750 = vst [vmem:[#allocation151_spill] sm:$0xff] %v17164_v5 }
0x1a78   : > { %9765 = vxpose.xlu0.b32.cont [4/8] (short) %v9757_v13, 128 }
0x1a79   : > { %v17168_v16 = vpop.permute.xlu1 %9985  ;;  %v17170_v4 = vpop.permute.xlu0 %10554 }
0x1a7a   : > { %17751 = vst [vmem:[#allocation153_spill] sm:$0xff] %v17168_v16 }
0x1a7c   : > { %9766 = vxpose.xlu0.b32.cont [5/8] (short) %v9758_v2, 128 }
0x1a7d   : > { %v17172_v61 = vpop.permute.xlu1 %10061  ;;  %v17174_v47 = vpop.permute.xlu0 %10408 }
0x1a80   : > { %9767 = vxpose.xlu0.b32.cont [6/8] (short) %v9759_v30, 128 }
0x1a81   : > { %v17176_v18 = vpop.permute.xlu1 %10066  ;;  %v17178_v57 = vpop.permute.xlu0 %10262 }
0x1a84   : > { %9768 = vxpose.xlu0.b32.cont [7/8] (short) %v9760_v37, 128 }
0x1a85   : > { %v17180_v33 = vpop.permute.xlu1 %10076  ;;  %v17182_v53 = vpop.permute.xlu0 %10564 }
0x1a88   : > { %9769 = vxpose.xlu0.b32.end [8/8] (short) %v9761_v51, 128 }
0x1a89   : > { %v17184_v14 = vpop.permute.xlu1 %10081  ;;  %v17186_v38 = vpop.permute.xlu0 %10418 }
0x1a8d   : > { %v17188_v17 = vpop.permute.xlu1 %10091  ;;  %v17190_v59 = vpop.permute.xlu0 %10272 }
0x1a8e   : > { %17752 = vst [vmem:[#allocation144_spill] sm:$0xff] %v17190_v59 }
0x1a91   : > { %v17192_v21 = vpop.permute.xlu1 %10101  ;;  %v17194_v8 = vpop.permute.xlu0 %10574 }
0x1a92   : > { %17753 = vst [vmem:[#allocation154_spill] sm:$0xff] %v17194_v8 }
0x1a95   : > { %v17196_v39 = vpop.permute.xlu1 %10111  ;;  %v17198_v34 = vpop.permute.xlu0 %10428 }
0x1a96   : > { %17754 = vst [vmem:[#allocation135_spill] sm:$0xff] %v17196_v39  ;;  %17755 = vst [vmem:[#allocation158_spill] sm:$0xff] %v17198_v34 }
0x1a99   : > { %v17200_v12 = vpop.permute.xlu1 %10121  ;;  %v17202_v63 = vpop.permute.xlu0 %10282 }
0x1a9a   : > { %17756 = vst [vmem:[#allocation150_spill] sm:$0xff] %v17200_v12  ;;  %17757 = vst [vmem:[#allocation155_spill] sm:$0xff] %v17202_v63  ;;  %v12091_v12 = vld [vmem:[%s17638_s9 + $0x270] sm:$0xff] }
0x1a9d   : > { %v17204_v9 = vpop.permute.xlu1 %10131  ;;  %v17206_v31 = vpop.permute.xlu0 %10584 }
0x1a9e   : > { %17758 = vst [vmem:[#allocation146_spill] sm:$0xff] %v17204_v9  ;;  %17759 = vst [vmem:[#allocation137_spill] sm:$0xff] %v17206_v31 }
0x1aa1   : > { %v17208_v6 = vpop.permute.xlu1 %10222  ;;  %v17210_v25 = vpop.permute.xlu0 %10438 }
0x1aa2   : > { %17760 = vst [vmem:[#allocation156_spill] sm:$0xff] %v17210_v25 }
0x1aa5   : > { %v17212_v13 = vpop.permute.xlu1 %10232  ;;  %v17214_v43 = vpop.permute.xlu0 %10292 }
0x1aa6   : > { %17761 = vst [vmem:[#allocation157_spill] sm:$0xff] %v17214_v43 }
0x1aa9   : > { %v17216_v2 = vpop.permute.xlu1 %10242  ;;  %v17218_v0 = vpop.permute.xlu0 %10594 }
0x1aaa   : > { %17762 = vst [vmem:[#allocation136_spill] sm:$0xff] %v17218_v0 }
0x1aad   : > { %v17220_v30 = vpop.permute.xlu1 %10373 }
0x1ab1   : > { %v17223_v37 = vpop.permute.xlu1 %10383 }
0x1ab5   : > { %v17226_v11 = vpop.permute.xlu1 %10534 }
0x1ab9   : > { %v17230_v0 = vpop.permute.xlu1 %10539 }
0x1aec   : > { %v9778_v55 = vpop.trf.xlu0 }
0x1aed   : > { %9810 = vrot.lane.b32.xlu1 %v9778_v55, %s15220_s6  ;;  %v17233_v55 = vpop.permute.xlu1 %10544 }
0x1af0   : > { %v9779_v50 = vpop.trf.xlu0 }
0x1af1   : > { %9812 = vrot.lane.b32.xlu1 %v9779_v50, %s15220_s6  ;;  %v17237_v50 = vpop.permute.xlu1 %10549 }
0x1af4   : > { %v9780_v51 = vpop.trf.xlu0 }
0x1af5   : > { %9814 = vrot.lane.b32.xlu1 %v9780_v51, %s15220_s6 }
0x1af8   : > { %v9781_v43 = vpop.trf.xlu0 }
0x1af9   : > { %9816 = vrot.lane.b32.xlu1 %v9781_v43, %s15220_s6  ;;  %v17240_v43 = vpop.permute.xlu1 %10403 }
0x1afc   : > { %v9782_v29 = vpop.trf.xlu0 }
0x1afd   : > { %9818 = vrot.lane.b32.xlu1 %v9782_v29, %s15220_s6  ;;  %v17244_v29 = vpop.permute.xlu1 %10257 }
0x1b00   : > { %v9783_v16 = vpop.trf.xlu0 }
0x1b01   : > { %9820 = vrot.lane.b32.xlu1 %v9783_v16, %s15220_s6  ;;  %v17247_v63 = vpop.permute.xlu1 %10559 }
0x1b04   : > { %v9784_v9 = vpop.trf.xlu0 }
0x1b05   : > { %9822 = vrot.lane.b32.xlu1 %v9784_v9, %s15220_s6  ;;  %v17251_v52 = vpop.permute.xlu1 %10413 }
0x1b08   : > { %v9785_v5 = vpop.trf.xlu0 }
0x1b09   : > { %9824 = vrot.lane.b32.xlu1 %v9785_v5, %s15220_s6  ;;  %v17254_v32 = vpop.permute.xlu1 %10267 }
0x1b0a   : > { %17763 = vst [vmem:[#allocation138_spill] sm:$0xff] %v17254_v32 }
0x1b0c   : > { %v9786_v51 = vpop.trf.xlu0 }
0x1b0d   : > { %9826 = vrot.lane.b32.xlu1 %v9786_v51, %s15220_s6 }
0x1b10   : > { %v9787_v25 = vpop.trf.xlu0 }
0x1b11   : > { %9828 = vrot.lane.b32.xlu1 %v9787_v25, %s15220_s6 }
0x1b14   : > { %v9788_v16 = vpop.trf.xlu0 }
0x1b15   : > { %9830 = vrot.lane.b32.xlu1 %v9788_v16, %s15220_s6  ;;  %v12092_v16 = vld [vmem:[%s17638_s9 + $0x278] sm:$0xff] }
0x1b18   : > { %v9789_v9 = vpop.trf.xlu0 }
0x1b19   : > { %9832 = vrot.lane.b32.xlu1 %v9789_v9, %s15220_s6  ;;  %v17260_v9 = vpop.permute.xlu1 %10569 }
0x1b1c   : > { %v9790_v5 = vpop.trf.xlu0 }
0x1b1d   : > { %9834 = vrot.lane.b32.xlu1 %v9790_v5, %s15220_s6  ;;  %v10666_v5 = vld [vmem:[#allocation8] sm:$0x1]  ;;  %v17262_v26 = vpop.permute.xlu1 %10423 }
0x1b1e   : > { %17764 = vst [vmem:[#allocation139_spill] sm:$0xff] %v17262_v26 }
0x1b20   : > { %v9791_v51 = vpop.trf.xlu0 }
0x1b21   : > { %9836 = vrot.lane.b32.xlu1 %v9791_v51, %s15220_s6  ;;  %v17264_v34 = vpop.permute.xlu1 %10277 }
0x1b22   : > { %17765 = vst [vmem:[#allocation149_spill] sm:$0xff] %v17264_v34 }
0x1b24   : > { %v9792_v25 = vpop.trf.xlu0 }
0x1b25   : > { %9838 = vrot.lane.b32.xlu1 %v9792_v25, %s15220_s6  ;;  %v17266_v51 = vpop.permute.xlu1 %10579 }
0x1b26   : > { %17766 = vst [vmem:[#allocation145_spill] sm:$0xff] %v17266_v51 }
0x1b28   : > { %v9793_v31 = vpop.trf.xlu0 }
0x1b29   : > { %10604 = vperm.xlu1 %13081, %v12092_v16   ;;  %9840 = vrot.lane.b32.xlu0 %v9793_v31, %s15220_s6  ;;  %v17268_v59 = vpop.permute.xlu1 %10433  ;;  %s15224_s6 = smov 124  }
0x1b2a   : > { %17767 = vst [vmem:[#allocation159_spill] sm:$0xff] %v17268_v59 }
0x1b2d   : > { %10599 = vperm.xlu0 %13082, %v12091_v12   ;;  %v17270_v25 = vpop.permute.xlu1 %10287 }
0x1b2e   : > { %17768 = vst [vmem:[#allocation160_spill] sm:$0xff] %v17270_v25 }
0x1b31   : > { %10669 = vperm.xlu0 %13082, %v10666_v5   ;;  %v17272_v1 = vpop.permute.xlu1 %10589 }
0x1b32   : > { %17769 = vst [vmem:[#allocation161_spill] sm:$0xff] %v17272_v1 }
0x1b35   : > { %v17274_v16 = vpop.permute.xlu1 %10443 }
0x1b36   : > { %17770 = vst [vmem:[#allocation162_spill] sm:$0xff] %v17274_v16 }
0x1b39   : > { %v17276_v31 = vpop.permute.xlu1 %10448 }
0x1b3a   : > { %17771 = vst [vmem:[#allocation163_spill] sm:$0xff] %v17276_v31 }
0x1b5f   : > { %v9811_v12 = vpop.permute.xlu1 %9810 }
0x1b60   : > { %v9859_v27 = vsel %vm9858_vm10, 0.0, %v9811_v12 }
0x1b61   : > { %v9876_v5 = vsel %vm9875_vm11, %v9859_v27, 0.0 }
0x1b62   : > { %v9988_v51 = vmul.f32 %v17092_v19, %v9876_v5  ;;  %v10139_v31 = vmul.f32 %v17172_v61, %v9876_v5  ;;  %v10607_v12 = vmul.f32 %v17148_v58, %v9876_v5 }
0x1b63   : > { %v9813_v34 = vpop.permute.xlu1 %9812 }
0x1b64   : > { %v9860_v59 = vsel %vm9858_vm10, 0.0, %v9813_v34  ;;  %v10004_v27 = vsel %vm3174_vm3, %v9988_v51, 0.0  ;;  %v10295_v34 = vmul.f32 %v17122_v24, %v9876_v5  ;;  %v10156_v8 = vsel %vm10155_vm12, %v10139_v31, 0.0 }
0x1b65   : > { %v9877_v25 = vsel %vm9875_vm11, %v9860_v59, 0.0  ;;  %v10451_v59 = vmul.f32 %v17220_v30, %v9876_v5 }
0x1b66   : > { %v9989_v1 = vmul.f32 %v17096_v42, %v9877_v25  ;;  %v10140_v16 = vmul.f32 %v17176_v18, %v9877_v25  ;;  %v10296_v61 = vmul.f32 %v17208_v6, %v9877_v25  ;;  %v10452_v18 = vmul.f32 %v17143_v44, %v9877_v25 }
0x1b67   : > { %v9815_v26 = vpop.permute.xlu1 %9814  ;;  %v10312_v44 = vsel %vm10311_vm13, %v10295_v34, 0.0 }
0x1b68   : > { %v9861_v32 = vsel %vm9858_vm10, 0.0, %v9815_v26  ;;  %v10005_v19 = vsel %vm3174_vm3, %v9989_v1, 0.0  ;;  %v10157_v51 = vsel %vm10155_vm12, %v10140_v16, 0.0  ;;  %v10608_v1 = vmul.f32 %v17226_v11, %v9877_v25 }
0x1b69   : > { %v10006_v42 = vadd.f32 %v10005_v19, %v10004_v27  ;;  %v9878_v26 = vsel %vm9875_vm11, %v9861_v32, 0.0  ;;  %v10468_v32 = vsel %vm10467_vm14, %v10451_v59, 0.0  ;;  %v10624_v11 = vsel %vm10623_vm15, %v10607_v12, 0.0 }
0x1b6a   : > { %v9990_v24 = vmul.f32 %v17100_v28, %v9878_v26  ;;  %v10141_v30 = vmul.f32 %v17088_v3, %v9878_v26  ;;  %v10297_v27 = vmul.f32 %v17126_v15, %v9878_v26  ;;  %v10453_v58 = vmul.f32 %v17223_v37, %v9878_v26 }
0x1b6b   : > { %v9817_v39 = vpop.permute.xlu1 %9816  ;;  %v10313_v28 = vsel %vm10311_vm13, %v10296_v61, 0.0  ;;  %v10469_v3 = vsel %vm10467_vm14, %v10452_v18, 0.0  ;;  %v10158_v5 = vadd.f32 %v10157_v51, %v10156_v8  ;;  %v10625_v37 = vsel %vm10623_vm15, %v10608_v1, 0.0 }
0x1b6c   : > { %v9862_v6 = vsel %vm9858_vm10, 0.0, %v9817_v39  ;;  %v10007_v31 = vsel %vm3174_vm3, %v9990_v24, 0.0  ;;  %v10609_v39 = vmul.f32 %v17230_v0, %v9878_v26  ;;  %v10159_v34 = vsel %vm10155_vm12, %v10141_v30, 0.0 }
0x1b6d   : > { %v9879_v16 = vsel %vm9875_vm11, %v9862_v6, 0.0  ;;  %v10008_v25 = vadd.f32 %v10007_v31, %v10006_v42  ;;  %v10315_v59 = vsel %vm10311_vm13, %v10297_v27, 0.0  ;;  %v10471_v24 = vsel %vm10467_vm14, %v10453_v58, 0.0 }
0x1b6e   : > { %v9991_v19 = vmul.f32 %v17104_v49, %v9879_v16  ;;  %v10142_v12 = vmul.f32 %v17180_v33, %v9879_v16  ;;  %v10298_v42 = vmul.f32 %v17212_v13, %v9879_v16  ;;  %v10454_v8 = vmul.f32 %v17154_v20, %v9879_v16 }
0x1b6f   : > { %v9819_v15 = vpop.permute.xlu1 %9818  ;;  %v10314_v51 = vadd.f32 %v10313_v28, %v10312_v44  ;;  %v10470_v0 = vadd.f32 %v10469_v3, %v10468_v32  ;;  %v10610_v49 = vmul.f32 %v17233_v55, %v9879_v16  ;;  %v10626_v30 = vadd.f32 %v10625_v37, %v10624_v11 }
0x1b70   : > { %v10009_v61 = vsel %vm3174_vm3, %v9991_v19, 0.0  ;;  %v9863_v18 = vsel %vm9858_vm10, 0.0, %v9819_v15  ;;  %v10160_v27 = vadd.f32 %v10159_v34, %v10158_v5  ;;  %v10627_v31 = vsel %vm10623_vm15, %v10609_v39, 0.0 }
0x1b71   : > { %v10010_v26 = vadd.f32 %v10009_v61, %v10008_v25  ;;  %v9880_v58 = vsel %vm9875_vm11, %v9863_v18, 0.0  ;;  %v10316_v6 = vadd.f32 %v10315_v59, %v10314_v51  ;;  %v10472_v33 = vadd.f32 %v10471_v24, %v10470_v0 }
0x1b72   : > { %v9992_v13 = vmul.f32 %v17114_v40, %v9880_v58  ;;  %v10161_v20 = vsel %vm10155_vm12, %v10142_v12, 0.0  ;;  %v10317_v15 = vsel %vm10311_vm13, %v10298_v42, 0.0  ;;  %v10473_v44 = vsel %vm10467_vm14, %v10454_v8, 0.0 }
0x1b73   : > { %v9821_v1 = vpop.permute.xlu1 %9820  ;;  %v10629_v55 = vsel %vm10623_vm15, %v10610_v49, 0.0  ;;  %v10143_v11 = vmul.f32 %v17184_v14, %v9880_v58  ;;  %v10299_v40 = vmul.f32 %v17132_v41, %v9880_v58  ;;  %v10455_v5 = vmul.f32 %v17158_v45, %v9880_v58 }
0x1b74   : > { %v9864_v32 = vsel %vm9858_vm10, 0.0, %v9821_v1  ;;  %v10011_v16 = vsel %vm3174_vm3, %v9992_v13, 0.0  ;;  %v10611_v37 = vmul.f32 %v17237_v50, %v9880_v58  ;;  %v10628_v39 = vadd.f32 %v10627_v31, %v10626_v30 }
0x1b75   : > { %v9881_v28 = vsel %vm9875_vm11, %v9864_v32, 0.0  ;;  %v10012_v25 = vadd.f32 %v10011_v16, %v10010_v26  ;;  %v10162_v59 = vadd.f32 %v10161_v20, %v10160_v27  ;;  %v10318_v24 = vadd.f32 %v10317_v15, %v10316_v6 }
0x1b76   : > { %v9993_v19 = vmul.f32 %v17118_v46, %v9881_v28  ;;  %v10144_v34 = vmul.f32 %v17090_v36, %v9881_v28  ;;  %v10474_v12 = vadd.f32 %v10473_v44, %v10472_v33  ;;  %v10300_v14 = vmul.f32 %v17216_v2, %v9881_v28 }
0x1b77   : > { %v9823_v3 = vpop.permute.xlu1 %9822  ;;  %v10630_v61 = vadd.f32 %v10629_v55, %v10628_v39  ;;  %v10163_v42 = vsel %vm10155_vm12, %v10143_v11, 0.0  ;;  %v10319_v50 = vsel %vm10311_vm13, %v10299_v40, 0.0  ;;  %v10475_v18 = vsel %vm10467_vm14, %v10455_v5, 0.0 }
0x1b78   : > { %v10013_v8 = vsel %vm3174_vm3, %v9993_v19, 0.0  ;;  %v9865_v41 = vsel %vm9858_vm10, 0.0, %v9823_v3  ;;  %v10631_v46 = vsel %vm10623_vm15, %v10611_v37, 0.0  ;;  %v10165_v51 = vsel %vm10155_vm12, %v10144_v34, 0.0 }
0x1b79   : > { %v10014_v36 = vadd.f32 %v10013_v8, %v10012_v25  ;;  %v10456_v0 = vmul.f32 %v17162_v62, %v9881_v28  ;;  %v10612_v2 = vmul.f32 %v17170_v4, %v9881_v28  ;;  %v9882_v26 = vsel %vm9875_vm11, %v9865_v41, 0.0 }
0x1b7a   : > { %v10164_v49 = vadd.f32 %v10163_v42, %v10162_v59  ;;  %v10321_v1 = vsel %vm10311_vm13, %v10300_v14, 0.0  ;;  %v9994_v30 = vmul.f32 %v17124_v56, %v9882_v26  ;;  %v10145_v27 = vmul.f32 %v17188_v17, %v9882_v26 }
0x1b7b   : > { %v9825_v45 = vpop.permute.xlu1 %9824  ;;  %v10320_v58 = vadd.f32 %v10319_v50, %v10318_v24  ;;  %v10476_v6 = vadd.f32 %v10475_v18, %v10474_v12  ;;  %v10301_v33 = vmul.f32 %v17137_v7, %v9882_v26  ;;  %v10632_v20 = vadd.f32 %v10631_v46, %v10630_v61 }
0x1b7c   : > { %v9866_v31 = vsel %vm9858_vm10, 0.0, %v9825_v45  ;;  %v10166_v62 = vadd.f32 %v10165_v51, %v10164_v49  ;;  %v10015_v4 = vsel %vm3174_vm3, %v9994_v30, 0.0  ;;  %v10477_v32 = vsel %vm10467_vm14, %v10456_v0, 0.0 }
0x1b7d   : > { %v9883_v15 = vsel %vm9875_vm11, %v9866_v31, 0.0  ;;  %v10322_v44 = vadd.f32 %v10321_v1, %v10320_v58  ;;  %v10633_v56 = vsel %vm10623_vm15, %v10612_v2, 0.0  ;;  %v10016_v55 = vadd.f32 %v10015_v4, %v10014_v36 }
0x1b7e   : > { %v10167_v17 = vsel %vm10155_vm12, %v10145_v27, 0.0  ;;  %v10457_v16 = vmul.f32 %v17240_v43, %v9882_v26  ;;  %v10613_v7 = vmul.f32 %v17247_v63, %v9882_v26  ;;  %v9995_v11 = vmul.f32 %v17128_v35, %v9883_v15 }
0x1b7f   : > { %v9827_v13 = vpop.permute.xlu1 %9826  ;;  %v10323_v28 = vsel %vm10311_vm13, %v10301_v33, 0.0  ;;  %v10146_v3 = vmul.f32 %v17094_v23, %v9883_v15  ;;  %v10302_v25 = vmul.f32 %v17166_v48, %v9883_v15  ;;  %v10458_v40 = vmul.f32 %v17174_v47, %v9883_v15 }
0x1b80   : > { %v10478_v37 = vadd.f32 %v10477_v32, %v10476_v6  ;;  %v10017_v39 = vsel %vm3174_vm3, %v9995_v11, 0.0  ;;  %v10614_v19 = vmul.f32 %v17182_v53, %v9883_v15  ;;  %v9867_v43 = vsel %vm9858_vm10, 0.0, %v9827_v13  ;;  %v17774_v11 = vld [vmem:[#allocation138_spill] sm:$0xff] }
0x1b81   : > { %v10634_v34 = vadd.f32 %v10633_v56, %v10632_v20  ;;  %v10168_v63 = vadd.f32 %v10167_v17, %v10166_v62  ;;  %v10018_v59 = vadd.f32 %v10017_v39, %v10016_v55  ;;  %v10324_v24 = vadd.f32 %v10323_v28, %v10322_v44  ;;  %v17772_v44 = vld [vmem:[#allocation154_spill] sm:$0xff]  ;;  %v17773_v56 = vld [vmem:[#allocation135_spill] sm:$0xff] }
0x1b82   : > { %v10479_v23 = vsel %vm10467_vm14, %v10457_v16, 0.0  ;;  %v10635_v48 = vsel %vm10623_vm15, %v10613_v7, 0.0  ;;  %v9884_v47 = vsel %vm9875_vm11, %v9867_v43, 0.0  ;;  %v10169_v12 = vsel %vm10155_vm12, %v10146_v3, 0.0 }
0x1b83   : > { %v9829_v5 = vpop.permute.xlu1 %9828  ;;  %v10325_v14 = vsel %vm10311_vm13, %v10302_v25, 0.0  ;;  %v10481_v53 = vsel %vm10467_vm14, %v10458_v40, 0.0  ;;  %v9996_v61 = vmul.f32 %v17134_v10, %v9884_v47  ;;  %v10637_v8 = vsel %vm10623_vm15, %v10614_v19, 0.0  ;;  %v17776_v19 = vld [vmem:[#allocation141_spill] sm:$0xff] }
0x1b84   : > { %v9868_v35 = vsel %vm9858_vm10, 0.0, %v9829_v5  ;;  %v10147_v41 = vmul.f32 %v17192_v21, %v9884_v47  ;;  %v10303_v45 = vmul.f32 %v17244_v29, %v9884_v47  ;;  %v10459_v46 = vmul.f32 %v17251_v52, %v9884_v47 }
0x1b85   : > { %v9885_v50 = vsel %vm9875_vm11, %v9868_v35, 0.0  ;;  %v10019_v18 = vsel %vm3174_vm3, %v9996_v61, 0.0  ;;  %v10615_v36 = vmul.f32 %v17260_v9, %v9884_v47  ;;  %v10480_v0 = vadd.f32 %v10479_v23, %v10478_v37  ;;  %v17777_v35 = vld [vmem:[#allocation145_spill] sm:$0xff] }
0x1b86   : > { %v9997_v51 = vmul.f32 %v17139_v60, %v9885_v50  ;;  %v10636_v2 = vadd.f32 %v10635_v48, %v10634_v34  ;;  %v10020_v10 = vadd.f32 %v10019_v18, %v10018_v59  ;;  %v10170_v49 = vadd.f32 %v10169_v12, %v10168_v63  ;;  %v17778_v12 = vld [vmem:[#allocation142_spill] sm:$0xff] }
0x1b87   : > { %v9831_v42 = vpop.permute.xlu1 %9830  ;;  %v10326_v1 = vadd.f32 %v10325_v14, %v10324_v24  ;;  %v10148_v29 = vmul.f32 %v17098_v54, %v9885_v50  ;;  %v10482_v27 = vadd.f32 %v10481_v53, %v10480_v0  ;;  %v10171_v52 = vsel %vm10155_vm12, %v10147_v41, 0.0  ;;  %v17779_v53 = vld [vmem:[#allocation144_spill] sm:$0xff]  ;;  %v17780_v18 = vld [vmem:[#allocation158_spill] sm:$0xff] }
0x1b88   : > { %v9869_v26 = vsel %vm9858_vm10, 0.0, %v9831_v42  ;;  %v10021_v21 = vsel %vm3174_vm3, %v9997_v51, 0.0  ;;  %v10638_v58 = vadd.f32 %v10637_v8, %v10636_v2  ;;  %v10327_v9 = vsel %vm10311_vm13, %v10303_v45, 0.0 }
0x1b89   : > { %v10022_v6 = vadd.f32 %v10021_v21, %v10020_v10  ;;  %v10483_v60 = vsel %vm10467_vm14, %v10459_v46, 0.0  ;;  %v10639_v33 = vsel %vm10623_vm15, %v10615_v36, 0.0  ;;  %v9886_v31 = vsel %vm9875_vm11, %v9869_v26, 0.0  ;;  %v17781_v10 = vld [vmem:[#allocation147_spill] sm:$0xff] }
0x1b8a   : > { %v10304_v13 = vmul.f32 %v17178_v57, %v9885_v50  ;;  %v10460_v20 = vmul.f32 %v17186_v38, %v9885_v50  ;;  %v9998_v54 = vmul.f32 %v17145_v22, %v9886_v31  ;;  %v10172_v4 = vadd.f32 %v10171_v52, %v10170_v49  ;;  %v17775_v57 = vld [vmem:[#allocation139_spill] sm:$0xff] }
0x1b8b   : > { %v9833_v30 = vpop.permute.xlu1 %9832  ;;  %v10173_v15 = vsel %vm10155_vm12, %v10148_v29, 0.0  ;;  %v10616_v32 = vmul.f32 %v17772_v44, %v9885_v50  ;;  %v10149_v55 = vmul.f32 %v17773_v56, %v9886_v31  ;;  %v10328_v16 = vadd.f32 %v10327_v9, %v10326_v1  ;;  %v17784_v9 = vld [vmem:[#allocation149_spill] sm:$0xff] }
0x1b8c   : > { %v9870_v62 = vsel %vm9858_vm10, 0.0, %v9833_v30  ;;  %v10023_v7 = vsel %vm3174_vm3, %v9998_v54, 0.0  ;;  %v10305_v28 = vmul.f32 %v17774_v11, %v9886_v31  ;;  %v10461_v3 = vmul.f32 %v17775_v57, %v9886_v31  ;;  %v17782_v30 = vld [vmem:[#allocation150_spill] sm:$0xff]  ;;  %v17788_v11 = vld [vmem:[#allocation155_spill] sm:$0xff]  ;;  %v17789_v57 = vld [vmem:[#allocation156_spill] sm:$0xff] }
0x1b8d   : > { %v10484_v38 = vadd.f32 %v10483_v60, %v10482_v27  ;;  %v10640_v25 = vadd.f32 %v10639_v33, %v10638_v58  ;;  %v10024_v22 = vadd.f32 %v10023_v7, %v10022_v6  ;;  %v9887_v40 = vsel %vm9875_vm11, %v9870_v62, 0.0  ;;  %v17783_v58 = vld [vmem:[#allocation137_spill] sm:$0xff] }
0x1b8e   : > { %v10174_v5 = vadd.f32 %v10173_v15, %v10172_v4  ;;  %v10329_v37 = vsel %vm10311_vm13, %v10304_v13, 0.0  ;;  %v10485_v39 = vsel %vm10467_vm14, %v10460_v20, 0.0  ;;  %v9999_v43 = vmul.f32 %v17776_v19, %v9887_v40  ;;  %v17785_v20 = vld [vmem:[#allocation159_spill] sm:$0xff] }
0x1b8f   : > { %v9835_v17 = vpop.permute.xlu1 %9834  ;;  %v10641_v34 = vsel %vm10623_vm15, %v10616_v32, 0.0  ;;  %v10175_v63 = vsel %vm10155_vm12, %v10149_v55, 0.0  ;;  %v10331_v59 = vsel %vm10311_vm13, %v10305_v28, 0.0  ;;  %v10617_v24 = vmul.f32 %v17777_v35, %v9886_v31  ;;  %v17786_v55 = vld [vmem:[#allocation143_spill] sm:$0xff] }
0x1b90   : > { %v10487_v48 = vsel %vm10467_vm14, %v10461_v3, 0.0  ;;  %v10025_v47 = vsel %vm3174_vm3, %v9999_v43, 0.0  ;;  %v10150_v14 = vmul.f32 %v17778_v12, %v9887_v40  ;;  %v10306_v61 = vmul.f32 %v17779_v53, %v9887_v40  ;;  %v17790_v35 = vld [vmem:[#allocation151_spill] sm:$0xff] }
0x1b91   : > { %v10330_v42 = vadd.f32 %v10329_v37, %v10328_v16  ;;  %v10486_v8 = vadd.f32 %v10485_v39, %v10484_v38  ;;  %v10026_v41 = vadd.f32 %v10025_v47, %v10024_v22  ;;  %v9871_v45 = vsel %vm9858_vm10, 0.0, %v9835_v17  ;;  %v17787_v16 = vld [vmem:[#allocation152_spill] sm:$0xff] }
0x1b92   : > { %v17416_v50 = vadd.f32 %v10641_v34, %v10640_v25  ;;  %v10462_v46 = vmul.f32 %v17780_v18, %v9887_v40  ;;  %v9888_v36 = vsel %vm9875_vm11, %v9871_v45, 0.0  ;;  %v10176_v51 = vadd.f32 %v10175_v63, %v10174_v5  ;;  %v17792_v47 = vld [vmem:[#allocation160_spill] sm:$0xff] }
0x1b93   : > { %v9837_v23 = vpop.permute.xlu1 %9836  ;;  %v10332_v0 = vadd.f32 %v10331_v59, %v10330_v42  ;;  %v10488_v2 = vadd.f32 %v10487_v48, %v10486_v8  ;;  %v10000_v26 = vmul.f32 %v17781_v10, %v9888_v36  ;;  %v17422_v1 = vsel %vm10623_vm15, %v10617_v24, 0.0 }
0x1b94   : > { %v10177_v21 = vsel %vm10155_vm12, %v10150_v14, 0.0  ;;  %v10333_v29 = vsel %vm10311_vm13, %v10306_v61, 0.0  ;;  %v10151_v27 = vmul.f32 %v17782_v30, %v9888_v36  ;;  %v10618_v52 = vmul.f32 %v17783_v58, %v9887_v40  ;;  %v17793_v14 = vld [vmem:[#allocation162_spill] sm:$0xff]  ;;  %v17796_v30 = vld [vmem:[#allocation140_spill] sm:$0xff]  ;;  %v17797_v58 = vld [vmem:[#allocation157_spill] sm:$0xff] }
0x1b95   : > { %v10027_v6 = vsel %vm3174_vm3, %v10000_v26, 0.0  ;;  %v10307_v60 = vmul.f32 %v17784_v9, %v9888_v36  ;;  %v9872_v33 = vsel %vm9858_vm10, 0.0, %v9837_v23  ;;  %v10489_v31 = vsel %vm10467_vm14, %v10462_v46, 0.0  ;;  %v17791_v23 = vld [vmem:[#allocation146_spill] sm:$0xff] }
0x1b96   : > { %v10028_v13 = vadd.f32 %v10027_v6, %v10026_v41  ;;  %v10463_v54 = vmul.f32 %v17785_v20, %v9888_v36  ;;  %v10178_v4 = vadd.f32 %v10177_v21, %v10176_v51  ;;  %v10334_v15 = vadd.f32 %v10333_v29, %v10332_v0  ;;  %v17794_v0 = vld [vmem:[#allocation161_spill] sm:$0xff]  ;;  %v17798_v6 = vld [vmem:[#allocation163_spill] sm:$0xff]  ;;  %v17799_v20 = vld [vmem:[#allocation136_spill] sm:$0xff] }
0x1b97   : > { %v9839_v49 = vpop.permute.xlu1 %9838  ;;  %v10179_v44 = vsel %vm10155_vm12, %v10151_v27, 0.0  ;;  %v9889_v32 = vsel %vm9875_vm11, %v9872_v33, 0.0  ;;  %v10490_v38 = vadd.f32 %v10489_v31, %v10488_v2  ;;  %v10645_v25 = vsel %vm10623_vm15, %v10618_v52, 0.0 }
0x1b98   : > { %v9873_v62 = vsel %vm9858_vm10, 0.0, %v9839_v49  ;;  %v10001_v17 = vmul.f32 %v17786_v55, %v9889_v32  ;;  %v10152_v7 = vmul.f32 %v17787_v16, %v9889_v32  ;;  %v10308_v28 = vmul.f32 %v17788_v11, %v9889_v32  ;;  %v17795_v49 = vld [vmem:[#allocation153_spill] sm:$0xff] }
0x1b99   : > { %v10464_v3 = vmul.f32 %v17789_v57, %v9889_v32  ;;  %v10335_v22 = vsel %vm10311_vm13, %v10307_v60, 0.0  ;;  %v9890_v40 = vsel %vm9875_vm11, %v9873_v62, 0.0  ;;  %v10491_v5 = vsel %vm10467_vm14, %v10463_v54, 0.0 }
0x1b9a   : > { %v10029_v37 = vsel %vm3174_vm3, %v10001_v17, 0.0  ;;  %v10181_v39 = vsel %vm10155_vm12, %v10152_v7, 0.0  ;;  %v10180_v43 = vadd.f32 %v10179_v44, %v10178_v4  ;;  %v10337_v63 = vsel %vm10311_vm13, %v10308_v28, 0.0 }
0x1b9b   : > { %v9841_v56 = vpop.permute.xlu0 %9840  ;;  %v10030_v34 = vadd.f32 %v10029_v37, %v10028_v13  ;;  %v10493_v59 = vsel %vm10467_vm14, %v10464_v3, 0.0  ;;  %v10002_v24 = vmul.f32 %v17790_v35, %v9890_v40  ;;  %v10153_v48 = vmul.f32 %v17791_v23, %v9890_v40 }
0x1b9c   : > { %v9874_v19 = vsel %vm9858_vm10, 0.0, %v9841_v56  ;;  %v10309_v12 = vmul.f32 %v17792_v47, %v9890_v40  ;;  %v10465_v53 = vmul.f32 %v17793_v14, %v9890_v40  ;;  %v10336_v61 = vadd.f32 %v10335_v22, %v10334_v15 }
0x1b9d   : > { %v10492_v42 = vadd.f32 %v10491_v5, %v10490_v38  ;;  %v10182_v8 = vadd.f32 %v10181_v39, %v10180_v43  ;;  %v9891_v41 = vsel %vm9875_vm11, %v9874_v19, 0.0  ;;  %v10031_v45 = vsel %vm3174_vm3, %v10002_v24, 0.0 }
0x1b9e   : > { %v10183_v18 = vsel %vm10155_vm12, %v10153_v48, 0.0  ;;  %v10339_v46 = vsel %vm10311_vm13, %v10309_v12, 0.0  ;;  %v10495_v51 = vsel %vm10467_vm14, %v10465_v53, 0.0  ;;  %v10619_v2 = vmul.f32 %v17794_v0, %v9888_v36 }
0x1b9f   : > { %v10338_v10 = vadd.f32 %v10337_v63, %v10336_v61  ;;  %v10494_v26 = vadd.f32 %v10493_v59, %v10492_v42  ;;  %v10003_v21 = vmul.f32 %v17795_v49, %v9891_v41  ;;  %v10184_v29 = vadd.f32 %v10183_v18, %v10182_v8 }
0x1ba0   : > { %v10154_v27 = vmul.f32 %v17796_v30, %v9891_v41  ;;  %v10310_v52 = vmul.f32 %v17797_v58, %v9891_v41  ;;  %v10466_v9 = vmul.f32 %v17798_v6, %v9891_v41  ;;  %v10032_v31 = vadd.f32 %v10031_v45, %v10030_v34 }
0x1ba1   : > { %v10340_v60 = vadd.f32 %v10339_v46, %v10338_v10  ;;  %v10496_v33 = vadd.f32 %v10495_v51, %v10494_v26  ;;  %v10033_v13 = vsel %vm3174_vm3, %v10003_v21, 0.0  ;;  %v10620_v54 = vmul.f32 %v17799_v20, %v9889_v32 }
0x1ba2   : > { %v10185_v36 = vsel %vm10155_vm12, %v10154_v27, 0.0  ;;  %v10341_v62 = vsel %vm10311_vm13, %v10310_v52, 0.0  ;;  %v10497_v4 = vsel %vm10467_vm14, %v10466_v9, 0.0  ;;  %v10034_v55 = vadd.f32 %v10033_v13, %v10032_v31 }
0x1ba3   : > { %v10186_v15 = vadd.f32 %v10185_v36, %v10184_v29  ;;  %v10342_v44 = vadd.f32 %v10341_v62, %v10340_v60  ;;  %v10498_v56 = vadd.f32 %v10497_v4, %v10496_v33  ;;  %v10644_v17 = vadd.f32 %v17422_v1, %v17416_v50  ;;  %v17800_v33 = vld [vmem:[#allocation148_spill] sm:$0xff] }
0x1ba4   : > { %v10647_v57 = vsel %vm10623_vm15, %v10619_v2, 0.0  ;;  %v10649_v3 = vsel %vm10623_vm15, %v10620_v54, 0.0  ;;  %v10035_v0 = vrot.slane %v10034_v55, 4 }
0x1ba5   : > { %v10187_v16 = vrot.slane %v10186_v15, 4  ;;  %v10343_v7 = vrot.slane %v10342_v44, 4  ;;  %v10499_v11 = vrot.slane %v10498_v56, 4  ;;  %v10646_v32 = vadd.f32 %v10645_v25, %v10644_v17 }
0x1ba6   : > { %v10036_v2 = vadd.f32 %v10035_v0, %v10034_v55 }
0x1ba7   : > { %v10500_v38 = vadd.f32 %v10499_v11, %v10498_v56  ;;  %v10188_v22 = vadd.f32 %v10187_v16, %v10186_v15  ;;  %v10344_v5 = vadd.f32 %v10343_v7, %v10342_v44  ;;  %v10648_v39 = vadd.f32 %v10647_v57, %v10646_v32 }
0x1ba8   : > { %v10605_v28 = vpop.permute.xlu1 %10604  ;;  %v10037_v10 = vrot.slane %v10036_v2, 2 }
0x1ba9   : > { %v10622_v37 = vmul.f32 %v10605_v28, %v9891_v41  ;;  %v10501_v34 = vrot.slane %v10500_v38, 2  ;;  %v10189_v63 = vrot.slane %v10188_v22, 2  ;;  %v10345_v59 = vrot.slane %v10344_v5, 2 }
0x1baa   : > { %v10650_v50 = vadd.f32 %v10649_v3, %v10648_v39  ;;  %v10038_v26 = vadd.f32 %v10037_v10, %v10036_v2 }
0x1bab   : > { %v10502_v35 = vadd.f32 %v10501_v34, %v10500_v38  ;;  %v10190_v24 = vadd.f32 %v10189_v63, %v10188_v22  ;;  %v10346_v23 = vadd.f32 %v10345_v59, %v10344_v5  ;;  %v10653_v25 = vsel %vm10623_vm15, %v10622_v37, 0.0 }
0x1bac   : > { %v10600_v19 = vpop.permute.xlu0 %10599  ;;  %v10039_v49 = vrot.slane %v10038_v26, 1 }
0x1bad   : > { %v10621_v43 = vmul.f32 %v10600_v19, %v9890_v40  ;;  %v10503_v47 = vrot.slane %v10502_v35, 1  ;;  %v10191_v12 = vrot.slane %v10190_v24, 1  ;;  %v10347_v42 = vrot.slane %v10346_v23, 1 }
0x1bae   : > { %v10040_v29 = vadd.f32 %v10039_v49, %v10038_v26 }
0x1baf   : > { %v10651_v1 = vsel %vm10623_vm15, %v10621_v43, 0.0  ;;  %v10504_v53 = vadd.f32 %v10503_v47, %v10502_v35  ;;  %v10192_v61 = vadd.f32 %v10191_v12, %v10190_v24  ;;  %v10348_v41 = vadd.f32 %v10347_v42, %v10346_v23 }
0x1bb0   : > { %v10652_v48 = vadd.f32 %v10651_v1, %v10650_v50  ;;  %v10670_v58 = vpop.permute.xlu0 %10669 }
0x1bb1   : > { %10506 = vrot.lane.b32.xlu0 %v10504_v53, %s15221_s7  ;;  %10194 = vrot.lane.b32.xlu1 %v10192_v61, %s15222_s28  ;;  %s2066_s7 = sand.u32 1, %s15110_s17   ;;  %s12093_s28 = sshll.u32 %s15520_s11, 4  ;;  %v10675_v31 = vrot.slane %v10670_v58, %v17800_v33 }
0x1bb2   : > { %v10654_v14 = vadd.f32 %v10653_v25, %v10652_v48  ;;  %s17478_s2 = scalar_lea.hbm %s15497_s4, %s12093_s28  ;;  %s10680_s3 = scalar_lea.sflag [#allocation11], %s2066_s7 }
0x1bb3   : > { %s15225_s11 = smov [#allocation66]  }
0x1bb4   : > { %v10655_v8 = vrot.slane %v10654_v14, 4  ;;  %s14984_s8 = sshll.u32 %s15225_s11, 4  ;;  %s14985_s8 = int_to_ptr.vmem [resolvable:$false] %s14984_s8 }
0x1bb5   : > { %10350 = vrot.lane.b32.xlu1 %v10348_v41, %s15223_s16  ;;  %s2067_s16 = scalar_lea.vmem [#allocation66], %s2066_s7  ;;  %s14986_s9 = scalar_lea.vmem %s14985_s8, 32 }
0x1bb6   : > { %v10656_v40 = vadd.f32 %v10655_v8, %v10654_v14 }
0x1bb8   : > { %v10657_v45 = vrot.slane %v10656_v40, 2 }
0x1bba   : > { %v10658_v18 = vadd.f32 %v10657_v45, %v10656_v40 }
0x1bbc   : > { %v10659_v46 = vrot.slane %v10658_v18, 1 }
0x1bbe   : > { %v10660_v51 = vadd.f32 %v10659_v46, %v10658_v18 }
0x1bc0   : > { %10662 = vrot.lane.b32.xlu1 %v10660_v51, %s15224_s6  ;;  %s10692_s6 = sshll.u32 %s2067_s16, 4  ;;  %s17480_s6 = int_to_ptr.vmem [resolvable:$true] %s10692_s6 }
0x1bc1   : > { %s14980_s5 = scalar_lea.vmem %s17480_s6, 16  ;;  %p14987_p1 = scmp.lt.s32.totalorder %s17480_s6, %s14985_s8 }
0x1bc2   : > { %p14981_p10 = scmp.ne.s32.totalorder %s17480_s6, %s14980_s5  ;;  %p14988_p5 = scmp.lt.s32.totalorder %s14986_s9, %s14980_s5 }
0x1bc4   : > { %p14982_p13 = pnand %p14981_p10, %p17801_p12  ;;  %p14989_p6 = por %p14988_p5, %p14987_p1 }
0x1bc6   : > { %p14983_p0 = pneg %p14982_p13 }
0x1bc8   : > { %p14990_p2 = pnand %p14989_p6, %p14983_p0 }
0x1c23   : > { %v10195_v21 = vpop.permute.xlu1 %10194  ;;  %v10507_v6 = vpop.permute.xlu0 %10506 }
0x1c24   : > { %v10197_v30 = vadd.f32 %v10195_v21, %v10040_v29 }
0x1c27   : > { %v10351_v27 = vpop.permute.xlu1 %10350 }
0x1c28   : > { %v10353_v52 = vadd.f32 %v10351_v27, %v10197_v30 }
0x1c2a   : > { %v10509_v9 = vadd.f32 %v10507_v6, %v10353_v52 }
0x1c32   : > { %v10663_v60 = vpop.permute.xlu1 %10662 }
0x1c33   : > { %v10665_v13 = vadd.f32 %v10663_v60, %v10509_v9 }
0x1c35   : > { %v10676_v20 = vadd.f32 %v10675_v31, %v10665_v13 }
0x1c37   : > { %10678 = vst.msk [vmem:[%s2067_s16] sm:$0x1] %vm10677_vm0, %v10676_v20 }
0x1c38   : > { %14993 = shalt.err (!%p14990_p2)
}
0x1c39   : > { %s14994_s7 = scalar_lea.hbm %s17478_s2, 16  ;;  %s14998_s28 = scalar_lea.hbm %s15497_s4, 32 }
0x1c3a   : > { %p14995_p3 = scmp.ne.s32.totalorder %s17478_s2, %s14994_s7  ;;  %p14999_p8 = scmp.lt.u32.totalorder %s17478_s2, %s15497_s4 }
0x1c3b   : > { %p15000_p11 = scmp.lt.u32.totalorder %s14998_s28, %s14994_s7  ;;  %p15002_p10 = scmp.lt.u32.totalorder %s14994_s7, %s17478_s2 }
0x1c3c   : > { %p14996_p4 = pnand %p14995_p3, %p17801_p12 }
0x1c3d   : > { %p15001_p9 = por %p15000_p11, %p14999_p8 }
0x1c3e   : > { %p14997_p7 = pneg %p14996_p4 }
0x1c3f   : > { %p15003_p13 = por %p15002_p10, %p15001_p9 }
0x1c41   : > { %p15004_p0 = pnand %p15003_p13, %p14997_p7 }
0x1c43   : > { %15007 = shalt.err (!%p15004_p0)
}
0x1c44   : > { %12849 = dma.vmem_to_hbm [thread:$0]  (%p17801_p12), %s17480_s6, 16, %s17478_s2, %s10680_s3  }
0x1c45 PF: > { %p12929_p1 = scmp.ge.s32.totalorder %s15118_s10, 2  ;;  %s10704_s9 = sand.u32 1, %s15106_s0  }
0x1c46   : > { %p17802_p5 = scmp.ne.s32.totalorder %s17651_s1, 0  ;;  %s10705_s5 = scalar_lea.sflag [#allocation11], %s10704_s9 }
0x1c48   : > { %p12852_p6 = pnand %p12929_p1, %p17802_p5 }
0x1c4a   : > { %15101 = dma.done.wait (!%p12852_p6), %s10705_s5, 16  }
0x1c4b   : > { %15103 = vsyncadd (!%p12852_p6), %s10705_s5, 4294967280  ;;  %s17803_s10 = sld [smem:[#allocation133_spill]]  ;;  %s17804_s8 = sld [smem:[#allocation132_spill]] }
0x1c4c   : > { %s17805_s7 = sld [smem:[#allocation134_spill]]  ;;  %s17806_s0 = smov %s15110_s17 }
0x1c51   : > { %p138_p2 = scmp.ge.s32.totalorder %s17803_s10, 4   ;;  %s17807_s17 = smov %s17804_s8 }
0x1c53   :  { %140 = sbr.rel (!%p138_p2) target bundleno = 130 (0x82), region = 531 }
0x1c5a   :  { %10709 = vsyncpa [#allocation10], 1 }
0x1c5b   :  { %10711 = vsyncpa [#allocation10 + $0x1], 1 }
0x1c5c   :  { %10712 = vsyncpa [#allocation13], 1 }
0x1c5d   :  { %10713 = vsyncpa [#allocation16], 1 }
0x1c5e   :  { %10714 = vsyncpa [#allocation19], 1 }
0x1c5f   :  { %10715 = vsyncpa [#allocation22], 1 }
0x1c60   :  { %10716 = vsyncpa [#allocation25], 1 }
0x1c61   :  { %10717 = vsyncpa [#allocation28], 1 }
0x1c62   :  { %10718 = vsyncpa [#allocation31], 1 }
0x1c63   :  { %10719 = vsyncpa [#allocation34], 1 }
0x1c64   :  { %10720 = vsyncpa [#allocation37], 1 }
0x1c65   :  { %10721 = vsyncpa [#allocation40], 1 }
0x1c66   :  { %10722 = vsyncpa [#allocation43], 1 }
0x1c67   :  { %10723 = vsyncpa [#allocation46], 1 }
0x1c68   :  { %10724 = vsyncpa [#allocation49], 1 }
0x1c69   :  { %10725 = vsyncpa [#allocation52], 1 }
0x1c6a   :  { %10726 = vsyncpa [#allocation55], 1 }
0x1c6b   :  { %10727 = vsyncpa [#allocation58], 1 }
0x1c6c   :  { %10728 = vsyncpa [#allocation61], 1 }
0x1c6d   :  { %10729 = vsyncpa [#allocation64], 1 }
0x1c6e   :  { %10730 = vsyncpa [#allocation11], 1 }
0x1c6f   :  { %10732 = vsyncpa [#allocation11 + $0x1], 1 }

</bundles_post_ra>
